<compile_context>
chip_gen: v5e
topology: v5e:2x2
jax: 0.10.0
libtpu: 0.0.40
codegen_flags: <defaults>
</compile_context>

<pallas_src>
import math
from functools import partial

import jax
import jax.numpy as jnp
from jax.experimental import pallas as pl
from jax.experimental.pallas import tpu as pltpu

F32 = jnp.float32
MXU_DTYPE = jnp.bfloat16      # matmul operand dtype (f32 accumulation on the MXU)
ACT_DTYPE = jnp.bfloat16      # inter-kernel activation dtype (halves HBM traffic between kernels)

_VMEM_LIMIT = 64 * 1024 * 1024
_PARALLEL = pltpu.CompilerParams(dimension_semantics=("parallel",),
                                 vmem_limit_bytes=_VMEM_LIMIT)


def _gelu(x):
    # TODO(synk): RE2 uses exact erf-GeLU; tanh approximation used here for robust TPU lowering.
    c = math.sqrt(2.0 / math.pi)
    return 0.5 * x * (1.0 + jnp.tanh(c * (x + 0.044715 * x * x * x)))


def _mx(x):
    return x.astype(MXU_DTYPE)


# --------------------------- Encoder: fused [mask -> Conv1d -> GeLU] x enc_layers ----------------
# Emits the augmented residual concat([x, enc(x)], -1) directly from VMEM.

def _make_encoder_kernel(n_layers, K, Cin0):
    pad = (K - 1) // 2

    def kernel(x_ref, m_ref, *refs):
        o_ref = refs[-1]
        wb = refs[:-1]                          # alternating (weight, bias) per layer
        x_in = x_ref[...]                       # (TB, L, Cin0)  ACT_DTYPE
        m = m_ref[...]                          # (TB, L, 1)     f32
        TB, L, _ = x_in.shape
        h = x_in.astype(F32)
        for li in range(n_layers):              # layers fused: intermediates stay in VMEM/vregs
            w = wb[2 * li][...]                 # (K*Cin, Cout)  bf16, resident
            bias = wb[2 * li + 1][...]          # (1, Cout)      f32
            Cin = w.shape[0] // K
            Cout = w.shape[1]
            # masked_fill(~mask, 0) -> Conv1d(padding=K//2) -> GeLU  (canonical RE2 order)
            h16 = (h * m).astype(MXU_DTYPE)     # cast once, BEFORE the K-fold im2col duplication
            taps = []
            for k in range(K):
                d = k - pad                     # temporal offset of this tap
                if d == 0:
                    taps.append(h16)
                elif d > 0:
                    taps.append(jnp.concatenate(
                        [h16[:, d:, :], jnp.zeros((TB, d, Cin), h16.dtype)], axis=1))
                else:
                    taps.append(jnp.concatenate(
                        [jnp.zeros((TB, -d, Cin), h16.dtype), h16[:, :L + d, :]], axis=1))
            # TODO(synk): replace the sublane-slice shifts with pltpu.roll + boundary mask (XLU
            # slot) once rank-3 sublane rotates are verified on all target generations.
            cols = jnp.concatenate(taps, axis=2) if K > 1 else taps[0]     # (TB, L, K*Cin)
            y = jnp.dot(cols.reshape(TB * L, K * Cin), w,
                        preferred_element_type=F32) + bias                 # (TB*L, Cout) f32
            h = _gelu(y).reshape(TB, L, Cout)
        # Augmented output [x, enc] written straight from the resident tile (no XLA concat).
        o_ref[:, :, :Cin0] = x_in
        o_ref[:, :, Cin0:] = h.astype(o_ref.dtype)

    return kernel


def _rows_per_step(nseq, L, target_tokens=256):
    """Pick TB (a divisor of nseq) so TB*L is ~target_tokens MXU rows per grid step."""
    tb = max(1, min(nseq, -(-target_tokens // L)))
    while nseq % tb:
        tb -= 1
    return tb


def encoder_augment(x, mask, enc_params):
    """Fused enc_layers conv stack; returns concat([x, enc(x)], -1) as ACT_DTYPE."""
    S, L, Cin = x.shape
    K = enc_params[0]["w"].shape[0]
    Cout = enc_params[-1]["w"].shape[2]
    TB = _rows_per_step(S, L)
    kernel = _make_encoder_kernel(len(enc_params), K, Cin)

    args = [x, mask]
    in_specs = [pl.BlockSpec((TB, L, Cin), lambda i: (i, 0, 0)),
                pl.BlockSpec((TB, L, 1), lambda i: (i, 0, 0))]
    for layer in enc_params:
        k_, cin, cout = layer["w"].shape
        args.append(_mx(layer["w"].reshape(k_ * cin, cout)))       # (K*Cin, Cout) bf16
        args.append(layer["b"])                                    # (1, Cout) f32
        in_specs.append(pl.BlockSpec((k_ * cin, cout), lambda i: (0, 0)))
        in_specs.append(pl.BlockSpec((1, cout), lambda i: (0, 0)))

    return pl.pallas_call(
        kernel,
        out_shape=jax.ShapeDtypeStruct((S, L, Cin + Cout), ACT_DTYPE),
        grid=(S // TB,),
        in_specs=in_specs,
        out_specs=pl.BlockSpec((TB, L, Cin + Cout), lambda i: (i, 0, 0)),
        compiler_params=_PARALLEL,
    )(*args)


# --------------------------- Alignment + fusion fused (per batch element) ------------------------

def _align_fuse_kernel(a_ref, b_ref, ma_ref, mat_ref, mb_ref, mbt_ref,
                       wx_ref, wal_ref, w3b_ref, ball_ref, wf_ref, bf_ref,
                       oa_ref, ob_ref, *, temperature):
    a16 = a_ref[0].astype(MXU_DTYPE)       # (La, D) — cast hoisted, reused by all matmuls
    b16 = b_ref[0].astype(MXU_DTYPE)       # (Lb, D)
    ma, mat = ma_ref[0], mat_ref[0]        # (La, 1), (1, La)
    mb, mbt = mb_ref[0], mbt_ref[0]        # (Lb, 1), (1, Lb)
    neg = jnp.asarray(-1e7, F32)

    def attend(q16, k16, rowmask, colmask):
        # (Lq, Lk) scores; softmax over the lane axis (row-wise) only.
        s = jax.lax.dot_general(q16, k16, (((1,), (1,)), ((), ())),
                                preferred_element_type=F32) * temperature
        s = jnp.where((rowmask > 0.0) & (colmask > 0.0), s, neg)
        e = jnp.exp(s - jnp.max(s, axis=1, keepdims=True))
        return e * pl.reciprocal(jnp.sum(e, axis=1, keepdims=True), approx=True)

    # softmax over b positions per a row  -> align feature for a
    p_ab = attend(a16, b16, ma, mbt)                                        # (La, Lb)
    feat_a = jnp.dot(p_ab.astype(MXU_DTYPE), b16, preferred_element_type=F32)  # (La, D) f32
    # softmax over a positions per b row, computed in the transposed orientation so the feature
    # matmul is a plain A@B (no XLU transpose of the (La, Lb) tile on the feat_b path).
    p_ba = attend(b16, a16, mb, mat)                                        # (Lb, La)
    feat_b = jnp.dot(p_ba.astype(MXU_DTYPE), a16, preferred_element_type=F32)  # (Lb, D) f32

    def fuse(x16, al):
        # Algebraically-fused FullFusion: h1|h2|h3 = gelu(x@Wx + [al@Wal | (x*al)@W3b] + b)
        x32 = x16.astype(F32)
        xw = jnp.dot(x16, wx_ref[...], preferred_element_type=F32)                    # (L, 3H)
        alw = jnp.dot(al.astype(MXU_DTYPE), wal_ref[...], preferred_element_type=F32) # (L, 2H)
        pw = jnp.dot((x32 * al).astype(MXU_DTYPE), w3b_ref[...],
                     preferred_element_type=F32)                                      # (L, H)
        h = _gelu(xw + jnp.concatenate([alw, pw], axis=1) + ball_ref[...])            # (L, 3H)
        return _gelu(jnp.dot(h.astype(MXU_DTYPE), wf_ref[...],
                             preferred_element_type=F32) + bf_ref[...])               # (L, H)

    oa_ref[0] = fuse(a16, feat_a).astype(oa_ref.dtype)
    ob_ref[0] = fuse(b16, feat_b).astype(ob_ref.dtype)


def align_fuse(a, b, mask_a, mask_a_t, mask_b, mask_b_t, fp, temperature):
    B, La, D = a.shape
    Lb = b.shape[1]
    H = fp["bf"].shape[1]
    w1, w2, w3 = fp["w1"], fp["w2"], fp["w3"]
    # Host-side weight glue (tiny):
    #   h1 = gelu(x@W1a + al@W1b + b1)
    #   h2 = gelu(x@W2a + (x-al)@W2b + b2) = gelu(x@(W2a+W2b) - al@W2b + b2)
    #   h3 = gelu(x@W3a + (x*al)@W3b + b3)
    wx = _mx(jnp.concatenate([w1[:D], w2[:D] + w2[D:2 * D], w3[:D]], axis=1))   # (D, 3H)
    wal = _mx(jnp.concatenate([w1[D:2 * D], -w2[D:2 * D]], axis=1))             # (D, 2H)
    w3b = _mx(w3[D:2 * D])                                                      # (D, H)
    ball = jnp.concatenate([fp["b1"], fp["b2"], fp["b3"]], axis=1)              # (1, 3H)
    wf = _mx(fp["wf"])                                                          # (3H, H)

    kern = partial(_align_fuse_kernel, temperature=float(temperature))
    # TODO(synk): for long sequences tile over La/Lb (flash-style) to fit v7x's 64 MiB VMEM.
    return pl.pallas_call(
        kern,
        out_shape=(jax.ShapeDtypeStruct((B, La, H), ACT_DTYPE),
                   jax.ShapeDtypeStruct((B, Lb, H), ACT_DTYPE)),
        grid=(B,),
        in_specs=[
            pl.BlockSpec((1, La, D), lambda i: (i, 0, 0)),
            pl.BlockSpec((1, Lb, D), lambda i: (i, 0, 0)),
            pl.BlockSpec((1, La, 1), lambda i: (i, 0, 0)),
            pl.BlockSpec((1, 1, La), lambda i: (i, 0, 0)),
            pl.BlockSpec((1, Lb, 1), lambda i: (i, 0, 0)),
            pl.BlockSpec((1, 1, Lb), lambda i: (i, 0, 0)),
            pl.BlockSpec((D, 3 * H), lambda i: (0, 0)),
            pl.BlockSpec((D, 2 * H), lambda i: (0, 0)),
            pl.BlockSpec((D, H), lambda i: (0, 0)),
            pl.BlockSpec((1, 3 * H), lambda i: (0, 0)),
            pl.BlockSpec((3 * H, H), lambda i: (0, 0)),
            pl.BlockSpec((1, H), lambda i: (0, 0)),
        ],
        out_specs=(pl.BlockSpec((1, La, H), lambda i: (i, 0, 0)),
                   pl.BlockSpec((1, Lb, H), lambda i: (i, 0, 0))),
        compiler_params=_PARALLEL,
    )(a, b, mask_a, mask_a_t, mask_b, mask_b_t, wx, wal, w3b, ball, wf, fp["bf"])


# --------------------------- Masked max pooling + prediction head (fused) ------------------------

def _pool_predict_kernel(a_ref, b_ref, ma_ref, mb_ref, w1_ref, b1_ref, w2_ref, b2_ref, o_ref):
    neg = jnp.asarray(-1e30, F32)
    a = jnp.where(ma_ref[...] > 0.0, a_ref[...].astype(F32), neg)
    b = jnp.where(mb_ref[...] > 0.0, b_ref[...].astype(F32), neg)
    pa = jnp.max(a, axis=1)                                       # (B, H) masked max pool
    pb = jnp.max(b, axis=1)
    feats = jnp.concatenate([pa, pb, pa - pb, pa * pb], axis=1)   # (B, 4H) -> one wide dot
    h = _gelu(jnp.dot(feats.astype(MXU_DTYPE), w1_ref[...],
                      preferred_element_type=F32) + b1_ref[...])
    logits = jnp.dot(h.astype(MXU_DTYPE), w2_ref[...],
                     preferred_element_type=F32) + b2_ref[...]
    o_ref[...] = logits.astype(o_ref.dtype)


def pool_predict(a, b, mask_a, mask_b, pp):
    B = a.shape[0]
    n_classes = pp["b2"].shape[1]
    return pl.pallas_call(
        _pool_predict_kernel,
        out_shape=jax.ShapeDtypeStruct((B, n_classes), F32),
        compiler_params=pltpu.CompilerParams(vmem_limit_bytes=_VMEM_LIMIT),
    )(a, b, mask_a, mask_b, _mx(pp["w1"]), pp["b1"], _mx(pp["w2"]), pp["b2"])


# --------------------------- Connection (augmented residual, JAX glue) ---------------------------

def augmented_residual(x, res, i):
    if i == 1:
        return jnp.concatenate([x, res], axis=-1)
    hs = x.shape[-1]
    x = (res[..., :hs] + x) * math.sqrt(0.5)
    return jnp.concatenate([x, res[..., hs:]], axis=-1)


# --------------------------- RE2 forward ---------------------------

def re2_forward(params, q1_ids, q2_ids, hidden_size):
    mask1 = (q1_ids != 0).astype(F32)[..., None]     # (B, L1, 1)
    mask2 = (q2_ids != 0).astype(F32)[..., None]     # (B, L2, 1)
    mask1_t = jnp.transpose(mask1, (0, 2, 1))        # (B, 1, L1)
    mask2_t = jnp.transpose(mask2, (0, 2, 1))        # (B, 1, L2)
    a = params["emb"][q1_ids].astype(ACT_DTYPE)      # embedding lookup (glue)
    b = params["emb"][q2_ids].astype(ACT_DTYPE)
    same_shape = (q1_ids.shape == q2_ids.shape)      # static; enables a/b pair stacking
    if same_shape:
        mask_ab = jnp.concatenate([mask1, mask2], axis=0)
    res_a, res_b = a, b
    temperature = 1.0 / math.sqrt(hidden_size)
    B = q1_ids.shape[0]
    for i, blk in enumerate(params["blocks"]):
        if i > 0:
            a = augmented_residual(a, res_a, i)
            b = augmented_residual(b, res_b, i)
            res_a, res_b = a, b
        if same_shape:   # batch a/b through the shared-weight encoder (2x MXU M, half launches)
            x = encoder_augment(jnp.concatenate([a, b], axis=0), mask_ab, blk["enc"])
            a, b = x[:B], x[B:]
        else:
            a = encoder_augment(a, mask1, blk["enc"])
            b = encoder_augment(b, mask2, blk["enc"])
        a, b = align_fuse(a, b, mask1, mask1_t, mask2, mask2_t, blk["fus"], temperature)
    logits = pool_predict(a, b, mask1, mask2, params["pred"])
    probs = jax.nn.softmax(logits, axis=-1)
    pred = jnp.argmax(probs, axis=-1)
    # TODO(synk): CrossEntropyLoss branch (labels is not None) not implemented.
    return logits, pred


# --------------------------- Deterministic parameter init ---------------------------

def init_params(key, vocab, embed_dim, hidden, ksize, n_blocks, enc_layers, n_classes):
    kit = iter(jax.random.split(key, 64))

    def nrm(shape, scale=0.1):
        return (scale * jax.random.normal(next(kit), shape)).astype(F32)

    def zeros(shape):
        return jnp.zeros(shape, F32)

    params = {"emb": nrm((vocab, embed_dim), 0.5), "blocks": []}
    for i in range(n_blocks):
        enc_in = embed_dim if i == 0 else embed_dim + hidden
        enc, cin = [], enc_in
        for _ in range(enc_layers):
            enc.append({"w": nrm((ksize, cin, hidden)), "b": zeros((1, hidden))})
            cin = hidden
        fin = embed_dim + hidden if i == 0 else embed_dim + 2 * hidden
        fus = {"w1": nrm((2 * fin, hidden)), "b1": zeros((1, hidden)),
               "w2": nrm((2 * fin, hidden)), "b2": zeros((1, hidden)),
               "w3": nrm((2 * fin, hidden)), "b3": zeros((1, hidden)),
               "wf": nrm((3 * hidden, hidden)), "bf": zeros((1, hidden))}
        params["blocks"].append({"enc": enc, "fus": fus})
    params["pred"] = {"w1": nrm((4 * hidden, hidden)), "b1": zeros((1, hidden)),
                      "w2": nrm((hidden, n_classes)), "b2": zeros((1, n_classes))}
    return params


if __name__ == "__main__":
    # Lane-friendly demo sizes: E = H = 128 so every feature dim (E, H, E+H, E+2H, 3H, 4H)
    # is a multiple of 128 (unmasked vst, full vregs) — per the performance review.
    VOCAB, E, H, K = 32, 128, 128, 3
    N_BLOCKS, ENC_LAYERS, N_CLASSES = 2, 2, 2
    B, L = 2, 16

    root = jax.random.PRNGKey(0)
    kp, k1, k2 = jax.random.split(root, 3)
    params = init_params(kp, VOCAB, E, H, K, N_BLOCKS, ENC_LAYERS, N_CLASSES)

    q1 = jax.random.randint(k1, (B, L), 1, VOCAB, dtype=jnp.int32)
    q2 = jax.random.randint(k2, (B, L), 1, VOCAB, dtype=jnp.int32)
    q1 = q1.at[:, L - 3:].set(0)     # trailing padding tokens (id 0)
    q2 = q2.at[0, L - 5:].set(0)

    fwd = jax.jit(partial(re2_forward, hidden_size=H))
    logits, pred = fwd(params, q1, q2)
    jax.block_until_ready((logits, pred))
    print("KERNEL_OK")
</pallas_src>

<mosaic_0001>
module attributes {stable_mosaic.version = 11 : i64} {
  func.func @kernel(%arg0: i32, %arg1: memref<4x16x128xbf16, #tpu.memory_space<vmem>>, %arg2: memref<4x16x1xf32, #tpu.memory_space<vmem>>, %arg3: memref<384x128xbf16, #tpu.memory_space<vmem>>, %arg4: memref<1x128xf32, #tpu.memory_space<vmem>>, %arg5: memref<384x128xbf16, #tpu.memory_space<vmem>>, %arg6: memref<1x128xf32, #tpu.memory_space<vmem>>, %arg7: memref<4x16x256xbf16, #tpu.memory_space<vmem>>) attributes {dimension_semantics = [#tpu.dimension_semantics<parallel>], iteration_bounds = array<i64: 1>, scalar_prefetch = 0 : i64, scratch_operands = 0 : i64, tpu.core_type = #tpu.core_type<tc>, window_params = [{transform_indices = @transform_0, window_bounds = array<i64: 4, 16, 128>}, {transform_indices = @transform_1, window_bounds = array<i64: 4, 16, 1>}, {pipeline_mode = #tpu.pipeline_mode<synchronous>, transform_indices = @transform_2, window_bounds = array<i64: 384, 128>}, {pipeline_mode = #tpu.pipeline_mode<synchronous>, transform_indices = @transform_3, window_bounds = array<i64: 1, 128>}, {pipeline_mode = #tpu.pipeline_mode<synchronous>, transform_indices = @transform_4, window_bounds = array<i64: 384, 128>}, {pipeline_mode = #tpu.pipeline_mode<synchronous>, transform_indices = @transform_5, window_bounds = array<i64: 1, 128>}, {transform_indices = @transform_6, window_bounds = array<i64: 4, 16, 256>}]} {
    %c0 = arith.constant 0 : index
    %c0_0 = arith.constant 0 : index
    %c0_1 = arith.constant 0 : index
    %0 = vector.load %arg1[%c0, %c0_0, %c0_1] : memref<4x16x128xbf16, #tpu.memory_space<vmem>>, vector<4x16x128xbf16>
    %c0_2 = arith.constant 0 : index
    %c0_3 = arith.constant 0 : index
    %c0_4 = arith.constant 0 : index
    %1 = vector.load %arg2[%c0_2, %c0_3, %c0_4] : memref<4x16x1xf32, #tpu.memory_space<vmem>>, vector<4x16x1xf32>
    %2 = arith.extf %0 : vector<4x16x128xbf16> to vector<4x16x128xf32>
    %c0_5 = arith.constant 0 : index
    %c0_6 = arith.constant 0 : index
    %3 = vector.load %arg3[%c0_5, %c0_6] : memref<384x128xbf16, #tpu.memory_space<vmem>>, vector<384x128xbf16>
    %c0_7 = arith.constant 0 : index
    %c0_8 = arith.constant 0 : index
    %4 = vector.load %arg4[%c0_7, %c0_8] : memref<1x128xf32, #tpu.memory_space<vmem>>, vector<1x128xf32>
    %5 = vector.broadcast %1 : vector<4x16x1xf32> to vector<4x16x128xf32>
    %6 = arith.mulf %2, %5 : vector<4x16x128xf32>
    %7 = arith.truncf %6 : vector<4x16x128xf32> to vector<4x16x128xbf16>
    %cst = arith.constant 0.000000e+00 : bf16
    %8 = vector.broadcast %cst : bf16 to vector<4x1x128xbf16>
    %9 = vector.extract_strided_slice %7 {offsets = [0, 0, 0], sizes = [4, 15, 128], strides = [1, 1, 1]} : vector<4x16x128xbf16> to vector<4x15x128xbf16>
    %10 = tpu.concatenate %8, %9 in 1 : vector<4x1x128xbf16>, vector<4x15x128xbf16> -> vector<4x16x128xbf16>
    %11 = vector.extract_strided_slice %7 {offsets = [0, 1, 0], sizes = [4, 15, 128], strides = [1, 1, 1]} : vector<4x16x128xbf16> to vector<4x15x128xbf16>
    %cst_9 = arith.constant 0.000000e+00 : bf16
    %12 = vector.broadcast %cst_9 : bf16 to vector<4x1x128xbf16>
    %13 = tpu.concatenate %11, %12 in 1 : vector<4x15x128xbf16>, vector<4x1x128xbf16> -> vector<4x16x128xbf16>
    %14 = tpu.concatenate %10, %7, %13 in 2 : vector<4x16x128xbf16>, vector<4x16x128xbf16>, vector<4x16x128xbf16> -> vector<4x16x384xbf16>
    %15 = vector.shape_cast %14 : vector<4x16x384xbf16> to vector<64x384xbf16>
    %cst_10 = arith.constant dense<0.000000e+00> : vector<64x128xf32>
    %16 = tpu.matmul %15, %3, %cst_10 {dimension_numbers = #tpu.dot_dimension_numbers<[1], [0], [0], [1], [0, 0, 1, 1], [], []>} : vector<64x384xbf16>, vector<384x128xbf16>, vector<64x128xf32> -> vector<64x128xf32>
    %17 = vector.broadcast %4 : vector<1x128xf32> to vector<64x128xf32>
    %18 = arith.addf %16, %17 : vector<64x128xf32>
    %cst_11 = arith.constant 5.000000e-01 : f32
    %19 = vector.broadcast %cst_11 : f32 to vector<64x128xf32>
    %20 = arith.mulf %19, %18 : vector<64x128xf32>
    %cst_12 = arith.constant 4.471500e-02 : f32
    %21 = vector.broadcast %cst_12 : f32 to vector<64x128xf32>
    %22 = arith.mulf %21, %18 : vector<64x128xf32>
    %23 = arith.mulf %22, %18 : vector<64x128xf32>
    %24 = arith.mulf %23, %18 : vector<64x128xf32>
    %25 = arith.addf %18, %24 : vector<64x128xf32>
    %cst_13 = arith.constant 0.797884583 : f32
    %26 = vector.broadcast %cst_13 : f32 to vector<64x128xf32>
    %27 = arith.mulf %26, %25 : vector<64x128xf32>
    %28 = math.tanh %27 : vector<64x128xf32>
    %cst_14 = arith.constant 1.000000e+00 : f32
    %29 = vector.broadcast %cst_14 : f32 to vector<64x128xf32>
    %30 = arith.addf %29, %28 : vector<64x128xf32>
    %31 = arith.mulf %20, %30 : vector<64x128xf32>
    %32 = vector.shape_cast %31 : vector<64x128xf32> to vector<4x16x128xf32>
    %c0_15 = arith.constant 0 : index
    %c0_16 = arith.constant 0 : index
    %33 = vector.load %arg5[%c0_15, %c0_16] : memref<384x128xbf16, #tpu.memory_space<vmem>>, vector<384x128xbf16>
    %c0_17 = arith.constant 0 : index
    %c0_18 = arith.constant 0 : index
    %34 = vector.load %arg6[%c0_17, %c0_18] : memref<1x128xf32, #tpu.memory_space<vmem>>, vector<1x128xf32>
    %35 = vector.broadcast %1 : vector<4x16x1xf32> to vector<4x16x128xf32>
    %36 = arith.mulf %32, %35 : vector<4x16x128xf32>
    %37 = arith.truncf %36 : vector<4x16x128xf32> to vector<4x16x128xbf16>
    %cst_19 = arith.constant 0.000000e+00 : bf16
    %38 = vector.broadcast %cst_19 : bf16 to vector<4x1x128xbf16>
    %39 = vector.extract_strided_slice %37 {offsets = [0, 0, 0], sizes = [4, 15, 128], strides = [1, 1, 1]} : vector<4x16x128xbf16> to vector<4x15x128xbf16>
    %40 = tpu.concatenate %38, %39 in 1 : vector<4x1x128xbf16>, vector<4x15x128xbf16> -> vector<4x16x128xbf16>
    %41 = vector.extract_strided_slice %37 {offsets = [0, 1, 0], sizes = [4, 15, 128], strides = [1, 1, 1]} : vector<4x16x128xbf16> to vector<4x15x128xbf16>
    %cst_20 = arith.constant 0.000000e+00 : bf16
    %42 = vector.broadcast %cst_20 : bf16 to vector<4x1x128xbf16>
    %43 = tpu.concatenate %41, %42 in 1 : vector<4x15x128xbf16>, vector<4x1x128xbf16> -> vector<4x16x128xbf16>
    %44 = tpu.concatenate %40, %37, %43 in 2 : vector<4x16x128xbf16>, vector<4x16x128xbf16>, vector<4x16x128xbf16> -> vector<4x16x384xbf16>
    %45 = vector.shape_cast %44 : vector<4x16x384xbf16> to vector<64x384xbf16>
    %cst_21 = arith.constant dense<0.000000e+00> : vector<64x128xf32>
    %46 = tpu.matmul %45, %33, %cst_21 {dimension_numbers = #tpu.dot_dimension_numbers<[1], [0], [0], [1], [0, 0, 1, 1], [], []>} : vector<64x384xbf16>, vector<384x128xbf16>, vector<64x128xf32> -> vector<64x128xf32>
    %47 = vector.broadcast %34 : vector<1x128xf32> to vector<64x128xf32>
    %48 = arith.addf %46, %47 : vector<64x128xf32>
    %cst_22 = arith.constant 5.000000e-01 : f32
    %49 = vector.broadcast %cst_22 : f32 to vector<64x128xf32>
    %50 = arith.mulf %49, %48 : vector<64x128xf32>
    %cst_23 = arith.constant 4.471500e-02 : f32
    %51 = vector.broadcast %cst_23 : f32 to vector<64x128xf32>
    %52 = arith.mulf %51, %48 : vector<64x128xf32>
    %53 = arith.mulf %52, %48 : vector<64x128xf32>
    %54 = arith.mulf %53, %48 : vector<64x128xf32>
    %55 = arith.addf %48, %54 : vector<64x128xf32>
    %cst_24 = arith.constant 0.797884583 : f32
    %56 = vector.broadcast %cst_24 : f32 to vector<64x128xf32>
    %57 = arith.mulf %56, %55 : vector<64x128xf32>
    %58 = math.tanh %57 : vector<64x128xf32>
    %cst_25 = arith.constant 1.000000e+00 : f32
    %59 = vector.broadcast %cst_25 : f32 to vector<64x128xf32>
    %60 = arith.addf %59, %58 : vector<64x128xf32>
    %61 = arith.mulf %50, %60 : vector<64x128xf32>
    %62 = vector.shape_cast %61 : vector<64x128xf32> to vector<4x16x128xf32>
    %c0_26 = arith.constant 0 : index
    %c0_27 = arith.constant 0 : index
    %c0_28 = arith.constant 0 : index
    %63 = vector.load %arg7[%c0_26, %c0_27, %c0_28] : memref<4x16x256xbf16, #tpu.memory_space<vmem>>, vector<4x16x128xbf16>
    tpu.vector_store %arg7[%c0_26, %c0_27, %c0_28], %0 {strides = array<i32>} : memref<4x16x256xbf16, #tpu.memory_space<vmem>>, vector<4x16x128xbf16>,
    %64 = arith.truncf %62 : vector<4x16x128xf32> to vector<4x16x128xbf16>
    %c0_29 = arith.constant 0 : index
    %c0_30 = arith.constant 0 : index
    %c128 = arith.constant 128 : index
    %65 = vector.load %arg7[%c0_29, %c0_30, %c128] : memref<4x16x256xbf16, #tpu.memory_space<vmem>>, vector<4x16x128xbf16>
    tpu.vector_store %arg7[%c0_29, %c0_30, %c128], %64 {strides = array<i32>} : memref<4x16x256xbf16, #tpu.memory_space<vmem>>, vector<4x16x128xbf16>,
    return
  }
  func.func @transform_0(%arg0: i32) -> (i32, i32, i32) {
    %c0_i32 = arith.constant 0 : i32
    %c0_i32_0 = arith.constant 0 : i32
    %c0_i32_1 = arith.constant 0 : i32
    return %arg0, %c0_i32, %c0_i32_0 : i32, i32, i32
  }
  func.func @transform_1(%arg0: i32) -> (i32, i32, i32) {
    %c0_i32 = arith.constant 0 : i32
    %c0_i32_0 = arith.constant 0 : i32
    %c0_i32_1 = arith.constant 0 : i32
    return %arg0, %c0_i32, %c0_i32_0 : i32, i32, i32
  }
  func.func @transform_2(%arg0: i32) -> (i32, i32) {
    %c0_i32 = arith.constant 0 : i32
    %c0_i32_0 = arith.constant 0 : i32
    %c0_i32_1 = arith.constant 0 : i32
    return %c0_i32, %c0_i32_0 : i32, i32
  }
  func.func @transform_3(%arg0: i32) -> (i32, i32) {
    %c0_i32 = arith.constant 0 : i32
    %c0_i32_0 = arith.constant 0 : i32
    %c0_i32_1 = arith.constant 0 : i32
    return %c0_i32, %c0_i32_0 : i32, i32
  }
  func.func @transform_4(%arg0: i32) -> (i32, i32) {
    %c0_i32 = arith.constant 0 : i32
    %c0_i32_0 = arith.constant 0 : i32
    %c0_i32_1 = arith.constant 0 : i32
    return %c0_i32, %c0_i32_0 : i32, i32
  }
  func.func @transform_5(%arg0: i32) -> (i32, i32) {
    %c0_i32 = arith.constant 0 : i32
    %c0_i32_0 = arith.constant 0 : i32
    %c0_i32_1 = arith.constant 0 : i32
    return %c0_i32, %c0_i32_0 : i32, i32
  }
  func.func @transform_6(%arg0: i32) -> (i32, i32, i32) {
    %c0_i32 = arith.constant 0 : i32
    %c0_i32_0 = arith.constant 0 : i32
    %c0_i32_1 = arith.constant 0 : i32
    return %arg0, %c0_i32, %c0_i32_0 : i32, i32, i32
  }
}

module attributes {stable_mosaic.version = 11 : i64} {
  func.func @kernel(%arg0: i32, %arg1: memref<4x16x256xbf16, #tpu.memory_space<vmem>>, %arg2: memref<4x16x1xf32, #tpu.memory_space<vmem>>, %arg3: memref<768x128xbf16, #tpu.memory_space<vmem>>, %arg4: memref<1x128xf32, #tpu.memory_space<vmem>>, %arg5: memref<384x128xbf16, #tpu.memory_space<vmem>>, %arg6: memref<1x128xf32, #tpu.memory_space<vmem>>, %arg7: memref<4x16x384xbf16, #tpu.memory_space<vmem>>) attributes {dimension_semantics = [#tpu.dimension_semantics<parallel>], iteration_bounds = array<i64: 1>, scalar_prefetch = 0 : i64, scratch_operands = 0 : i64, tpu.core_type = #tpu.core_type<tc>, window_params = [{transform_indices = @transform_0, window_bounds = array<i64: 4, 16, 256>}, {transform_indices = @transform_1, window_bounds = array<i64: 4, 16, 1>}, {pipeline_mode = #tpu.pipeline_mode<synchronous>, transform_indices = @transform_2, window_bounds = array<i64: 768, 128>}, {pipeline_mode = #tpu.pipeline_mode<synchronous>, transform_indices = @transform_3, window_bounds = array<i64: 1, 128>}, {pipeline_mode = #tpu.pipeline_mode<synchronous>, transform_indices = @transform_4, window_bounds = array<i64: 384, 128>}, {pipeline_mode = #tpu.pipeline_mode<synchronous>, transform_indices = @transform_5, window_bounds = array<i64: 1, 128>}, {transform_indices = @transform_6, window_bounds = array<i64: 4, 16, 384>}]} {
    %c0 = arith.constant 0 : index
    %c0_0 = arith.constant 0 : index
    %c0_1 = arith.constant 0 : index
    %0 = vector.load %arg1[%c0, %c0_0, %c0_1] : memref<4x16x256xbf16, #tpu.memory_space<vmem>>, vector<4x16x256xbf16>
    %c0_2 = arith.constant 0 : index
    %c0_3 = arith.constant 0 : index
    %c0_4 = arith.constant 0 : index
    %1 = vector.load %arg2[%c0_2, %c0_3, %c0_4] : memref<4x16x1xf32, #tpu.memory_space<vmem>>, vector<4x16x1xf32>
    %2 = arith.extf %0 : vector<4x16x256xbf16> to vector<4x16x256xf32>
    %c0_5 = arith.constant 0 : index
    %c0_6 = arith.constant 0 : index
    %3 = vector.load %arg3[%c0_5, %c0_6] : memref<768x128xbf16, #tpu.memory_space<vmem>>, vector<768x128xbf16>
    %c0_7 = arith.constant 0 : index
    %c0_8 = arith.constant 0 : index
    %4 = vector.load %arg4[%c0_7, %c0_8] : memref<1x128xf32, #tpu.memory_space<vmem>>, vector<1x128xf32>
    %5 = vector.broadcast %1 : vector<4x16x1xf32> to vector<4x16x256xf32>
    %6 = arith.mulf %2, %5 : vector<4x16x256xf32>
    %7 = arith.truncf %6 : vector<4x16x256xf32> to vector<4x16x256xbf16>
    %cst = arith.constant 0.000000e+00 : bf16
    %8 = vector.broadcast %cst : bf16 to vector<4x1x256xbf16>
    %9 = vector.extract_strided_slice %7 {offsets = [0, 0, 0], sizes = [4, 15, 256], strides = [1, 1, 1]} : vector<4x16x256xbf16> to vector<4x15x256xbf16>
    %10 = tpu.concatenate %8, %9 in 1 : vector<4x1x256xbf16>, vector<4x15x256xbf16> -> vector<4x16x256xbf16>
    %11 = vector.extract_strided_slice %7 {offsets = [0, 1, 0], sizes = [4, 15, 256], strides = [1, 1, 1]} : vector<4x16x256xbf16> to vector<4x15x256xbf16>
    %cst_9 = arith.constant 0.000000e+00 : bf16
    %12 = vector.broadcast %cst_9 : bf16 to vector<4x1x256xbf16>
    %13 = tpu.concatenate %11, %12 in 1 : vector<4x15x256xbf16>, vector<4x1x256xbf16> -> vector<4x16x256xbf16>
    %14 = tpu.concatenate %10, %7, %13 in 2 : vector<4x16x256xbf16>, vector<4x16x256xbf16>, vector<4x16x256xbf16> -> vector<4x16x768xbf16>
    %15 = vector.shape_cast %14 : vector<4x16x768xbf16> to vector<64x768xbf16>
    %cst_10 = arith.constant dense<0.000000e+00> : vector<64x128xf32>
    %16 = tpu.matmul %15, %3, %cst_10 {dimension_numbers = #tpu.dot_dimension_numbers<[1], [0], [0], [1], [0, 0, 1, 1], [], []>} : vector<64x768xbf16>, vector<768x128xbf16>, vector<64x128xf32> -> vector<64x128xf32>
    %17 = vector.broadcast %4 : vector<1x128xf32> to vector<64x128xf32>
    %18 = arith.addf %16, %17 : vector<64x128xf32>
    %cst_11 = arith.constant 5.000000e-01 : f32
    %19 = vector.broadcast %cst_11 : f32 to vector<64x128xf32>
    %20 = arith.mulf %19, %18 : vector<64x128xf32>
    %cst_12 = arith.constant 4.471500e-02 : f32
    %21 = vector.broadcast %cst_12 : f32 to vector<64x128xf32>
    %22 = arith.mulf %21, %18 : vector<64x128xf32>
    %23 = arith.mulf %22, %18 : vector<64x128xf32>
    %24 = arith.mulf %23, %18 : vector<64x128xf32>
    %25 = arith.addf %18, %24 : vector<64x128xf32>
    %cst_13 = arith.constant 0.797884583 : f32
    %26 = vector.broadcast %cst_13 : f32 to vector<64x128xf32>
    %27 = arith.mulf %26, %25 : vector<64x128xf32>
    %28 = math.tanh %27 : vector<64x128xf32>
    %cst_14 = arith.constant 1.000000e+00 : f32
    %29 = vector.broadcast %cst_14 : f32 to vector<64x128xf32>
    %30 = arith.addf %29, %28 : vector<64x128xf32>
    %31 = arith.mulf %20, %30 : vector<64x128xf32>
    %32 = vector.shape_cast %31 : vector<64x128xf32> to vector<4x16x128xf32>
    %c0_15 = arith.constant 0 : index
    %c0_16 = arith.constant 0 : index
    %33 = vector.load %arg5[%c0_15, %c0_16] : memref<384x128xbf16, #tpu.memory_space<vmem>>, vector<384x128xbf16>
    %c0_17 = arith.constant 0 : index
    %c0_18 = arith.constant 0 : index
    %34 = vector.load %arg6[%c0_17, %c0_18] : memref<1x128xf32, #tpu.memory_space<vmem>>, vector<1x128xf32>
    %35 = vector.broadcast %1 : vector<4x16x1xf32> to vector<4x16x128xf32>
    %36 = arith.mulf %32, %35 : vector<4x16x128xf32>
    %37 = arith.truncf %36 : vector<4x16x128xf32> to vector<4x16x128xbf16>
    %cst_19 = arith.constant 0.000000e+00 : bf16
    %38 = vector.broadcast %cst_19 : bf16 to vector<4x1x128xbf16>
    %39 = vector.extract_strided_slice %37 {offsets = [0, 0, 0], sizes = [4, 15, 128], strides = [1, 1, 1]} : vector<4x16x128xbf16> to vector<4x15x128xbf16>
    %40 = tpu.concatenate %38, %39 in 1 : vector<4x1x128xbf16>, vector<4x15x128xbf16> -> vector<4x16x128xbf16>
    %41 = vector.extract_strided_slice %37 {offsets = [0, 1, 0], sizes = [4, 15, 128], strides = [1, 1, 1]} : vector<4x16x128xbf16> to vector<4x15x128xbf16>
    %cst_20 = arith.constant 0.000000e+00 : bf16
    %42 = vector.broadcast %cst_20 : bf16 to vector<4x1x128xbf16>
    %43 = tpu.concatenate %41, %42 in 1 : vector<4x15x128xbf16>, vector<4x1x128xbf16> -> vector<4x16x128xbf16>
    %44 = tpu.concatenate %40, %37, %43 in 2 : vector<4x16x128xbf16>, vector<4x16x128xbf16>, vector<4x16x128xbf16> -> vector<4x16x384xbf16>
    %45 = vector.shape_cast %44 : vector<4x16x384xbf16> to vector<64x384xbf16>
    %cst_21 = arith.constant dense<0.000000e+00> : vector<64x128xf32>
    %46 = tpu.matmul %45, %33, %cst_21 {dimension_numbers = #tpu.dot_dimension_numbers<[1], [0], [0], [1], [0, 0, 1, 1], [], []>} : vector<64x384xbf16>, vector<384x128xbf16>, vector<64x128xf32> -> vector<64x128xf32>
    %47 = vector.broadcast %34 : vector<1x128xf32> to vector<64x128xf32>
    %48 = arith.addf %46, %47 : vector<64x128xf32>
    %cst_22 = arith.constant 5.000000e-01 : f32
    %49 = vector.broadcast %cst_22 : f32 to vector<64x128xf32>
    %50 = arith.mulf %49, %48 : vector<64x128xf32>
    %cst_23 = arith.constant 4.471500e-02 : f32
    %51 = vector.broadcast %cst_23 : f32 to vector<64x128xf32>
    %52 = arith.mulf %51, %48 : vector<64x128xf32>
    %53 = arith.mulf %52, %48 : vector<64x128xf32>
    %54 = arith.mulf %53, %48 : vector<64x128xf32>
    %55 = arith.addf %48, %54 : vector<64x128xf32>
    %cst_24 = arith.constant 0.797884583 : f32
    %56 = vector.broadcast %cst_24 : f32 to vector<64x128xf32>
    %57 = arith.mulf %56, %55 : vector<64x128xf32>
    %58 = math.tanh %57 : vector<64x128xf32>
    %cst_25 = arith.constant 1.000000e+00 : f32
    %59 = vector.broadcast %cst_25 : f32 to vector<64x128xf32>
    %60 = arith.addf %59, %58 : vector<64x128xf32>
    %61 = arith.mulf %50, %60 : vector<64x128xf32>
    %62 = vector.shape_cast %61 : vector<64x128xf32> to vector<4x16x128xf32>
    %c0_26 = arith.constant 0 : index
    %c0_27 = arith.constant 0 : index
    %c0_28 = arith.constant 0 : index
    %63 = vector.load %arg7[%c0_26, %c0_27, %c0_28] : memref<4x16x384xbf16, #tpu.memory_space<vmem>>, vector<4x16x256xbf16>
    tpu.vector_store %arg7[%c0_26, %c0_27, %c0_28], %0 {strides = array<i32>} : memref<4x16x384xbf16, #tpu.memory_space<vmem>>, vector<4x16x256xbf16>,
    %64 = arith.truncf %62 : vector<4x16x128xf32> to vector<4x16x128xbf16>
    %c0_29 = arith.constant 0 : index
    %c0_30 = arith.constant 0 : index
    %c256 = arith.constant 256 : index
    %65 = vector.load %arg7[%c0_29, %c0_30, %c256] : memref<4x16x384xbf16, #tpu.memory_space<vmem>>, vector<4x16x128xbf16>
    tpu.vector_store %arg7[%c0_29, %c0_30, %c256], %64 {strides = array<i32>} : memref<4x16x384xbf16, #tpu.memory_space<vmem>>, vector<4x16x128xbf16>,
    return
  }
  func.func @transform_0(%arg0: i32) -> (i32, i32, i32) {
    %c0_i32 = arith.constant 0 : i32
    %c0_i32_0 = arith.constant 0 : i32
    %c0_i32_1 = arith.constant 0 : i32
    return %arg0, %c0_i32, %c0_i32_0 : i32, i32, i32
  }
  func.func @transform_1(%arg0: i32) -> (i32, i32, i32) {
    %c0_i32 = arith.constant 0 : i32
    %c0_i32_0 = arith.constant 0 : i32
    %c0_i32_1 = arith.constant 0 : i32
    return %arg0, %c0_i32, %c0_i32_0 : i32, i32, i32
  }
  func.func @transform_2(%arg0: i32) -> (i32, i32) {
    %c0_i32 = arith.constant 0 : i32
    %c0_i32_0 = arith.constant 0 : i32
    %c0_i32_1 = arith.constant 0 : i32
    return %c0_i32, %c0_i32_0 : i32, i32
  }
  func.func @transform_3(%arg0: i32) -> (i32, i32) {
    %c0_i32 = arith.constant 0 : i32
    %c0_i32_0 = arith.constant 0 : i32
    %c0_i32_1 = arith.constant 0 : i32
    return %c0_i32, %c0_i32_0 : i32, i32
  }
  func.func @transform_4(%arg0: i32) -> (i32, i32) {
    %c0_i32 = arith.constant 0 : i32
    %c0_i32_0 = arith.constant 0 : i32
    %c0_i32_1 = arith.constant 0 : i32
    return %c0_i32, %c0_i32_0 : i32, i32
  }
  func.func @transform_5(%arg0: i32) -> (i32, i32) {
    %c0_i32 = arith.constant 0 : i32
    %c0_i32_0 = arith.constant 0 : i32
    %c0_i32_1 = arith.constant 0 : i32
    return %c0_i32, %c0_i32_0 : i32, i32
  }
  func.func @transform_6(%arg0: i32) -> (i32, i32, i32) {
    %c0_i32 = arith.constant 0 : i32
    %c0_i32_0 = arith.constant 0 : i32
    %c0_i32_1 = arith.constant 0 : i32
    return %arg0, %c0_i32, %c0_i32_0 : i32, i32, i32
  }
}

module attributes {stable_mosaic.version = 11 : i64} {
  func.func @_align_fuse_kernel(%arg0: i32, %arg1: memref<1x16x256xbf16, #tpu.memory_space<vmem>>, %arg2: memref<1x16x256xbf16, #tpu.memory_space<vmem>>, %arg3: memref<1x16x1xf32, #tpu.memory_space<vmem>>, %arg4: memref<1x1x16xf32, #tpu.memory_space<vmem>>, %arg5: memref<1x16x1xf32, #tpu.memory_space<vmem>>, %arg6: memref<1x1x16xf32, #tpu.memory_space<vmem>>, %arg7: memref<256x384xbf16, #tpu.memory_space<vmem>>, %arg8: memref<256x256xbf16, #tpu.memory_space<vmem>>, %arg9: memref<256x128xbf16, #tpu.memory_space<vmem>>, %arg10: memref<1x384xf32, #tpu.memory_space<vmem>>, %arg11: memref<384x128xbf16, #tpu.memory_space<vmem>>, %arg12: memref<1x128xf32, #tpu.memory_space<vmem>>, %arg13: memref<1x16x128xbf16, #tpu.memory_space<vmem>>, %arg14: memref<1x16x128xbf16, #tpu.memory_space<vmem>>) attributes {dimension_semantics = [#tpu.dimension_semantics<parallel>], iteration_bounds = array<i64: 2>, scalar_prefetch = 0 : i64, scratch_operands = 0 : i64, tpu.core_type = #tpu.core_type<tc>, window_params = [{transform_indices = @transform_0, window_bounds = array<i64: 1, 16, 256>}, {transform_indices = @transform_1, window_bounds = array<i64: 1, 16, 256>}, {transform_indices = @transform_2, window_bounds = array<i64: 1, 16, 1>}, {transform_indices = @transform_3, window_bounds = array<i64: 1, 1, 16>}, {transform_indices = @transform_4, window_bounds = array<i64: 1, 16, 1>}, {transform_indices = @transform_5, window_bounds = array<i64: 1, 1, 16>}, {pipeline_mode = #tpu.pipeline_mode<synchronous>, transform_indices = @transform_6, window_bounds = array<i64: 256, 384>}, {pipeline_mode = #tpu.pipeline_mode<synchronous>, transform_indices = @transform_7, window_bounds = array<i64: 256, 256>}, {pipeline_mode = #tpu.pipeline_mode<synchronous>, transform_indices = @transform_8, window_bounds = array<i64: 256, 128>}, {pipeline_mode = #tpu.pipeline_mode<synchronous>, transform_indices = @transform_9, window_bounds = array<i64: 1, 384>}, {pipeline_mode = #tpu.pipeline_mode<synchronous>, transform_indices = @transform_10, window_bounds = array<i64: 384, 128>}, {pipeline_mode = #tpu.pipeline_mode<synchronous>, transform_indices = @transform_11, window_bounds = array<i64: 1, 128>}, {transform_indices = @transform_12, window_bounds = array<i64: 1, 16, 128>}, {transform_indices = @transform_13, window_bounds = array<i64: 1, 16, 128>}]} {
    %c0 = arith.constant 0 : index
    %c0_0 = arith.constant 0 : index
    %c0_1 = arith.constant 0 : index
    %0 = vector.load %arg1[%c0, %c0_0, %c0_1] : memref<1x16x256xbf16, #tpu.memory_space<vmem>>, vector<1x16x256xbf16>
    %1 = vector.shape_cast %0 : vector<1x16x256xbf16> to vector<16x256xbf16>
    %c0_2 = arith.constant 0 : index
    %c0_3 = arith.constant 0 : index
    %c0_4 = arith.constant 0 : index
    %2 = vector.load %arg2[%c0_2, %c0_3, %c0_4] : memref<1x16x256xbf16, #tpu.memory_space<vmem>>, vector<1x16x256xbf16>
    %3 = vector.shape_cast %2 : vector<1x16x256xbf16> to vector<16x256xbf16>
    %c0_5 = arith.constant 0 : index
    %c0_6 = arith.constant 0 : index
    %c0_7 = arith.constant 0 : index
    %4 = vector.load %arg3[%c0_5, %c0_6, %c0_7] : memref<1x16x1xf32, #tpu.memory_space<vmem>>, vector<1x16x1xf32>
    %5 = vector.shape_cast %4 : vector<1x16x1xf32> to vector<16x1xf32>
    %c0_8 = arith.constant 0 : index
    %c0_9 = arith.constant 0 : index
    %c0_10 = arith.constant 0 : index
    %6 = vector.load %arg4[%c0_8, %c0_9, %c0_10] : memref<1x1x16xf32, #tpu.memory_space<vmem>>, vector<1x1x16xf32>
    %7 = vector.shape_cast %6 : vector<1x1x16xf32> to vector<1x16xf32>
    %c0_11 = arith.constant 0 : index
    %c0_12 = arith.constant 0 : index
    %c0_13 = arith.constant 0 : index
    %8 = vector.load %arg5[%c0_11, %c0_12, %c0_13] : memref<1x16x1xf32, #tpu.memory_space<vmem>>, vector<1x16x1xf32>
    %9 = vector.shape_cast %8 : vector<1x16x1xf32> to vector<16x1xf32>
    %c0_14 = arith.constant 0 : index
    %c0_15 = arith.constant 0 : index
    %c0_16 = arith.constant 0 : index
    %10 = vector.load %arg6[%c0_14, %c0_15, %c0_16] : memref<1x1x16xf32, #tpu.memory_space<vmem>>, vector<1x1x16xf32>
    %11 = vector.shape_cast %10 : vector<1x1x16xf32> to vector<1x16xf32>
    %cst = arith.constant dense<0.000000e+00> : vector<16x16xf32>
    %12 = tpu.matmul %1, %3, %cst {dimension_numbers = #tpu.dot_dimension_numbers<[1], [1], [0], [0], [0, 0, 1, 0], [], []>} : vector<16x256xbf16>, vector<16x256xbf16>, vector<16x16xf32> -> vector<16x16xf32>
    %cst_17 = arith.constant 0.0883883461 : f32
    %13 = vector.broadcast %cst_17 : f32 to vector<16x16xf32>
    %14 = arith.mulf %12, %13 : vector<16x16xf32>
    %cst_18 = arith.constant 0.000000e+00 : f32
    %15 = vector.broadcast %cst_18 : f32 to vector<16x1xf32>
    %16 = arith.cmpf ogt, %5, %15 : vector<16x1xf32>
    %cst_19 = arith.constant 0.000000e+00 : f32
    %17 = vector.broadcast %cst_19 : f32 to vector<1x16xf32>
    %18 = arith.cmpf ogt, %11, %17 : vector<1x16xf32>
    %19 = vector.broadcast %16 : vector<16x1xi1> to vector<16x16xi1>
    %20 = vector.broadcast %18 : vector<1x16xi1> to vector<16x16xi1>
    %21 = arith.andi %19, %20 : vector<16x16xi1>
    %cst_20 = arith.constant -1.000000e+07 : f32
    %22 = vector.broadcast %cst_20 : f32 to vector<16x16xf32>
    %23 = arith.select %21, %14, %22 : vector<16x16xi1>, vector<16x16xf32>
    %cst_21 = arith.constant dense<0xFF800000> : vector<16xf32>
    %24 = vector.multi_reduction <maximumf>, %23, %cst_21 [1] : vector<16x16xf32> to vector<16xf32>
    %25 = vector.shape_cast %24 : vector<16xf32> to vector<16x1xf32>
    %26 = vector.broadcast %25 : vector<16x1xf32> to vector<16x16xf32>
    %27 = arith.subf %23, %26 : vector<16x16xf32>
    %28 = math.exp %27 : vector<16x16xf32>
    %cst_22 = arith.constant dense<0.000000e+00> : vector<16xf32>
    %29 = vector.multi_reduction <add>, %28, %cst_22 [1] : vector<16x16xf32> to vector<16xf32>
    %30 = vector.shape_cast %29 : vector<16xf32> to vector<16x1xf32>
    %31 = tpu.reciprocal %30 {approx = true} : vector<16x1xf32> -> vector<16x1xf32>
    %32 = vector.broadcast %31 : vector<16x1xf32> to vector<16x16xf32>
    %33 = arith.mulf %28, %32 : vector<16x16xf32>
    %34 = arith.truncf %33 : vector<16x16xf32> to vector<16x16xbf16>
    %cst_23 = arith.constant dense<0.000000e+00> : vector<16x256xf32>
    %35 = tpu.matmul %34, %3, %cst_23 {dimension_numbers = #tpu.dot_dimension_numbers<[1], [0], [0], [1], [0, 0, 1, 1], [], []>} : vector<16x16xbf16>, vector<16x256xbf16>, vector<16x256xf32> -> vector<16x256xf32>
    %cst_24 = arith.constant dense<0.000000e+00> : vector<16x16xf32>
    %36 = tpu.matmul %3, %1, %cst_24 {dimension_numbers = #tpu.dot_dimension_numbers<[1], [1], [0], [0], [0, 0, 1, 0], [], []>} : vector<16x256xbf16>, vector<16x256xbf16>, vector<16x16xf32> -> vector<16x16xf32>
    %cst_25 = arith.constant 0.0883883461 : f32
    %37 = vector.broadcast %cst_25 : f32 to vector<16x16xf32>
    %38 = arith.mulf %36, %37 : vector<16x16xf32>
    %cst_26 = arith.constant 0.000000e+00 : f32
    %39 = vector.broadcast %cst_26 : f32 to vector<16x1xf32>
    %40 = arith.cmpf ogt, %9, %39 : vector<16x1xf32>
    %cst_27 = arith.constant 0.000000e+00 : f32
    %41 = vector.broadcast %cst_27 : f32 to vector<1x16xf32>
    %42 = arith.cmpf ogt, %7, %41 : vector<1x16xf32>
    %43 = vector.broadcast %40 : vector<16x1xi1> to vector<16x16xi1>
    %44 = vector.broadcast %42 : vector<1x16xi1> to vector<16x16xi1>
    %45 = arith.andi %43, %44 : vector<16x16xi1>
    %cst_28 = arith.constant -1.000000e+07 : f32
    %46 = vector.broadcast %cst_28 : f32 to vector<16x16xf32>
    %47 = arith.select %45, %38, %46 : vector<16x16xi1>, vector<16x16xf32>
    %cst_29 = arith.constant dense<0xFF800000> : vector<16xf32>
    %48 = vector.multi_reduction <maximumf>, %47, %cst_29 [1] : vector<16x16xf32> to vector<16xf32>
    %49 = vector.shape_cast %48 : vector<16xf32> to vector<16x1xf32>
    %50 = vector.broadcast %49 : vector<16x1xf32> to vector<16x16xf32>
    %51 = arith.subf %47, %50 : vector<16x16xf32>
    %52 = math.exp %51 : vector<16x16xf32>
    %cst_30 = arith.constant dense<0.000000e+00> : vector<16xf32>
    %53 = vector.multi_reduction <add>, %52, %cst_30 [1] : vector<16x16xf32> to vector<16xf32>
    %54 = vector.shape_cast %53 : vector<16xf32> to vector<16x1xf32>
    %55 = tpu.reciprocal %54 {approx = true} : vector<16x1xf32> -> vector<16x1xf32>
    %56 = vector.broadcast %55 : vector<16x1xf32> to vector<16x16xf32>
    %57 = arith.mulf %52, %56 : vector<16x16xf32>
    %58 = arith.truncf %57 : vector<16x16xf32> to vector<16x16xbf16>
    %cst_31 = arith.constant dense<0.000000e+00> : vector<16x256xf32>
    %59 = tpu.matmul %58, %1, %cst_31 {dimension_numbers = #tpu.dot_dimension_numbers<[1], [0], [0], [1], [0, 0, 1, 1], [], []>} : vector<16x16xbf16>, vector<16x256xbf16>, vector<16x256xf32> -> vector<16x256xf32>
    %60 = arith.extf %1 : vector<16x256xbf16> to vector<16x256xf32>
    %c0_32 = arith.constant 0 : index
    %c0_33 = arith.constant 0 : index
    %61 = vector.load %arg7[%c0_32, %c0_33] : memref<256x384xbf16, #tpu.memory_space<vmem>>, vector<256x384xbf16>
    %cst_34 = arith.constant dense<0.000000e+00> : vector<16x384xf32>
    %62 = tpu.matmul %1, %61, %cst_34 {dimension_numbers = #tpu.dot_dimension_numbers<[1], [0], [0], [1], [0, 0, 1, 1], [], []>} : vector<16x256xbf16>, vector<256x384xbf16>, vector<16x384xf32> -> vector<16x384xf32>
    %63 = arith.truncf %35 : vector<16x256xf32> to vector<16x256xbf16>
    %c0_35 = arith.constant 0 : index
    %c0_36 = arith.constant 0 : index
    %64 = vector.load %arg8[%c0_35, %c0_36] : memref<256x256xbf16, #tpu.memory_space<vmem>>, vector<256x256xbf16>
    %cst_37 = arith.constant dense<0.000000e+00> : vector<16x256xf32>
    %65 = tpu.matmul %63, %64, %cst_37 {dimension_numbers = #tpu.dot_dimension_numbers<[1], [0], [0], [1], [0, 0, 1, 1], [], []>} : vector<16x256xbf16>, vector<256x256xbf16>, vector<16x256xf32> -> vector<16x256xf32>
    %66 = arith.mulf %60, %35 : vector<16x256xf32>
    %67 = arith.truncf %66 : vector<16x256xf32> to vector<16x256xbf16>
    %c0_38 = arith.constant 0 : index
    %c0_39 = arith.constant 0 : index
    %68 = vector.load %arg9[%c0_38, %c0_39] : memref<256x128xbf16, #tpu.memory_space<vmem>>, vector<256x128xbf16>
    %cst_40 = arith.constant dense<0.000000e+00> : vector<16x128xf32>
    %69 = tpu.matmul %67, %68, %cst_40 {dimension_numbers = #tpu.dot_dimension_numbers<[1], [0], [0], [1], [0, 0, 1, 1], [], []>} : vector<16x256xbf16>, vector<256x128xbf16>, vector<16x128xf32> -> vector<16x128xf32>
    %70 = tpu.concatenate %65, %69 in 1 : vector<16x256xf32>, vector<16x128xf32> -> vector<16x384xf32>
    %71 = arith.addf %62, %70 : vector<16x384xf32>
    %c0_41 = arith.constant 0 : index
    %c0_42 = arith.constant 0 : index
    %72 = vector.load %arg10[%c0_41, %c0_42] : memref<1x384xf32, #tpu.memory_space<vmem>>, vector<1x384xf32>
    %73 = vector.broadcast %72 : vector<1x384xf32> to vector<16x384xf32>
    %74 = arith.addf %71, %73 : vector<16x384xf32>
    %cst_43 = arith.constant 5.000000e-01 : f32
    %75 = vector.broadcast %cst_43 : f32 to vector<16x384xf32>
    %76 = arith.mulf %75, %74 : vector<16x384xf32>
    %cst_44 = arith.constant 4.471500e-02 : f32
    %77 = vector.broadcast %cst_44 : f32 to vector<16x384xf32>
    %78 = arith.mulf %77, %74 : vector<16x384xf32>
    %79 = arith.mulf %78, %74 : vector<16x384xf32>
    %80 = arith.mulf %79, %74 : vector<16x384xf32>
    %81 = arith.addf %74, %80 : vector<16x384xf32>
    %cst_45 = arith.constant 0.797884583 : f32
    %82 = vector.broadcast %cst_45 : f32 to vector<16x384xf32>
    %83 = arith.mulf %82, %81 : vector<16x384xf32>
    %84 = math.tanh %83 : vector<16x384xf32>
    %cst_46 = arith.constant 1.000000e+00 : f32
    %85 = vector.broadcast %cst_46 : f32 to vector<16x384xf32>
    %86 = arith.addf %85, %84 : vector<16x384xf32>
    %87 = arith.mulf %76, %86 : vector<16x384xf32>
    %88 = arith.truncf %87 : vector<16x384xf32> to vector<16x384xbf16>
    %c0_47 = arith.constant 0 : index
    %c0_48 = arith.constant 0 : index
    %89 = vector.load %arg11[%c0_47, %c0_48] : memref<384x128xbf16, #tpu.memory_space<vmem>>, vector<384x128xbf16>
    %cst_49 = arith.constant dense<0.000000e+00> : vector<16x128xf32>
    %90 = tpu.matmul %88, %89, %cst_49 {dimension_numbers = #tpu.dot_dimension_numbers<[1], [0], [0], [1], [0, 0, 1, 1], [], []>} : vector<16x384xbf16>, vector<384x128xbf16>, vector<16x128xf32> -> vector<16x128xf32>
    %c0_50 = arith.constant 0 : index
    %c0_51 = arith.constant 0 : index
    %91 = vector.load %arg12[%c0_50, %c0_51] : memref<1x128xf32, #tpu.memory_space<vmem>>, vector<1x128xf32>
    %92 = vector.broadcast %91 : vector<1x128xf32> to vector<16x128xf32>
    %93 = arith.addf %90, %92 : vector<16x128xf32>
    %cst_52 = arith.constant 5.000000e-01 : f32
    %94 = vector.broadcast %cst_52 : f32 to vector<16x128xf32>
    %95 = arith.mulf %94, %93 : vector<16x128xf32>
    %cst_53 = arith.constant 4.471500e-02 : f32
    %96 = vector.broadcast %cst_53 : f32 to vector<16x128xf32>
    %97 = arith.mulf %96, %93 : vector<16x128xf32>
    %98 = arith.mulf %97, %93 : vector<16x128xf32>
    %99 = arith.mulf %98, %93 : vector<16x128xf32>
    %100 = arith.addf %93, %99 : vector<16x128xf32>
    %cst_54 = arith.constant 0.797884583 : f32
    %101 = vector.broadcast %cst_54 : f32 to vector<16x128xf32>
    %102 = arith.mulf %101, %100 : vector<16x128xf32>
    %103 = math.tanh %102 : vector<16x128xf32>
    %cst_55 = arith.constant 1.000000e+00 : f32
    %104 = vector.broadcast %cst_55 : f32 to vector<16x128xf32>
    %105 = arith.addf %104, %103 : vector<16x128xf32>
    %106 = arith.mulf %95, %105 : vector<16x128xf32>
    %107 = arith.truncf %106 : vector<16x128xf32> to vector<16x128xbf16>
    %c0_56 = arith.constant 0 : index
    %c0_57 = arith.constant 0 : index
    %c0_58 = arith.constant 0 : index
    %108 = vector.load %arg13[%c0_56, %c0_57, %c0_58] : memref<1x16x128xbf16, #tpu.memory_space<vmem>>, vector<1x16x128xbf16>
    %109 = vector.shape_cast %108 : vector<1x16x128xbf16> to vector<16x128xbf16>
    %110 = vector.shape_cast %107 : vector<16x128xbf16> to vector<1x16x128xbf16>
    tpu.vector_store %arg13[%c0_56, %c0_57, %c0_58], %110 {strides = array<i32>} : memref<1x16x128xbf16, #tpu.memory_space<vmem>>, vector<1x16x128xbf16>,
    %111 = arith.extf %3 : vector<16x256xbf16> to vector<16x256xf32>
    %c0_59 = arith.constant 0 : index
    %c0_60 = arith.constant 0 : index
    %112 = vector.load %arg7[%c0_59, %c0_60] : memref<256x384xbf16, #tpu.memory_space<vmem>>, vector<256x384xbf16>
    %cst_61 = arith.constant dense<0.000000e+00> : vector<16x384xf32>
    %113 = tpu.matmul %3, %112, %cst_61 {dimension_numbers = #tpu.dot_dimension_numbers<[1], [0], [0], [1], [0, 0, 1, 1], [], []>} : vector<16x256xbf16>, vector<256x384xbf16>, vector<16x384xf32> -> vector<16x384xf32>
    %114 = arith.truncf %59 : vector<16x256xf32> to vector<16x256xbf16>
    %c0_62 = arith.constant 0 : index
    %c0_63 = arith.constant 0 : index
    %115 = vector.load %arg8[%c0_62, %c0_63] : memref<256x256xbf16, #tpu.memory_space<vmem>>, vector<256x256xbf16>
    %cst_64 = arith.constant dense<0.000000e+00> : vector<16x256xf32>
    %116 = tpu.matmul %114, %115, %cst_64 {dimension_numbers = #tpu.dot_dimension_numbers<[1], [0], [0], [1], [0, 0, 1, 1], [], []>} : vector<16x256xbf16>, vector<256x256xbf16>, vector<16x256xf32> -> vector<16x256xf32>
    %117 = arith.mulf %111, %59 : vector<16x256xf32>
    %118 = arith.truncf %117 : vector<16x256xf32> to vector<16x256xbf16>
    %c0_65 = arith.constant 0 : index
    %c0_66 = arith.constant 0 : index
    %119 = vector.load %arg9[%c0_65, %c0_66] : memref<256x128xbf16, #tpu.memory_space<vmem>>, vector<256x128xbf16>
    %cst_67 = arith.constant dense<0.000000e+00> : vector<16x128xf32>
    %120 = tpu.matmul %118, %119, %cst_67 {dimension_numbers = #tpu.dot_dimension_numbers<[1], [0], [0], [1], [0, 0, 1, 1], [], []>} : vector<16x256xbf16>, vector<256x128xbf16>, vector<16x128xf32> -> vector<16x128xf32>
    %121 = tpu.concatenate %116, %120 in 1 : vector<16x256xf32>, vector<16x128xf32> -> vector<16x384xf32>
    %122 = arith.addf %113, %121 : vector<16x384xf32>
    %c0_68 = arith.constant 0 : index
    %c0_69 = arith.constant 0 : index
    %123 = vector.load %arg10[%c0_68, %c0_69] : memref<1x384xf32, #tpu.memory_space<vmem>>, vector<1x384xf32>
    %124 = vector.broadcast %123 : vector<1x384xf32> to vector<16x384xf32>
    %125 = arith.addf %122, %124 : vector<16x384xf32>
    %cst_70 = arith.constant 5.000000e-01 : f32
    %126 = vector.broadcast %cst_70 : f32 to vector<16x384xf32>
    %127 = arith.mulf %126, %125 : vector<16x384xf32>
    %cst_71 = arith.constant 4.471500e-02 : f32
    %128 = vector.broadcast %cst_71 : f32 to vector<16x384xf32>
    %129 = arith.mulf %128, %125 : vector<16x384xf32>
    %130 = arith.mulf %129, %125 : vector<16x384xf32>
    %131 = arith.mulf %130, %125 : vector<16x384xf32>
    %132 = arith.addf %125, %131 : vector<16x384xf32>
    %cst_72 = arith.constant 0.797884583 : f32
    %133 = vector.broadcast %cst_72 : f32 to vector<16x384xf32>
    %134 = arith.mulf %133, %132 : vector<16x384xf32>
    %135 = math.tanh %134 : vector<16x384xf32>
    %cst_73 = arith.constant 1.000000e+00 : f32
    %136 = vector.broadcast %cst_73 : f32 to vector<16x384xf32>
    %137 = arith.addf %136, %135 : vector<16x384xf32>
    %138 = arith.mulf %127, %137 : vector<16x384xf32>
    %139 = arith.truncf %138 : vector<16x384xf32> to vector<16x384xbf16>
    %c0_74 = arith.constant 0 : index
    %c0_75 = arith.constant 0 : index
    %140 = vector.load %arg11[%c0_74, %c0_75] : memref<384x128xbf16, #tpu.memory_space<vmem>>, vector<384x128xbf16>
    %cst_76 = arith.constant dense<0.000000e+00> : vector<16x128xf32>
    %141 = tpu.matmul %139, %140, %cst_76 {dimension_numbers = #tpu.dot_dimension_numbers<[1], [0], [0], [1], [0, 0, 1, 1], [], []>} : vector<16x384xbf16>, vector<384x128xbf16>, vector<16x128xf32> -> vector<16x128xf32>
    %c0_77 = arith.constant 0 : index
    %c0_78 = arith.constant 0 : index
    %142 = vector.load %arg12[%c0_77, %c0_78] : memref<1x128xf32, #tpu.memory_space<vmem>>, vector<1x128xf32>
    %143 = vector.broadcast %142 : vector<1x128xf32> to vector<16x128xf32>
    %144 = arith.addf %141, %143 : vector<16x128xf32>
    %cst_79 = arith.constant 5.000000e-01 : f32
    %145 = vector.broadcast %cst_79 : f32 to vector<16x128xf32>
    %146 = arith.mulf %145, %144 : vector<16x128xf32>
    %cst_80 = arith.constant 4.471500e-02 : f32
    %147 = vector.broadcast %cst_80 : f32 to vector<16x128xf32>
    %148 = arith.mulf %147, %144 : vector<16x128xf32>
    %149 = arith.mulf %148, %144 : vector<16x128xf32>
    %150 = arith.mulf %149, %144 : vector<16x128xf32>
    %151 = arith.addf %144, %150 : vector<16x128xf32>
    %cst_81 = arith.constant 0.797884583 : f32
    %152 = vector.broadcast %cst_81 : f32 to vector<16x128xf32>
    %153 = arith.mulf %152, %151 : vector<16x128xf32>
    %154 = math.tanh %153 : vector<16x128xf32>
    %cst_82 = arith.constant 1.000000e+00 : f32
    %155 = vector.broadcast %cst_82 : f32 to vector<16x128xf32>
    %156 = arith.addf %155, %154 : vector<16x128xf32>
    %157 = arith.mulf %146, %156 : vector<16x128xf32>
    %158 = arith.truncf %157 : vector<16x128xf32> to vector<16x128xbf16>
    %c0_83 = arith.constant 0 : index
    %c0_84 = arith.constant 0 : index
    %c0_85 = arith.constant 0 : index
    %159 = vector.load %arg14[%c0_83, %c0_84, %c0_85] : memref<1x16x128xbf16, #tpu.memory_space<vmem>>, vector<1x16x128xbf16>
    %160 = vector.shape_cast %159 : vector<1x16x128xbf16> to vector<16x128xbf16>
    %161 = vector.shape_cast %158 : vector<16x128xbf16> to vector<1x16x128xbf16>
    tpu.vector_store %arg14[%c0_83, %c0_84, %c0_85], %161 {strides = array<i32>} : memref<1x16x128xbf16, #tpu.memory_space<vmem>>, vector<1x16x128xbf16>,
    return
  }
  func.func @transform_0(%arg0: i32) -> (i32, i32, i32) {
    %c0_i32 = arith.constant 0 : i32
    %c0_i32_0 = arith.constant 0 : i32
    %c0_i32_1 = arith.constant 0 : i32
    return %arg0, %c0_i32, %c0_i32_0 : i32, i32, i32
  }
  func.func @transform_1(%arg0: i32) -> (i32, i32, i32) {
    %c0_i32 = arith.constant 0 : i32
    %c0_i32_0 = arith.constant 0 : i32
    %c0_i32_1 = arith.constant 0 : i32
    return %arg0, %c0_i32, %c0_i32_0 : i32, i32, i32
  }
  func.func @transform_2(%arg0: i32) -> (i32, i32, i32) {
    %c0_i32 = arith.constant 0 : i32
    %c0_i32_0 = arith.constant 0 : i32
    %c0_i32_1 = arith.constant 0 : i32
    return %arg0, %c0_i32, %c0_i32_0 : i32, i32, i32
  }
  func.func @transform_3(%arg0: i32) -> (i32, i32, i32) {
    %c0_i32 = arith.constant 0 : i32
    %c0_i32_0 = arith.constant 0 : i32
    %c0_i32_1 = arith.constant 0 : i32
    return %arg0, %c0_i32, %c0_i32_0 : i32, i32, i32
  }
  func.func @transform_4(%arg0: i32) -> (i32, i32, i32) {
    %c0_i32 = arith.constant 0 : i32
    %c0_i32_0 = arith.constant 0 : i32
    %c0_i32_1 = arith.constant 0 : i32
    return %arg0, %c0_i32, %c0_i32_0 : i32, i32, i32
  }
  func.func @transform_5(%arg0: i32) -> (i32, i32, i32) {
    %c0_i32 = arith.constant 0 : i32
    %c0_i32_0 = arith.constant 0 : i32
    %c0_i32_1 = arith.constant 0 : i32
    return %arg0, %c0_i32, %c0_i32_0 : i32, i32, i32
  }
  func.func @transform_6(%arg0: i32) -> (i32, i32) {
    %c0_i32 = arith.constant 0 : i32
    %c0_i32_0 = arith.constant 0 : i32
    %c0_i32_1 = arith.constant 0 : i32
    return %c0_i32, %c0_i32_0 : i32, i32
  }
  func.func @transform_7(%arg0: i32) -> (i32, i32) {
    %c0_i32 = arith.constant 0 : i32
    %c0_i32_0 = arith.constant 0 : i32
    %c0_i32_1 = arith.constant 0 : i32
    return %c0_i32, %c0_i32_0 : i32, i32
  }
  func.func @transform_8(%arg0: i32) -> (i32, i32) {
    %c0_i32 = arith.constant 0 : i32
    %c0_i32_0 = arith.constant 0 : i32
    %c0_i32_1 = arith.constant 0 : i32
    return %c0_i32, %c0_i32_0 : i32, i32
  }
  func.func @transform_9(%arg0: i32) -> (i32, i32) {
    %c0_i32 = arith.constant 0 : i32
    %c0_i32_0 = arith.constant 0 : i32
    %c0_i32_1 = arith.constant 0 : i32
    return %c0_i32, %c0_i32_0 : i32, i32
  }
  func.func @transform_10(%arg0: i32) -> (i32, i32) {
    %c0_i32 = arith.constant 0 : i32
    %c0_i32_0 = arith.constant 0 : i32
    %c0_i32_1 = arith.constant 0 : i32
    return %c0_i32, %c0_i32_0 : i32, i32
  }
  func.func @transform_11(%arg0: i32) -> (i32, i32) {
    %c0_i32 = arith.constant 0 : i32
    %c0_i32_0 = arith.constant 0 : i32
    %c0_i32_1 = arith.constant 0 : i32
    return %c0_i32, %c0_i32_0 : i32, i32
  }
  func.func @transform_12(%arg0: i32) -> (i32, i32, i32) {
    %c0_i32 = arith.constant 0 : i32
    %c0_i32_0 = arith.constant 0 : i32
    %c0_i32_1 = arith.constant 0 : i32
    return %arg0, %c0_i32, %c0_i32_0 : i32, i32, i32
  }
  func.func @transform_13(%arg0: i32) -> (i32, i32, i32) {
    %c0_i32 = arith.constant 0 : i32
    %c0_i32_0 = arith.constant 0 : i32
    %c0_i32_1 = arith.constant 0 : i32
    return %arg0, %c0_i32, %c0_i32_0 : i32, i32, i32
  }
}

module attributes {stable_mosaic.version = 11 : i64} {
  func.func @_pool_predict_kernel(%arg0: memref<2x16x128xbf16, #tpu.memory_space<vmem>>, %arg1: memref<2x16x128xbf16, #tpu.memory_space<vmem>>, %arg2: memref<2x16x1xf32, #tpu.memory_space<vmem>>, %arg3: memref<2x16x1xf32, #tpu.memory_space<vmem>>, %arg4: memref<512x128xbf16, #tpu.memory_space<vmem>>, %arg5: memref<1x128xf32, #tpu.memory_space<vmem>>, %arg6: memref<128x2xbf16, #tpu.memory_space<vmem>>, %arg7: memref<1x2xf32, #tpu.memory_space<vmem>>, %arg8: memref<2x2xf32, #tpu.memory_space<vmem>>) attributes {dimension_semantics = [], scalar_prefetch = 0 : i64, scratch_operands = 0 : i64, tpu.core_type = #tpu.core_type<tc>} {
    %c0 = arith.constant 0 : index
    %c0_0 = arith.constant 0 : index
    %c0_1 = arith.constant 0 : index
    %0 = vector.load %arg2[%c0, %c0_0, %c0_1] : memref<2x16x1xf32, #tpu.memory_space<vmem>>, vector<2x16x1xf32>
    %cst = arith.constant 0.000000e+00 : f32
    %1 = vector.broadcast %cst : f32 to vector<2x16x1xf32>
    %2 = arith.cmpf ogt, %0, %1 : vector<2x16x1xf32>
    %c0_2 = arith.constant 0 : index
    %c0_3 = arith.constant 0 : index
    %c0_4 = arith.constant 0 : index
    %3 = vector.load %arg0[%c0_2, %c0_3, %c0_4] : memref<2x16x128xbf16, #tpu.memory_space<vmem>>, vector<2x16x128xbf16>
    %4 = arith.extf %3 : vector<2x16x128xbf16> to vector<2x16x128xf32>
    %cst_5 = arith.constant -1.000000e+30 : f32
    %5 = vector.shape_cast %2 : vector<2x16x1xi1> to vector<2x16x1xi1>
    %6 = vector.broadcast %5 : vector<2x16x1xi1> to vector<2x16x128xi1>
    %7 = vector.broadcast %cst_5 : f32 to vector<2x16x128xf32>
    %8 = arith.select %6, %4, %7 : vector<2x16x128xi1>, vector<2x16x128xf32>
    %c0_6 = arith.constant 0 : index
    %c0_7 = arith.constant 0 : index
    %c0_8 = arith.constant 0 : index
    %9 = vector.load %arg3[%c0_6, %c0_7, %c0_8] : memref<2x16x1xf32, #tpu.memory_space<vmem>>, vector<2x16x1xf32>
    %cst_9 = arith.constant 0.000000e+00 : f32
    %10 = vector.broadcast %cst_9 : f32 to vector<2x16x1xf32>
    %11 = arith.cmpf ogt, %9, %10 : vector<2x16x1xf32>
    %c0_10 = arith.constant 0 : index
    %c0_11 = arith.constant 0 : index
    %c0_12 = arith.constant 0 : index
    %12 = vector.load %arg1[%c0_10, %c0_11, %c0_12] : memref<2x16x128xbf16, #tpu.memory_space<vmem>>, vector<2x16x128xbf16>
    %13 = arith.extf %12 : vector<2x16x128xbf16> to vector<2x16x128xf32>
    %cst_13 = arith.constant -1.000000e+30 : f32
    %14 = vector.shape_cast %11 : vector<2x16x1xi1> to vector<2x16x1xi1>
    %15 = vector.broadcast %14 : vector<2x16x1xi1> to vector<2x16x128xi1>
    %16 = vector.broadcast %cst_13 : f32 to vector<2x16x128xf32>
    %17 = arith.select %15, %13, %16 : vector<2x16x128xi1>, vector<2x16x128xf32>
    %cst_14 = arith.constant dense<0xFF800000> : vector<2x128xf32>
    %18 = vector.multi_reduction <maximumf>, %8, %cst_14 [1] : vector<2x16x128xf32> to vector<2x128xf32>
    %cst_15 = arith.constant dense<0xFF800000> : vector<2x128xf32>
    %19 = vector.multi_reduction <maximumf>, %17, %cst_15 [1] : vector<2x16x128xf32> to vector<2x128xf32>
    %20 = arith.subf %18, %19 : vector<2x128xf32>
    %21 = arith.mulf %18, %19 : vector<2x128xf32>
    %22 = tpu.concatenate %18, %19, %20, %21 in 1 : vector<2x128xf32>, vector<2x128xf32>, vector<2x128xf32>, vector<2x128xf32> -> vector<2x512xf32>
    %23 = arith.truncf %22 : vector<2x512xf32> to vector<2x512xbf16>
    %c0_16 = arith.constant 0 : index
    %c0_17 = arith.constant 0 : index
    %24 = vector.load %arg4[%c0_16, %c0_17] : memref<512x128xbf16, #tpu.memory_space<vmem>>, vector<512x128xbf16>
    %cst_18 = arith.constant dense<0.000000e+00> : vector<2x128xf32>
    %25 = tpu.matmul %23, %24, %cst_18 {dimension_numbers = #tpu.dot_dimension_numbers<[1], [0], [0], [1], [0, 0, 1, 1], [], []>} : vector<2x512xbf16>, vector<512x128xbf16>, vector<2x128xf32> -> vector<2x128xf32>
    %c0_19 = arith.constant 0 : index
    %c0_20 = arith.constant 0 : index
    %26 = vector.load %arg5[%c0_19, %c0_20] : memref<1x128xf32, #tpu.memory_space<vmem>>, vector<1x128xf32>
    %27 = vector.broadcast %26 : vector<1x128xf32> to vector<2x128xf32>
    %28 = arith.addf %25, %27 : vector<2x128xf32>
    %cst_21 = arith.constant 5.000000e-01 : f32
    %29 = vector.broadcast %cst_21 : f32 to vector<2x128xf32>
    %30 = arith.mulf %29, %28 : vector<2x128xf32>
    %cst_22 = arith.constant 4.471500e-02 : f32
    %31 = vector.broadcast %cst_22 : f32 to vector<2x128xf32>
    %32 = arith.mulf %31, %28 : vector<2x128xf32>
    %33 = arith.mulf %32, %28 : vector<2x128xf32>
    %34 = arith.mulf %33, %28 : vector<2x128xf32>
    %35 = arith.addf %28, %34 : vector<2x128xf32>
    %cst_23 = arith.constant 0.797884583 : f32
    %36 = vector.broadcast %cst_23 : f32 to vector<2x128xf32>
    %37 = arith.mulf %36, %35 : vector<2x128xf32>
    %38 = math.tanh %37 : vector<2x128xf32>
    %cst_24 = arith.constant 1.000000e+00 : f32
    %39 = vector.broadcast %cst_24 : f32 to vector<2x128xf32>
    %40 = arith.addf %39, %38 : vector<2x128xf32>
    %41 = arith.mulf %30, %40 : vector<2x128xf32>
    %42 = arith.truncf %41 : vector<2x128xf32> to vector<2x128xbf16>
    %c0_25 = arith.constant 0 : index
    %c0_26 = arith.constant 0 : index
    %43 = vector.load %arg6[%c0_25, %c0_26] : memref<128x2xbf16, #tpu.memory_space<vmem>>, vector<128x2xbf16>
    %cst_27 = arith.constant dense<0.000000e+00> : vector<2x2xf32>
    %44 = tpu.matmul %42, %43, %cst_27 {dimension_numbers = #tpu.dot_dimension_numbers<[1], [0], [0], [1], [0, 0, 1, 1], [], []>} : vector<2x128xbf16>, vector<128x2xbf16>, vector<2x2xf32> -> vector<2x2xf32>
    %c0_28 = arith.constant 0 : index
    %c0_29 = arith.constant 0 : index
    %45 = vector.load %arg7[%c0_28, %c0_29] : memref<1x2xf32, #tpu.memory_space<vmem>>, vector<1x2xf32>
    %46 = vector.broadcast %45 : vector<1x2xf32> to vector<2x2xf32>
    %47 = arith.addf %44, %46 : vector<2x2xf32>
    %c0_30 = arith.constant 0 : index
    %c0_31 = arith.constant 0 : index
    %48 = vector.load %arg8[%c0_30, %c0_31] : memref<2x2xf32, #tpu.memory_space<vmem>>, vector<2x2xf32>
    tpu.vector_store %arg8[%c0_30, %c0_31], %47 {strides = array<i32>} : memref<2x2xf32, #tpu.memory_space<vmem>>, vector<2x2xf32>,
    return
  }
}

module attributes {stable_mosaic.version = 11 : i64} {
  func.func @_align_fuse_kernel(%arg0: i32, %arg1: memref<1x16x384xbf16, #tpu.memory_space<vmem>>, %arg2: memref<1x16x384xbf16, #tpu.memory_space<vmem>>, %arg3: memref<1x16x1xf32, #tpu.memory_space<vmem>>, %arg4: memref<1x1x16xf32, #tpu.memory_space<vmem>>, %arg5: memref<1x16x1xf32, #tpu.memory_space<vmem>>, %arg6: memref<1x1x16xf32, #tpu.memory_space<vmem>>, %arg7: memref<384x384xbf16, #tpu.memory_space<vmem>>, %arg8: memref<384x256xbf16, #tpu.memory_space<vmem>>, %arg9: memref<384x128xbf16, #tpu.memory_space<vmem>>, %arg10: memref<1x384xf32, #tpu.memory_space<vmem>>, %arg11: memref<384x128xbf16, #tpu.memory_space<vmem>>, %arg12: memref<1x128xf32, #tpu.memory_space<vmem>>, %arg13: memref<1x16x128xbf16, #tpu.memory_space<vmem>>, %arg14: memref<1x16x128xbf16, #tpu.memory_space<vmem>>) attributes {dimension_semantics = [#tpu.dimension_semantics<parallel>], iteration_bounds = array<i64: 2>, scalar_prefetch = 0 : i64, scratch_operands = 0 : i64, tpu.core_type = #tpu.core_type<tc>, window_params = [{transform_indices = @transform_0, window_bounds = array<i64: 1, 16, 384>}, {transform_indices = @transform_1, window_bounds = array<i64: 1, 16, 384>}, {transform_indices = @transform_2, window_bounds = array<i64: 1, 16, 1>}, {transform_indices = @transform_3, window_bounds = array<i64: 1, 1, 16>}, {transform_indices = @transform_4, window_bounds = array<i64: 1, 16, 1>}, {transform_indices = @transform_5, window_bounds = array<i64: 1, 1, 16>}, {pipeline_mode = #tpu.pipeline_mode<synchronous>, transform_indices = @transform_6, window_bounds = array<i64: 384, 384>}, {pipeline_mode = #tpu.pipeline_mode<synchronous>, transform_indices = @transform_7, window_bounds = array<i64: 384, 256>}, {pipeline_mode = #tpu.pipeline_mode<synchronous>, transform_indices = @transform_8, window_bounds = array<i64: 384, 128>}, {pipeline_mode = #tpu.pipeline_mode<synchronous>, transform_indices = @transform_9, window_bounds = array<i64: 1, 384>}, {pipeline_mode = #tpu.pipeline_mode<synchronous>, transform_indices = @transform_10, window_bounds = array<i64: 384, 128>}, {pipeline_mode = #tpu.pipeline_mode<synchronous>, transform_indices = @transform_11, window_bounds = array<i64: 1, 128>}, {transform_indices = @transform_12, window_bounds = array<i64: 1, 16, 128>}, {transform_indices = @transform_13, window_bounds = array<i64: 1, 16, 128>}]} {
    %c0 = arith.constant 0 : index
    %c0_0 = arith.constant 0 : index
    %c0_1 = arith.constant 0 : index
    %0 = vector.load %arg1[%c0, %c0_0, %c0_1] : memref<1x16x384xbf16, #tpu.memory_space<vmem>>, vector<1x16x384xbf16>
    %1 = vector.shape_cast %0 : vector<1x16x384xbf16> to vector<16x384xbf16>
    %c0_2 = arith.constant 0 : index
    %c0_3 = arith.constant 0 : index
    %c0_4 = arith.constant 0 : index
    %2 = vector.load %arg2[%c0_2, %c0_3, %c0_4] : memref<1x16x384xbf16, #tpu.memory_space<vmem>>, vector<1x16x384xbf16>
    %3 = vector.shape_cast %2 : vector<1x16x384xbf16> to vector<16x384xbf16>
    %c0_5 = arith.constant 0 : index
    %c0_6 = arith.constant 0 : index
    %c0_7 = arith.constant 0 : index
    %4 = vector.load %arg3[%c0_5, %c0_6, %c0_7] : memref<1x16x1xf32, #tpu.memory_space<vmem>>, vector<1x16x1xf32>
    %5 = vector.shape_cast %4 : vector<1x16x1xf32> to vector<16x1xf32>
    %c0_8 = arith.constant 0 : index
    %c0_9 = arith.constant 0 : index
    %c0_10 = arith.constant 0 : index
    %6 = vector.load %arg4[%c0_8, %c0_9, %c0_10] : memref<1x1x16xf32, #tpu.memory_space<vmem>>, vector<1x1x16xf32>
    %7 = vector.shape_cast %6 : vector<1x1x16xf32> to vector<1x16xf32>
    %c0_11 = arith.constant 0 : index
    %c0_12 = arith.constant 0 : index
    %c0_13 = arith.constant 0 : index
    %8 = vector.load %arg5[%c0_11, %c0_12, %c0_13] : memref<1x16x1xf32, #tpu.memory_space<vmem>>, vector<1x16x1xf32>
    %9 = vector.shape_cast %8 : vector<1x16x1xf32> to vector<16x1xf32>
    %c0_14 = arith.constant 0 : index
    %c0_15 = arith.constant 0 : index
    %c0_16 = arith.constant 0 : index
    %10 = vector.load %arg6[%c0_14, %c0_15, %c0_16] : memref<1x1x16xf32, #tpu.memory_space<vmem>>, vector<1x1x16xf32>
    %11 = vector.shape_cast %10 : vector<1x1x16xf32> to vector<1x16xf32>
    %cst = arith.constant dense<0.000000e+00> : vector<16x16xf32>
    %12 = tpu.matmul %1, %3, %cst {dimension_numbers = #tpu.dot_dimension_numbers<[1], [1], [0], [0], [0, 0, 1, 0], [], []>} : vector<16x384xbf16>, vector<16x384xbf16>, vector<16x16xf32> -> vector<16x16xf32>
    %cst_17 = arith.constant 0.0883883461 : f32
    %13 = vector.broadcast %cst_17 : f32 to vector<16x16xf32>
    %14 = arith.mulf %12, %13 : vector<16x16xf32>
    %cst_18 = arith.constant 0.000000e+00 : f32
    %15 = vector.broadcast %cst_18 : f32 to vector<16x1xf32>
    %16 = arith.cmpf ogt, %5, %15 : vector<16x1xf32>
    %cst_19 = arith.constant 0.000000e+00 : f32
    %17 = vector.broadcast %cst_19 : f32 to vector<1x16xf32>
    %18 = arith.cmpf ogt, %11, %17 : vector<1x16xf32>
    %19 = vector.broadcast %16 : vector<16x1xi1> to vector<16x16xi1>
    %20 = vector.broadcast %18 : vector<1x16xi1> to vector<16x16xi1>
    %21 = arith.andi %19, %20 : vector<16x16xi1>
    %cst_20 = arith.constant -1.000000e+07 : f32
    %22 = vector.broadcast %cst_20 : f32 to vector<16x16xf32>
    %23 = arith.select %21, %14, %22 : vector<16x16xi1>, vector<16x16xf32>
    %cst_21 = arith.constant dense<0xFF800000> : vector<16xf32>
    %24 = vector.multi_reduction <maximumf>, %23, %cst_21 [1] : vector<16x16xf32> to vector<16xf32>
    %25 = vector.shape_cast %24 : vector<16xf32> to vector<16x1xf32>
    %26 = vector.broadcast %25 : vector<16x1xf32> to vector<16x16xf32>
    %27 = arith.subf %23, %26 : vector<16x16xf32>
    %28 = math.exp %27 : vector<16x16xf32>
    %cst_22 = arith.constant dense<0.000000e+00> : vector<16xf32>
    %29 = vector.multi_reduction <add>, %28, %cst_22 [1] : vector<16x16xf32> to vector<16xf32>
    %30 = vector.shape_cast %29 : vector<16xf32> to vector<16x1xf32>
    %31 = tpu.reciprocal %30 {approx = true} : vector<16x1xf32> -> vector<16x1xf32>
    %32 = vector.broadcast %31 : vector<16x1xf32> to vector<16x16xf32>
    %33 = arith.mulf %28, %32 : vector<16x16xf32>
    %34 = arith.truncf %33 : vector<16x16xf32> to vector<16x16xbf16>
    %cst_23 = arith.constant dense<0.000000e+00> : vector<16x384xf32>
    %35 = tpu.matmul %34, %3, %cst_23 {dimension_numbers = #tpu.dot_dimension_numbers<[1], [0], [0], [1], [0, 0, 1, 1], [], []>} : vector<16x16xbf16>, vector<16x384xbf16>, vector<16x384xf32> -> vector<16x384xf32>
    %cst_24 = arith.constant dense<0.000000e+00> : vector<16x16xf32>
    %36 = tpu.matmul %3, %1, %cst_24 {dimension_numbers = #tpu.dot_dimension_numbers<[1], [1], [0], [0], [0, 0, 1, 0], [], []>} : vector<16x384xbf16>, vector<16x384xbf16>, vector<16x16xf32> -> vector<16x16xf32>
    %cst_25 = arith.constant 0.0883883461 : f32
    %37 = vector.broadcast %cst_25 : f32 to vector<16x16xf32>
    %38 = arith.mulf %36, %37 : vector<16x16xf32>
    %cst_26 = arith.constant 0.000000e+00 : f32
    %39 = vector.broadcast %cst_26 : f32 to vector<16x1xf32>
    %40 = arith.cmpf ogt, %9, %39 : vector<16x1xf32>
    %cst_27 = arith.constant 0.000000e+00 : f32
    %41 = vector.broadcast %cst_27 : f32 to vector<1x16xf32>
    %42 = arith.cmpf ogt, %7, %41 : vector<1x16xf32>
    %43 = vector.broadcast %40 : vector<16x1xi1> to vector<16x16xi1>
    %44 = vector.broadcast %42 : vector<1x16xi1> to vector<16x16xi1>
    %45 = arith.andi %43, %44 : vector<16x16xi1>
    %cst_28 = arith.constant -1.000000e+07 : f32
    %46 = vector.broadcast %cst_28 : f32 to vector<16x16xf32>
    %47 = arith.select %45, %38, %46 : vector<16x16xi1>, vector<16x16xf32>
    %cst_29 = arith.constant dense<0xFF800000> : vector<16xf32>
    %48 = vector.multi_reduction <maximumf>, %47, %cst_29 [1] : vector<16x16xf32> to vector<16xf32>
    %49 = vector.shape_cast %48 : vector<16xf32> to vector<16x1xf32>
    %50 = vector.broadcast %49 : vector<16x1xf32> to vector<16x16xf32>
    %51 = arith.subf %47, %50 : vector<16x16xf32>
    %52 = math.exp %51 : vector<16x16xf32>
    %cst_30 = arith.constant dense<0.000000e+00> : vector<16xf32>
    %53 = vector.multi_reduction <add>, %52, %cst_30 [1] : vector<16x16xf32> to vector<16xf32>
    %54 = vector.shape_cast %53 : vector<16xf32> to vector<16x1xf32>
    %55 = tpu.reciprocal %54 {approx = true} : vector<16x1xf32> -> vector<16x1xf32>
    %56 = vector.broadcast %55 : vector<16x1xf32> to vector<16x16xf32>
    %57 = arith.mulf %52, %56 : vector<16x16xf32>
    %58 = arith.truncf %57 : vector<16x16xf32> to vector<16x16xbf16>
    %cst_31 = arith.constant dense<0.000000e+00> : vector<16x384xf32>
    %59 = tpu.matmul %58, %1, %cst_31 {dimension_numbers = #tpu.dot_dimension_numbers<[1], [0], [0], [1], [0, 0, 1, 1], [], []>} : vector<16x16xbf16>, vector<16x384xbf16>, vector<16x384xf32> -> vector<16x384xf32>
    %60 = arith.extf %1 : vector<16x384xbf16> to vector<16x384xf32>
    %c0_32 = arith.constant 0 : index
    %c0_33 = arith.constant 0 : index
    %61 = vector.load %arg7[%c0_32, %c0_33] : memref<384x384xbf16, #tpu.memory_space<vmem>>, vector<384x384xbf16>
    %cst_34 = arith.constant dense<0.000000e+00> : vector<16x384xf32>
    %62 = tpu.matmul %1, %61, %cst_34 {dimension_numbers = #tpu.dot_dimension_numbers<[1], [0], [0], [1], [0, 0, 1, 1], [], []>} : vector<16x384xbf16>, vector<384x384xbf16>, vector<16x384xf32> -> vector<16x384xf32>
    %63 = arith.truncf %35 : vector<16x384xf32> to vector<16x384xbf16>
    %c0_35 = arith.constant 0 : index
    %c0_36 = arith.constant 0 : index
    %64 = vector.load %arg8[%c0_35, %c0_36] : memref<384x256xbf16, #tpu.memory_space<vmem>>, vector<384x256xbf16>
    %cst_37 = arith.constant dense<0.000000e+00> : vector<16x256xf32>
    %65 = tpu.matmul %63, %64, %cst_37 {dimension_numbers = #tpu.dot_dimension_numbers<[1], [0], [0], [1], [0, 0, 1, 1], [], []>} : vector<16x384xbf16>, vector<384x256xbf16>, vector<16x256xf32> -> vector<16x256xf32>
    %66 = arith.mulf %60, %35 : vector<16x384xf32>
    %67 = arith.truncf %66 : vector<16x384xf32> to vector<16x384xbf16>
    %c0_38 = arith.constant 0 : index
    %c0_39 = arith.constant 0 : index
    %68 = vector.load %arg9[%c0_38, %c0_39] : memref<384x128xbf16, #tpu.memory_space<vmem>>, vector<384x128xbf16>
    %cst_40 = arith.constant dense<0.000000e+00> : vector<16x128xf32>
    %69 = tpu.matmul %67, %68, %cst_40 {dimension_numbers = #tpu.dot_dimension_numbers<[1], [0], [0], [1], [0, 0, 1, 1], [], []>} : vector<16x384xbf16>, vector<384x128xbf16>, vector<16x128xf32> -> vector<16x128xf32>
    %70 = tpu.concatenate %65, %69 in 1 : vector<16x256xf32>, vector<16x128xf32> -> vector<16x384xf32>
    %71 = arith.addf %62, %70 : vector<16x384xf32>
    %c0_41 = arith.constant 0 : index
    %c0_42 = arith.constant 0 : index
    %72 = vector.load %arg10[%c0_41, %c0_42] : memref<1x384xf32, #tpu.memory_space<vmem>>, vector<1x384xf32>
    %73 = vector.broadcast %72 : vector<1x384xf32> to vector<16x384xf32>
    %74 = arith.addf %71, %73 : vector<16x384xf32>
    %cst_43 = arith.constant 5.000000e-01 : f32
    %75 = vector.broadcast %cst_43 : f32 to vector<16x384xf32>
    %76 = arith.mulf %75, %74 : vector<16x384xf32>
    %cst_44 = arith.constant 4.471500e-02 : f32
    %77 = vector.broadcast %cst_44 : f32 to vector<16x384xf32>
    %78 = arith.mulf %77, %74 : vector<16x384xf32>
    %79 = arith.mulf %78, %74 : vector<16x384xf32>
    %80 = arith.mulf %79, %74 : vector<16x384xf32>
    %81 = arith.addf %74, %80 : vector<16x384xf32>
    %cst_45 = arith.constant 0.797884583 : f32
    %82 = vector.broadcast %cst_45 : f32 to vector<16x384xf32>
    %83 = arith.mulf %82, %81 : vector<16x384xf32>
    %84 = math.tanh %83 : vector<16x384xf32>
    %cst_46 = arith.constant 1.000000e+00 : f32
    %85 = vector.broadcast %cst_46 : f32 to vector<16x384xf32>
    %86 = arith.addf %85, %84 : vector<16x384xf32>
    %87 = arith.mulf %76, %86 : vector<16x384xf32>
    %88 = arith.truncf %87 : vector<16x384xf32> to vector<16x384xbf16>
    %c0_47 = arith.constant 0 : index
    %c0_48 = arith.constant 0 : index
    %89 = vector.load %arg11[%c0_47, %c0_48] : memref<384x128xbf16, #tpu.memory_space<vmem>>, vector<384x128xbf16>
    %cst_49 = arith.constant dense<0.000000e+00> : vector<16x128xf32>
    %90 = tpu.matmul %88, %89, %cst_49 {dimension_numbers = #tpu.dot_dimension_numbers<[1], [0], [0], [1], [0, 0, 1, 1], [], []>} : vector<16x384xbf16>, vector<384x128xbf16>, vector<16x128xf32> -> vector<16x128xf32>
    %c0_50 = arith.constant 0 : index
    %c0_51 = arith.constant 0 : index
    %91 = vector.load %arg12[%c0_50, %c0_51] : memref<1x128xf32, #tpu.memory_space<vmem>>, vector<1x128xf32>
    %92 = vector.broadcast %91 : vector<1x128xf32> to vector<16x128xf32>
    %93 = arith.addf %90, %92 : vector<16x128xf32>
    %cst_52 = arith.constant 5.000000e-01 : f32
    %94 = vector.broadcast %cst_52 : f32 to vector<16x128xf32>
    %95 = arith.mulf %94, %93 : vector<16x128xf32>
    %cst_53 = arith.constant 4.471500e-02 : f32
    %96 = vector.broadcast %cst_53 : f32 to vector<16x128xf32>
    %97 = arith.mulf %96, %93 : vector<16x128xf32>
    %98 = arith.mulf %97, %93 : vector<16x128xf32>
    %99 = arith.mulf %98, %93 : vector<16x128xf32>
    %100 = arith.addf %93, %99 : vector<16x128xf32>
    %cst_54 = arith.constant 0.797884583 : f32
    %101 = vector.broadcast %cst_54 : f32 to vector<16x128xf32>
    %102 = arith.mulf %101, %100 : vector<16x128xf32>
    %103 = math.tanh %102 : vector<16x128xf32>
    %cst_55 = arith.constant 1.000000e+00 : f32
    %104 = vector.broadcast %cst_55 : f32 to vector<16x128xf32>
    %105 = arith.addf %104, %103 : vector<16x128xf32>
    %106 = arith.mulf %95, %105 : vector<16x128xf32>
    %107 = arith.truncf %106 : vector<16x128xf32> to vector<16x128xbf16>
    %c0_56 = arith.constant 0 : index
    %c0_57 = arith.constant 0 : index
    %c0_58 = arith.constant 0 : index
    %108 = vector.load %arg13[%c0_56, %c0_57, %c0_58] : memref<1x16x128xbf16, #tpu.memory_space<vmem>>, vector<1x16x128xbf16>
    %109 = vector.shape_cast %108 : vector<1x16x128xbf16> to vector<16x128xbf16>
    %110 = vector.shape_cast %107 : vector<16x128xbf16> to vector<1x16x128xbf16>
    tpu.vector_store %arg13[%c0_56, %c0_57, %c0_58], %110 {strides = array<i32>} : memref<1x16x128xbf16, #tpu.memory_space<vmem>>, vector<1x16x128xbf16>,
    %111 = arith.extf %3 : vector<16x384xbf16> to vector<16x384xf32>
    %c0_59 = arith.constant 0 : index
    %c0_60 = arith.constant 0 : index
    %112 = vector.load %arg7[%c0_59, %c0_60] : memref<384x384xbf16, #tpu.memory_space<vmem>>, vector<384x384xbf16>
    %cst_61 = arith.constant dense<0.000000e+00> : vector<16x384xf32>
    %113 = tpu.matmul %3, %112, %cst_61 {dimension_numbers = #tpu.dot_dimension_numbers<[1], [0], [0], [1], [0, 0, 1, 1], [], []>} : vector<16x384xbf16>, vector<384x384xbf16>, vector<16x384xf32> -> vector<16x384xf32>
    %114 = arith.truncf %59 : vector<16x384xf32> to vector<16x384xbf16>
    %c0_62 = arith.constant 0 : index
    %c0_63 = arith.constant 0 : index
    %115 = vector.load %arg8[%c0_62, %c0_63] : memref<384x256xbf16, #tpu.memory_space<vmem>>, vector<384x256xbf16>
    %cst_64 = arith.constant dense<0.000000e+00> : vector<16x256xf32>
    %116 = tpu.matmul %114, %115, %cst_64 {dimension_numbers = #tpu.dot_dimension_numbers<[1], [0], [0], [1], [0, 0, 1, 1], [], []>} : vector<16x384xbf16>, vector<384x256xbf16>, vector<16x256xf32> -> vector<16x256xf32>
    %117 = arith.mulf %111, %59 : vector<16x384xf32>
    %118 = arith.truncf %117 : vector<16x384xf32> to vector<16x384xbf16>
    %c0_65 = arith.constant 0 : index
    %c0_66 = arith.constant 0 : index
    %119 = vector.load %arg9[%c0_65, %c0_66] : memref<384x128xbf16, #tpu.memory_space<vmem>>, vector<384x128xbf16>
    %cst_67 = arith.constant dense<0.000000e+00> : vector<16x128xf32>
    %120 = tpu.matmul %118, %119, %cst_67 {dimension_numbers = #tpu.dot_dimension_numbers<[1], [0], [0], [1], [0, 0, 1, 1], [], []>} : vector<16x384xbf16>, vector<384x128xbf16>, vector<16x128xf32> -> vector<16x128xf32>
    %121 = tpu.concatenate %116, %120 in 1 : vector<16x256xf32>, vector<16x128xf32> -> vector<16x384xf32>
    %122 = arith.addf %113, %121 : vector<16x384xf32>
    %c0_68 = arith.constant 0 : index
    %c0_69 = arith.constant 0 : index
    %123 = vector.load %arg10[%c0_68, %c0_69] : memref<1x384xf32, #tpu.memory_space<vmem>>, vector<1x384xf32>
    %124 = vector.broadcast %123 : vector<1x384xf32> to vector<16x384xf32>
    %125 = arith.addf %122, %124 : vector<16x384xf32>
    %cst_70 = arith.constant 5.000000e-01 : f32
    %126 = vector.broadcast %cst_70 : f32 to vector<16x384xf32>
    %127 = arith.mulf %126, %125 : vector<16x384xf32>
    %cst_71 = arith.constant 4.471500e-02 : f32
    %128 = vector.broadcast %cst_71 : f32 to vector<16x384xf32>
    %129 = arith.mulf %128, %125 : vector<16x384xf32>
    %130 = arith.mulf %129, %125 : vector<16x384xf32>
    %131 = arith.mulf %130, %125 : vector<16x384xf32>
    %132 = arith.addf %125, %131 : vector<16x384xf32>
    %cst_72 = arith.constant 0.797884583 : f32
    %133 = vector.broadcast %cst_72 : f32 to vector<16x384xf32>
    %134 = arith.mulf %133, %132 : vector<16x384xf32>
    %135 = math.tanh %134 : vector<16x384xf32>
    %cst_73 = arith.constant 1.000000e+00 : f32
    %136 = vector.broadcast %cst_73 : f32 to vector<16x384xf32>
    %137 = arith.addf %136, %135 : vector<16x384xf32>
    %138 = arith.mulf %127, %137 : vector<16x384xf32>
    %139 = arith.truncf %138 : vector<16x384xf32> to vector<16x384xbf16>
    %c0_74 = arith.constant 0 : index
    %c0_75 = arith.constant 0 : index
    %140 = vector.load %arg11[%c0_74, %c0_75] : memref<384x128xbf16, #tpu.memory_space<vmem>>, vector<384x128xbf16>
    %cst_76 = arith.constant dense<0.000000e+00> : vector<16x128xf32>
    %141 = tpu.matmul %139, %140, %cst_76 {dimension_numbers = #tpu.dot_dimension_numbers<[1], [0], [0], [1], [0, 0, 1, 1], [], []>} : vector<16x384xbf16>, vector<384x128xbf16>, vector<16x128xf32> -> vector<16x128xf32>
    %c0_77 = arith.constant 0 : index
    %c0_78 = arith.constant 0 : index
    %142 = vector.load %arg12[%c0_77, %c0_78] : memref<1x128xf32, #tpu.memory_space<vmem>>, vector<1x128xf32>
    %143 = vector.broadcast %142 : vector<1x128xf32> to vector<16x128xf32>
    %144 = arith.addf %141, %143 : vector<16x128xf32>
    %cst_79 = arith.constant 5.000000e-01 : f32
    %145 = vector.broadcast %cst_79 : f32 to vector<16x128xf32>
    %146 = arith.mulf %145, %144 : vector<16x128xf32>
    %cst_80 = arith.constant 4.471500e-02 : f32
    %147 = vector.broadcast %cst_80 : f32 to vector<16x128xf32>
    %148 = arith.mulf %147, %144 : vector<16x128xf32>
    %149 = arith.mulf %148, %144 : vector<16x128xf32>
    %150 = arith.mulf %149, %144 : vector<16x128xf32>
    %151 = arith.addf %144, %150 : vector<16x128xf32>
    %cst_81 = arith.constant 0.797884583 : f32
    %152 = vector.broadcast %cst_81 : f32 to vector<16x128xf32>
    %153 = arith.mulf %152, %151 : vector<16x128xf32>
    %154 = math.tanh %153 : vector<16x128xf32>
    %cst_82 = arith.constant 1.000000e+00 : f32
    %155 = vector.broadcast %cst_82 : f32 to vector<16x128xf32>
    %156 = arith.addf %155, %154 : vector<16x128xf32>
    %157 = arith.mulf %146, %156 : vector<16x128xf32>
    %158 = arith.truncf %157 : vector<16x128xf32> to vector<16x128xbf16>
    %c0_83 = arith.constant 0 : index
    %c0_84 = arith.constant 0 : index
    %c0_85 = arith.constant 0 : index
    %159 = vector.load %arg14[%c0_83, %c0_84, %c0_85] : memref<1x16x128xbf16, #tpu.memory_space<vmem>>, vector<1x16x128xbf16>
    %160 = vector.shape_cast %159 : vector<1x16x128xbf16> to vector<16x128xbf16>
    %161 = vector.shape_cast %158 : vector<16x128xbf16> to vector<1x16x128xbf16>
    tpu.vector_store %arg14[%c0_83, %c0_84, %c0_85], %161 {strides = array<i32>} : memref<1x16x128xbf16, #tpu.memory_space<vmem>>, vector<1x16x128xbf16>,
    return
  }
  func.func @transform_0(%arg0: i32) -> (i32, i32, i32) {
    %c0_i32 = arith.constant 0 : i32
    %c0_i32_0 = arith.constant 0 : i32
    %c0_i32_1 = arith.constant 0 : i32
    return %arg0, %c0_i32, %c0_i32_0 : i32, i32, i32
  }
  func.func @transform_1(%arg0: i32) -> (i32, i32, i32) {
    %c0_i32 = arith.constant 0 : i32
    %c0_i32_0 = arith.constant 0 : i32
    %c0_i32_1 = arith.constant 0 : i32
    return %arg0, %c0_i32, %c0_i32_0 : i32, i32, i32
  }
  func.func @transform_2(%arg0: i32) -> (i32, i32, i32) {
    %c0_i32 = arith.constant 0 : i32
    %c0_i32_0 = arith.constant 0 : i32
    %c0_i32_1 = arith.constant 0 : i32
    return %arg0, %c0_i32, %c0_i32_0 : i32, i32, i32
  }
  func.func @transform_3(%arg0: i32) -> (i32, i32, i32) {
    %c0_i32 = arith.constant 0 : i32
    %c0_i32_0 = arith.constant 0 : i32
    %c0_i32_1 = arith.constant 0 : i32
    return %arg0, %c0_i32, %c0_i32_0 : i32, i32, i32
  }
  func.func @transform_4(%arg0: i32) -> (i32, i32, i32) {
    %c0_i32 = arith.constant 0 : i32
    %c0_i32_0 = arith.constant 0 : i32
    %c0_i32_1 = arith.constant 0 : i32
    return %arg0, %c0_i32, %c0_i32_0 : i32, i32, i32
  }
  func.func @transform_5(%arg0: i32) -> (i32, i32, i32) {
    %c0_i32 = arith.constant 0 : i32
    %c0_i32_0 = arith.constant 0 : i32
    %c0_i32_1 = arith.constant 0 : i32
    return %arg0, %c0_i32, %c0_i32_0 : i32, i32, i32
  }
  func.func @transform_6(%arg0: i32) -> (i32, i32) {
    %c0_i32 = arith.constant 0 : i32
    %c0_i32_0 = arith.constant 0 : i32
    %c0_i32_1 = arith.constant 0 : i32
    return %c0_i32, %c0_i32_0 : i32, i32
  }
  func.func @transform_7(%arg0: i32) -> (i32, i32) {
    %c0_i32 = arith.constant 0 : i32
    %c0_i32_0 = arith.constant 0 : i32
    %c0_i32_1 = arith.constant 0 : i32
    return %c0_i32, %c0_i32_0 : i32, i32
  }
  func.func @transform_8(%arg0: i32) -> (i32, i32) {
    %c0_i32 = arith.constant 0 : i32
    %c0_i32_0 = arith.constant 0 : i32
    %c0_i32_1 = arith.constant 0 : i32
    return %c0_i32, %c0_i32_0 : i32, i32
  }
  func.func @transform_9(%arg0: i32) -> (i32, i32) {
    %c0_i32 = arith.constant 0 : i32
    %c0_i32_0 = arith.constant 0 : i32
    %c0_i32_1 = arith.constant 0 : i32
    return %c0_i32, %c0_i32_0 : i32, i32
  }
  func.func @transform_10(%arg0: i32) -> (i32, i32) {
    %c0_i32 = arith.constant 0 : i32
    %c0_i32_0 = arith.constant 0 : i32
    %c0_i32_1 = arith.constant 0 : i32
    return %c0_i32, %c0_i32_0 : i32, i32
  }
  func.func @transform_11(%arg0: i32) -> (i32, i32) {
    %c0_i32 = arith.constant 0 : i32
    %c0_i32_0 = arith.constant 0 : i32
    %c0_i32_1 = arith.constant 0 : i32
    return %c0_i32, %c0_i32_0 : i32, i32
  }
  func.func @transform_12(%arg0: i32) -> (i32, i32, i32) {
    %c0_i32 = arith.constant 0 : i32
    %c0_i32_0 = arith.constant 0 : i32
    %c0_i32_1 = arith.constant 0 : i32
    return %arg0, %c0_i32, %c0_i32_0 : i32, i32, i32
  }
  func.func @transform_13(%arg0: i32) -> (i32, i32, i32) {
    %c0_i32 = arith.constant 0 : i32
    %c0_i32_0 = arith.constant 0 : i32
    %c0_i32_1 = arith.constant 0 : i32
    return %arg0, %c0_i32, %c0_i32_0 : i32, i32, i32
  }
}

</mosaic_0001>

<bundles_post_ra>
// kernel: re2_forward.5
= control target key start
LH: loop header
LB: loop body
LE: loop exit
PB: predicated region body
PF: predicated region fallthrough
CT: control target
= control target key end

     0   :  { %v1310_v0 = vmov 0   ;;  %vm205_vm0 = vcmask 1040384   ;;  %vm206_vm1 = vsmask.f32 256  ;;  %vm224_vm3 = vcmask 1047552   ;;  %s1717_s1 = inlined_call_operand.vmem [shape: f32[4,16,1], index: 1, kind: input, shape index: {}]   ;;  %s1718_s2 = inlined_call_operand.vmem [shape: bf16[384,128], index: 2, kind: input, shape index: {}]   ;;  %s1719_s0 = inlined_call_operand.vmem [shape: bf16[4,16,128], index: 0, kind: input, shape index: {}]   ;;  %s1720_s6 = inlined_call_operand.vmem [shape: bf16[4,16,256], index: 6, kind: output, shape index: {}]   ;;  %s1721_s3 = inlined_call_operand.vmem [shape: f32[1,128], index: 3, kind: input, shape index: {}]   ;;  %s1722_s4 = inlined_call_operand.vmem [shape: bf16[384,128], index: 4, kind: input, shape index: {}]   ;;  %s1723_s5 = inlined_call_operand.vmem [shape: f32[1,128], index: 5, kind: input, shape index: {}]  }
   0x1   :  { %1274 = vset.pattern.permute.xlu1 %v1310_v0  ;;  %1273 = vset.pattern.permute.xlu0 %v1310_v0  ;;  %v38_v1 = vld [vmem:[%s1717_s1 + $0x30] sm:$0xff]  ;;  %v36_v2 = vld [vmem:[%s1717_s1 + $0x20] sm:$0xff]  ;;  %v1223_v4 = vld [vmem:[%s1718_s2 + $0x78] sm:$0xff]  ;;  %vm225_vm4 = vsmask.f32 7424 }
   0x2   :  { %129 = vperm.xlu1 %1274, %v38_v1   ;;  %119 = vperm.xlu0 %1273, %v36_v2   ;;  %v32_v3 = vld [vmem:[%s1717_s1] sm:$0xff]  ;;  %v1215_v5 = vld [vmem:[%s1718_s2 + $0x38] sm:$0xff]  ;;  %v1222_v6 = vld [vmem:[%s1718_s2 + $0x70] sm:$0xff] }
   0x3   :  { %1275 = vset.pattern.permute.xlu2 %v1310_v0  ;;  %411 = vmatpush.bf16.msra.mxu1 %v1223_v4  ;;  %v39_v7 = vld [vmem:[%s1717_s1 + $0x38] sm:$0xff]  ;;  %v37_v8 = vld [vmem:[%s1717_s1 + $0x28] sm:$0xff]  ;;  %v1214_v9 = vld [vmem:[%s1718_s2 + $0x30] sm:$0xff] }
   0x4   :  { %99 = vperm.xlu2 %1275, %v32_v3   ;;  %1264 = vmatpush.bf16.msra.mxu3 %v1223_v4  ;;  %v33_v10 = vld [vmem:[%s1717_s1 + $0x8] sm:$0xff]  ;;  %v1220_v12 = vld [vmem:[%s1718_s2 + $0x60] sm:$0xff]  ;;  %v35_v13 = vld [vmem:[%s1717_s1 + $0x18] sm:$0xff] }
   0x5   :  { %382 = vmatpush.bf16.msra.mxu0 %v1215_v5  ;;  %1256 = vmatpush.bf16.msra.mxu2 %v1215_v5  ;;  %v1221_v11 = vld [vmem:[%s1718_s2 + $0x68] sm:$0xff]  ;;  %v34_v14 = vld [vmem:[%s1717_s1 + $0x10] sm:$0xff]  ;;  %v24_v15 = vld [vmem:[%s1719_s0] sm:$0xf] }
   0x6   :  { %988 = vst [vmem:[%s1720_s6] sm:$0xf] %v24_v15  ;;  %v1213_v16 = vld [vmem:[%s1718_s2 + $0x28] sm:$0xff]  ;;  %v1219_v17 = vld [vmem:[%s1718_s2 + $0x58] sm:$0xff]  ;;  %v1212_v18 = vld [vmem:[%s1718_s2 + $0x20] sm:$0xff]  ;;  %v40_v30 = vunpack.c.l.bf16 %v24_v15 }
   0x7   :  { %412 = vmatpush.bf16.msra.mxu1 %v1222_v6  ;;  %v1218_v19 = vld [vmem:[%s1718_s2 + $0x50] sm:$0xff]  ;;  %v25_v21 = vld [vmem:[%s1719_s0 + $0x4] sm:$0xf]  ;;  %v1211_v22 = vld [vmem:[%s1718_s2 + $0x18] sm:$0xff] }
   0x8   :  { %1265 = vmatpush.bf16.msra.mxu3 %v1222_v6  ;;  %v1409_v20 = vld [vmem:[%s1719_s0 + $0x10] sm:$0xf]  ;;  %v1424_v23 = vld [vmem:[%s1719_s0 + $0x18] sm:$0xf]  ;;  %989 = vst [vmem:[%s1720_s6 + $0x8] sm:$0xf] %v25_v21  ;;  %v41_v35 = vunpack.c.l.bf16 %v25_v21  ;;  %vm1491_vm2 = vmand %vm205_vm0, %vm206_vm1 }
   0x9   :  { %383 = vmatpush.bf16.msra.mxu0 %v1214_v9  ;;  %1257 = vmatpush.bf16.msra.mxu2 %v1214_v9  ;;  %992 = vst [vmem:[%s1720_s6 + $0x20] sm:$0xf] %v1409_v20  ;;  %v1217_v24 = vld [vmem:[%s1718_s2 + $0x48] sm:$0xff]  ;;  %v1210_v25 = vld [vmem:[%s1718_s2 + $0x10] sm:$0xff]  ;;  %v1216_v26 = vld [vmem:[%s1718_s2 + $0x40] sm:$0xff]  ;;  %v44_v54 = vunpack.c.l.bf16 %v1409_v20  ;;  %v46_v59 = vunpack.c.l.bf16 %v1424_v23 }
   0xa   :  { %134 = vperm.xlu1 %1274, %v39_v7   ;;  %124 = vperm.xlu0 %1273, %v37_v8   ;;  %994 = vst [vmem:[%s1720_s6 + $0x30] sm:$0xf] %v1424_v23  ;;  %v29_v27 = vld [vmem:[%s1719_s0 + $0x14] sm:$0xf]  ;;  %v1209_v28 = vld [vmem:[%s1718_s2 + $0x8] sm:$0xff]  ;;  %v1208_v32 = vld [vmem:[%s1718_s2] sm:$0xff] }
   0xb   :  { %413 = vmatpush.bf16.msra.mxu1 %v1221_v11  ;;  %993 = vst [vmem:[%s1720_s6 + $0x28] sm:$0xf] %v29_v27  ;;  %v31_v29 = vld [vmem:[%s1719_s0 + $0x1c] sm:$0xf]  ;;  %v27_v34 = vld [vmem:[%s1719_s0 + $0xc] sm:$0xf]  ;;  %v45_v58 = vunpack.c.l.bf16 %v29_v27  ;;  %vm1547_vm5 = vmand %vm224_vm3, %vm225_vm4 }
   0xc   :  { %104 = vperm.xlu2 %1275, %v33_v10   ;;  %1266 = vmatpush.bf16.msra.mxu3 %v1221_v11  ;;  %995 = vst [vmem:[%s1720_s6 + $0x38] sm:$0xf] %v31_v29  ;;  %v26_v36 = vld [vmem:[%s1719_s0 + $0x8] sm:$0xf]  ;;  %v1231_v43 = vld [vmem:[%s1718_s2 + $0xb8] sm:$0xff]  ;;  %v1230_v45 = vld [vmem:[%s1718_s2 + $0xb0] sm:$0xff]  ;;  %v47_v60 = vunpack.c.l.bf16 %v31_v29  ;;  %v43_v8 = vunpack.c.l.bf16 %v27_v34 }
   0xd   :  { %384 = vmatpush.bf16.msra.mxu0 %v1213_v16  ;;  %1258 = vmatpush.bf16.msra.mxu2 %v1213_v16  ;;  %991 = vst [vmem:[%s1720_s6 + $0x18] sm:$0xf] %v27_v34  ;;  %v1229_v51 = vld [vmem:[%s1718_s2 + $0xa8] sm:$0xff]  ;;  %v1228_v56 = vld [vmem:[%s1718_s2 + $0xa0] sm:$0xff]  ;;  %v1227_v61 = vld [vmem:[%s1718_s2 + $0x98] sm:$0xff]  ;;  %v42_v9 = vunpack.c.l.bf16 %v26_v36 }
   0xe   :  { %990 = vst [vmem:[%s1720_s6 + $0x10] sm:$0xf] %v26_v36  ;;  %v1226_v2 = vld [vmem:[%s1718_s2 + $0x90] sm:$0xff]  ;;  %v1225_v10 = vld [vmem:[%s1718_s2 + $0x88] sm:$0xff] }
   0xf   :  { %414 = vmatpush.bf16.msra.mxu1 %v1220_v12 }
  0x10   :  { %1267 = vmatpush.bf16.msra.mxu3 %v1220_v12 }
  0x11   :  { %385 = vmatpush.bf16.msra.mxu0 %v1212_v18  ;;  %1259 = vmatpush.bf16.msra.mxu2 %v1212_v18 }
  0x12   :  { %114 = vperm.xlu1 %1274, %v35_v13   ;;  %109 = vperm.xlu0 %1273, %v34_v14  }
  0x13   :  { %415 = vmatpush.bf16.msra.mxu1 %v1219_v17 }
  0x14   :  { %1268 = vmatpush.bf16.msra.mxu3 %v1219_v17 }
  0x15   :  { %386 = vmatpush.bf16.msra.mxu0 %v1211_v22  ;;  %1260 = vmatpush.bf16.msra.mxu2 %v1211_v22 }
  0x17   :  { %416 = vmatpush.bf16.msra.mxu1 %v1218_v19 }
  0x18   :  { %1269 = vmatpush.bf16.msra.mxu3 %v1218_v19  ;;  %v1224_v19 = vld [vmem:[%s1718_s2 + $0x80] sm:$0xff] }
  0x19   :  { %387 = vmatpush.bf16.msra.mxu0 %v1210_v25  ;;  %1261 = vmatpush.bf16.msra.mxu2 %v1210_v25 }
  0x1b   :  { %417 = vmatpush.bf16.msra.mxu1 %v1217_v24 }
  0x1c   :  { %1270 = vmatpush.bf16.msra.mxu3 %v1217_v24 }
  0x1d   :  { %388 = vmatpush.bf16.msra.mxu0 %v1209_v28  ;;  %1262 = vmatpush.bf16.msra.mxu2 %v1209_v28 }
  0x1f   :  { %418 = vmatpush.bf16.msra.mxu1 %v1216_v26 }
  0x20   :  { %1271 = vmatpush.bf16.msra.mxu3 %v1216_v26 }
  0x21   :  { %389 = vmatpush.bf16.msra.mxu0 %v1208_v32  ;;  %1263 = vmatpush.bf16.msra.mxu2 %v1208_v32 }
  0x25   :  { %440 = vmatpush.bf16.msrb.mxu2 %v1231_v43 }
  0x29   :  { %441 = vmatpush.bf16.msrb.mxu2 %v1230_v45 }
  0x2d   :  { %442 = vmatpush.bf16.msrb.mxu2 %v1229_v51 }
  0x31   :  { %443 = vmatpush.bf16.msrb.mxu2 %v1228_v56 }
  0x35   :  { %444 = vmatpush.bf16.msrb.mxu2 %v1227_v61  ;;  %v1247_v61 = vld [vmem:[%s1722_s4 + $0x78] sm:$0xff] }
  0x36   :  { %858 = vmatpush.bf16.msrb.mxu0 %v1247_v61 }
  0x39   :  { %445 = vmatpush.bf16.msrb.mxu2 %v1226_v2  ;;  %v1239_v2 = vld [vmem:[%s1722_s4 + $0x38] sm:$0xff] }
  0x3a   :  { %829 = vmatpush.bf16.msrb.mxu3 %v1239_v2 }
  0x3d   :  { %446 = vmatpush.bf16.msrb.mxu2 %v1225_v10  ;;  %v1237_v10 = vld [vmem:[%s1722_s4 + $0x28] sm:$0xff] }
  0x41   :  { %447 = vmatpush.bf16.msrb.mxu2 %v1224_v19  ;;  %v1252_v19 = vld [vmem:[%s1722_s4 + $0xa0] sm:$0xff] }
  0x5e   :  { %v1457_v31 = vpop.permute.xlu2 %99 }
  0x5f   :  { %v137_v33 = vmul.f32 %v1457_v31, %v40_v30 }
  0x61   :  { %v145_v37 = vpack.c.bf16 %v137_v33, %v137_v33 }
  0x63   :  { %v161_v40 = vunpack.c.l.b16 %v145_v37 }
  0x66   :  { %v1475_v38 = vpop.permute.xlu2 %104 }
  0x67   :  { %v138_v39 = vmul.f32 %v1475_v38, %v41_v35 }
  0x69   :  { %v146_v41 = vpack.c.bf16 %v138_v39, %v138_v39 }
  0x6b   :  { %v162_v42 = vunpack.c.l.b16 %v146_v41 }
  0x6d   :  { %v1481_v44 = vpack.c.b16 %v162_v42, %v161_v40 }
  0x6f   :  { %419 = vmatmul.bf16.vlgmr.msra.gmra.mxu1 %v1481_v44  ;;  %v174_v46 = vshrl.u32 %v1481_v44, 16  ;;  %v177_v47 = vshll.u32 %v1481_v44, 16 }
  0x71   :  { %v176_v48 = vrot.slane %v174_v46, 7  ;;  %v212_v45 = vrot.slane %v177_v47, 1 }
  0x73   :  { %v179_v50 = vor.u32 %v177_v47, %v176_v48  ;;  %v213_v48 = vor.u32 %v212_v45, %v174_v46 }
  0x74   :  { %v1500_v52 = vpop.permute.xlu1 %129  ;;  %v1502_v53 = vpop.permute.xlu0 %119 }
  0x75   :  { %v208_v55 = vsel %vm1491_vm2, 0, %v179_v50  ;;  %v141_v57 = vmul.f32 %v1502_v53, %v44_v54  ;;  %v143_v3 = vmul.f32 %v1500_v52, %v46_v59  ;;  %v227_v51 = vsel %vm1547_vm5, %v213_v48, 0 }
  0x76   :  { %390 = vmatmul.bf16.vlgmr.msra.gmra.mxu0 %v208_v55 }
  0x77   :  { %v149_v0 = vpack.c.bf16 %v141_v57, %v141_v57  ;;  %v151_v11 = vpack.c.bf16 %v143_v3, %v143_v3  ;;  %v1255_v3 = vld [vmem:[%s1722_s4 + $0xb8] sm:$0xff] }
  0x78   :  { %887 = vmatpush.bf16.msrb.mxu1 %v1255_v3 }
  0x79   :  { %v165_v6 = vunpack.c.l.b16 %v149_v0  ;;  %v167_v20 = vunpack.c.l.b16 %v151_v11  ;;  %v1253_v11 = vld [vmem:[%s1722_s4 + $0xa8] sm:$0xff] }
  0x7c   :  { %v1515_v62 = vpop.permute.xlu1 %134  ;;  %v1517_v63 = vpop.permute.xlu0 %124 }
  0x7d   :  { %v142_v1 = vmul.f32 %v1517_v63, %v45_v58  ;;  %v144_v4 = vmul.f32 %v1515_v62, %v47_v60 }
  0x7f   :  { %v150_v5 = vpack.c.bf16 %v142_v1, %v142_v1  ;;  %v152_v12 = vpack.c.bf16 %v144_v4, %v144_v4  ;;  %v1246_v1 = vld [vmem:[%s1722_s4 + $0x70] sm:$0xff]  ;;  %v1245_v4 = vld [vmem:[%s1722_s4 + $0x68] sm:$0xff] }
  0x80   :  { %859 = vmatpush.bf16.msrb.mxu0 %v1246_v1 }
  0x81   :  { %v166_v7 = vunpack.c.l.b16 %v150_v5  ;;  %v168_v21 = vunpack.c.l.b16 %v152_v12  ;;  %v1243_v12 = vld [vmem:[%s1722_s4 + $0x58] sm:$0xff] }
  0x83   :  { %v171_v13 = vpack.c.b16 %v166_v7, %v165_v6  ;;  %v172_v32 = vpack.c.b16 %v168_v21, %v167_v20  ;;  %v1238_v7 = vld [vmem:[%s1722_s4 + $0x30] sm:$0xff] }
  0x84   :  { %v1528_v14 = vpop.permute.xlu1 %114  ;;  %v1530_v15 = vpop.permute.xlu0 %109  ;;  %860 = vmatpush.bf16.msrb.mxu0 %v1245_v4  ;;  %830 = vmatpush.bf16.msrb.mxu3 %v1238_v7  ;;  %v1242_v21 = vld [vmem:[%s1722_s4 + $0x50] sm:$0xff] }
  0x85   :  { %v140_v16 = vmul.f32 %v1528_v14, %v43_v8  ;;  %v139_v17 = vmul.f32 %v1530_v15, %v42_v9  ;;  %429 = vmatmul.bf16.vlgmr.msra.gmra.mxu3 %v171_v13  ;;  %v188_v18 = vshrl.u32 %v171_v13, 16  ;;  %v191_v25 = vshll.u32 %v171_v13, 16  ;;  %v1254_v8 = vld [vmem:[%s1722_s4 + $0xb0] sm:$0xff]  ;;  %v1244_v9 = vld [vmem:[%s1722_s4 + $0x60] sm:$0xff] }
  0x86   :  { %v195_v36 = vshrl.u32 %v172_v32, 16  ;;  %v198_v41 = vshll.u32 %v172_v32, 16  ;;  %888 = vmatpush.bf16.msrb.mxu1 %v1254_v8 }
  0x87   :  { %v148_v22 = vpack.c.bf16 %v140_v16, %v140_v16  ;;  %v147_v23 = vpack.c.bf16 %v139_v17, %v139_v17  ;;  %v190_v24 = vrot.slane %v188_v18, 7  ;;  %v216_v47 = vrot.slane %v191_v25, 1  ;;  %v1603_v17 = vld [vmem:[%s1721_s3] ss:$0 sm:$0xff] }
  0x88   :  { %v197_v40 = vrot.slane %v195_v36, 7  ;;  %v218_v46 = vrot.slane %v198_v41, 1  ;;  %861 = vmatpush.bf16.msrb.mxu0 %v1244_v9  ;;  %831 = vmatpush.bf16.msrb.mxu3 %v1237_v10 }
  0x89   :  { %v164_v26 = vunpack.c.l.b16 %v148_v22  ;;  %v163_v27 = vunpack.c.l.b16 %v147_v23  ;;  %v193_v28 = vor.u32 %v191_v25, %v190_v24  ;;  %v217_v57 = vor.u32 %v216_v47, %v188_v18  ;;  %v1236_v18 = vld [vmem:[%s1722_s4 + $0x20] sm:$0xff]  ;;  %v1235_v23 = vld [vmem:[%s1722_s4 + $0x18] sm:$0xff] }
  0x8a   :  { %v200_v42 = vor.u32 %v198_v41, %v197_v40  ;;  %v219_v58 = vor.u32 %v218_v46, %v195_v36  ;;  %889 = vmatpush.bf16.msrb.mxu1 %v1253_v11  ;;  %v1251_v24 = vld [vmem:[%s1722_s4 + $0x98] sm:$0xff]  ;;  %v1249_v40 = vld [vmem:[%s1722_s4 + $0x88] sm:$0xff] }
  0x8b   :  { %v170_v29 = vpack.c.b16 %v164_v26, %v163_v27  ;;  %v210_v30 = vsel %vm1491_vm2, 0, %v193_v28  ;;  %v229_v44 = vsel %vm1547_vm5, %v217_v57, 0  ;;  %v1241_v26 = vld [vmem:[%s1722_s4 + $0x48] sm:$0xff] }
  0x8c   :  { %400 = vmatmul.bf16.vlgmr.msra.gmra.mxu2 %v210_v30  ;;  %v211_v43 = vsel %vm1491_vm2, 0, %v200_v42  ;;  %v230_v59 = vsel %vm1547_vm5, %v219_v58, 0  ;;  %862 = vmatpush.bf16.msrb.mxu0 %v1243_v12  ;;  %v1234_v30 = vld [vmem:[%s1722_s4 + $0x10] sm:$0xff] }
  0x8d   :  { %424 = vmatmul.bf16.gmra.mxu1 %v170_v29  ;;  %v181_v33 = vshrl.u32 %v170_v29, 16  ;;  %v184_v35 = vshll.u32 %v170_v29, 16  ;;  %832 = vmatpush.bf16.msrb.mxu3 %v1236_v18 }
  0x8e   :  { %890 = vmatpush.bf16.msrb.mxu1 %v1252_v19 }
  0x8f   :  { %v183_v34 = vrot.slane %v181_v33, 7  ;;  %v214_v54 = vrot.slane %v184_v35, 1 }
  0x90   :  { %863 = vmatpush.bf16.msrb.mxu0 %v1242_v21 }
  0x91   :  { %v186_v37 = vor.u32 %v184_v35, %v183_v34  ;;  %v215_v55 = vor.u32 %v214_v54, %v181_v33  ;;  %833 = vmatpush.bf16.msrb.mxu3 %v1235_v23  ;;  %v1240_v35 = vld [vmem:[%s1722_s4 + $0x40] sm:$0xff] }
  0x92   :  { %891 = vmatpush.bf16.msrb.mxu1 %v1251_v24  ;;  %v1248_v54 = vld [vmem:[%s1722_s4 + $0x80] sm:$0xff] }
  0x93   :  { %v209_v39 = vsel %vm1491_vm2, 0, %v186_v37  ;;  %v228_v56 = vsel %vm1547_vm5, %v215_v55, 0 }
  0x94   :  { %395 = vmatmul.bf16.gmra.mxu0 %v209_v39  ;;  %v1233_v39 = vld [vmem:[%s1722_s4 + $0x8] sm:$0xff] }
  0x95   :  { %434 = vmatmul.bf16.gmra.mxu3 %v172_v32  ;;  %864 = vmatpush.bf16.msrb.mxu0 %v1241_v26  ;;  %v1250_v32 = vld [vmem:[%s1722_s4 + $0x90] sm:$0xff] }
  0x96   :  { %834 = vmatpush.bf16.msrb.mxu3 %v1234_v30  ;;  %892 = vmatpush.bf16.msrb.mxu1 %v1250_v32 }
  0x99   :  { %865 = vmatpush.bf16.msrb.mxu0 %v1240_v35 }
  0x9a   :  { %835 = vmatpush.bf16.msrb.mxu3 %v1233_v39  ;;  %893 = vmatpush.bf16.msrb.mxu1 %v1249_v40 }
  0x9c   :  { %405 = vmatmul.bf16.gmra.mxu2 %v211_v43 }
  0x9e   :  { %894 = vmatpush.bf16.msrb.mxu1 %v1248_v54 }
  0xac   :  { %448 = vmatmul.bf16.vlgmr.msrb.gmra.mxu2 %v227_v51  ;;  %v1232_v51 = vld [vmem:[%s1722_s4] sm:$0xff] }
  0xad   :  { %836 = vmatpush.bf16.msrb.mxu3 %v1232_v51 }
  0xbc   :  { %453 = vmatmul.bf16.gmra.mxu2 %v228_v56 }
  0xcc   :  { %458 = vmatmul.bf16.gmra.mxu2 %v229_v44 }
  0xdc   :  { %463 = vmatmul.bf16.gmra.mxu2 %v230_v59 }
  0xec   :  { %v420_v13 = vpop.f32.mrf.mxu1 }
  0xf3   :  { %v391_v6 = vpop.f32.mrf.mxu0 }
  0xf4   :  { %v392_v20 = vadd.f32 %v1603_v17, %v391_v6  ;;  %v422_v29 = vpop.f32.mrf.mxu1 }
  0xf6   :  { %v421_v25 = vadd.f32 %v420_v13, %v392_v20 }
  0xfb   :  { %v393_v22 = vpop.f32.mrf.mxu0 }
  0xfc   :  { %v394_v33 = vadd.f32 %v1603_v17, %v393_v22 }
  0xfe   :  { %v423_v42 = vadd.f32 %v422_v29, %v394_v33 }
 0x108   :  { %v430_v18 = vpop.f32.mrf.mxu3 }
 0x10a   :  { %v425_v57 = vpop.f32.mrf.mxu1 }
 0x10f   :  { %v1559_v60 = vpop.f32.mrf.mxu2 }
 0x110   :  { %v402_v24 = vadd.f32 %v1603_v17, %v1559_v60 }
 0x111   :  { %v396_v37 = vpop.f32.mrf.mxu0 }
 0x112   :  { %v397_v55 = vadd.f32 %v1603_v17, %v396_v37  ;;  %v427_v10 = vpop.f32.mrf.mxu1 }
 0x114   :  { %v426_v58 = vadd.f32 %v425_v57, %v397_v55 }
 0x117   :  { %v1564_v0 = vpop.f32.mrf.mxu2 }
 0x119   :  { %v398_v59 = vpop.f32.mrf.mxu0 }
 0x11a   :  { %v399_v4 = vadd.f32 %v1603_v17, %v398_v59 }
 0x11c   :  { %v428_v13 = vadd.f32 %v427_v10, %v399_v4 }
 0x11f   :  { %v1578_v5 = vpop.f32.mrf.mxu2 }
 0x127   :  { %v1598_v16 = vpop.f32.mrf.mxu2 }
 0x12f   :  { %v449_v27 = vpop.f32.mrf.mxu2 }
 0x130   :  { %v450_v28 = vadd.f32 %v449_v27, %v421_v25 }
 0x132   :  { %v477_v34 = vmul.f32 0.044715, %v450_v28  ;;  %v469_v11 = vmul.f32 0.5, %v450_v28 }
 0x134   :  { %v485_v36 = vmul.f32 %v477_v34, %v450_v28  ;;  %v431_v34 = vadd.f32 %v430_v18, %v402_v24 }
 0x136   :  { %v493_v41 = vmul.f32 %v485_v36, %v450_v28 }
 0x137   :  { %v451_v43 = vpop.f32.mrf.mxu2 }
 0x138   :  { %v501_v45 = vadd.f32 %v493_v41, %v450_v28  ;;  %v452_v48 = vadd.f32 %v451_v43, %v423_v42  ;;  %v432_v41 = vpop.f32.mrf.mxu3  ;;  %v404_v43 = vadd.f32 %v1603_v17, %v1564_v0 }
 0x13a   :  { %v478_v56 = vmul.f32 0.044715, %v452_v48  ;;  %v509_v47 = vmul.f32 0.7978846, %v501_v45  ;;  %v470_v27 = vmul.f32 0.5, %v452_v48 }
 0x13c   :  { %v486_v44 = vmul.f32 %v478_v56, %v452_v48  ;;  %1278 = vtanh.f32 %v509_v47 }
 0x13e   :  { %v494_v46 = vmul.f32 %v486_v44, %v452_v48 }
 0x13f   :  { %v454_v61 = vpop.f32.mrf.mxu2 }
 0x140   :  { %v502_v1 = vadd.f32 %v494_v46, %v452_v48  ;;  %v455_v2 = vadd.f32 %v454_v61, %v426_v58  ;;  %v435_v10 = vpop.f32.mrf.mxu3 }
 0x142   :  { %v1279_v3 = vpop.eup %1278  ;;  %v479_v6 = vmul.f32 0.044715, %v455_v2  ;;  %v510_v7 = vmul.f32 0.7978846, %v502_v1  ;;  %v471_v47 = vmul.f32 0.5, %v455_v2 }
 0x143   :  { %v525_v8 = vadd.f32 1.0, %v1279_v3 }
 0x144   :  { %v487_v9 = vmul.f32 %v479_v6, %v455_v2  ;;  %1280 = vtanh.f32 %v510_v7  ;;  %v407_v6 = vadd.f32 %v1603_v17, %v1578_v5 }
 0x145   :  { %v533_v20 = vmul.f32 %v525_v8, %v469_v11 }
 0x146   :  { %v495_v12 = vmul.f32 %v487_v9, %v455_v2  ;;  %v436_v5 = vadd.f32 %v435_v10, %v407_v6 }
 0x147   :  { %v456_v19 = vpop.f32.mrf.mxu2  ;;  %v590_v30 = vmul.f32 %v533_v20, %v1457_v31 }
 0x148   :  { %v503_v21 = vadd.f32 %v495_v12, %v455_v2  ;;  %v457_v22 = vadd.f32 %v456_v19, %v428_v13 }
 0x149   :  { %v598_v37 = vpack.c.bf16 %v590_v30, %v590_v30  ;;  %v409_v30 = vadd.f32 %v1603_v17, %v1598_v16 }
 0x14a   :  { %v1281_v23 = vpop.eup %1280  ;;  %v480_v25 = vmul.f32 0.044715, %v457_v22  ;;  %v511_v26 = vmul.f32 0.7978846, %v503_v21  ;;  %v472_v8 = vmul.f32 0.5, %v457_v22 }
 0x14b   :  { %v526_v29 = vadd.f32 1.0, %v1281_v23  ;;  %v614_v31 = vunpack.c.l.b16 %v598_v37  ;;  %v437_v37 = vpop.f32.mrf.mxu3 }
 0x14c   :  { %v488_v32 = vmul.f32 %v480_v25, %v457_v22  ;;  %1282 = vtanh.f32 %v511_v26 }
 0x14d   :  { %v534_v28 = vmul.f32 %v526_v29, %v470_v27 }
 0x14e   :  { %v496_v33 = vmul.f32 %v488_v32, %v457_v22 }
 0x14f   :  { %v459_v35 = vpop.f32.mrf.mxu2  ;;  %v591_v36 = vmul.f32 %v534_v28, %v1475_v38  ;;  %v433_v38 = vadd.f32 %v432_v41, %v404_v43 }
 0x150   :  { %v504_v39 = vadd.f32 %v496_v33, %v457_v22  ;;  %v460_v40 = vadd.f32 %v459_v35, %v431_v34 }
 0x151   :  { %v599_v42 = vpack.c.bf16 %v591_v36, %v591_v36 }
 0x152   :  { %v1283_v60 = vpop.eup %1282  ;;  %v481_v45 = vmul.f32 0.044715, %v460_v40  ;;  %v512_v48 = vmul.f32 0.7978846, %v504_v39  ;;  %v473_v41 = vmul.f32 0.5, %v460_v40 }
 0x153   :  { %v615_v51 = vunpack.c.l.b16 %v599_v42  ;;  %v527_v54 = vadd.f32 1.0, %v1283_v60 }
 0x154   :  { %v489_v55 = vmul.f32 %v481_v45, %v460_v40  ;;  %1284 = vtanh.f32 %v512_v48 }
 0x155   :  { %v622_v56 = vpack.c.b16 %v615_v51, %v614_v31  ;;  %v535_v59 = vmul.f32 %v527_v54, %v471_v47 }
 0x156   :  { %v497_v57 = vmul.f32 %v489_v55, %v460_v40 }
 0x157   :  { %v461_v44 = vpop.f32.mrf.mxu2  ;;  %866 = vmatmul.bf16.vlgmr.msrb.gmra.mxu0 %v622_v56  ;;  %v627_v46 = vshrl.u32 %v622_v56, 16  ;;  %v630_v58 = vshll.u32 %v622_v56, 16  ;;  %v592_v13 = vmul.f32 %v535_v59, %v1530_v15 }
 0x158   :  { %v505_v61 = vadd.f32 %v497_v57, %v460_v40  ;;  %v462_v1 = vadd.f32 %v461_v44, %v433_v38 }
 0x159   :  { %v629_v3 = vrot.slane %v627_v46, 7  ;;  %v662_v0 = vrot.slane %v630_v58, 1  ;;  %v600_v25 = vpack.c.bf16 %v592_v13, %v592_v13 }
 0x15a   :  { %v1285_v4 = vpop.eup %1284  ;;  %v482_v7 = vmul.f32 0.044715, %v462_v1  ;;  %v513_v9 = vmul.f32 0.7978846, %v505_v61  ;;  %v474_v56 = vmul.f32 0.5, %v462_v1 }
 0x15b   :  { %v632_v2 = vor.u32 %v630_v58, %v629_v3  ;;  %v663_v11 = vor.u32 %v662_v0, %v627_v46  ;;  %v528_v12 = vadd.f32 1.0, %v1285_v4  ;;  %v616_v33 = vunpack.c.l.b16 %v600_v25 }
 0x15c   :  { %v490_v18 = vmul.f32 %v482_v7, %v462_v1  ;;  %1286 = vtanh.f32 %v513_v9 }
 0x15d   :  { %v658_v19 = vsel %vm1491_vm2, 0, %v632_v2  ;;  %v674_v20 = vsel %vm1547_vm5, %v663_v11, 0  ;;  %v536_v21 = vmul.f32 %v528_v12, %v472_v8 }
 0x15e   :  { %v498_v23 = vmul.f32 %v490_v18, %v462_v1  ;;  %837 = vmatmul.bf16.vlgmr.msrb.gmra.mxu3 %v658_v19  ;;  %895 = vmatmul.bf16.vlgmr.msrb.gmra.mxu1 %v674_v20 }
 0x15f   :  { %v464_v22 = vpop.f32.mrf.mxu2  ;;  %v593_v24 = vmul.f32 %v536_v21, %v1528_v14  ;;  %v438_v14 = vadd.f32 %v437_v37, %v409_v30 }
 0x160   :  { %v506_v26 = vadd.f32 %v498_v23, %v462_v1  ;;  %v465_v27 = vadd.f32 %v464_v22, %v436_v5 }
 0x161   :  { %v601_v15 = vpack.c.bf16 %v593_v24, %v593_v24 }
 0x162   :  { %v1287_v29 = vpop.eup %1286  ;;  %v483_v32 = vmul.f32 0.044715, %v465_v27  ;;  %v514_v28 = vmul.f32 0.7978846, %v506_v26  ;;  %v475_v11 = vmul.f32 0.5, %v465_v27 }
 0x163   :  { %v617_v34 = vunpack.c.l.b16 %v601_v15  ;;  %v529_v35 = vadd.f32 1.0, %v1287_v29 }
 0x164   :  { %v491_v36 = vmul.f32 %v483_v32, %v465_v27  ;;  %1288 = vtanh.f32 %v514_v28 }
 0x165   :  { %v623_v39 = vpack.c.b16 %v617_v34, %v616_v33  ;;  %v537_v48 = vmul.f32 %v529_v35, %v473_v41 }
 0x166   :  { %v499_v42 = vmul.f32 %v491_v36, %v465_v27 }
 0x167   :  { %v466_v60 = vpop.f32.mrf.mxu2  ;;  %871 = vmatmul.bf16.gmra.mxu0 %v623_v39  ;;  %v634_v43 = vshrl.u32 %v623_v39, 16  ;;  %v637_v45 = vshll.u32 %v623_v39, 16  ;;  %v594_v40 = vmul.f32 %v537_v48, %v1502_v53 }
 0x168   :  { %v507_v31 = vadd.f32 %v499_v42, %v465_v27  ;;  %v467_v51 = vadd.f32 %v466_v60, %v438_v14  ;;  %v1683_v60 = vld [vmem:[%s1723_s5] ss:$0 sm:$0xff] }
 0x169   :  { %v636_v16 = vrot.slane %v634_v43, 7  ;;  %v664_v17 = vrot.slane %v637_v45, 1  ;;  %v602_v0 = vpack.c.bf16 %v594_v40, %v594_v40 }
 0x16a   :  { %v1289_v54 = vpop.eup %1288  ;;  %v484_v55 = vmul.f32 0.044715, %v467_v51  ;;  %v515_v47 = vmul.f32 0.7978846, %v507_v31  ;;  %v476_v23 = vmul.f32 0.5, %v467_v51 }
 0x16b   :  { %v639_v57 = vor.u32 %v637_v45, %v636_v16  ;;  %v665_v38 = vor.u32 %v664_v17, %v634_v43  ;;  %v530_v44 = vadd.f32 1.0, %v1289_v54  ;;  %v618_v53 = vunpack.c.l.b16 %v602_v0 }
 0x16c   :  { %v492_v46 = vmul.f32 %v484_v55, %v467_v51  ;;  %1290 = vtanh.f32 %v515_v47 }
 0x16d   :  { %v659_v58 = vsel %vm1491_vm2, 0, %v639_v57  ;;  %v675_v59 = vsel %vm1547_vm5, %v665_v38, 0  ;;  %v538_v61 = vmul.f32 %v530_v44, %v474_v56 }
 0x16e   :  { %v500_v3 = vmul.f32 %v492_v46, %v467_v51  ;;  %842 = vmatmul.bf16.gmra.mxu3 %v659_v58  ;;  %900 = vmatmul.bf16.gmra.mxu1 %v675_v59 }
 0x16f   :  { %v595_v1 = vmul.f32 %v538_v61, %v1517_v63 }
 0x170   :  { %v508_v4 = vadd.f32 %v500_v3, %v467_v51 }
 0x171   :  { %v603_v6 = vpack.c.bf16 %v595_v1, %v595_v1 }
 0x172   :  { %v1291_v7 = vpop.eup %1290  ;;  %v516_v8 = vmul.f32 0.7978846, %v508_v4 }
 0x173   :  { %v619_v9 = vunpack.c.l.b16 %v603_v6  ;;  %v531_v10 = vadd.f32 1.0, %v1291_v7 }
 0x174   :  { %1292 = vtanh.f32 %v516_v8 }
 0x175   :  { %v624_v2 = vpack.c.b16 %v619_v9, %v618_v53  ;;  %v539_v18 = vmul.f32 %v531_v10, %v475_v11 }
 0x177   :  { %876 = vmatmul.bf16.gmra.mxu0 %v624_v2  ;;  %v641_v12 = vshrl.u32 %v624_v2, 16  ;;  %v644_v13 = vshll.u32 %v624_v2, 16  ;;  %v596_v24 = vmul.f32 %v539_v18, %v1500_v52 }
 0x179   :  { %v643_v19 = vrot.slane %v641_v12, 7  ;;  %v666_v20 = vrot.slane %v644_v13, 1  ;;  %v604_v29 = vpack.c.bf16 %v596_v24, %v596_v24 }
 0x17a   :  { %v1293_v21 = vpop.eup %1292 }
 0x17b   :  { %v646_v63 = vor.u32 %v644_v13, %v643_v19  ;;  %v667_v5 = vor.u32 %v666_v20, %v641_v12  ;;  %v532_v22 = vadd.f32 1.0, %v1293_v21  ;;  %v620_v32 = vunpack.c.l.b16 %v604_v29 }
 0x17d   :  { %v660_v25 = vsel %vm1491_vm2, 0, %v646_v63  ;;  %v676_v26 = vsel %vm1547_vm5, %v667_v5, 0  ;;  %v540_v27 = vmul.f32 %v532_v22, %v476_v23 }
 0x17e   :  { %847 = vmatmul.bf16.gmra.mxu3 %v660_v25  ;;  %905 = vmatmul.bf16.gmra.mxu1 %v676_v26 }
 0x17f   :  { %v597_v15 = vmul.f32 %v540_v27, %v1515_v62 }
 0x181   :  { %v605_v30 = vpack.c.bf16 %v597_v15, %v597_v15 }
 0x183   :  { %v621_v28 = vunpack.c.l.b16 %v605_v30 }
 0x185   :  { %v625_v33 = vpack.c.b16 %v621_v28, %v620_v32 }
 0x187   :  { %881 = vmatmul.bf16.gmra.mxu0 %v625_v33  ;;  %v648_v34 = vshrl.u32 %v625_v33, 16  ;;  %v651_v35 = vshll.u32 %v625_v33, 16 }
 0x189   :  { %v650_v52 = vrot.slane %v648_v34, 7  ;;  %v668_v36 = vrot.slane %v651_v35, 1 }
 0x18b   :  { %v653_v37 = vor.u32 %v651_v35, %v650_v52  ;;  %v669_v39 = vor.u32 %v668_v36, %v648_v34 }
 0x18d   :  { %v661_v41 = vsel %vm1491_vm2, 0, %v653_v37  ;;  %v677_v42 = vsel %vm1547_vm5, %v669_v39, 0 }
 0x18e   :  { %852 = vmatmul.bf16.gmra.mxu3 %v661_v41  ;;  %910 = vmatmul.bf16.gmra.mxu1 %v677_v42 }
 0x1d4   :  { %v867_v62 = vpop.f32.mrf.mxu0 }
 0x1db   :  { %v896_v14 = vpop.f32.mrf.mxu1 }
 0x1dc   :  { %v869_v43 = vpop.f32.mrf.mxu0 }
 0x1e1   :  { %v838_v45 = vpop.f32.mrf.mxu3 }
 0x1e2   :  { %v839_v48 = vadd.f32 %v1683_v60, %v838_v45 }
 0x1e3   :  { %v898_v31 = vpop.f32.mrf.mxu1 }
 0x1e4   :  { %v868_v51 = vadd.f32 %v867_v62, %v839_v48  ;;  %v872_v17 = vpop.f32.mrf.mxu0 }
 0x1e6   :  { %v897_v49 = vadd.f32 %v896_v14, %v868_v51 }
 0x1e8   :  { %v924_v16 = vmul.f32 0.044715, %v897_v49  ;;  %v916_v10 = vmul.f32 0.5, %v897_v49 }
 0x1e9   :  { %v840_v50 = vpop.f32.mrf.mxu3 }
 0x1ea   :  { %v932_v54 = vmul.f32 %v924_v16, %v897_v49  ;;  %v841_v55 = vadd.f32 %v1683_v60, %v840_v50 }
 0x1eb   :  { %v901_v56 = vpop.f32.mrf.mxu1 }
 0x1ec   :  { %v940_v47 = vmul.f32 %v932_v54, %v897_v49  ;;  %v870_v57 = vadd.f32 %v869_v43, %v841_v55  ;;  %v874_v3 = vpop.f32.mrf.mxu0 }
 0x1ee   :  { %v948_v38 = vadd.f32 %v940_v47, %v897_v49  ;;  %v899_v44 = vadd.f32 %v898_v31, %v870_v57 }
 0x1f0   :  { %v956_v40 = vmul.f32 0.7978846, %v948_v38  ;;  %v925_v46 = vmul.f32 0.044715, %v899_v44  ;;  %v917_v27 = vmul.f32 0.5, %v899_v44 }
 0x1f1   :  { %v843_v58 = vpop.f32.mrf.mxu3 }
 0x1f2   :  { %1294 = vtanh.f32 %v956_v40  ;;  %v933_v59 = vmul.f32 %v925_v46, %v899_v44  ;;  %v844_v61 = vadd.f32 %v1683_v60, %v843_v58 }
 0x1f3   :  { %v903_v4 = vpop.f32.mrf.mxu1 }
 0x1f4   :  { %v941_v1 = vmul.f32 %v933_v59, %v899_v44  ;;  %v873_v0 = vadd.f32 %v872_v17, %v844_v61  ;;  %v877_v23 = vpop.f32.mrf.mxu0 }
 0x1f6   :  { %v949_v6 = vadd.f32 %v941_v1, %v899_v44  ;;  %v902_v7 = vadd.f32 %v901_v56, %v873_v0 }
 0x1f8   :  { %v1295_v8 = vpop.eup %1294  ;;  %v957_v53 = vmul.f32 0.7978846, %v949_v6  ;;  %v926_v9 = vmul.f32 0.044715, %v902_v7  ;;  %v918_v62 = vmul.f32 0.5, %v902_v7 }
 0x1f9   :  { %v972_v2 = vadd.f32 1.0, %v1295_v8  ;;  %v845_v11 = vpop.f32.mrf.mxu3 }
 0x1fa   :  { %1296 = vtanh.f32 %v957_v53  ;;  %v934_v12 = vmul.f32 %v926_v9, %v902_v7  ;;  %v846_v13 = vadd.f32 %v1683_v60, %v845_v11 }
 0x1fb   :  { %v980_v18 = vmul.f32 %v972_v2, %v916_v10  ;;  %v906_v22 = vpop.f32.mrf.mxu1 }
 0x1fc   :  { %v942_v19 = vmul.f32 %v934_v12, %v902_v7  ;;  %v875_v20 = vadd.f32 %v874_v3, %v846_v13  ;;  %v879_v37 = vpop.f32.mrf.mxu0 }
 0x1fd   :  { %v996_v21 = vpack.c.bf16 %v980_v18, %v980_v18 }
 0x1fe   :  { %v950_v63 = vadd.f32 %v942_v19, %v902_v7  ;;  %v904_v5 = vadd.f32 %v903_v4, %v875_v20 }
 0x1ff   :  { %1004 = vst [vmem:[%s1720_s6 + $0x4] sm:$0xf] %v996_v21 }
 0x200   :  { %v1297_v24 = vpop.eup %1296  ;;  %v958_v25 = vmul.f32 0.7978846, %v950_v63  ;;  %v927_v26 = vmul.f32 0.044715, %v904_v5  ;;  %v919_v57 = vmul.f32 0.5, %v904_v5 }
 0x201   :  { %v973_v15 = vadd.f32 1.0, %v1297_v24  ;;  %v848_v29 = vpop.f32.mrf.mxu3 }
 0x202   :  { %1298 = vtanh.f32 %v958_v25  ;;  %v935_v30 = vmul.f32 %v927_v26, %v904_v5  ;;  %v849_v32 = vadd.f32 %v1683_v60, %v848_v29 }
 0x203   :  { %v981_v28 = vmul.f32 %v973_v15, %v917_v27  ;;  %v908_v43 = vpop.f32.mrf.mxu1 }
 0x204   :  { %v943_v33 = vmul.f32 %v935_v30, %v904_v5  ;;  %v878_v34 = vadd.f32 %v877_v23, %v849_v32  ;;  %v882_v44 = vpop.f32.mrf.mxu0 }
 0x205   :  { %v997_v35 = vpack.c.bf16 %v981_v28, %v981_v28 }
 0x206   :  { %v951_v52 = vadd.f32 %v943_v33, %v904_v5  ;;  %v907_v36 = vadd.f32 %v906_v22, %v878_v34 }
 0x207   :  { %1005 = vst [vmem:[%s1720_s6 + $0xc] sm:$0xf] %v997_v35 }
 0x208   :  { %v1299_v39 = vpop.eup %1298  ;;  %v959_v41 = vmul.f32 0.7978846, %v951_v52  ;;  %v928_v42 = vmul.f32 0.044715, %v907_v36  ;;  %v920_v9 = vmul.f32 0.5, %v907_v36 }
 0x209   :  { %v974_v14 = vadd.f32 1.0, %v1299_v39  ;;  %v850_v45 = vpop.f32.mrf.mxu3 }
 0x20a   :  { %1300 = vtanh.f32 %v959_v41  ;;  %v936_v48 = vmul.f32 %v928_v42, %v907_v36  ;;  %v851_v31 = vadd.f32 %v1683_v60, %v850_v45 }
 0x20b   :  { %v982_v51 = vmul.f32 %v974_v14, %v918_v62  ;;  %v911_v61 = vpop.f32.mrf.mxu1 }
 0x20c   :  { %v944_v49 = vmul.f32 %v936_v48, %v907_v36  ;;  %v880_v16 = vadd.f32 %v879_v37, %v851_v31  ;;  %v884_v18 = vpop.f32.mrf.mxu0 }
 0x20d   :  { %v998_v17 = vpack.c.bf16 %v982_v51, %v982_v51 }
 0x20e   :  { %v952_v50 = vadd.f32 %v944_v49, %v907_v36  ;;  %v909_v54 = vadd.f32 %v908_v43, %v880_v16 }
 0x20f   :  { %1006 = vst [vmem:[%s1720_s6 + $0x14] sm:$0xf] %v998_v17 }
 0x210   :  { %v1301_v55 = vpop.eup %1300  ;;  %v960_v56 = vmul.f32 0.7978846, %v952_v50  ;;  %v929_v47 = vmul.f32 0.044715, %v909_v54  ;;  %v921_v26 = vmul.f32 0.5, %v909_v54 }
 0x211   :  { %v975_v38 = vadd.f32 1.0, %v1301_v55  ;;  %v853_v40 = vpop.f32.mrf.mxu3 }
 0x212   :  { %1302 = vtanh.f32 %v960_v56  ;;  %v937_v46 = vmul.f32 %v929_v47, %v909_v54  ;;  %v854_v58 = vadd.f32 %v1683_v60, %v853_v40 }
 0x213   :  { %v983_v59 = vmul.f32 %v975_v38, %v919_v57  ;;  %v913_v23 = vpop.f32.mrf.mxu1 }
 0x214   :  { %v945_v3 = vmul.f32 %v937_v46, %v909_v54  ;;  %v883_v1 = vadd.f32 %v882_v44, %v854_v58 }
 0x215   :  { %v999_v0 = vpack.c.bf16 %v983_v59, %v983_v59 }
 0x216   :  { %v953_v4 = vadd.f32 %v945_v3, %v909_v54  ;;  %v912_v6 = vadd.f32 %v911_v61, %v883_v1 }
 0x217   :  { %1007 = vst [vmem:[%s1720_s6 + $0x1c] sm:$0xf] %v999_v0 }
 0x218   :  { %v1303_v7 = vpop.eup %1302  ;;  %v961_v8 = vmul.f32 0.7978846, %v953_v4  ;;  %v930_v53 = vmul.f32 0.044715, %v912_v6  ;;  %v922_v34 = vmul.f32 0.5, %v912_v6 }
 0x219   :  { %v976_v10 = vadd.f32 1.0, %v1303_v7  ;;  %v855_v2 = vpop.f32.mrf.mxu3 }
 0x21a   :  { %1304 = vtanh.f32 %v961_v8  ;;  %v938_v11 = vmul.f32 %v930_v53, %v912_v6  ;;  %v856_v12 = vadd.f32 %v1683_v60, %v855_v2 }
 0x21b   :  { %v984_v13 = vmul.f32 %v976_v10, %v920_v9 }
 0x21c   :  { %v946_v19 = vmul.f32 %v938_v11, %v912_v6  ;;  %v885_v20 = vadd.f32 %v884_v18, %v856_v12 }
 0x21d   :  { %v1000_v21 = vpack.c.bf16 %v984_v13, %v984_v13 }
 0x21e   :  { %v954_v63 = vadd.f32 %v946_v19, %v912_v6  ;;  %v914_v5 = vadd.f32 %v913_v23, %v885_v20 }
 0x21f   :  { %1008 = vst [vmem:[%s1720_s6 + $0x24] sm:$0xf] %v1000_v21 }
 0x220   :  { %v1305_v22 = vpop.eup %1304  ;;  %v962_v24 = vmul.f32 0.7978846, %v954_v63  ;;  %v931_v25 = vmul.f32 0.044715, %v914_v5  ;;  %v923_v39 = vmul.f32 0.5, %v914_v5 }
 0x221   :  { %v977_v27 = vadd.f32 1.0, %v1305_v22 }
 0x222   :  { %1306 = vtanh.f32 %v962_v24  ;;  %v939_v15 = vmul.f32 %v931_v25, %v914_v5 }
 0x223   :  { %v985_v60 = vmul.f32 %v977_v27, %v921_v26 }
 0x224   :  { %v947_v29 = vmul.f32 %v939_v15, %v914_v5 }
 0x225   :  { %v1001_v30 = vpack.c.bf16 %v985_v60, %v985_v60 }
 0x226   :  { %v955_v32 = vadd.f32 %v947_v29, %v914_v5 }
 0x227   :  { %1009 = vst [vmem:[%s1720_s6 + $0x2c] sm:$0xf] %v1001_v30 }
 0x228   :  { %v1307_v28 = vpop.eup %1306  ;;  %v963_v33 = vmul.f32 0.7978846, %v955_v32 }
 0x229   :  { %v978_v35 = vadd.f32 1.0, %v1307_v28 }
 0x22a   :  { %1308 = vtanh.f32 %v963_v33 }
 0x22b   :  { %v986_v52 = vmul.f32 %v978_v35, %v922_v34 }
 0x22d   :  { %v1002_v36 = vpack.c.bf16 %v986_v52, %v986_v52 }
 0x22f   :  { %1010 = vst [vmem:[%s1720_s6 + $0x34] sm:$0xf] %v1002_v36 }
 0x230   :  { %v1309_v37 = vpop.eup %1308 }
 0x231   :  { %v979_v41 = vadd.f32 1.0, %v1309_v37 }
 0x233   :  { %v987_v42 = vmul.f32 %v979_v41, %v923_v39 }
 0x235   :  { %v1003_v62 = vpack.c.bf16 %v987_v42, %v987_v42 }
 0x237   :  { %1011 = vst [vmem:[%s1720_s6 + $0x3c] sm:$0xf] %v1003_v62 }

// kernel: re2_forward.7
= control target key start
LH: loop header
LB: loop body
LE: loop exit
PB: predicated region body
PF: predicated region fallthrough
CT: control target
= control target key end

     0   :  { %v1793_v0 = vmov 0   ;;  %vm313_vm0 = vcmask 1040384   ;;  %vm314_vm1 = vsmask.f32 256  ;;  %vm348_vm3 = vcmask 1047552   ;;  %s2418_s1 = inlined_call_operand.vmem [shape: f32[4,16,1], index: 1, kind: input, shape index: {}]   ;;  %s2419_s2 = inlined_call_operand.vmem [shape: bf16[768,128], index: 2, kind: input, shape index: {}]   ;;  %s2420_s0 = inlined_call_operand.vmem [shape: bf16[4,16,256], index: 0, kind: input, shape index: {}]   ;;  %s2421_s6 = inlined_call_operand.vmem [shape: bf16[4,16,384], index: 6, kind: output, shape index: {}]   ;;  %s2422_s3 = inlined_call_operand.vmem [shape: f32[1,128], index: 3, kind: input, shape index: {}]   ;;  %s2423_s4 = inlined_call_operand.vmem [shape: bf16[384,128], index: 4, kind: input, shape index: {}]   ;;  %s2424_s5 = inlined_call_operand.vmem [shape: f32[1,128], index: 5, kind: input, shape index: {}]  }
   0x1   :  { %1757 = vset.pattern.permute.xlu1 %v1793_v0  ;;  %1756 = vset.pattern.permute.xlu0 %v1793_v0  ;;  %v38_v1 = vld [vmem:[%s2418_s1 + $0x30] sm:$0xff]  ;;  %v36_v2 = vld [vmem:[%s2418_s1 + $0x20] sm:$0xff]  ;;  %v1690_v4 = vld [vmem:[%s2419_s2 + $0xb8] sm:$0xff]  ;;  %vm349_vm4 = vsmask.f32 7424 }
   0x2   :  { %185 = vperm.xlu1 %1757, %v38_v1   ;;  %175 = vperm.xlu0 %1756, %v36_v2   ;;  %v32_v3 = vld [vmem:[%s2418_s1] sm:$0xff]  ;;  %v1698_v5 = vld [vmem:[%s2419_s2 + $0xf8] sm:$0xff]  ;;  %v1689_v6 = vld [vmem:[%s2419_s2 + $0xb0] sm:$0xff] }
   0x3   :  { %1758 = vset.pattern.permute.xlu2 %v1793_v0  ;;  %716 = vmatpush.bf16.msra.mxu2 %v1690_v4  ;;  %v1674_v7 = vld [vmem:[%s2419_s2 + $0x38] sm:$0xff]  ;;  %v37_v9 = vld [vmem:[%s2418_s1 + $0x28] sm:$0xff]  ;;  %v1697_v10 = vld [vmem:[%s2419_s2 + $0xf0] sm:$0xff] }
   0x4   :  { %155 = vperm.xlu2 %1758, %v32_v3   ;;  %v39_v8 = vld [vmem:[%s2418_s1 + $0x38] sm:$0xff]  ;;  %745 = vmatpush.bf16.msra.mxu3 %v1698_v5  ;;  %v1673_v11 = vld [vmem:[%s2419_s2 + $0x30] sm:$0xff]  ;;  %v33_v12 = vld [vmem:[%s2418_s1 + $0x8] sm:$0xff] }
   0x5   :  { %658 = vmatpush.bf16.msra.mxu0 %v1674_v7  ;;  %1739 = vmatpush.bf16.msra.mxu1 %v1674_v7  ;;  %v1688_v13 = vld [vmem:[%s2419_s2 + $0xa8] sm:$0xff]  ;;  %v1687_v15 = vld [vmem:[%s2419_s2 + $0xa0] sm:$0xff]  ;;  %v35_v16 = vld [vmem:[%s2418_s1 + $0x18] sm:$0xff] }
   0x6   :  { %v1696_v14 = vld [vmem:[%s2419_s2 + $0xe8] sm:$0xff]  ;;  %v34_v17 = vld [vmem:[%s2418_s1 + $0x10] sm:$0xff]  ;;  %v1695_v18 = vld [vmem:[%s2419_s2 + $0xe0] sm:$0xff] }
   0x7   :  { %717 = vmatpush.bf16.msra.mxu2 %v1689_v6  ;;  %v24_v19 = vld [vmem:[%s2420_s0] sm:$0xff]  ;;  %v1672_v20 = vld [vmem:[%s2419_s2 + $0x28] sm:$0xff]  ;;  %v1686_v21 = vld [vmem:[%s2419_s2 + $0x98] sm:$0xff] }
   0x8   :  { %746 = vmatpush.bf16.msra.mxu3 %v1697_v10  ;;  %1351 = vst [vmem:[%s2421_s6] sm:$0xff] %v24_v19  ;;  %v1694_v22 = vld [vmem:[%s2419_s2 + $0xd8] sm:$0xff]  ;;  %v1671_v23 = vld [vmem:[%s2419_s2 + $0x20] sm:$0xff]  ;;  %v1685_v24 = vld [vmem:[%s2419_s2 + $0x90] sm:$0xff]  ;;  %v40_v38 = vunpack.c.l.bf16 %v24_v19  ;;  %v41_v39 = vunpack.c.h.bf16 %v24_v19 }
   0x9   :  { %659 = vmatpush.bf16.msra.mxu0 %v1673_v11  ;;  %1740 = vmatpush.bf16.msra.mxu1 %v1673_v11  ;;  %v1693_v25 = vld [vmem:[%s2419_s2 + $0xd0] sm:$0xff]  ;;  %v1910_v26 = vld [vmem:[%s2420_s0 + $0x20] sm:$0xff]  ;;  %v25_v27 = vld [vmem:[%s2420_s0 + $0x8] sm:$0xff] }
   0xa   :  { %190 = vperm.xlu1 %1757, %v39_v8   ;;  %180 = vperm.xlu0 %1756, %v37_v9   ;;  %1355 = vst [vmem:[%s2421_s6 + $0x30] sm:$0xff] %v1910_v26  ;;  %v1670_v28 = vld [vmem:[%s2419_s2 + $0x18] sm:$0xff]  ;;  %v1925_v29 = vld [vmem:[%s2420_s0 + $0x30] sm:$0xff]  ;;  %v1684_v30 = vld [vmem:[%s2419_s2 + $0x88] sm:$0xff]  ;;  %v42_v45 = vunpack.c.l.bf16 %v25_v27  ;;  %v43_v46 = vunpack.c.h.bf16 %v25_v27  ;;  %v48_v10 = vunpack.c.l.bf16 %v1910_v26  ;;  %v49_v11 = vunpack.c.h.bf16 %v1910_v26 }
   0xb   :  { %718 = vmatpush.bf16.msra.mxu2 %v1688_v13  ;;  %1352 = vst [vmem:[%s2421_s6 + $0xc] sm:$0xff] %v25_v27  ;;  %v1692_v31 = vld [vmem:[%s2419_s2 + $0xc8] sm:$0xff]  ;;  %v1669_v32 = vld [vmem:[%s2419_s2 + $0x10] sm:$0xff]  ;;  %v1683_v33 = vld [vmem:[%s2419_s2 + $0x80] sm:$0xff]  ;;  %v52_v19 = vunpack.c.l.bf16 %v1925_v29 }
   0xc   :  { %160 = vperm.xlu2 %1758, %v33_v12   ;;  %747 = vmatpush.bf16.msra.mxu3 %v1696_v14  ;;  %1357 = vst [vmem:[%s2421_s6 + $0x48] sm:$0xff] %v1925_v29  ;;  %v1691_v34 = vld [vmem:[%s2419_s2 + $0xc0] sm:$0xff]  ;;  %v1952_v35 = vld [vmem:[%s2420_s0 + $0x28] sm:$0xff]  ;;  %v1964_v37 = vld [vmem:[%s2420_s0 + $0x38] sm:$0xff] }
   0xd   :  { %660 = vmatpush.bf16.msra.mxu0 %v1672_v20  ;;  %1741 = vmatpush.bf16.msra.mxu1 %v1672_v20  ;;  %1356 = vst [vmem:[%s2421_s6 + $0x3c] sm:$0xff] %v1952_v35  ;;  %v1668_v36 = vld [vmem:[%s2419_s2 + $0x8] sm:$0xff]  ;;  %v1667_v41 = vld [vmem:[%s2419_s2] sm:$0xff]  ;;  %v1980_v44 = vld [vmem:[%s2420_s0 + $0x18] sm:$0xff]  ;;  %v53_v20 = vunpack.c.h.bf16 %v1925_v29 }
   0xe   :  { %1358 = vst [vmem:[%s2421_s6 + $0x54] sm:$0xff] %v1964_v37  ;;  %v1989_v47 = vld [vmem:[%s2420_s0 + $0x10] sm:$0xff]  ;;  %v1706_v48 = vld [vmem:[%s2419_s2 + $0x138] sm:$0xff]  ;;  %v1704_v60 = vld [vmem:[%s2419_s2 + $0x128] sm:$0xff] }
   0xf   :  { %719 = vmatpush.bf16.msra.mxu2 %v1687_v15  ;;  %1354 = vst [vmem:[%s2421_s6 + $0x24] sm:$0xff] %v1980_v44  ;;  %v1705_v53 = vld [vmem:[%s2419_s2 + $0x130] sm:$0xff]  ;;  %v1682_v59 = vld [vmem:[%s2419_s2 + $0x78] sm:$0xff]  ;;  %v1703_v0 = vld [vmem:[%s2419_s2 + $0x120] sm:$0xff] }
  0x10   :  { %748 = vmatpush.bf16.msra.mxu3 %v1695_v18  ;;  %1353 = vst [vmem:[%s2421_s6 + $0x18] sm:$0xff] %v1989_v47  ;;  %v1681_v63 = vld [vmem:[%s2419_s2 + $0x70] sm:$0xff]  ;;  %vm2029_vm2 = vmand %vm313_vm0, %vm314_vm1  ;;  %v1680_v8 = vld [vmem:[%s2419_s2 + $0x68] sm:$0xff]  ;;  %v51_v18 = vunpack.c.h.bf16 %v1952_v35 }
  0x11   :  { %661 = vmatpush.bf16.msra.mxu0 %v1671_v23  ;;  %1742 = vmatpush.bf16.msra.mxu1 %v1671_v23  ;;  %v1702_v9 = vld [vmem:[%s2419_s2 + $0x118] sm:$0xff]  ;;  %v1679_v13 = vld [vmem:[%s2419_s2 + $0x60] sm:$0xff]  ;;  %v1701_v14 = vld [vmem:[%s2419_s2 + $0x110] sm:$0xff]  ;;  %v55_v23 = vunpack.c.h.bf16 %v1964_v37 }
  0x12   :  { %170 = vperm.xlu1 %1757, %v35_v16   ;;  %165 = vperm.xlu0 %1756, %v34_v17   ;;  %v50_v17 = vunpack.c.l.bf16 %v1952_v35  ;;  %v1700_v26 = vld [vmem:[%s2419_s2 + $0x108] sm:$0xff]  ;;  %vm2156_vm5 = vmand %vm348_vm3, %vm349_vm4 }
  0x13   :  { %720 = vmatpush.bf16.msra.mxu2 %v1686_v21 }
  0x14   :  { %749 = vmatpush.bf16.msra.mxu3 %v1694_v22  ;;  %v54_v22 = vunpack.c.l.bf16 %v1964_v37 }
  0x15   :  { %662 = vmatpush.bf16.msra.mxu0 %v1670_v28  ;;  %1743 = vmatpush.bf16.msra.mxu1 %v1670_v28 }
  0x17   :  { %721 = vmatpush.bf16.msra.mxu2 %v1685_v24 }
  0x18   :  { %750 = vmatpush.bf16.msra.mxu3 %v1693_v25  ;;  %v1678_v25 = vld [vmem:[%s2419_s2 + $0x58] sm:$0xff] }
  0x19   :  { %663 = vmatpush.bf16.msra.mxu0 %v1669_v32  ;;  %1744 = vmatpush.bf16.msra.mxu1 %v1669_v32 }
  0x1b   :  { %722 = vmatpush.bf16.msra.mxu2 %v1684_v30  ;;  %v1677_v30 = vld [vmem:[%s2419_s2 + $0x50] sm:$0xff] }
  0x1c   :  { %751 = vmatpush.bf16.msra.mxu3 %v1692_v31  ;;  %v1699_v31 = vld [vmem:[%s2419_s2 + $0x100] sm:$0xff] }
  0x1d   :  { %664 = vmatpush.bf16.msra.mxu0 %v1668_v36  ;;  %1745 = vmatpush.bf16.msra.mxu1 %v1668_v36 }
  0x1f   :  { %723 = vmatpush.bf16.msra.mxu2 %v1683_v33  ;;  %v46_v33 = vunpack.c.l.bf16 %v1980_v44 }
  0x20   :  { %752 = vmatpush.bf16.msra.mxu3 %v1691_v34  ;;  %v47_v34 = vunpack.c.h.bf16 %v1980_v44  ;;  %v1676_v44 = vld [vmem:[%s2419_s2 + $0x48] sm:$0xff] }
  0x21   :  { %665 = vmatpush.bf16.msra.mxu0 %v1667_v41  ;;  %1746 = vmatpush.bf16.msra.mxu1 %v1667_v41 }
  0x25   :  { %774 = vmatpush.bf16.msrb.mxu0 %v1706_v48  ;;  %687 = vmatpush.bf16.msrb.mxu1 %v1682_v59 }
  0x29   :  { %775 = vmatpush.bf16.msrb.mxu0 %v1705_v53  ;;  %688 = vmatpush.bf16.msrb.mxu1 %v1681_v63 }
  0x2d   :  { %776 = vmatpush.bf16.msrb.mxu0 %v1704_v60  ;;  %689 = vmatpush.bf16.msrb.mxu1 %v1680_v8 }
  0x31   :  { %777 = vmatpush.bf16.msrb.mxu0 %v1703_v0  ;;  %690 = vmatpush.bf16.msrb.mxu1 %v1679_v13 }
  0x35   :  { %778 = vmatpush.bf16.msrb.mxu0 %v1702_v9  ;;  %691 = vmatpush.bf16.msrb.mxu1 %v1678_v25  ;;  %v1713_v25 = vld [vmem:[%s2419_s2 + $0x170] sm:$0xff] }
  0x39   :  { %779 = vmatpush.bf16.msrb.mxu0 %v1701_v14  ;;  %692 = vmatpush.bf16.msrb.mxu1 %v1677_v30 }
  0x3d   :  { %780 = vmatpush.bf16.msrb.mxu0 %v1700_v26  ;;  %693 = vmatpush.bf16.msrb.mxu1 %v1676_v44 }
  0x41   :  { %781 = vmatpush.bf16.msrb.mxu0 %v1699_v31 }
  0x5e   :  { %v1970_v40 = vpop.permute.xlu2 %155 }
  0x5f   :  { %v193_v42 = vmul.f32 %v1970_v40, %v40_v38  ;;  %v194_v43 = vmul.f32 %v1970_v40, %v41_v39 }
  0x61   :  { %v209_v49 = vpack.c.bf16 %v194_v43, %v193_v42  ;;  %v44_v42 = vunpack.c.l.bf16 %v1989_v47  ;;  %v45_v43 = vunpack.c.h.bf16 %v1989_v47 }
  0x63   :  { %v225_v55 = vunpack.c.l.b16 %v209_v49  ;;  %v226_v56 = vunpack.c.h.b16 %v209_v49 }
  0x66   :  { %v1998_v50 = vpop.permute.xlu2 %160 }
  0x67   :  { %v195_v51 = vmul.f32 %v1998_v50, %v42_v45  ;;  %v196_v52 = vmul.f32 %v1998_v50, %v43_v46 }
  0x69   :  { %v210_v54 = vpack.c.bf16 %v196_v52, %v195_v51 }
  0x6b   :  { %v227_v57 = vunpack.c.l.b16 %v210_v54  ;;  %v228_v58 = vunpack.c.h.b16 %v210_v54 }
  0x6d   :  { %v2011_v61 = vpack.c.b16 %v227_v57, %v225_v55  ;;  %v2013_v62 = vpack.c.b16 %v228_v58, %v226_v56  ;;  %v1675_v56 = vld [vmem:[%s2419_s2 + $0x40] sm:$0xff] }
  0x6e   :  { %694 = vmatpush.bf16.msrb.mxu1 %v1675_v56 }
  0x6f   :  { %724 = vmatmul.bf16.vlgmr.msra.gmra.mxu2 %v2011_v61  ;;  %753 = vmatmul.bf16.vlgmr.msra.gmra.mxu3 %v2013_v62  ;;  %v250_v1 = vshrl.u32 %v2011_v61, 16  ;;  %v253_v2 = vshll.u32 %v2011_v61, 16  ;;  %v260_v61 = vshll.u32 %v2013_v62, 16 }
  0x71   :  { %v252_v3 = vrot.slane %v250_v1, 7  ;;  %v324_v31 = vrot.slane %v253_v2, 1 }
  0x73   :  { %v255_v4 = vor.u32 %v253_v2, %v252_v3  ;;  %v257_v2 = vshrl.u32 %v2013_v62, 16 }
  0x74   :  { %v2033_v6 = vpop.permute.xlu1 %185  ;;  %v2035_v7 = vpop.permute.xlu0 %175 }
  0x75   :  { %v316_v12 = vsel %vm2029_vm2, 0, %v255_v4  ;;  %v201_v15 = vmul.f32 %v2035_v7, %v48_v10  ;;  %v202_v16 = vmul.f32 %v2035_v7, %v49_v11  ;;  %v205_v35 = vmul.f32 %v2033_v6, %v52_v19 }
  0x76   :  { %666 = vmatmul.bf16.vlgmr.msra.gmra.mxu0 %v316_v12  ;;  %v206_v36 = vmul.f32 %v2033_v6, %v53_v20 }
  0x77   :  { %v2071_v27 = vpack.c.bf16 %v202_v16, %v201_v15  ;;  %v1714_v16 = vld [vmem:[%s2419_s2 + $0x178] sm:$0xff] }
  0x78   :  { %v2098_v46 = vpack.c.bf16 %v206_v36, %v205_v35  ;;  %v1712_v35 = vld [vmem:[%s2419_s2 + $0x168] sm:$0xff] }
  0x79   :  { %v233_v39 = vunpack.c.l.b16 %v2071_v27  ;;  %v234_v30 = vunpack.c.h.b16 %v2071_v27  ;;  %v325_v27 = vor.u32 %v324_v31, %v250_v1 }
  0x7a   :  { %v237_v59 = vunpack.c.l.b16 %v2098_v46 }
  0x7b   :  { %v351_v36 = vsel %vm2156_vm5, %v325_v27, 0 }
  0x7c   :  { %v2059_v21 = vpop.permute.xlu1 %190  ;;  %v2063_v24 = vpop.permute.xlu0 %180 }
  0x7d   :  { %v203_v28 = vmul.f32 %v2063_v24, %v50_v17  ;;  %v204_v29 = vmul.f32 %v2063_v24, %v51_v18  ;;  %v207_v37 = vmul.f32 %v2059_v21, %v54_v22  ;;  %v208_v38 = vmul.f32 %v2059_v21, %v55_v23 }
  0x7f   :  { %v2081_v32 = vpack.c.bf16 %v204_v29, %v203_v28  ;;  %v2100_v48 = vpack.c.bf16 %v208_v38, %v207_v37  ;;  %v259_v37 = vrot.slane %v257_v2, 7  ;;  %v1711_v38 = vld [vmem:[%s2419_s2 + $0x160] sm:$0xff] }
  0x81   :  { %v235_v41 = vunpack.c.l.b16 %v2081_v32  ;;  %v239_v60 = vunpack.c.l.b16 %v2100_v48  ;;  %v236_v29 = vunpack.c.h.b16 %v2081_v32  ;;  %v262_v1 = vor.u32 %v260_v61, %v259_v37 }
  0x83   :  { %v2096_v45 = vpack.c.b16 %v235_v41, %v233_v39  ;;  %v2125_v14 = vpack.c.b16 %v239_v60, %v237_v59  ;;  %v238_v39 = vunpack.c.h.b16 %v2098_v46  ;;  %v240_v41 = vunpack.c.h.b16 %v2100_v48  ;;  %v1708_v59 = vld [vmem:[%s2419_s2 + $0x148] sm:$0xff] }
  0x84   :  { %v2102_v49 = vpop.permute.xlu1 %170  ;;  %v2104_v51 = vpop.permute.xlu0 %165 }
  0x85   :  { %v199_v52 = vmul.f32 %v2102_v49, %v46_v33  ;;  %v200_v47 = vmul.f32 %v2102_v49, %v47_v34  ;;  %v197_v53 = vmul.f32 %v2104_v51, %v44_v42  ;;  %v198_v54 = vmul.f32 %v2104_v51, %v45_v43 }
  0x86   :  { %v278_v55 = vshrl.u32 %v2096_v45, 16  ;;  %v281_v0 = vshll.u32 %v2096_v45, 16  ;;  %v292_v19 = vshrl.u32 %v2125_v14, 16  ;;  %v295_v26 = vshll.u32 %v2125_v14, 16 }
  0x87   :  { %v212_v57 = vpack.c.bf16 %v200_v47, %v199_v52  ;;  %v211_v58 = vpack.c.bf16 %v198_v54, %v197_v53  ;;  %v2146_v34 = vpack.c.b16 %v236_v29, %v234_v30  ;;  %v317_v43 = vsel %vm2029_vm2, 0, %v262_v1  ;;  %v1710_v52 = vld [vmem:[%s2419_s2 + $0x158] sm:$0xff]  ;;  %v1709_v53 = vld [vmem:[%s2419_s2 + $0x150] sm:$0xff] }
  0x88   :  { %v280_v63 = vrot.slane %v278_v55, 7  ;;  %v294_v23 = vrot.slane %v292_v19, 7  ;;  %v248_v44 = vpack.c.b16 %v240_v41, %v238_v39  ;;  %v1721_v39 = vld [vmem:[%s2423_s4 + $0x30] sm:$0xff] }
  0x89   :  { %v231_v3 = vunpack.c.l.b16 %v212_v57  ;;  %v232_v4 = vunpack.c.h.b16 %v212_v57  ;;  %v229_v8 = vunpack.c.l.b16 %v211_v58  ;;  %v230_v9 = vunpack.c.h.b16 %v211_v58 }
  0x8a   :  { %v283_v10 = vor.u32 %v281_v0, %v280_v63  ;;  %v297_v28 = vor.u32 %v295_v26, %v294_v23  ;;  %v332_v57 = vrot.slane %v281_v0, 1  ;;  %v1707_v63 = vld [vmem:[%s2419_s2 + $0x140] sm:$0xff] }
  0x8b   :  { %v243_v11 = vpack.c.b16 %v231_v3, %v229_v8  ;;  %v2121_v12 = vpack.c.b16 %v232_v4, %v230_v9  ;;  %v285_v3 = vshrl.u32 %v2146_v34, 16  ;;  %v288_v8 = vshll.u32 %v2146_v34, 16 }
  0x8c   :  { %v320_v13 = vsel %vm2029_vm2, 0, %v283_v10  ;;  %v322_v33 = vsel %vm2029_vm2, 0, %v297_v28  ;;  %v333_v60 = vor.u32 %v332_v57, %v278_v55  ;;  %v336_v10 = vrot.slane %v295_v26, 1  ;;  %v1719_v57 = vld [vmem:[%s2423_s4 + $0x20] sm:$0xff] }
  0x8d   :  { %676 = vmatmul.bf16.vlgmr.msra.gmra.mxu1 %v320_v13  ;;  %729 = vmatmul.bf16.gmra.mxu2 %v243_v11  ;;  %v264_v15 = vshrl.u32 %v243_v11, 16  ;;  %v267_v18 = vshll.u32 %v243_v11, 16  ;;  %v271_v47 = vshrl.u32 %v2121_v12, 16  ;;  %v274_v54 = vshll.u32 %v2121_v12, 16 }
  0x8e   :  { %758 = vmatmul.bf16.gmra.mxu3 %v2121_v12  ;;  %803 = vmatpush.bf16.msra.mxu1 %v1714_v16  ;;  %v355_v0 = vsel %vm2156_vm5, %v333_v60, 0  ;;  %v287_v4 = vrot.slane %v285_v3, 7  ;;  %v337_v55 = vor.u32 %v336_v10, %v292_v19  ;;  %v299_v11 = vshrl.u32 %v248_v44, 16 }
  0x8f   :  { %v266_v17 = vrot.slane %v264_v15, 7  ;;  %v328_v42 = vrot.slane %v267_v18, 1  ;;  %v273_v48 = vrot.slane %v271_v47, 7 }
  0x90   :  { %v290_v9 = vor.u32 %v288_v8, %v287_v4  ;;  %v357_v12 = vsel %vm2156_vm5, %v337_v55, 0  ;;  %v301_v13 = vrot.slane %v299_v11, 7  ;;  %v1728_v4 = vld [vmem:[%s2423_s4 + $0x68] sm:$0xff]  ;;  %v1738_v55 = vld [vmem:[%s2423_s4 + $0xb8] sm:$0xff] }
  0x91   :  { %v269_v20 = vor.u32 %v267_v18, %v266_v17  ;;  %v329_v62 = vor.u32 %v328_v42, %v264_v15  ;;  %v276_v56 = vor.u32 %v274_v54, %v273_v48  ;;  %v302_v15 = vshll.u32 %v248_v44, 16  ;;  %v2228_v42 = vld [vmem:[%s2422_s3] ss:$0 sm:$0xff]  ;;  %1250 = vmatpush.bf16.msra.mxu0 %v1738_v55 }
  0x92   :  { %804 = vmatpush.bf16.msra.mxu1 %v1713_v25  ;;  %v326_v18 = vrot.slane %v260_v61, 1  ;;  %v334_v25 = vrot.slane %v288_v8, 1  ;;  %v1718_v8 = vld [vmem:[%s2423_s4 + $0x18] sm:$0xff] }
  0x93   :  { %v318_v22 = vsel %vm2029_vm2, 0, %v269_v20  ;;  %v353_v46 = vsel %vm2156_vm5, %v329_v62, 0  ;;  %v319_v58 = vsel %vm2029_vm2, 0, %v276_v56  ;;  %v304_v16 = vor.u32 %v302_v15, %v301_v13  ;;  %v1729_v56 = vld [vmem:[%s2423_s4 + $0x70] sm:$0xff] }
  0x94   :  { %671 = vmatmul.bf16.gmra.mxu0 %v318_v22  ;;  %v327_v20 = vor.u32 %v326_v18, %v257_v2  ;;  %v335_v26 = vor.u32 %v334_v25, %v285_v3  ;;  %v338_v31 = vrot.slane %v302_v15, 1  ;;  %v2268_v15 = vld [vmem:[%s2423_s4 + $0xb0] sm:$0xff] }
  0x95   :  { %v323_v17 = vsel %vm2029_vm2, 0, %v304_v16  ;;  %v1727_v16 = vld [vmem:[%s2423_s4 + $0x60] sm:$0xff]  ;;  %1251 = vmatpush.bf16.msra.mxu0 %v2268_v15 }
  0x96   :  { %805 = vmatpush.bf16.msra.mxu1 %v1712_v35  ;;  %v352_v22 = vsel %vm2156_vm5, %v327_v20, 0  ;;  %v356_v29 = vsel %vm2156_vm5, %v335_v26, 0  ;;  %v1726_v26 = vld [vmem:[%s2423_s4 + $0x58] sm:$0xff] }
  0x9a   :  { %806 = vmatpush.bf16.msra.mxu1 %v1711_v38  ;;  %v1722_v38 = vld [vmem:[%s2423_s4 + $0x38] sm:$0xff] }
  0x9b   :  { %1192 = vmatpush.bf16.msrb.mxu2 %v1722_v38 }
  0x9d   :  { %681 = vmatmul.bf16.gmra.mxu1 %v322_v33  ;;  %734 = vmatmul.bf16.gmra.mxu2 %v2096_v45  ;;  %v321_v45 = vsel %vm2029_vm2, 0, %v290_v9  ;;  %v339_v33 = vor.u32 %v338_v31, %v299_v11 }
  0x9e   :  { %763 = vmatmul.bf16.gmra.mxu3 %v2146_v34  ;;  %807 = vmatpush.bf16.msra.mxu1 %v1710_v52 }
  0x9f   :  { %v358_v35 = vsel %vm2156_vm5, %v339_v33, 0  ;;  %1193 = vmatpush.bf16.msrb.mxu2 %v1721_v39 }
  0xa2   :  { %808 = vmatpush.bf16.msra.mxu1 %v1709_v53 }
  0xa4   :  { %782 = vmatmul.bf16.vlgmr.msrb.gmra.mxu0 %v351_v36 }
  0xa6   :  { %809 = vmatpush.bf16.msra.mxu1 %v1708_v59 }
  0xaa   :  { %810 = vmatpush.bf16.msra.mxu1 %v1707_v63 }
  0xad   :  { %695 = vmatmul.bf16.vlgmr.msrb.gmra.mxu1 %v317_v43  ;;  %739 = vmatmul.bf16.gmra.mxu2 %v2125_v14  ;;  %v330_v14 = vrot.slane %v274_v54, 1  ;;  %v1730_v43 = vld [vmem:[%s2423_s4 + $0x78] sm:$0xff] }
  0xae   :  { %768 = vmatmul.bf16.gmra.mxu3 %v248_v44  ;;  %v1720_v44 = vld [vmem:[%s2423_s4 + $0x28] sm:$0xff] }
  0xaf   :  { %v331_v19 = vor.u32 %v330_v14, %v271_v47  ;;  %1221 = vmatpush.bf16.msrb.mxu3 %v1730_v43  ;;  %1194 = vmatpush.bf16.msrb.mxu2 %v1720_v44  ;;  %v2302_v44 = vld [vmem:[%s2423_s4 + $0x98] sm:$0xff] }
  0xb1   :  { %v354_v23 = vsel %vm2156_vm5, %v331_v19, 0  ;;  %v2280_v19 = vld [vmem:[%s2423_s4 + $0xa8] sm:$0xff] }
  0xb2   :  { %1252 = vmatpush.bf16.msra.mxu0 %v2280_v19 }
  0xb3   :  { %1222 = vmatpush.bf16.msrb.mxu3 %v1729_v56  ;;  %1195 = vmatpush.bf16.msrb.mxu2 %v1719_v57 }
  0xb4   :  { %787 = vmatmul.bf16.gmra.mxu0 %v353_v46 }
  0xb7   :  { %1223 = vmatpush.bf16.msrb.mxu3 %v1728_v4  ;;  %1196 = vmatpush.bf16.msrb.mxu2 %v1718_v8 }
  0xbb   :  { %1224 = vmatpush.bf16.msrb.mxu3 %v1727_v16 }
  0xbd   :  { %700 = vmatmul.bf16.gmra.mxu1 %v319_v58 }
  0xbf   :  { %1225 = vmatpush.bf16.msrb.mxu3 %v1726_v26 }
  0xc4   :  { %792 = vmatmul.bf16.gmra.mxu0 %v355_v0 }
  0xcd   :  { %705 = vmatmul.bf16.gmra.mxu1 %v321_v45 }
  0xd4   :  { %797 = vmatmul.bf16.gmra.mxu0 %v357_v12 }
  0xdd   :  { %710 = vmatmul.bf16.gmra.mxu1 %v323_v17  ;;  %v1717_v17 = vld [vmem:[%s2423_s4 + $0x10] sm:$0xff] }
  0xde   :  { %1197 = vmatpush.bf16.msrb.mxu2 %v1717_v17 }
  0xed   :  { %811 = vmatmul.bf16.vlgmr.msra.gmra.mxu1 %v352_v22 }
  0xf2   :  { %v725_v53 = vpop.f32.mrf.mxu2  ;;  %v754_v58 = vpop.f32.mrf.mxu3 }
  0xf3   :  { %v667_v36 = vpop.f32.mrf.mxu0 }
  0xf4   :  { %v668_v3 = vadd.f32 %v2228_v42, %v667_v36 }
  0xfa   :  { %v727_v9 = vpop.f32.mrf.mxu2  ;;  %v756_v45 = vpop.f32.mrf.mxu3 }
  0xfb   :  { %v669_v1 = vpop.f32.mrf.mxu0 }
  0xfc   :  { %v670_v13 = vadd.f32 %v2228_v42, %v669_v1 }
  0xfd   :  { %816 = vmatmul.bf16.gmra.mxu1 %v354_v23 }
 0x10a   :  { %v677_v28 = vpop.f32.mrf.mxu1 }
 0x10b   :  { %v678_v62 = vadd.f32 %v2228_v42, %v677_v28 }
 0x10d   :  { %821 = vmatmul.bf16.gmra.mxu1 %v356_v29 }
 0x110   :  { %v730_v14 = vpop.f32.mrf.mxu2 }
 0x111   :  { %v672_v52 = vpop.f32.mrf.mxu0  ;;  %v759_v28 = vpop.f32.mrf.mxu3 }
 0x112   :  { %v2211_v30 = vpop.f32.mrf.mxu1  ;;  %v673_v31 = vadd.f32 %v2228_v42, %v672_v52 }
 0x118   :  { %v732_v43 = vpop.f32.mrf.mxu2 }
 0x119   :  { %v2239_v48 = vpop.f32.mrf.mxu0 }
 0x11a   :  { %v682_v34 = vpop.f32.mrf.mxu1  ;;  %v675_v56 = vadd.f32 %v2228_v42, %v2239_v48 }
 0x11b   :  { %v683_v59 = vadd.f32 %v2228_v42, %v682_v34  ;;  %v2290_v34 = vld [vmem:[%s2423_s4 + $0xa0] sm:$0xff] }
 0x11c   :  { %1253 = vmatpush.bf16.msra.mxu0 %v2290_v34 }
 0x11d   :  { %826 = vmatmul.bf16.gmra.mxu1 %v358_v35  ;;  %v1725_v35 = vld [vmem:[%s2423_s4 + $0x50] sm:$0xff] }
 0x11e   :  { %1226 = vmatpush.bf16.msrb.mxu3 %v1725_v35 }
 0x120   :  { %1254 = vmatpush.bf16.msra.mxu0 %v2302_v44 }
 0x121   :  { %v783_v60 = vpop.f32.mrf.mxu0 }
 0x122   :  { %v2215_v27 = vpop.f32.mrf.mxu1 }
 0x129   :  { %v785_v18 = vpop.f32.mrf.mxu0 }
 0x12a   :  { %v696_v2 = vpop.f32.mrf.mxu1 }
 0x12b   :  { %v697_v10 = vadd.f32 %v696_v2, %v668_v3  ;;  %v1716_v2 = vld [vmem:[%s2423_s4 + $0x8] sm:$0xff]  ;;  %v761_v3 = vpop.f32.mrf.mxu3 }
 0x12c   :  { %1198 = vmatpush.bf16.msrb.mxu2 %v1716_v2 }
 0x12d   :  { %v726_v11 = vadd.f32 %v725_v53, %v697_v10 }
 0x12f   :  { %v755_v22 = vadd.f32 %v754_v58, %v726_v11  ;;  %v2326_v11 = vld [vmem:[%s2423_s4 + $0x88] sm:$0xff] }
 0x131   :  { %v784_v25 = vadd.f32 %v783_v60, %v755_v22  ;;  %v788_v1 = vpop.f32.mrf.mxu0  ;;  %v1723_v60 = vld [vmem:[%s2423_s4 + $0x40] sm:$0xff] }
 0x132   :  { %v698_v37 = vpop.f32.mrf.mxu1  ;;  %v2333_v22 = vld [vmem:[%s2423_s4 + $0x80] sm:$0xff] }
 0x133   :  { %v699_v20 = vadd.f32 %v698_v37, %v670_v13 }
 0x135   :  { %v728_v23 = vadd.f32 %v727_v9, %v699_v20 }
 0x137   :  { %v757_v38 = vadd.f32 %v756_v45, %v728_v23 }
 0x139   :  { %v790_v45 = vpop.f32.mrf.mxu0 }
 0x13a   :  { %v701_v61 = vpop.f32.mrf.mxu1 }
 0x13b   :  { %v702_v36 = vadd.f32 %v701_v61, %v673_v31  ;;  %v1724_v61 = vld [vmem:[%s2423_s4 + $0x48] sm:$0xff] }
 0x13c   :  { %1227 = vmatpush.bf16.msrb.mxu3 %v1724_v61 }
 0x13d   :  { %v731_v52 = vadd.f32 %v730_v14, %v702_v36 }
 0x13f   :  { %v760_v8 = vadd.f32 %v759_v28, %v731_v52  ;;  %v764_v28 = vpop.f32.mrf.mxu3 }
 0x140   :  { %1228 = vmatpush.bf16.msrb.mxu3 %v1723_v60 }
 0x141   :  { %v789_v17 = vadd.f32 %v788_v1, %v760_v8 }
 0x142   :  { %v2223_v41 = vpop.f32.mrf.mxu1 }
 0x143   :  { %v704_v4 = vadd.f32 %v2223_v41, %v675_v56  ;;  %v735_v41 = vpop.f32.mrf.mxu2 }
 0x145   :  { %v733_v13 = vadd.f32 %v732_v43, %v704_v4 }
 0x14a   :  { %v706_v47 = vpop.f32.mrf.mxu1 }
 0x14b   :  { %v2237_v46 = vadd.f32 %v706_v47, %v678_v62  ;;  %v786_v47 = vadd.f32 %v785_v18, %v757_v38 }
 0x14d   :  { %v736_v35 = vadd.f32 %v735_v41, %v2237_v46 }
 0x152   :  { %v2241_v54 = vpop.f32.mrf.mxu1 }
 0x15a   :  { %v711_v63 = vpop.f32.mrf.mxu1 }
 0x15b   :  { %v2251_v0 = vadd.f32 %v711_v63, %v683_v59  ;;  %v2313_v59 = vld [vmem:[%s2423_s4 + $0x90] sm:$0xff]  ;;  %v1715_v63 = vld [vmem:[%s2423_s4] sm:$0xff] }
 0x15c   :  { %1199 = vmatpush.bf16.msrb.mxu2 %v1715_v63  ;;  %1255 = vmatpush.bf16.msra.mxu0 %v2313_v59 }
 0x160   :  { %1747 = vmatpush.bf16.msra.mxu2 %v1738_v55  ;;  %1256 = vmatpush.bf16.msra.mxu0 %v2326_v11 }
 0x162   :  { %v2262_v12 = vpop.f32.mrf.mxu1 }
 0x164   :  { %1748 = vmatpush.bf16.msra.mxu2 %v2268_v15  ;;  %1257 = vmatpush.bf16.msra.mxu0 %v2333_v22 }
 0x168   :  { %1749 = vmatpush.bf16.msra.mxu2 %v2280_v19 }
 0x16a   :  { %v812_v29 = vpop.f32.mrf.mxu1 }
 0x16b   :  { %v813_v33 = vadd.f32 %v812_v29, %v784_v25  ;;  %v762_v25 = vadd.f32 %v761_v3, %v733_v13 }
 0x16c   :  { %1750 = vmatpush.bf16.msra.mxu2 %v2290_v34  ;;  %v766_v34 = vpop.f32.mrf.mxu3 }
 0x16d   :  { %v840_v37 = vmul.f32 0.044715, %v813_v33  ;;  %v832_v15 = vmul.f32 0.5, %v813_v33  ;;  %v791_v36 = vadd.f32 %v790_v45, %v762_v25 }
 0x16f   :  { %v848_v39 = vmul.f32 %v840_v37, %v813_v33  ;;  %v793_v37 = vpop.f32.mrf.mxu0 }
 0x170   :  { %1751 = vmatpush.bf16.msra.mxu2 %v2302_v44 }
 0x171   :  { %v856_v62 = vmul.f32 %v848_v39, %v813_v33  ;;  %v680_v39 = vadd.f32 %v2228_v42, %v2211_v30 }
 0x172   :  { %v814_v53 = vpop.f32.mrf.mxu1 }
 0x173   :  { %v864_v57 = vadd.f32 %v856_v62, %v813_v33  ;;  %v815_v58 = vadd.f32 %v814_v53, %v786_v47  ;;  %v737_v62 = vpop.f32.mrf.mxu2  ;;  %v709_v19 = vadd.f32 %v2241_v54, %v680_v39  ;;  %v765_v33 = vadd.f32 %v764_v28, %v736_v35 }
 0x174   :  { %1752 = vmatpush.bf16.msra.mxu2 %v2313_v59  ;;  %v769_v28 = vpop.f32.mrf.mxu3 }
 0x175   :  { %v841_v48 = vmul.f32 0.044715, %v815_v58  ;;  %v872_v9 = vmul.f32 0.7978846, %v864_v57  ;;  %v833_v46 = vmul.f32 0.5, %v815_v58  ;;  %v738_v30 = vadd.f32 %v737_v62, %v709_v19 }
 0x176   :  { %v794_v4 = vadd.f32 %v793_v37, %v765_v33 }
 0x177   :  { %v849_v10 = vmul.f32 %v841_v48, %v815_v58  ;;  %1761 = vtanh.f32 %v872_v9  ;;  %v767_v13 = vadd.f32 %v766_v34, %v738_v30 }
 0x178   :  { %1753 = vmatpush.bf16.msra.mxu2 %v2326_v11  ;;  %v685_v11 = vadd.f32 %v2228_v42, %v2215_v27 }
 0x179   :  { %v857_v16 = vmul.f32 %v849_v10, %v815_v58  ;;  %v795_v10 = vpop.f32.mrf.mxu0 }
 0x17a   :  { %v817_v18 = vpop.f32.mrf.mxu1 }
 0x17b   :  { %v865_v20 = vadd.f32 %v857_v16, %v815_v58  ;;  %v818_v55 = vadd.f32 %v817_v18, %v789_v17  ;;  %v740_v17 = vpop.f32.mrf.mxu2 }
 0x17c   :  { %v741_v59 = vadd.f32 %v740_v17, %v2251_v0  ;;  %1754 = vmatpush.bf16.msra.mxu2 %v2333_v22 }
 0x17d   :  { %v1762_v14 = vpop.eup %1761  ;;  %v842_v23 = vmul.f32 0.044715, %v818_v55  ;;  %v873_v26 = vmul.f32 0.7978846, %v865_v20 }
 0x17e   :  { %v888_v29 = vadd.f32 1.0, %v1762_v14 }
 0x17f   :  { %v850_v31 = vmul.f32 %v842_v23, %v818_v55  ;;  %1763 = vtanh.f32 %v873_v26  ;;  %v834_v23 = vmul.f32 0.5, %v818_v55  ;;  %v796_v26 = vadd.f32 %v795_v10, %v767_v13 }
 0x180   :  { %v896_v1 = vmul.f32 %v888_v29, %v832_v15 }
 0x181   :  { %v858_v2 = vmul.f32 %v850_v31, %v818_v55 }
 0x182   :  { %v819_v38 = vpop.f32.mrf.mxu1  ;;  %v953_v57 = vmul.f32 %v896_v1, %v1970_v40  ;;  %v714_v1 = vadd.f32 %v2262_v12, %v685_v11 }
 0x183   :  { %v866_v43 = vadd.f32 %v858_v2, %v818_v55  ;;  %v820_v52 = vadd.f32 %v819_v38, %v791_v36  ;;  %v770_v55 = vadd.f32 %v769_v28, %v741_v59  ;;  %v742_v27 = vpop.f32.mrf.mxu2 }
 0x184   :  { %v961_v54 = vpack.c.bf16 %v953_v57, %v953_v57  ;;  %v743_v12 = vadd.f32 %v742_v27, %v714_v1 }
 0x185   :  { %v1764_v47 = vpop.eup %1763  ;;  %v843_v61 = vmul.f32 0.044715, %v820_v52  ;;  %v874_v53 = vmul.f32 0.7978846, %v866_v43  ;;  %v835_v43 = vmul.f32 0.5, %v820_v52 }
 0x186   :  { %v889_v56 = vadd.f32 1.0, %v1764_v47  ;;  %v977_v41 = vunpack.c.l.b16 %v961_v54  ;;  %v798_v47 = vpop.f32.mrf.mxu0 }
 0x187   :  { %v851_v60 = vmul.f32 %v843_v61, %v820_v52  ;;  %1765 = vtanh.f32 %v874_v53 }
 0x188   :  { %v897_v63 = vmul.f32 %v889_v56, %v833_v46 }
 0x189   :  { %v859_v3 = vmul.f32 %v851_v60, %v820_v52 }
 0x18a   :  { %v822_v48 = vpop.f32.mrf.mxu1  ;;  %v954_v8 = vmul.f32 %v897_v63, %v1998_v50 }
 0x18b   :  { %v867_v9 = vadd.f32 %v859_v3, %v820_v52  ;;  %v2346_v58 = vadd.f32 %v822_v48, %v794_v4  ;;  %v799_v52 = vadd.f32 %v798_v47, %v770_v55  ;;  %v771_v3 = vpop.f32.mrf.mxu3 }
 0x18c   :  { %v962_v40 = vpack.c.bf16 %v954_v8, %v954_v8  ;;  %v772_v54 = vadd.f32 %v771_v3, %v743_v12 }
 0x18d   :  { %v1766_v45 = vpop.eup %1765  ;;  %v844_v44 = vmul.f32 0.044715, %v2346_v58  ;;  %v875_v16 = vmul.f32 0.7978846, %v867_v9  ;;  %v836_v17 = vmul.f32 0.5, %v2346_v58 }
 0x18e   :  { %v978_v18 = vunpack.c.l.b16 %v962_v40  ;;  %v890_v20 = vadd.f32 1.0, %v1766_v45  ;;  %v800_v13 = vpop.f32.mrf.mxu0 }
 0x18f   :  { %v852_v50 = vmul.f32 %v844_v44, %v2346_v58  ;;  %1767 = vtanh.f32 %v875_v16 }
 0x190   :  { %v985_v14 = vpack.c.b16 %v978_v18, %v977_v41  ;;  %v898_v35 = vmul.f32 %v890_v20, %v834_v23 }
 0x191   :  { %v860_v25 = vmul.f32 %v852_v50, %v2346_v58 }
 0x192   :  { %v824_v29 = vpop.f32.mrf.mxu1  ;;  %1229 = vmatmul.bf16.vlgmr.msrb.gmra.mxu3 %v985_v14  ;;  %v990_v31 = vshrl.u32 %v985_v14, 16  ;;  %v993_v15 = vshll.u32 %v985_v14, 16  ;;  %v955_v22 = vmul.f32 %v898_v35, %v2104_v51 }
 0x193   :  { %v868_v2 = vadd.f32 %v860_v25, %v2346_v58  ;;  %v825_v36 = vadd.f32 %v824_v29, %v796_v26 }
 0x194   :  { %v992_v0 = vrot.slane %v990_v31, 7  ;;  %v1025_v37 = vrot.slane %v993_v15, 1  ;;  %v963_v63 = vpack.c.bf16 %v955_v22, %v955_v22 }
 0x195   :  { %v1768_v38 = vpop.eup %1767  ;;  %v845_v39 = vmul.f32 0.044715, %v825_v36  ;;  %v876_v62 = vmul.f32 0.7978846, %v868_v2 }
 0x196   :  { %v995_v19 = vor.u32 %v993_v15, %v992_v0  ;;  %v1026_v61 = vor.u32 %v1025_v37, %v990_v31  ;;  %v891_v33 = vadd.f32 1.0, %v1768_v38  ;;  %v979_v10 = vunpack.c.l.b16 %v963_v63 }
 0x197   :  { %v853_v53 = vmul.f32 %v845_v39, %v825_v36  ;;  %1769 = vtanh.f32 %v876_v62  ;;  %v837_v31 = vmul.f32 0.5, %v825_v36 }
 0x198   :  { %v1021_v42 = vsel %vm2029_vm2, 0, %v995_v19  ;;  %v1037_v46 = vsel %vm2156_vm5, %v1026_v61, 0  ;;  %v899_v56 = vmul.f32 %v891_v33, %v835_v43 }
 0x199   :  { %v861_v57 = vmul.f32 %v853_v53, %v825_v36  ;;  %1200 = vmatmul.bf16.vlgmr.msrb.gmra.mxu2 %v1021_v42  ;;  %1258 = vmatmul.bf16.vlgmr.msra.gmra.mxu0 %v1037_v46 }
 0x19a   :  { %v827_v60 = vpop.f32.mrf.mxu1  ;;  %v956_v34 = vmul.f32 %v899_v56, %v2102_v49  ;;  %v801_v49 = vadd.f32 %v800_v13, %v772_v54 }
 0x19b   :  { %v869_v51 = vadd.f32 %v861_v57, %v825_v36  ;;  %v828_v30 = vadd.f32 %v827_v60, %v799_v52 }
 0x19c   :  { %v964_v4 = vpack.c.bf16 %v956_v34, %v956_v34 }
 0x19d   :  { %v1770_v48 = vpop.eup %1769  ;;  %v846_v8 = vmul.f32 0.044715, %v828_v30  ;;  %v877_v9 = vmul.f32 0.7978846, %v869_v51  ;;  %v838_v53 = vmul.f32 0.5, %v828_v30 }
 0x19e   :  { %v980_v40 = vunpack.c.l.b16 %v964_v4  ;;  %v892_v45 = vadd.f32 1.0, %v1770_v48 }
 0x19f   :  { %v854_v44 = vmul.f32 %v846_v8, %v828_v30  ;;  %1771 = vtanh.f32 %v877_v9 }
 0x1a0   :  { %v986_v16 = vpack.c.b16 %v980_v40, %v979_v10  ;;  %v900_v59 = vmul.f32 %v892_v45, %v836_v17 }
 0x1a1   :  { %v862_v41 = vmul.f32 %v854_v44, %v828_v30 }
 0x1a2   :  { %v829_v18 = vpop.f32.mrf.mxu1  ;;  %1234 = vmatmul.bf16.gmra.mxu3 %v986_v16  ;;  %v997_v20 = vshrl.u32 %v986_v16, 16  ;;  %v1000_v50 = vshll.u32 %v986_v16, 16  ;;  %v957_v58 = vmul.f32 %v900_v59, %v2035_v7 }
 0x1a3   :  { %v870_v14 = vadd.f32 %v862_v41, %v828_v30  ;;  %v830_v23 = vadd.f32 %v829_v18, %v801_v49  ;;  %v2384_v18 = vld [vmem:[%s2424_s5] ss:$0 sm:$0xff] }
 0x1a4   :  { %v999_v25 = vrot.slane %v997_v20, 7  ;;  %v1027_v26 = vrot.slane %v1000_v50, 1  ;;  %v965_v39 = vpack.c.bf16 %v957_v58, %v957_v58 }
 0x1a5   :  { %v1772_v28 = vpop.eup %1771  ;;  %v847_v29 = vmul.f32 0.044715, %v830_v23  ;;  %v878_v15 = vmul.f32 0.7978846, %v870_v14  ;;  %v839_v52 = vmul.f32 0.5, %v830_v23 }
 0x1a6   :  { %v1002_v35 = vor.u32 %v1000_v50, %v999_v25  ;;  %v1028_v11 = vor.u32 %v1027_v26, %v997_v20  ;;  %v893_v2 = vadd.f32 1.0, %v1772_v28  ;;  %v981_v7 = vunpack.c.l.b16 %v965_v39 }
 0x1a7   :  { %v855_v0 = vmul.f32 %v847_v29, %v830_v23  ;;  %1773 = vtanh.f32 %v878_v15 }
 0x1a8   :  { %v1022_v37 = vsel %vm2029_vm2, 0, %v1002_v35  ;;  %v1038_v55 = vsel %vm2156_vm5, %v1028_v11, 0  ;;  %v901_v38 = vmul.f32 %v893_v2, %v837_v31 }
 0x1a9   :  { %v863_v1 = vmul.f32 %v855_v0, %v830_v23  ;;  %1205 = vmatmul.bf16.gmra.mxu2 %v1022_v37  ;;  %1263 = vmatmul.bf16.gmra.mxu0 %v1038_v55 }
 0x1aa   :  { %v958_v36 = vmul.f32 %v901_v38, %v2063_v24 }
 0x1ab   :  { %v871_v43 = vadd.f32 %v863_v1, %v830_v23 }
 0x1ac   :  { %v966_v62 = vpack.c.bf16 %v958_v36, %v958_v36 }
 0x1ad   :  { %v1774_v47 = vpop.eup %1773  ;;  %v879_v19 = vmul.f32 0.7978846, %v871_v43 }
 0x1ae   :  { %v982_v61 = vunpack.c.l.b16 %v966_v62  ;;  %v894_v33 = vadd.f32 1.0, %v1774_v47 }
 0x1af   :  { %1775 = vtanh.f32 %v879_v19 }
 0x1b0   :  { %v987_v22 = vpack.c.b16 %v982_v61, %v981_v7  ;;  %v902_v46 = vmul.f32 %v894_v33, %v838_v53 }
 0x1b2   :  { %1239 = vmatmul.bf16.gmra.mxu3 %v987_v22  ;;  %v1004_v27 = vshrl.u32 %v987_v22, 16  ;;  %v1007_v42 = vshll.u32 %v987_v22, 16  ;;  %v959_v63 = vmul.f32 %v902_v46, %v2033_v6 }
 0x1b4   :  { %v1006_v56 = vrot.slane %v1004_v27, 7  ;;  %v1029_v12 = vrot.slane %v1007_v42, 1  ;;  %v967_v48 = vpack.c.bf16 %v959_v63, %v959_v63 }
 0x1b5   :  { %v1776_v57 = vpop.eup %1775 }
 0x1b6   :  { %v1009_v24 = vor.u32 %v1007_v42, %v1006_v56  ;;  %v1030_v60 = vor.u32 %v1029_v12, %v1004_v27  ;;  %v895_v34 = vadd.f32 1.0, %v1776_v57  ;;  %v983_v54 = vunpack.c.l.b16 %v967_v48 }
 0x1b8   :  { %v1023_v51 = vsel %vm2029_vm2, 0, %v1009_v24  ;;  %v1039_v3 = vsel %vm2156_vm5, %v1030_v60, 0  ;;  %v903_v30 = vmul.f32 %v895_v34, %v839_v52 }
 0x1b9   :  { %1210 = vmatmul.bf16.gmra.mxu2 %v1023_v51  ;;  %1268 = vmatmul.bf16.gmra.mxu0 %v1039_v3 }
 0x1ba   :  { %v960_v4 = vmul.f32 %v903_v30, %v2059_v21 }
 0x1bc   :  { %v968_v8 = vpack.c.bf16 %v960_v4, %v960_v4 }
 0x1be   :  { %v984_v9 = vunpack.c.l.b16 %v968_v8 }
 0x1c0   :  { %v988_v10 = vpack.c.b16 %v984_v9, %v983_v54 }
 0x1c2   :  { %1244 = vmatmul.bf16.gmra.mxu3 %v988_v10  ;;  %v1011_v40 = vshrl.u32 %v988_v10, 16  ;;  %v1014_v6 = vshll.u32 %v988_v10, 16 }
 0x1c4   :  { %v1013_v45 = vrot.slane %v1011_v40, 7  ;;  %v1031_v16 = vrot.slane %v1014_v6, 1 }
 0x1c6   :  { %v1016_v44 = vor.u32 %v1014_v6, %v1013_v45  ;;  %v1032_v17 = vor.u32 %v1031_v16, %v1011_v40 }
 0x1c8   :  { %v1024_v13 = vsel %vm2029_vm2, 0, %v1016_v44  ;;  %v1040_v41 = vsel %vm2156_vm5, %v1032_v17, 0 }
 0x1c9   :  { %1215 = vmatmul.bf16.gmra.mxu2 %v1024_v13 }
 0x1d9   :  { %1273 = vmatmul.bf16.vlgmr.msra.gmra.mxu2 %v1040_v41 }
 0x215   :  { %v1230_v21 = vpop.f32.mrf.mxu3 }
 0x216   :  { %v1259_v49 = vpop.f32.mrf.mxu0 }
 0x21c   :  { %v1201_v20 = vpop.f32.mrf.mxu2 }
 0x21d   :  { %v1202_v50 = vadd.f32 %v2384_v18, %v1201_v20  ;;  %v1232_v59 = vpop.f32.mrf.mxu3 }
 0x21e   :  { %v1261_v14 = vpop.f32.mrf.mxu0 }
 0x21f   :  { %v1231_v5 = vadd.f32 %v1230_v21, %v1202_v50 }
 0x221   :  { %v1260_v23 = vadd.f32 %v1259_v49, %v1231_v5 }
 0x223   :  { %v1287_v25 = vmul.f32 0.044715, %v1260_v23  ;;  %v1279_v61 = vmul.f32 0.5, %v1260_v23 }
 0x224   :  { %v1203_v26 = vpop.f32.mrf.mxu2 }
 0x225   :  { %v1295_v28 = vmul.f32 %v1287_v25, %v1260_v23  ;;  %v1204_v32 = vadd.f32 %v2384_v18, %v1203_v26  ;;  %v1235_v15 = vpop.f32.mrf.mxu3 }
 0x226   :  { %v1264_v2 = vpop.f32.mrf.mxu0 }
 0x227   :  { %v1303_v29 = vmul.f32 %v1295_v28, %v1260_v23  ;;  %v1233_v31 = vadd.f32 %v1232_v59, %v1204_v32 }
 0x229   :  { %v1311_v35 = vadd.f32 %v1303_v29, %v1260_v23  ;;  %v1262_v11 = vadd.f32 %v1261_v14, %v1233_v31 }
 0x22b   :  { %v1319_v58 = vmul.f32 0.7978846, %v1311_v35  ;;  %v1288_v0 = vmul.f32 0.044715, %v1262_v11  ;;  %v1280_v51 = vmul.f32 0.5, %v1262_v11 }
 0x22c   :  { %v1206_v37 = vpop.f32.mrf.mxu2 }
 0x22d   :  { %1777 = vtanh.f32 %v1319_v58  ;;  %v1296_v55 = vmul.f32 %v1288_v0, %v1262_v11  ;;  %v1207_v38 = vadd.f32 %v2384_v18, %v1206_v37  ;;  %v1237_v62 = vpop.f32.mrf.mxu3 }
 0x22e   :  { %v1266_v22 = vpop.f32.mrf.mxu0 }
 0x22f   :  { %v1304_v1 = vmul.f32 %v1296_v55, %v1262_v11  ;;  %v1236_v36 = vadd.f32 %v1235_v15, %v1207_v38 }
 0x231   :  { %v1312_v39 = vadd.f32 %v1304_v1, %v1262_v11  ;;  %v1265_v43 = vadd.f32 %v1264_v2, %v1236_v36 }
 0x233   :  { %v1778_v47 = vpop.eup %1777  ;;  %v1320_v19 = vmul.f32 0.7978846, %v1312_v39  ;;  %v1289_v7 = vmul.f32 0.044715, %v1265_v43  ;;  %v1281_v41 = vmul.f32 0.5, %v1265_v43 }
 0x234   :  { %v1335_v33 = vadd.f32 1.0, %v1778_v47  ;;  %v1208_v53 = vpop.f32.mrf.mxu2 }
 0x235   :  { %1779 = vtanh.f32 %v1320_v19  ;;  %v1297_v27 = vmul.f32 %v1289_v7, %v1265_v43  ;;  %v1209_v42 = vadd.f32 %v2384_v18, %v1208_v53  ;;  %v1240_v30 = vpop.f32.mrf.mxu3 }
 0x236   :  { %v1343_v46 = vmul.f32 %v1335_v33, %v1279_v61  ;;  %v1269_v9 = vpop.f32.mrf.mxu0 }
 0x237   :  { %v1305_v56 = vmul.f32 %v1297_v27, %v1265_v43  ;;  %v1238_v12 = vadd.f32 %v1237_v62, %v1209_v42 }
 0x238   :  { %v1359_v57 = vpack.c.bf16 %v1343_v46, %v1343_v46 }
 0x239   :  { %v1313_v52 = vadd.f32 %v1305_v56, %v1265_v43  ;;  %v1267_v24 = vadd.f32 %v1266_v22, %v1238_v12 }
 0x23a   :  { %1367 = vst [vmem:[%s2421_s6 + $0x8] sm:$0xf] %v1359_v57 }
 0x23b   :  { %v1780_v60 = vpop.eup %1779  ;;  %v1321_v34 = vmul.f32 0.7978846, %v1313_v52  ;;  %v1290_v63 = vmul.f32 0.044715, %v1267_v24  ;;  %v1282_v35 = vmul.f32 0.5, %v1267_v24 }
 0x23c   :  { %v1336_v3 = vadd.f32 1.0, %v1780_v60  ;;  %v1211_v4 = vpop.f32.mrf.mxu2 }
 0x23d   :  { %1781 = vtanh.f32 %v1321_v34  ;;  %v1298_v48 = vmul.f32 %v1290_v63, %v1267_v24  ;;  %v1212_v8 = vadd.f32 %v2384_v18, %v1211_v4  ;;  %v1242_v5 = vpop.f32.mrf.mxu3 }
 0x23e   :  { %v1344_v54 = vmul.f32 %v1336_v3, %v1280_v51  ;;  %v1271_v26 = vpop.f32.mrf.mxu0 }
 0x23f   :  { %v1306_v10 = vmul.f32 %v1298_v48, %v1267_v24  ;;  %v1241_v40 = vadd.f32 %v1240_v30, %v1212_v8 }
 0x240   :  { %v1360_v45 = vpack.c.bf16 %v1344_v54, %v1344_v54 }
 0x241   :  { %v1314_v6 = vadd.f32 %v1306_v10, %v1267_v24  ;;  %v1270_v44 = vadd.f32 %v1269_v9, %v1241_v40 }
 0x242   :  { %1368 = vst [vmem:[%s2421_s6 + $0x14] sm:$0xf] %v1360_v45 }
 0x243   :  { %v1782_v13 = vpop.eup %1781  ;;  %v1322_v16 = vmul.f32 0.7978846, %v1314_v6  ;;  %v1291_v17 = vmul.f32 0.044715, %v1270_v44  ;;  %v1283_v39 = vmul.f32 0.5, %v1270_v44 }
 0x244   :  { %v1337_v21 = vadd.f32 1.0, %v1782_v13  ;;  %v1213_v49 = vpop.f32.mrf.mxu2 }
 0x245   :  { %1783 = vtanh.f32 %v1322_v16  ;;  %v1299_v20 = vmul.f32 %v1291_v17, %v1270_v44  ;;  %v1214_v50 = vadd.f32 %v2384_v18, %v1213_v49  ;;  %v1245_v61 = vpop.f32.mrf.mxu3 }
 0x246   :  { %v1345_v59 = vmul.f32 %v1337_v21, %v1281_v41 }
 0x247   :  { %v1307_v14 = vmul.f32 %v1299_v20, %v1270_v44  ;;  %v1243_v23 = vadd.f32 %v1242_v5, %v1214_v50 }
 0x248   :  { %v1361_v25 = vpack.c.bf16 %v1345_v59, %v1345_v59 }
 0x249   :  { %v1315_v28 = vadd.f32 %v1307_v14, %v1270_v44  ;;  %v1272_v32 = vadd.f32 %v1271_v26, %v1243_v23 }
 0x24a   :  { %1369 = vst [vmem:[%s2421_s6 + $0x20] sm:$0xf] %v1361_v25 }
 0x24b   :  { %v1784_v29 = vpop.eup %1783  ;;  %v1323_v31 = vmul.f32 0.7978846, %v1315_v28  ;;  %v1292_v15 = vmul.f32 0.044715, %v1272_v32  ;;  %v1284_v53 = vmul.f32 0.5, %v1272_v32 }
 0x24c   :  { %v1338_v11 = vadd.f32 1.0, %v1784_v29  ;;  %v1216_v2 = vpop.f32.mrf.mxu2 }
 0x24d   :  { %1785 = vtanh.f32 %v1323_v31  ;;  %v1300_v58 = vmul.f32 %v1292_v15, %v1272_v32  ;;  %v1217_v19 = vadd.f32 %v2384_v18, %v1216_v2  ;;  %v1247_v60 = vpop.f32.mrf.mxu3 }
 0x24e   :  { %v1346_v0 = vmul.f32 %v1338_v11, %v1282_v35 }
 0x24f   :  { %v1308_v37 = vmul.f32 %v1300_v58, %v1272_v32  ;;  %v1246_v22 = vadd.f32 %v1245_v61, %v1217_v19 }
 0x250   :  { %v1362_v55 = vpack.c.bf16 %v1346_v0, %v1346_v0 }
 0x251   :  { %v1316_v38 = vadd.f32 %v1308_v37, %v1272_v32 }
 0x252   :  { %1370 = vst [vmem:[%s2421_s6 + $0x2c] sm:$0xf] %v1362_v55 }
 0x253   :  { %v1786_v1 = vpop.eup %1785  ;;  %v1324_v36 = vmul.f32 0.7978846, %v1316_v38 }
 0x254   :  { %v1339_v43 = vadd.f32 1.0, %v1786_v1  ;;  %v1218_v62 = vpop.f32.mrf.mxu2 }
 0x255   :  { %1787 = vtanh.f32 %v1324_v36  ;;  %v1219_v12 = vadd.f32 %v2384_v18, %v1218_v62 }
 0x256   :  { %v1347_v47 = vmul.f32 %v1339_v43, %v1283_v39 }
 0x257   :  { %v1248_v63 = vadd.f32 %v1247_v60, %v1219_v12 }
 0x258   :  { %v1363_v7 = vpack.c.bf16 %v1347_v47, %v1347_v47 }
 0x25a   :  { %1371 = vst [vmem:[%s2421_s6 + $0x38] sm:$0xf] %v1363_v7 }
 0x25b   :  { %v1788_v33 = vpop.eup %1787 }
 0x25c   :  { %v1340_v27 = vadd.f32 1.0, %v1788_v33  ;;  %v1274_v42 = vpop.f32.mrf.mxu2 }
 0x25d   :  { %v1275_v46 = vadd.f32 %v1274_v42, %v1246_v22 }
 0x25e   :  { %v1348_v56 = vmul.f32 %v1340_v27, %v1284_v53 }
 0x25f   :  { %v1293_v57 = vmul.f32 0.044715, %v1275_v46  ;;  %v1285_v40 = vmul.f32 0.5, %v1275_v46 }
 0x260   :  { %v1364_v52 = vpack.c.bf16 %v1348_v56, %v1348_v56 }
 0x261   :  { %v1301_v24 = vmul.f32 %v1293_v57, %v1275_v46 }
 0x262   :  { %1372 = vst [vmem:[%s2421_s6 + $0x44] sm:$0xf] %v1364_v52 }
 0x263   :  { %v1309_v34 = vmul.f32 %v1301_v24, %v1275_v46 }
 0x264   :  { %v1276_v51 = vpop.f32.mrf.mxu2 }
 0x265   :  { %v1317_v3 = vadd.f32 %v1309_v34, %v1275_v46  ;;  %v1277_v30 = vadd.f32 %v1276_v51, %v1248_v63 }
 0x267   :  { %v1325_v4 = vmul.f32 0.7978846, %v1317_v3  ;;  %v1294_v48 = vmul.f32 0.044715, %v1277_v30  ;;  %v1286_v16 = vmul.f32 0.5, %v1277_v30 }
 0x269   :  { %1789 = vtanh.f32 %v1325_v4  ;;  %v1302_v8 = vmul.f32 %v1294_v48, %v1277_v30 }
 0x26b   :  { %v1310_v54 = vmul.f32 %v1302_v8, %v1277_v30 }
 0x26d   :  { %v1318_v9 = vadd.f32 %v1310_v54, %v1277_v30 }
 0x26f   :  { %v1790_v18 = vpop.eup %1789  ;;  %v1326_v10 = vmul.f32 0.7978846, %v1318_v9 }
 0x270   :  { %v1341_v45 = vadd.f32 1.0, %v1790_v18 }
 0x271   :  { %1791 = vtanh.f32 %v1326_v10 }
 0x272   :  { %v1349_v6 = vmul.f32 %v1341_v45, %v1285_v40 }
 0x274   :  { %v1365_v44 = vpack.c.bf16 %v1349_v6, %v1349_v6 }
 0x276   :  { %1373 = vst [vmem:[%s2421_s6 + $0x50] sm:$0xf] %v1365_v44 }
 0x277   :  { %v1792_v13 = vpop.eup %1791 }
 0x278   :  { %v1342_v17 = vadd.f32 1.0, %v1792_v13 }
 0x27a   :  { %v1350_v41 = vmul.f32 %v1342_v17, %v1286_v16 }
 0x27c   :  { %v1366_v21 = vpack.c.bf16 %v1350_v41, %v1350_v41 }
 0x27e   :  { %1374 = vst [vmem:[%s2421_s6 + $0x5c] sm:$0xf] %v1366_v21 }

// kernel: re2_forward.9
= control target key start
LH: loop header
LB: loop body
LE: loop exit
PB: predicated region body
PF: predicated region fallthrough
CT: control target
= control target key end

     0   :  { %v797_v0 = vmov 0   ;;  %s1012_s2 = inlined_call_operand.vmem [shape: f32[2,16,1], index: 2, kind: input, shape index: {}]   ;;  %s1013_s3 = inlined_call_operand.vmem [shape: f32[2,16,1], index: 3, kind: input, shape index: {}]   ;;  %s1014_s5 = inlined_call_operand.vmem [shape: f32[1,128], index: 5, kind: input, shape index: {}]   ;;  %s1015_s4 = inlined_call_operand.vmem [shape: bf16[512,128], index: 4, kind: input, shape index: {}]   ;;  %s1016_s1 = inlined_call_operand.vmem [shape: bf16[2,16,128], index: 1, kind: input, shape index: {}]   ;;  %s1017_s0 = inlined_call_operand.vmem [shape: bf16[2,16,128], index: 0, kind: input, shape index: {}]   ;;  %s1018_s7 = inlined_call_operand.vmem [shape: f32[1,2], index: 7, kind: input, shape index: {}]   ;;  %s1019_s6 = inlined_call_operand.vmem [shape: bf16[128,2], index: 6, kind: input, shape index: {}]   ;;  %s1020_s8 = inlined_call_operand.vmem [shape: f32[2,2], index: 8, kind: output, shape index: {}]  }
   0x1   :  { %791 = vset.pattern.permute.xlu1 %v797_v0  ;;  %790 = vset.pattern.permute.xlu0 %v797_v0  ;;  %v31_v1 = vld [vmem:[%s1012_s2 + $0x10] sm:$0xff]  ;;  %v29_v2 = vld [vmem:[%s1012_s2] sm:$0xff]  ;;  %v32_v5 = vld [vmem:[%s1012_s2 + $0x18] sm:$0xff] }
   0x2   :  { %vm35_vm0 = vcmp.gt.f32.partialorder %v31_v1, 0.0  ;;  %vm33_vm1 = vcmp.gt.f32.partialorder %v29_v2, 0.0  ;;  %792 = vset.pattern.permute.xlu2 %v797_v0  ;;  %v30_v6 = vld [vmem:[%s1012_s2 + $0x8] sm:$0xff]  ;;  %v69_v7 = vld [vmem:[%s1013_s3] sm:$0xff]  ;;  %vm36_vm3 = vcmp.gt.f32.partialorder %v32_v5, 0.0  ;;  %v72_v12 = vld [vmem:[%s1013_s3 + $0x18] sm:$0xff] }
   0x3   :  { %v47_v3 = vsel %vm35_vm0, 1, %v797_v0  ;;  %v45_v4 = vsel %vm33_vm1, 1, %v797_v0  ;;  %vm73_vm2 = vcmp.gt.f32.partialorder %v69_v7, 0.0  ;;  %v70_v9 = vld [vmem:[%s1013_s3 + $0x8] sm:$0xff]  ;;  %vm34_vm4 = vcmp.gt.f32.partialorder %v30_v6, 0.0  ;;  %v71_v13 = vld [vmem:[%s1013_s3 + $0x10] sm:$0xff] }
   0x4   :  { %56 = vperm.xlu1 %791, %v47_v3   ;;  %50 = vperm.xlu0 %790, %v45_v4   ;;  %v85_v8 = vsel %vm73_vm2, 1, %v797_v0  ;;  %vm74_vm5 = vcmp.gt.f32.partialorder %v70_v9, 0.0  ;;  %v48_v10 = vsel %vm36_vm3, 1, %v797_v0  ;;  %v46_v11 = vsel %vm34_vm4, 1, %v797_v0  ;;  %v738_v17 = vld [vmem:[%s1015_s4 + $0x38] sm:$0xff]  ;;  %v737_v18 = vld [vmem:[%s1015_s4 + $0x30] sm:$0xff] }
   0x5   :  { %90 = vperm.xlu2 %792, %v85_v8   ;;  %v86_v14 = vsel %vm74_vm5, 1, %v797_v0  ;;  %vm76_vm6 = vcmp.gt.f32.partialorder %v72_v12, 0.0  ;;  %vm75_vm7 = vcmp.gt.f32.partialorder %v71_v13, 0.0  ;;  %422 = vmatpush.bf16.msra.mxu0 %v738_v17  ;;  %v736_v19 = vld [vmem:[%s1015_s4 + $0x28] sm:$0xff]  ;;  %v746_v20 = vld [vmem:[%s1015_s4 + $0x78] sm:$0xff]  ;;  %v735_v23 = vld [vmem:[%s1015_s4 + $0x20] sm:$0xff] }
   0x6   :  { %v88_v15 = vsel %vm76_vm6, 1, %v797_v0  ;;  %v87_v16 = vsel %vm75_vm7, 1, %v797_v0  ;;  %v754_v21 = vld [vmem:[%s1015_s4 + $0xb8] sm:$0xff]  ;;  %435 = vmatpush.bf16.msra.mxu1 %v746_v20  ;;  %v745_v24 = vld [vmem:[%s1015_s4 + $0x70] sm:$0xff]  ;;  %v744_v28 = vld [vmem:[%s1015_s4 + $0x68] sm:$0xff]  ;;  %vm143_vm0 = vcmask 1041409  }
   0x7   :  { %v762_v22 = vld [vmem:[%s1015_s4 + $0xf8] sm:$0xff]  ;;  %448 = vmatpush.bf16.msra.mxu2 %v754_v21  ;;  %v753_v25 = vld [vmem:[%s1015_s4 + $0xb0] sm:$0xff]  ;;  %v752_v29 = vld [vmem:[%s1015_s4 + $0xa8] sm:$0xff]  ;;  %vm565_vm1 = vcmask 9216  }
   0x8   :  { %461 = vmatpush.bf16.msra.mxu3 %v762_v22  ;;  %v761_v26 = vld [vmem:[%s1015_s4 + $0xf0] sm:$0xff]  ;;  %v734_v27 = vld [vmem:[%s1015_s4 + $0x18] sm:$0xff]  ;;  %v760_v30 = vld [vmem:[%s1015_s4 + $0xe8] sm:$0xff] }
   0x9   :  { %423 = vmatpush.bf16.msra.mxu0 %v737_v18  ;;  %v733_v31 = vld [vmem:[%s1015_s4 + $0x10] sm:$0xff]  ;;  %v743_v32 = vld [vmem:[%s1015_s4 + $0x60] sm:$0xff]  ;;  %v732_v36 = vld [vmem:[%s1015_s4 + $0x8] sm:$0xff] }
   0xa   :  { %436 = vmatpush.bf16.msra.mxu1 %v745_v24  ;;  %v751_v33 = vld [vmem:[%s1015_s4 + $0xa0] sm:$0xff]  ;;  %v742_v37 = vld [vmem:[%s1015_s4 + $0x58] sm:$0xff]  ;;  %v741_v41 = vld [vmem:[%s1015_s4 + $0x50] sm:$0xff] }
   0xb   :  { %449 = vmatpush.bf16.msra.mxu2 %v753_v25  ;;  %v759_v34 = vld [vmem:[%s1015_s4 + $0xe0] sm:$0xff]  ;;  %v750_v38 = vld [vmem:[%s1015_s4 + $0x98] sm:$0xff]  ;;  %v749_v42 = vld [vmem:[%s1015_s4 + $0x90] sm:$0xff] }
   0xc   :  { %59 = vperm.xlu1 %791, %v48_v10   ;;  %53 = vperm.xlu0 %790, %v46_v11   ;;  %v758_v39 = vld [vmem:[%s1015_s4 + $0xd8] sm:$0xff]  ;;  %v731_v40 = vld [vmem:[%s1015_s4] sm:$0xff]  ;;  %v757_v43 = vld [vmem:[%s1015_s4 + $0xd0] sm:$0xff] }
   0xd   :  { %93 = vperm.xlu2 %792, %v86_v14   ;;  %424 = vmatpush.bf16.msra.mxu0 %v736_v19  ;;  %v780_v44 = vld [vmem:[%s1016_s1] sm:$0xff]   ;;  %v740_v45 = vld [vmem:[%s1015_s4 + $0x48] sm:$0xff] }
   0xe   :  { %462 = vmatpush.bf16.msra.mxu3 %v761_v26  ;;  %437 = vmatpush.bf16.msra.mxu1 %v744_v28  ;;  %v748_v47 = vld [vmem:[%s1015_s4 + $0x88] sm:$0xff]  ;;  %v739_v49 = vld [vmem:[%s1015_s4 + $0x40] sm:$0xff]  ;;  %v781_v50 = vunpack.c.l.bf16 %v780_v44  ;;  %v782_v51 = vunpack.c.h.bf16 %v780_v44 }
   0xf   :  { %450 = vmatpush.bf16.msra.mxu2 %v752_v29  ;;  %v756_v48 = vld [vmem:[%s1015_s4 + $0xc8] sm:$0xff]  ;;  %v747_v52 = vld [vmem:[%s1015_s4 + $0x80] sm:$0xff] }
  0x10   :  { %v755_v53 = vld [vmem:[%s1015_s4 + $0xc0] sm:$0xff]  ;;  %v787_v57 = vld [vmem:[%s1017_s0 + $0x8] sm:$0xff]  }
  0x11   :  { %425 = vmatpush.bf16.msra.mxu0 %v735_v23  ;;  %v772_v59 = vld [vmem:[%s1017_s0] sm:$0xff]   ;;  %v777_v60 = vunpack.c.l.bf16 %v787_v57  ;;  %v778_v63 = vunpack.c.h.bf16 %v787_v57  ;;  %v788_v10 = vld [vmem:[%s1016_s1 + $0x8] sm:$0xff]   ;;  %v766_v57 = vld [vmem:[%s1019_s6 + $0x18] sm:$0xff] }
  0x12   :  { %463 = vmatpush.bf16.msra.mxu3 %v760_v30  ;;  %438 = vmatpush.bf16.msra.mxu1 %v743_v32  ;;  %v773_v62 = vunpack.c.l.bf16 %v772_v59  ;;  %v774_v0 = vunpack.c.h.bf16 %v772_v59  ;;  %v786_v14 = vunpack.c.h.bf16 %v788_v10 }
  0x13   :  { %451 = vmatpush.bf16.msra.mxu2 %v751_v33 }
  0x14   :  { %99 = vperm.xlu1 %791, %v88_v15   ;;  %96 = vperm.xlu0 %790, %v87_v16   ;;  %v785_v15 = vunpack.c.l.bf16 %v788_v10 }
  0x15   :  { %426 = vmatpush.bf16.msra.mxu0 %v734_v27 }
  0x16   :  { %464 = vmatpush.bf16.msra.mxu3 %v759_v34  ;;  %439 = vmatpush.bf16.msra.mxu1 %v742_v37 }
  0x17   :  { %452 = vmatpush.bf16.msra.mxu2 %v750_v38 }
  0x19   :  { %427 = vmatpush.bf16.msra.mxu0 %v733_v31 }
  0x1a   :  { %465 = vmatpush.bf16.msra.mxu3 %v758_v39  ;;  %440 = vmatpush.bf16.msra.mxu1 %v741_v41 }
  0x1b   :  { %453 = vmatpush.bf16.msra.mxu2 %v749_v42 }
  0x1d   :  { %428 = vmatpush.bf16.msra.mxu0 %v732_v36 }
  0x1e   :  { %466 = vmatpush.bf16.msra.mxu3 %v757_v43  ;;  %441 = vmatpush.bf16.msra.mxu1 %v740_v45 }
  0x1f   :  { %454 = vmatpush.bf16.msra.mxu2 %v748_v47 }
  0x21   :  { %429 = vmatpush.bf16.msra.mxu0 %v731_v40 }
  0x22   :  { %467 = vmatpush.bf16.msra.mxu3 %v756_v48  ;;  %442 = vmatpush.bf16.msra.mxu1 %v739_v49 }
  0x23   :  { %455 = vmatpush.bf16.msra.mxu2 %v747_v52 }
  0x26   :  { %468 = vmatpush.bf16.msra.mxu3 %v755_v53  ;;  %v770_v53 = vld [vmem:[%s1019_s6 + $0x38] sm:$0xff] }
  0x27   :  { %552 = vmatpush.bf16.msrb.mxu0 %v770_v53 }
  0x5f   :  { %v91_v35 = vpop.permute.xlu2 %90 }
  0x60   :  { %vm101_vm8 = vcmp.eq.s32.totalorder %v91_v35, 1 }
  0x61   :  { %v105_v56 = vsel %vm101_vm8, %v781_v50, -1e+30 }
  0x67   :  { %v94_v46 = vpop.permute.xlu2 %93 }
  0x68   :  { %vm102_vm9 = vcmp.eq.s32.totalorder %v94_v46, 1 }
  0x69   :  { %v106_v58 = vsel %vm102_vm9, %v782_v51, -1e+30 }
  0x6a   :  { %v123_v61 = vmax.f32 %v105_v56, %v106_v58  ;;  %v767_v56 = vld [vmem:[%s1019_s6 + $0x20] sm:$0xff]  ;;  %v765_v58 = vld [vmem:[%s1019_s6 + $0x10] sm:$0xff] }
  0x6c   :  { %v124_v4 = vrot.slane %v123_v61, 4 }
  0x6e   :  { %v125_v13 = vmax.f32 %v123_v61, %v124_v4  ;;  %v763_v61 = vld [vmem:[%s1019_s6] sm:$0xff] }
  0x70   :  { %v126_v22 = vrot.slane %v125_v13, 2 }
  0x72   :  { %v127_v31 = vmax.f32 %v125_v13, %v126_v22 }
  0x74   :  { %v128_v37 = vrot.slane %v127_v31, 1 }
  0x76   :  { %v57_v54 = vpop.permute.xlu1 %56  ;;  %v51_v55 = vpop.permute.xlu0 %50  ;;  %v129_v41 = vmax.f32 %v127_v31, %v128_v37 }
  0x77   :  { %vm63_vm10 = vcmp.eq.s32.totalorder %v57_v54, 1  ;;  %vm61_vm11 = vcmp.eq.s32.totalorder %v51_v55, 1  ;;  %v769_v54 = vld [vmem:[%s1019_s6 + $0x30] sm:$0xff]  ;;  %v768_v55 = vld [vmem:[%s1019_s6 + $0x28] sm:$0xff] }
  0x78   :  { %v67_v3 = vsel %vm63_vm10, %v777_v60, -1e+30  ;;  %v65_v5 = vsel %vm61_vm11, %v773_v62, -1e+30  ;;  %553 = vmatpush.bf16.msrb.mxu0 %v769_v54  ;;  %v764_v60 = vld [vmem:[%s1019_s6 + $0x8] sm:$0xff] }
  0x7c   :  { %554 = vmatpush.bf16.msrb.mxu0 %v768_v55 }
  0x7e   :  { %v60_v1 = vpop.permute.xlu1 %59  ;;  %v54_v2 = vpop.permute.xlu0 %53 }
  0x7f   :  { %vm64_vm12 = vcmp.eq.s32.totalorder %v60_v1, 1  ;;  %vm62_vm13 = vcmp.eq.s32.totalorder %v54_v2, 1 }
  0x80   :  { %v68_v6 = vsel %vm64_vm12, %v778_v63, -1e+30  ;;  %v66_v7 = vsel %vm62_vm13, %v774_v0, -1e+30  ;;  %555 = vmatpush.bf16.msrb.mxu0 %v767_v56  ;;  %v793_v0 = vld [vmem:[%s1014_s5] ss:$0 sm:$0xff] }
  0x81   :  { %v116_v8 = vmax.f32 %v67_v3, %v68_v6  ;;  %v109_v9 = vmax.f32 %v65_v5, %v66_v7 }
  0x83   :  { %v117_v11 = vrot.slane %v116_v8, 4  ;;  %v110_v12 = vrot.slane %v109_v9, 4 }
  0x84   :  { %556 = vmatpush.bf16.msrb.mxu0 %v766_v57 }
  0x85   :  { %v118_v16 = vmax.f32 %v116_v8, %v117_v11  ;;  %v111_v17 = vmax.f32 %v109_v9, %v110_v12 }
  0x86   :  { %v100_v18 = vpop.permute.xlu1 %99  ;;  %v97_v19 = vpop.permute.xlu0 %96 }
  0x87   :  { %v119_v20 = vrot.slane %v118_v16, 2  ;;  %v112_v21 = vrot.slane %v111_v17, 2  ;;  %vm104_vm14 = vcmp.eq.s32.totalorder %v100_v18, 1  ;;  %vm103_vm15 = vcmp.eq.s32.totalorder %v97_v19, 1 }
  0x88   :  { %v108_v23 = vsel %vm104_vm14, %v786_v14, -1e+30  ;;  %v107_v24 = vsel %vm103_vm15, %v785_v15, -1e+30  ;;  %557 = vmatpush.bf16.msrb.mxu0 %v765_v58 }
  0x89   :  { %v120_v25 = vmax.f32 %v118_v16, %v119_v20  ;;  %v113_v26 = vmax.f32 %v111_v17, %v112_v21  ;;  %v130_v27 = vmax.f32 %v107_v24, %v108_v23  ;;  %v794_v20 = vld [vmem:[%s1018_s7] ss:$0 sm:$0xff] }
  0x8b   :  { %v131_v28 = vrot.slane %v130_v27, 4  ;;  %v114_v29 = vrot.slane %v113_v26, 1  ;;  %v121_v30 = vrot.slane %v120_v25, 1 }
  0x8c   :  { %558 = vmatpush.bf16.msrb.mxu0 %v764_v60 }
  0x8d   :  { %v132_v32 = vmax.f32 %v130_v27, %v131_v28  ;;  %v115_v33 = vmax.f32 %v113_v26, %v114_v29  ;;  %v122_v34 = vmax.f32 %v120_v25, %v121_v30 }
  0x8f   :  { %v133_v35 = vrot.slane %v132_v32, 2  ;;  %v144_v36 = vsel %vm143_vm0, %v122_v34, %v115_v33  ;;  %v137_v43 = vsub.f32 %v115_v33, %v129_v41  ;;  %v139_v46 = vmul.f32 %v129_v41, %v115_v33 }
  0x90   :  { %v158_v38 = vpack.c.bf16 %v144_v36, %v144_v36  ;;  %559 = vmatpush.bf16.msrb.mxu0 %v763_v61 }
  0x91   :  { %v134_v39 = vmax.f32 %v132_v32, %v133_v35 }
  0x92   :  { %430 = vmatmul.bf16.vlgmr.msra.gmra.mxu0 %v158_v38 }
  0x93   :  { %v135_v40 = vrot.slane %v134_v39, 1 }
  0x95   :  { %v136_v42 = vmax.f32 %v134_v39, %v135_v40 }
  0x97   :  { %v148_v44 = vsel %vm143_vm0, %v136_v42, %v129_v41  ;;  %v138_v45 = vsub.f32 %v122_v34, %v136_v42  ;;  %v140_v47 = vmul.f32 %v136_v42, %v122_v34 }
  0x98   :  { %v159_v48 = vpack.c.bf16 %v148_v44, %v148_v44 }
  0x99   :  { %v152_v49 = vsel %vm143_vm0, %v138_v45, %v137_v43  ;;  %v156_v50 = vsel %vm143_vm0, %v140_v47, %v139_v46 }
  0x9a   :  { %443 = vmatmul.bf16.vlgmr.msra.gmra.mxu1 %v159_v48  ;;  %v160_v51 = vpack.c.bf16 %v152_v49, %v152_v49  ;;  %v161_v52 = vpack.c.bf16 %v156_v50, %v156_v50 }
  0x9c   :  { %456 = vmatmul.bf16.vlgmr.msra.gmra.mxu2 %v160_v51  ;;  %469 = vmatmul.bf16.vlgmr.msra.gmra.mxu3 %v161_v52 }
 0x10f   :  { %v431_v59 = vpop.f32.mrf.mxu0 }
 0x110   :  { %v432_v1 = vadd.f32 %v793_v0, %v431_v59 }
 0x117   :  { %v433_v62 = vpop.f32.mrf.mxu0  ;;  %v444_v63 = vpop.f32.mrf.mxu1 }
 0x118   :  { %v445_v2 = vadd.f32 %v444_v63, %v432_v1 }
 0x11f   :  { %v446_v3 = vpop.f32.mrf.mxu1  ;;  %v457_v4 = vpop.f32.mrf.mxu2 }
 0x120   :  { %v458_v5 = vadd.f32 %v457_v4, %v445_v2  ;;  %v470_v6 = vpop.f32.mrf.mxu3 }
 0x122   :  { %v471_v7 = vadd.f32 %v470_v6, %v458_v5 }
 0x124   :  { %v475_v8 = vmul.f32 0.044715, %v471_v7  ;;  %v474_v16 = vmul.f32 0.5, %v471_v7 }
 0x126   :  { %v476_v9 = vmul.f32 %v475_v8, %v471_v7 }
 0x127   :  { %v459_v10 = vpop.f32.mrf.mxu2 }
 0x128   :  { %v472_v11 = vpop.f32.mrf.mxu3  ;;  %v477_v12 = vmul.f32 %v476_v9, %v471_v7 }
 0x12a   :  { %v478_v13 = vadd.f32 %v477_v12, %v471_v7 }
 0x12c   :  { %v479_v14 = vmul.f32 0.7978846, %v478_v13 }
 0x12e   :  { %795 = vtanh.f32 %v479_v14 }
 0x134   :  { %v796_v15 = vpop.eup %795 }
 0x135   :  { %v481_v17 = vadd.f32 1.0, %v796_v15 }
 0x137   :  { %v482_v18 = vmul.f32 %v481_v17, %v474_v16 }
 0x139   :  { %v483_v19 = vpack.c.bf16 %v482_v18, %v482_v18 }
 0x13b   :  { %560 = vmatmul.bf16.vlgmr.msrb.gmra.mxu0 %v483_v19 }
 0x1b8   :  { %v561_v21 = vpop.f32.mrf.mxu0 }
 0x1b9   :  { %v562_v22 = vadd.f32 %v794_v20, %v561_v21 }
 0x1bb   :  { %566 = vst.msk [vmem:[%s1020_s8] sm:$0x3] %vm565_vm1, %v562_v22 }
 0x1c0   :  { %v563_v23 = vpop.f32.mrf.mxu0 }

// kernel: re2_forward.6
= control target key start
LH: loop header
LB: loop body
LE: loop exit
PB: predicated region body
PF: predicated region fallthrough
CT: control target
= control target key end

     0   :  { %s4625_s25 = smov 0   ;;  %s6130_s0 = inlined_call_operand.vmem [shape: bf16[2,16,256], index: 0, kind: input, shape index: {}]   ;;  %s6131_s1 = inlined_call_operand.vmem [shape: bf16[2,16,256], index: 1, kind: input, shape index: {}]   ;;  %s6132_s2 = inlined_call_operand.vmem [shape: f32[2,16,1], index: 2, kind: input, shape index: {}]   ;;  %s6133_s3 = inlined_call_operand.vmem [shape: f32[2,1,16], index: 3, kind: input, shape index: {}]   ;;  %s6134_s4 = inlined_call_operand.vmem [shape: f32[2,16,1], index: 4, kind: input, shape index: {}]   ;;  %s6135_s5 = inlined_call_operand.vmem [shape: f32[2,1,16], index: 5, kind: input, shape index: {}]   ;;  %s6136_s6 = inlined_call_operand.vmem [shape: bf16[256,384], index: 6, kind: input, shape index: {}]   ;;  %s6137_s7 = inlined_call_operand.vmem [shape: bf16[256,256], index: 7, kind: input, shape index: {}]   ;;  %s6138_s8 = inlined_call_operand.vmem [shape: bf16[256,128], index: 8, kind: input, shape index: {}]   ;;  %s6139_s9 = inlined_call_operand.vmem [shape: f32[1,384], index: 9, kind: input, shape index: {}]   ;;  %s6140_s10 = inlined_call_operand.vmem [shape: bf16[384,128], index: 10, kind: input, shape index: {}]   ;;  %s6141_s11 = inlined_call_operand.vmem [shape: f32[1,128], index: 11, kind: input, shape index: {}]   ;;  %s6142_s12 = inlined_call_operand.vmem [shape: bf16[2,16,128], index: 12, kind: output, shape index: {0}]   ;;  %s6143_s13 = inlined_call_operand.vmem [shape: bf16[2,16,128], index: 13, kind: output, shape index: {1}]  }
   0x1 LB: > { %s3226_s26 = sadd.s32 4294967295, %s4552_s25   ;;  %p3230_p0 = scmp.ge.s32.totalorder %s4552_s25, 1  ;;  %s4552_s25 = sphi %s4625_s25, %s24_s25  }
   0x2   : > { %p436_p1 = scmp.lt.s32.totalorder %s4552_s25, 3 }
   0x4   : > { %p437_p2 = pnand %p3230_p0, %p436_p1 }
   0x5   : > { %p506_p3 = scmp.lt.s32.totalorder (!%p437_p2), %s3226_s26, 1 }
   0x6   : > { %440 = sbr.rel (%p437_p2) target bundleno = 1182 (0x49e), region = 68 }
   0xb   : > { %v4554_v0 = vmov 0   ;;  %s6147_s26 = smov (!%p506_p3, %s3226_s26), 1  ;;  %vm623_vm7 = vcmask 130048   ;;  %v4310_v23 = vld [vmem:[%s6137_s7 + $0xd4] sm:$0xf0] }
   0xc   : > { %4494 = vset.pattern.permute.xlu0 %v4554_v0  ;;  %4495 = vset.pattern.permute.xlu1 %v4554_v0  ;;  %s4225_s27 = sshll.u32 %s6147_s26, 4  ;;  %s523_s14 = scalar_lea.vmem %s6133_s3, %s6147_s26 }
   0xd   : > { %s4641_s30 = scalar_lea.vmem %s6131_s1, %s4225_s27  ;;  %s4646_s16 = scalar_lea.vmem %s6130_s0, %s4225_s27  ;;  %v549_v42 = vld [vmem:[%s523_s14] sm:$0x1] }
   0xe   : > { %v3253_v1 = vld [vmem:[%s4641_s30] sm:$0xf]  ;;  %v4234_v2 = vld [vmem:[%s4641_s30 + $0x4] sm:$0xf0]  ;;  %v4233_v3 = vld [vmem:[%s4641_s30 + $0x4] sm:$0xf]  ;;  %s520_s19 = scalar_lea.vmem %s6132_s2, %s4225_s27  ;;  %s4677_s22 = scalar_lea.vmem %s6134_s4, %s4225_s27 }
   0xf   : > { %v4654_v4 = vor.u32 %v4234_v2, %v3253_v1  ;;  %v3255_v5 = vld [vmem:[%s4641_s30 + $0x8] sm:$0xf0]  ;;  %v3245_v6 = vld [vmem:[%s4646_s16] sm:$0xf]  ;;  %v4232_v7 = vld [vmem:[%s4646_s16 + $0x4] sm:$0xf0]  ;;  %s531_s27 = scalar_lea.vmem %s6135_s5, %s6147_s26 }
  0x10   : > { %v4659_v8 = vor.u32 %v4233_v3, %v3255_v5  ;;  %v4661_v9 = vor.u32 %v4232_v7, %v3245_v6  ;;  %v4231_v10 = vld [vmem:[%s4646_s16 + $0x4] sm:$0xf]  ;;  %v3247_v11 = vld [vmem:[%s4646_s16 + $0x8] sm:$0xf0]  ;;  %v552_v19 = vld [vmem:[%s531_s27] sm:$0x1] }
  0x11   : > { %v547_v12 = vld [vmem:[%s520_s19] sm:$0xff]  ;;  %580 = vmatpush.bf16.xpose.msra.mxu0 %v4654_v4  ;;  %v4666_v13 = vor.u32 %v4231_v10, %v3247_v11  ;;  %v548_v15 = vld [vmem:[%s520_s19 + $0x8] sm:$0xff]  ;;  %vm605_vm3 = vcmp.gt.f32.partialorder %v552_v19, 0.0  ;;  %vm710_vm11 = vcmp.gt.f32.partialorder %v549_v42, 0.0  ;;  %v3321_v3 = vld [vmem:[%s6137_s7 + $0x70] sm:$0xf] }
  0x12   : > { %vm603_vm0 = vcmp.gt.f32.partialorder %v547_v12, 0.0  ;;  %594 = vmatpush.bf16.xpose.msra.mxu1 %v4659_v8  ;;  %685 = vmatpush.bf16.xpose.msra.mxu2 %v4661_v9  ;;  %vm604_vm1 = vcmp.gt.f32.partialorder %v548_v15, 0.0  ;;  %v550_v17 = vld [vmem:[%s4677_s22] sm:$0xff]  ;;  %v616_v20 = vsel %vm605_vm3, 1, %v4554_v0  ;;  %v551_v37 = vld [vmem:[%s4677_s22 + $0x8] sm:$0xff]  ;;  %v721_v48 = vsel %vm710_vm11, 1, %v4554_v0 }
  0x13   : > { %v606_v14 = vsel %vm603_vm0, 1, %v4554_v0  ;;  %699 = vmatpush.bf16.xpose.msra.mxu3 %v4666_v13  ;;  %v607_v16 = vsel %vm604_vm1, 1, %v4554_v0  ;;  %vm708_vm2 = vcmp.gt.f32.partialorder %v550_v17, 0.0  ;;  %v617_v21 = vperm.slane %v616_v20, 0  ;;  %v4298_v5 = vld [vmem:[%s6137_s7 + $0x74] sm:$0xf0] }
  0x14   : > { %609 = vperm.xlu0 %4494, %v606_v14   ;;  %v711_v18 = vsel %vm708_vm2, 1, %v4554_v0  ;;  %vm709_vm10 = vcmp.gt.f32.partialorder %v551_v37, 0.0  ;;  %v722_v51 = vperm.slane %v721_v48, 0  ;;  %v3385_v6 = vld [vmem:[%s6137_s7 + $0xf0] sm:$0xf]  ;;  %v3322_v7 = vor.u32 %v4298_v5, %v3321_v3  ;;  %s4229_s14 = sshll.u32 %s6147_s26, 3 }
  0x15   : > { %vm4693_vm4 = vcmp.eq.s32.totalorder %v617_v21, 1  ;;  %v712_v38 = vsel %vm709_vm10, 1, %v4554_v0  ;;  %v4314_v10 = vld [vmem:[%s6137_s7 + $0xf4] sm:$0xf0]  ;;  %v3313_v11 = vld [vmem:[%s6137_s7 + $0x60] sm:$0xf]  ;;  %s536_s21 = scalar_lea.vmem %s6142_s12, %s4229_s14  ;;  %s541_s22 = scalar_lea.vmem %s6143_s13, %s4229_s14 }
  0x16   : > { %vm723_vm12 = vcmp.eq.s32.totalorder %v722_v51, 1  ;;  %v4296_v12 = vld [vmem:[%s6137_s7 + $0x64] sm:$0xf0]  ;;  %v3386_v14 = vor.u32 %v4314_v10, %v3385_v6  ;;  %v3377_v15 = vld [vmem:[%s6137_s7 + $0xe0] sm:$0xf] }
  0x17   : > { %v3305_v20 = vld [vmem:[%s6137_s7 + $0x50] sm:$0xf]  ;;  %v4294_v21 = vld [vmem:[%s6137_s7 + $0x54] sm:$0xf0]  ;;  %v4313_v42 = vld [vmem:[%s6137_s7 + $0xf4] sm:$0xf] }
  0x18   : > { %581 = vmatmul.bf16.vlgmr.msra.gmra.mxu0 %v4661_v9  ;;  %v3315_v51 = vld [vmem:[%s6137_s7 + $0x68] sm:$0xf0]  ;;  %v3371_v3 = vld [vmem:[%s6137_s7 + $0xd8] sm:$0xf0]  ;;  %v3273_v10 = vld [vmem:[%s6137_s7 + $0x10] sm:$0xf] }
  0x19   : > { %657 = vmatpush.bf16.msrb.mxu0 %v4654_v4  ;;  %595 = vmatmul.bf16.vlgmr.msra.gmra.mxu1 %v4666_v13 }
  0x1a   : > { %671 = vmatpush.bf16.msrb.mxu1 %v4659_v8  ;;  %686 = vmatmul.bf16.vlgmr.msra.gmra.mxu2 %v4654_v4 }
  0x1b   : > { %700 = vmatmul.bf16.vlgmr.msra.gmra.mxu3 %v4659_v8  ;;  %1044 = vmatpush.bf16.msrb.mxu2 %v3322_v7 }
  0x1c   : > { %612 = vperm.xlu0 %4494, %v607_v16   ;;  %v4312_v16 = vld [vmem:[%s6137_s7 + $0xe4] sm:$0xf0]  ;;  %1058 = vmatpush.bf16.msrb.mxu3 %v3386_v14 }
  0x1d   : > { %761 = vmatpush.bf16.msra.mxu0 %v4661_v9  ;;  %v3378_v19 = vor.u32 %v4312_v16, %v3377_v15  ;;  %v4302_v16 = vld [vmem:[%s6137_s7 + $0x94] sm:$0xf0] }
  0x1e   : > { %775 = vmatpush.bf16.msra.mxu1 %v4666_v13 }
  0x20   : > { %1059 = vmatpush.bf16.msrb.mxu3 %v3378_v19 }
  0x24   : > { %714 = vperm.xlu0 %4494, %v711_v18   ;;  %v3314_v18 = vor.u32 %v4296_v12, %v3313_v11  ;;  %v4286_v11 = vld [vmem:[%s6137_s7 + $0x14] sm:$0xf0] }
  0x25   : > { %v3274_v19 = vor.u32 %v4286_v11, %v3273_v10  ;;  %v3267_v10 = vld [vmem:[%s6137_s7 + $0x8] sm:$0xf0]  ;;  %v4299_v11 = vld [vmem:[%s6137_s7 + $0x84] sm:$0xf] }
  0x26   : > { %1045 = vmatpush.bf16.msrb.mxu2 %v3314_v18 }
  0x86   : > { %v610_v22 = vpop.permute.xlu0 %609 }
  0x87   : > { %vm614_vm5 = vcmp.eq.s32.totalorder %v610_v22, 1  ;;  %v3369_v22 = vld [vmem:[%s6137_s7 + $0xd0] sm:$0xf] }
  0x88   : > { %vm619_vm6 = vmand %vm614_vm5, %vm4693_vm4 }
  0x8e   : > { %v613_v31 = vpop.permute.xlu0 %612 }
  0x8f   : > { %vm615_vm8 = vcmp.eq.s32.totalorder %v613_v31, 1 }
  0x90   : > { %vm620_vm9 = vmand %vm615_vm8, %vm4693_vm4 }
  0x95   : > { %v582_v24 = vpop.f32.mrf.mxu0 }
  0x96   : > { %v596_v25 = vpop.f32.mrf.mxu1  ;;  %v715_v53 = vpop.permute.xlu0 %714 }
  0x97   : > { %v597_v26 = vadd.f32 %v596_v25, %v582_v24  ;;  %vm719_vm13 = vcmp.eq.s32.totalorder %v715_v53, 1  ;;  %v3306_v24 = vor.u32 %v4294_v21, %v3305_v20  ;;  %v3379_v53 = vld [vmem:[%s6137_s7 + $0xe8] sm:$0xf0]  ;;  %v3265_v21 = vld [vmem:[%s6137_s7] sm:$0xf] }
  0x98   : > { %vm724_vm14 = vmand %vm719_vm13, %vm723_vm12 }
  0x99   : > { %v601_v27 = vmul.f32 0.088388346, %v597_v26  ;;  %v3370_v26 = vor.u32 %v4310_v23, %v3369_v22  ;;  %1046 = vmatpush.bf16.msrb.mxu2 %v3306_v24  ;;  %v4284_v22 = vld [vmem:[%s6137_s7 + $0x4] sm:$0xf0]  ;;  %v3329_v23 = vld [vmem:[%s6137_s7 + $0x80] sm:$0xf] }
  0x9a   : > { %v4300_v24 = vld [vmem:[%s6137_s7 + $0x84] sm:$0xf0] }
  0x9b   : > { %v621_v28 = vsel %vm619_vm6, %v601_v27, -10000000.0  ;;  %v3297_v27 = vld [vmem:[%s6137_s7 + $0x40] sm:$0xf]  ;;  %1060 = vmatpush.bf16.msrb.mxu3 %v3370_v26  ;;  %v4322_v26 = vld [vmem:[%s6138_s8 + $0x38] sm:$0xff] }
  0x9c   : > { %v624_v29 = vsel %vm623_vm7, %v621_v28, -inf }
  0x9d   : > { %625 = vmax.xlane.f32.xlu1 %v624_v29  ;;  %v584_v30 = vpop.f32.mrf.mxu0  ;;  %v687_v49 = vpop.f32.mrf.mxu2  ;;  %v3361_v29 = vld [vmem:[%s6137_s7 + $0xc0] sm:$0xf] }
  0x9e   : > { %v598_v32 = vpop.f32.mrf.mxu1  ;;  %v701_v50 = vpop.f32.mrf.mxu3 }
  0x9f   : > { %v599_v33 = vadd.f32 %v598_v32, %v584_v30  ;;  %v702_v52 = vadd.f32 %v701_v50, %v687_v49  ;;  %v4308_v30 = vld [vmem:[%s6137_s7 + $0xc4] sm:$0xf0]  ;;  %v4295_v50 = vld [vmem:[%s6137_s7 + $0x64] sm:$0xf] }
  0xa1   : > { %v602_v34 = vmul.f32 0.088388346, %v599_v33  ;;  %v706_v56 = vmul.f32 0.088388346, %v702_v52  ;;  %v4311_v52 = vld [vmem:[%s6137_s7 + $0xe4] sm:$0xf] }
  0xa3   : > { %v622_v35 = vsel %vm620_vm9, %v602_v34, -10000000.0  ;;  %v4715_v57 = vsel %vm724_vm14, %v706_v56, -10000000.0  ;;  %v3281_v56 = vld [vmem:[%s6137_s7 + $0x20] sm:$0xf] }
  0xa4   : > { %v627_v36 = vsel %vm623_vm7, %v622_v35, -inf  ;;  %v728_v60 = vsel %vm623_vm7, %v4715_v57, -inf }
  0xa5   : > { %628 = vmax.xlane.f32.xlu1 %v627_v36  ;;  %v689_v58 = vpop.f32.mrf.mxu2  ;;  %v4290_v36 = vld [vmem:[%s6137_s7 + $0x34] sm:$0xf0] }
  0xa6   : > { %v703_v59 = vpop.f32.mrf.mxu3 }
  0xa7   : > { %v704_v61 = vadd.f32 %v703_v59, %v689_v58  ;;  %v3345_v58 = vld [vmem:[%s6137_s7 + $0xa0] sm:$0xf]  ;;  %v3318_v59 = vor.u32 %v4295_v50, %v3315_v51  ;;  %v4305_v50 = vld [vmem:[%s6137_s7 + $0xb4] sm:$0xf]  ;;  %v3355_v51 = vld [vmem:[%s6137_s7 + $0xb8] sm:$0xf0] }
  0xa9   : > { %v707_v63 = vmul.f32 0.088388346, %v704_v61  ;;  %v4304_v61 = vld [vmem:[%s6137_s7 + $0xa4] sm:$0xf0] }
  0xaa   : > { %v3346_v7 = vor.u32 %v4304_v61, %v3345_v58  ;;  %v4303_v58 = vld [vmem:[%s6137_s7 + $0xa4] sm:$0xf] }
  0xab   : > { %v4315_v61 = vld [vmem:[%s6138_s8] sm:$0xff] }
  0xbe   : > { %717 = vperm.xlu1 %4495, %v712_v38  }
 0x110   : > { %v626_v39 = vpop.xlane.xlu1 %625 }
 0x111   : > { %v630_v40 = vsub.f32 %v621_v28, %v626_v39  ;;  %v4292_v28 = vld [vmem:[%s6137_s7 + $0x44] sm:$0xf0]  ;;  %v3362_v39 = vor.u32 %v4308_v30, %v3361_v29  ;;  %v4330_v29 = vld [vmem:[%s6138_s8 + $0x78] sm:$0xff] }
 0x112   : > { %v3298_v38 = vor.u32 %v4292_v28, %v3297_v27  ;;  %v3330_v27 = vor.u32 %v4300_v24, %v3329_v23 }
 0x113   : > { %v632_v41 = vmul.f32 1.442695, %v630_v40  ;;  %v4297_v40 = vld [vmem:[%s6137_s7 + $0x74] sm:$0xf]  ;;  %1061 = vmatpush.bf16.msrb.mxu3 %v3362_v39  ;;  %v4291_v39 = vld [vmem:[%s6137_s7 + $0x44] sm:$0xf] }
 0x114   : > { %1047 = vmatpush.bf16.msrb.mxu2 %v3298_v38  ;;  %v4326_v38 = vld [vmem:[%s6138_s8 + $0x58] sm:$0xff] }
 0x115   : > { %4498 = vpow2.f32 %v632_v41  ;;  %v3323_v41 = vld [vmem:[%s6137_s7 + $0x78] sm:$0xf0] }
 0x118   : > { %v629_v43 = vpop.xlane.xlu1 %628 }
 0x119   : > { %v631_v44 = vsub.f32 %v622_v35, %v629_v43  ;;  %v3289_v35 = vld [vmem:[%s6137_s7 + $0x30] sm:$0xf] }
 0x11b   : > { %v4709_v45 = vpop.eup %4498  ;;  %v634_v46 = vmul.f32 1.442695, %v631_v44  ;;  %v3353_v44 = vld [vmem:[%s6137_s7 + $0xb0] sm:$0xf] }
 0x11c   : > { %v636_v47 = vsel %vm623_vm7, %v4709_v45, 0.0 }
 0x11d   : > { %4500 = vpow2.f32 %v634_v46  ;;  %637 = vadd.xlane.f32.xlu2 %v636_v47  ;;  %v3326_v46 = vor.u32 %v4297_v40, %v3323_v41  ;;  %v3387_v47 = vld [vmem:[%s6137_s7 + $0xf8] sm:$0xf0]  ;;  %v3299_v40 = vld [vmem:[%s6137_s7 + $0x48] sm:$0xf0] }
 0x11e   : > { %v3390_v49 = vor.u32 %v4313_v42, %v3387_v47  ;;  %v3302_v41 = vor.u32 %v4291_v39, %v3299_v40  ;;  %v4307_v42 = vld [vmem:[%s6137_s7 + $0xc4] sm:$0xf]  ;;  %v4289_v47 = vld [vmem:[%s6137_s7 + $0x34] sm:$0xf]  ;;  %v3541_v39 = vld [vmem:[%s6136_s6 + $0xa8] sm:$0xf] }
 0x11f   : > { %v4257_v40 = vld [vmem:[%s6136_s6 + $0xb0] sm:$0xf0] }
 0x123   : > { %v4501_v54 = vpop.eup %4500 }
 0x124   : > { %v639_v55 = vsel %vm623_vm7, %v4501_v54, 0.0 }
 0x125   : > { %640 = vadd.xlane.f32.xlu2 %v639_v55 }
 0x12d   : > { %729 = vmax.xlane.f32.xlu2 %v728_v60  ;;  %v3382_v60 = vor.u32 %v4311_v52, %v3379_v53  ;;  %v3358_v52 = vor.u32 %v4305_v50, %v3355_v51  ;;  %v4316_v53 = vld [vmem:[%s6138_s8 + $0x8] sm:$0xff] }
 0x130   : > { %v718_v62 = vpop.permute.xlu1 %717 }
 0x131   : > { %vm720_vm15 = vcmp.eq.s32.totalorder %v718_v62, 1  ;;  %v4293_v62 = vld [vmem:[%s6137_s7 + $0x54] sm:$0xf] }
 0x132   : > { %vm725_vm0 = vmand %vm720_vm15, %vm723_vm12 }
 0x133   : > { %v4719_v0 = vsel %vm725_vm0, %v707_v63, -10000000.0  ;;  %v3307_v63 = vld [vmem:[%s6137_s7 + $0x58] sm:$0xf0] }
 0x134   : > { %v731_v1 = vsel %vm623_vm7, %v4719_v0, -inf  ;;  %v3310_v12 = vor.u32 %v4293_v62, %v3307_v63  ;;  %v4323_v62 = vld [vmem:[%s6138_s8 + $0x40] sm:$0xff]  ;;  %v4285_v63 = vld [vmem:[%s6137_s7 + $0x14] sm:$0xf] }
 0x135   : > { %732 = vmax.xlane.f32.xlu0 %v731_v1 }
 0x190   : > { %v638_v2 = vpop.xlane.xlu2 %637 }
 0x191   : > { %4502 = vrcp.f32 %v638_v2  ;;  %v4309_v2 = vld [vmem:[%s6137_s7 + $0xd4] sm:$0xf] }
 0x197   : > { %v4503_v25 = vpop.eup %4502 }
 0x198   : > { %v641_v17 = vpop.xlane.xlu2 %640  ;;  %v644_v32 = vmul.f32 %v4503_v25, %v4709_v45  ;;  %v4306_v45 = vld [vmem:[%s6137_s7 + $0xb4] sm:$0xf0]  ;;  %v3266_v25 = vor.u32 %v4284_v22, %v3265_v21  ;;  %v4280_v21 = vld [vmem:[%s6136_s6 + $0x16c] sm:$0xf] }
 0x199   : > { %4504 = vrcp.f32 %v641_v17  ;;  %v3354_v55 = vor.u32 %v4306_v45, %v3353_v44  ;;  %v3374_v17 = vor.u32 %v4309_v2, %v3371_v3  ;;  %v4317_v45 = vld [vmem:[%s6138_s8 + $0x10] sm:$0xff]  ;;  %v3639_v22 = vld [vmem:[%s6136_s6 + $0x174] sm:$0xf0] }
 0x19a   : > { %v4301_v3 = vld [vmem:[%s6137_s7 + $0x94] sm:$0xf] }
 0x19b   : > { %1062 = vmatpush.bf16.msrb.mxu3 %v3354_v55  ;;  %v4287_v55 = vld [vmem:[%s6137_s7 + $0x24] sm:$0xf] }
 0x19f   : > { %v4505_v31 = vpop.eup %4504  ;;  %1063 = vmatpush.bf16.msrb.mxu3 %v3346_v7  ;;  %v4283_v7 = vld [vmem:[%s6137_s7 + $0x4] sm:$0xf] }
 0x1a0   : > { %v645_v33 = vmul.f32 %v4505_v31, %v4501_v54  ;;  %v730_v34 = vpop.xlane.xlu2 %729  ;;  %v3290_v54 = vor.u32 %v4290_v36, %v3289_v35  ;;  %v4321_v31 = vld [vmem:[%s6138_s8 + $0x30] sm:$0xff]  ;;  %v4319_v35 = vld [vmem:[%s6138_s8 + $0x20] sm:$0xff] }
 0x1a1   : > { %v734_v37 = vsub.f32 %v4715_v57, %v730_v34  ;;  %v4288_v57 = vld [vmem:[%s6137_s7 + $0x24] sm:$0xf0]  ;;  %v4327_v36 = vld [vmem:[%s6138_s8 + $0x60] sm:$0xff] }
 0x1a2   : > { %v646_v43 = vpack.c.bf16 %v645_v33, %v644_v32  ;;  %1048 = vmatpush.bf16.msrb.mxu2 %v3290_v54  ;;  %v3282_v6 = vor.u32 %v4288_v57, %v3281_v56  ;;  %v4329_v32 = vld [vmem:[%s6138_s8 + $0x70] sm:$0xff]  ;;  %v4320_v33 = vld [vmem:[%s6138_s8 + $0x28] sm:$0xff] }
 0x1a3   : > { %v736_v48 = vmul.f32 1.442695, %v734_v37  ;;  %v4328_v34 = vld [vmem:[%s6138_s8 + $0x68] sm:$0xff]  ;;  %v4318_v37 = vld [vmem:[%s6138_s8 + $0x18] sm:$0xff] }
 0x1a4   : > { %3259 = vmatmul.msk.bf16.vlgmr.msrb.gmra.mxu0 %vm623_vm7, %v646_v43  ;;  %3260 = vmatmul.msk.bf16.vlgmr.msrb.gmra.mxu1 %vm623_vm7, %v646_v43  ;;  %v3363_v43 = vld [vmem:[%s6137_s7 + $0xc8] sm:$0xf0] }
 0x1a5   : > { %4506 = vpow2.f32 %v736_v48  ;;  %1072 = vmatpush.bf16.msrb.mxu0 %v3326_v46  ;;  %1086 = vmatpush.bf16.msrb.mxu1 %v3390_v49  ;;  %v3366_v44 = vor.u32 %v4307_v42, %v3363_v43  ;;  %v4325_v46 = vld [vmem:[%s6138_s8 + $0x50] sm:$0xff]  ;;  %v3291_v48 = vld [vmem:[%s6137_s7 + $0x38] sm:$0xf0]  ;;  %v4324_v54 = vld [vmem:[%s6138_s8 + $0x48] sm:$0xff] }
 0x1a6   : > { %1049 = vmatpush.bf16.msrb.mxu2 %v3282_v6  ;;  %v3294_v49 = vor.u32 %v4289_v47, %v3291_v48  ;;  %v3283_v56 = vld [vmem:[%s6137_s7 + $0x28] sm:$0xf0]  ;;  %v4281_v42 = vld [vmem:[%s6136_s6 + $0x170] sm:$0xf0]  ;;  %v4250_v43 = vld [vmem:[%s6136_s6 + $0x7c] sm:$0xf] }
 0x1a7   : > { %v3286_v57 = vor.u32 %v4287_v55, %v3283_v56  ;;  %v3615_v47 = vld [vmem:[%s6136_s6 + $0x144] sm:$0xf0]  ;;  %v4254_v55 = vld [vmem:[%s6136_s6 + $0x98] sm:$0xf0] }
 0x1a8   : > { %v733_v1 = vpop.xlane.xlu0 %732 }
 0x1a9   : > { %v735_v5 = vsub.f32 %v4719_v0, %v733_v1  ;;  %1073 = vmatpush.bf16.msrb.mxu0 %v3318_v59  ;;  %1087 = vmatpush.bf16.msrb.mxu1 %v3382_v60  ;;  %v3337_v0 = vld [vmem:[%s6137_s7 + $0x90] sm:$0xf]  ;;  %v3347_v59 = vld [vmem:[%s6137_s7 + $0xa8] sm:$0xf0]  ;;  %v3275_v1 = vld [vmem:[%s6137_s7 + $0x18] sm:$0xf0] }
 0x1aa   : > { %v3338_v20 = vor.u32 %v4302_v16, %v3337_v0  ;;  %1050 = vmatpush.bf16.msrb.mxu2 %v3274_v19  ;;  %v3350_v60 = vor.u32 %v4303_v58, %v3347_v59  ;;  %v3278_v2 = vor.u32 %v4285_v63, %v3275_v1  ;;  %v4256_v19 = vld [vmem:[%s6136_s6 + $0xac] sm:$0xf]  ;;  %v4278_v59 = vld [vmem:[%s6136_s6 + $0x158] sm:$0xf0]  ;;  %v3603_v63 = vld [vmem:[%s6136_s6 + $0x12c] sm:$0xf0] }
 0x1ab   : > { %v4842_v14 = vpop.eup %4506  ;;  %v738_v15 = vmul.f32 1.442695, %v735_v5  ;;  %v3339_v5 = vld [vmem:[%s6137_s7 + $0x98] sm:$0xf0] }
 0x1ac   : > { %v740_v18 = vsel %vm623_vm7, %v4842_v14, 0.0  ;;  %1064 = vmatpush.bf16.msrb.mxu3 %v3338_v20  ;;  %v3342_v6 = vor.u32 %v4301_v3, %v3339_v5  ;;  %v3543_v20 = vld [vmem:[%s6136_s6 + $0xb4] sm:$0xf0] }
 0x1ad   : > { %4508 = vpow2.f32 %v738_v15  ;;  %741 = vadd.xlane.f32.xlu2 %v740_v18  ;;  %1074 = vmatpush.bf16.msrb.mxu0 %v3310_v12  ;;  %v3270_v12 = vor.u32 %v4283_v7, %v3267_v10  ;;  %v3331_v15 = vld [vmem:[%s6137_s7 + $0x88] sm:$0xf0]  ;;  %v3517_v7 = vld [vmem:[%s6136_s6 + $0x78] sm:$0xf]  ;;  %v4251_v10 = vld [vmem:[%s6136_s6 + $0x80] sm:$0xf0] }
 0x1ae   : > { %1088 = vmatpush.bf16.msrb.mxu1 %v3374_v17  ;;  %1051 = vmatpush.bf16.msrb.mxu2 %v3266_v25  ;;  %v3334_v0 = vor.u32 %v4299_v11, %v3331_v15  ;;  %v3613_v11 = vld [vmem:[%s6136_s6 + $0x138] sm:$0xf] }
 0x1b0   : > { %1065 = vmatpush.bf16.msrb.mxu3 %v3330_v27  ;;  %v3642_v27 = vor.u32 %v4280_v21, %v3639_v22  ;;  %v4268_v21 = vld [vmem:[%s6136_s6 + $0x10c] sm:$0xf]  ;;  %v3591_v22 = vld [vmem:[%s6136_s6 + $0x114] sm:$0xf0] }
 0x1b1   : > { %1075 = vmatpush.bf16.msrb.mxu0 %v3302_v41  ;;  %v3637_v41 = vld [vmem:[%s6136_s6 + $0x168] sm:$0xf] }
 0x1b2   : > { %1234 = vmatpush.bf16.msra.mxu2 %v4322_v26  ;;  %1089 = vmatpush.bf16.msrb.mxu1 %v3366_v44  ;;  %v3546_v26 = vor.u32 %v4256_v19, %v3543_v20  ;;  %v4244_v19 = vld [vmem:[%s6136_s6 + $0x4c] sm:$0xf]  ;;  %v3495_v20 = vld [vmem:[%s6136_s6 + $0x54] sm:$0xf0] }
 0x1b3   : > { %v4867_v28 = vpop.eup %4508 }
 0x1b4   : > { %v743_v30 = vsel %vm623_vm7, %v4867_v28, 0.0  ;;  %1248 = vmatpush.bf16.msra.mxu3 %v4330_v29  ;;  %v4253_v29 = vld [vmem:[%s6136_s6 + $0x94] sm:$0xf] }
 0x1b5   : > { %744 = vadd.xlane.f32.xlu2 %v743_v30  ;;  %1076 = vmatpush.bf16.msrb.mxu0 %v3294_v49  ;;  %v543_v49 = vld [vmem:[%s4646_s16] sm:$0xff] }
 0x1b6   : > { %1235 = vmatpush.bf16.msra.mxu2 %v4321_v31  ;;  %1090 = vmatpush.bf16.msrb.mxu1 %v3358_v52  ;;  %v3542_v52 = vor.u32 %v4257_v40, %v3541_v39  ;;  %v782_v1 = vunpack.c.l.bf16 %v543_v49  ;;  %v3579_v39 = vld [vmem:[%s6136_s6 + $0xfc] sm:$0xf0] }
 0x1b8   : > { %1249 = vmatpush.bf16.msra.mxu3 %v4329_v32  ;;  %v3531_v32 = vld [vmem:[%s6136_s6 + $0x9c] sm:$0xf0] }
 0x1b9   : > { %1077 = vmatpush.bf16.msrb.mxu0 %v3286_v57 }
 0x1ba   : > { %1236 = vmatpush.bf16.msra.mxu2 %v4320_v33  ;;  %1091 = vmatpush.bf16.msrb.mxu1 %v3350_v60  ;;  %v4277_v33 = vld [vmem:[%s6136_s6 + $0x154] sm:$0xf]  ;;  %v4247_v60 = vld [vmem:[%s6136_s6 + $0x64] sm:$0xf] }
 0x1bc   : > { %1250 = vmatpush.bf16.msra.mxu3 %v4328_v34  ;;  %v3627_v34 = vld [vmem:[%s6136_s6 + $0x15c] sm:$0xf0] }
 0x1bd   : > { %1078 = vmatpush.bf16.msrb.mxu0 %v3278_v2  ;;  %v783_v2 = vunpack.c.h.bf16 %v543_v49  ;;  %v3471_v49 = vld [vmem:[%s6136_s6 + $0x24] sm:$0xf0] }
 0x1be   : > { %1237 = vmatpush.bf16.msra.mxu2 %v4319_v35  ;;  %1092 = vmatpush.bf16.msrb.mxu1 %v3342_v6 }
 0x1c0   : > { %1251 = vmatpush.bf16.msra.mxu3 %v4327_v36  ;;  %v544_v36 = vld [vmem:[%s4646_s16 + $0x8] sm:$0xff] }
 0x1c1   : > { %1079 = vmatpush.bf16.msrb.mxu0 %v3270_v12  ;;  %v784_v51 = vunpack.c.l.bf16 %v544_v36  ;;  %v785_v57 = vunpack.c.h.bf16 %v544_v36  ;;  %v4241_v36 = vld [vmem:[%s6136_s6 + $0x34] sm:$0xf] }
 0x1c2   : > { %1238 = vmatpush.bf16.msra.mxu2 %v4318_v37  ;;  %1093 = vmatpush.bf16.msrb.mxu1 %v3334_v0  ;;  %v3534_v37 = vor.u32 %v4253_v29, %v3531_v32  ;;  %v3505_v29 = vld [vmem:[%s6136_s6 + $0x60] sm:$0xf]  ;;  %v4248_v32 = vld [vmem:[%s6136_s6 + $0x68] sm:$0xf0] }
 0x1c3   : > { %v3506_v40 = vor.u32 %v4248_v32, %v3505_v29  ;;  %v4279_v29 = vld [vmem:[%s6136_s6 + $0x160] sm:$0xf0] }
 0x1c4   : > { %1252 = vmatpush.bf16.msra.mxu3 %v4326_v38  ;;  %v3630_v38 = vor.u32 %v4277_v33, %v3627_v34 }
 0x1c6   : > { %1239 = vmatpush.bf16.msra.mxu2 %v4317_v45  ;;  %v3519_v45 = vld [vmem:[%s6136_s6 + $0x84] sm:$0xf0] }
 0x1c8   : > { %1253 = vmatpush.bf16.msra.mxu3 %v4325_v46  ;;  %v4274_v46 = vld [vmem:[%s6136_s6 + $0x13c] sm:$0xf] }
 0x1c9   : > { %v3618_v58 = vor.u32 %v4274_v46, %v3615_v47  ;;  %v3589_v46 = vld [vmem:[%s6136_s6 + $0x108] sm:$0xf]  ;;  %v4269_v47 = vld [vmem:[%s6136_s6 + $0x110] sm:$0xf0] }
 0x1ca   : > { %1240 = vmatpush.bf16.msra.mxu2 %v4316_v53  ;;  %v3638_v53 = vor.u32 %v4281_v42, %v3637_v41  ;;  %v3493_v42 = vld [vmem:[%s6136_s6 + $0x48] sm:$0xf] }
 0x1cc   : > { %1254 = vmatpush.bf16.msra.mxu3 %v4324_v54  ;;  %v3529_v54 = vld [vmem:[%s6136_s6 + $0x90] sm:$0xf] }
 0x1cd   : > { %v3530_v3 = vor.u32 %v4254_v55, %v3529_v54  ;;  %v3481_v54 = vld [vmem:[%s6136_s6 + $0x30] sm:$0xf]  ;;  %v4242_v55 = vld [vmem:[%s6136_s6 + $0x38] sm:$0xf0] }
 0x1ce   : > { %1241 = vmatpush.bf16.msra.mxu2 %v4315_v61  ;;  %v3507_v61 = vld [vmem:[%s6136_s6 + $0x6c] sm:$0xf0] }
 0x1cf   : > { %v3510_v6 = vor.u32 %v4247_v60, %v3507_v61  ;;  %v4259_v60 = vld [vmem:[%s6136_s6 + $0xc4] sm:$0xf]  ;;  %v3555_v61 = vld [vmem:[%s6136_s6 + $0xcc] sm:$0xf0] }
 0x1d0   : > { %1255 = vmatpush.bf16.msra.mxu3 %v4323_v62  ;;  %v4271_v62 = vld [vmem:[%s6136_s6 + $0x124] sm:$0xf] }
 0x1d1   : > { %v3606_v0 = vor.u32 %v4271_v62, %v3603_v63  ;;  %v3482_v62 = vor.u32 %v4242_v55, %v3481_v54 }
 0x220   : > { %v742_v16 = vpop.xlane.xlu2 %741 }
 0x221   : > { %v4976_v17 = vpop.f32.mrf.mxu0  ;;  %v4978_v18 = vpop.f32.mrf.mxu1  ;;  %4510 = vrcp.f32 %v742_v16  ;;  %v4275_v16 = vld [vmem:[%s6136_s6 + $0x140] sm:$0xf0] }
 0x227   : > { %v4511_v35 = vpop.eup %4510 }
 0x228   : > { %v745_v23 = vpop.xlane.xlu2 %744  ;;  %v748_v48 = vmul.f32 %v4511_v35, %v4842_v14  ;;  %v3625_v14 = vld [vmem:[%s6136_s6 + $0x150] sm:$0xf]  ;;  %v4272_v35 = vld [vmem:[%s6136_s6 + $0x128] sm:$0xf0] }
 0x229   : > { %4512 = vrcp.f32 %v745_v23  ;;  %v661_v24 = vpop.f32.mrf.mxu0  ;;  %v675_v25 = vpop.f32.mrf.mxu1  ;;  %v3626_v5 = vor.u32 %v4278_v59, %v3625_v14  ;;  %v1100_v23 = vmul.f32 %v782_v1, %v4976_v17  ;;  %v3459_v59 = vld [vmem:[%s6136_s6 + $0xc] sm:$0xf0]  ;;  %v3469_v1 = vld [vmem:[%s6136_s6 + $0x18] sm:$0xf] }
 0x22a   : > { %v4996_v30 = vpack.c.bf16 %v661_v24, %v4976_v17  ;;  %v4999_v31 = vpack.c.bf16 %v675_v25, %v4978_v18  ;;  %v1102_v12 = vmul.f32 %v784_v51, %v661_v24  ;;  %v1103_v15 = vmul.f32 %v785_v57, %v675_v25  ;;  %v3567_v51 = vld [vmem:[%s6136_s6 + $0xe4] sm:$0xf0]  ;;  %v3577_v57 = vld [vmem:[%s6136_s6 + $0xf0] sm:$0xf] }
 0x22b   : > { %v1101_v24 = vmul.f32 %v783_v2, %v4978_v18  ;;  %v3518_v25 = vor.u32 %v4251_v10, %v3517_v7  ;;  %v3594_v17 = vor.u32 %v4268_v21, %v3591_v22  ;;  %v3601_v18 = vld [vmem:[%s6136_s6 + $0x120] sm:$0xf] }
 0x22c   : > { %1052 = vmatmul.bf16.vlgmr.msrb.gmra.mxu2 %v4996_v30  ;;  %1066 = vmatmul.bf16.vlgmr.msrb.gmra.mxu3 %v4999_v31  ;;  %v1104_v33 = vpack.c.bf16 %v1102_v12, %v1100_v23  ;;  %v3602_v41 = vor.u32 %v4272_v35, %v3601_v18  ;;  %v3457_v10 = vld [vmem:[%s6136_s6] sm:$0xf]  ;;  %v4276_v35 = vld [vmem:[%s6136_s6 + $0x148] sm:$0xf0] }
 0x22d   : > { %1546 = vmatpush.bf16.msrb.mxu2 %v3546_v26  ;;  %1560 = vmatpush.bf16.msrb.mxu3 %v3642_v27  ;;  %v3614_v26 = vor.u32 %v4275_v16, %v3613_v11  ;;  %v3498_v27 = vor.u32 %v4244_v19, %v3495_v20  ;;  %v1105_v34 = vpack.c.bf16 %v1103_v15, %v1101_v24  ;;  %v4236_v11 = vld [vmem:[%s6136_s6 + $0x8] sm:$0xf0]  ;;  %v3553_v12 = vld [vmem:[%s6136_s6 + $0xc0] sm:$0xf]  ;;  %v4258_v16 = vld [vmem:[%s6136_s6 + $0xb8] sm:$0xf0] }
 0x22e   : > { %v4260_v15 = vld [vmem:[%s6136_s6 + $0xc8] sm:$0xf0]  ;;  %v3645_v19 = vld [vmem:[%s6136_s6 + $0x170] sm:$0xf]  ;;  %v4282_v20 = vld [vmem:[%s6136_s6 + $0x178] sm:$0xf0]  ;;  %v3458_v21 = vor.u32 %v4236_v11, %v3457_v10 }
 0x22f   : > { %v4513_v44 = vpop.eup %4512  ;;  %v3554_v22 = vor.u32 %v4260_v15, %v3553_v12  ;;  %v3646_v24 = vor.u32 %v4282_v20, %v3645_v19  ;;  %v3621_v18 = vld [vmem:[%s6136_s6 + $0x140] sm:$0xf]  ;;  %v3785_v10 = vld [vmem:[%s6137_s7 + $0x50] sm:$0xf]  ;;  %v4414_v11 = vld [vmem:[%s6137_s7 + $0x54] sm:$0xf0] }
 0x230   : > { %v749_v50 = vmul.f32 %v4513_v44, %v4867_v28  ;;  %v3522_v28 = vor.u32 %v4250_v43, %v3519_v45  ;;  %v4245_v43 = vld [vmem:[%s6136_s6 + $0x50] sm:$0xf0]  ;;  %v3786_v12 = vor.u32 %v4414_v11, %v3785_v10  ;;  %v3777_v15 = vld [vmem:[%s6137_s7 + $0x40] sm:$0xf]  ;;  %v3769_v19 = vld [vmem:[%s6137_s7 + $0x30] sm:$0xf] }
 0x231   : > { %1547 = vmatpush.bf16.msrb.mxu2 %v3534_v37  ;;  %1561 = vmatpush.bf16.msrb.mxu3 %v3630_v38  ;;  %v3483_v37 = vld [vmem:[%s6136_s6 + $0x3c] sm:$0xf0]  ;;  %v4265_v38 = vld [vmem:[%s6136_s6 + $0xf4] sm:$0xf]  ;;  %v4434_v11 = vld [vmem:[%s6137_s7 + $0xf4] sm:$0xf0] }
 0x232   : > { %v750_v56 = vpack.c.bf16 %v749_v50, %v748_v48  ;;  %v3486_v44 = vor.u32 %v4241_v36, %v3483_v37  ;;  %v3582_v45 = vor.u32 %v4265_v38, %v3579_v39  ;;  %v4238_v48 = vld [vmem:[%s6136_s6 + $0x1c] sm:$0xf]  ;;  %v3622_v37 = vor.u32 %v4276_v35, %v3621_v18  ;;  %v3513_v38 = vld [vmem:[%s6136_s6 + $0x68] sm:$0xf]  ;;  %v4249_v39 = vld [vmem:[%s6136_s6 + $0x70] sm:$0xf0] }
 0x233   : > { %v4262_v50 = vld [vmem:[%s6136_s6 + $0xdc] sm:$0xf]  ;;  %v3474_v14 = vor.u32 %v4238_v48, %v3471_v49  ;;  %v3761_v20 = vld [vmem:[%s6137_s7 + $0x20] sm:$0xf] }
 0x234   : > { %3261 = vmatmul.msk.bf16.vlgmr.msra.gmra.mxu0 %vm623_vm7, %v750_v56  ;;  %3262 = vmatmul.msk.bf16.vlgmr.msra.gmra.mxu1 %vm623_vm7, %v750_v56  ;;  %v3570_v56 = vor.u32 %v4262_v50, %v3567_v51  ;;  %v3489_v50 = vld [vmem:[%s6136_s6 + $0x38] sm:$0xf]  ;;  %v4243_v51 = vld [vmem:[%s6136_s6 + $0x40] sm:$0xf0] }
 0x235   : > { %1518 = vmatpush.bf16.msra.mxu0 %v3542_v52  ;;  %1532 = vmatpush.bf16.msra.mxu1 %v3638_v53  ;;  %v3494_v52 = vor.u32 %v4245_v43, %v3493_v42  ;;  %v3590_v53 = vor.u32 %v4269_v47, %v3589_v46  ;;  %v3514_v42 = vor.u32 %v4249_v39, %v3513_v38  ;;  %v3597_v46 = vld [vmem:[%s6136_s6 + $0x110] sm:$0xf]  ;;  %v4270_v47 = vld [vmem:[%s6136_s6 + $0x118] sm:$0xf0] }
 0x236   : > { %1548 = vmatpush.bf16.msrb.mxu2 %v3522_v28  ;;  %1562 = vmatpush.bf16.msrb.mxu3 %v3618_v58  ;;  %v4266_v28 = vld [vmem:[%s6136_s6 + $0xf8] sm:$0xf0]  ;;  %v4235_v58 = vld [vmem:[%s6136_s6 + $0x4] sm:$0xf]  ;;  %v3598_v49 = vor.u32 %v4270_v47, %v3597_v46  ;;  %v3490_v54 = vor.u32 %v4243_v51, %v3489_v50  ;;  %v4337_v38 = vld [vmem:[%s6140_s10 + $0x30] sm:$0xff] }
 0x237   : > { %v3578_v63 = vor.u32 %v4266_v28, %v3577_v57  ;;  %v3462_v2 = vor.u32 %v4235_v58, %v3459_v59  ;;  %v3573_v57 = vld [vmem:[%s6136_s6 + $0xe0] sm:$0xf]  ;;  %v4264_v28 = vld [vmem:[%s6136_s6 + $0xe8] sm:$0xf0]  ;;  %v4346_v18 = vld [vmem:[%s6140_s10 + $0x78] sm:$0xff] }
 0x238   : > { %v3574_v59 = vor.u32 %v4264_v28, %v3573_v57  ;;  %v4338_v35 = vld [vmem:[%s6140_s10 + $0x38] sm:$0xff]  ;;  %v4437_v39 = vld [vmem:[%s6138_s8 + $0x10] sm:$0xff]  ;;  %v5392_v47 = vld [vmem:[%s4641_s30] sm:$0xff] }
 0x239   : > { %1519 = vmatpush.bf16.msra.mxu0 %v3530_v3  ;;  %1533 = vmatpush.bf16.msra.mxu1 %v3626_v5  ;;  %v3558_v3 = vor.u32 %v4259_v60, %v3555_v61  ;;  %v4239_v5 = vld [vmem:[%s6136_s6 + $0x20] sm:$0xf0]  ;;  %v3465_v60 = vld [vmem:[%s6136_s6 + $0x8] sm:$0xf]  ;;  %v4237_v61 = vld [vmem:[%s6136_s6 + $0x10] sm:$0xf0] }
 0x23a   : > { %1549 = vmatpush.bf16.msrb.mxu2 %v3510_v6  ;;  %1563 = vmatpush.bf16.msrb.mxu3 %v3606_v0  ;;  %v3470_v6 = vor.u32 %v4239_v5, %v3469_v1  ;;  %v3549_v0 = vld [vmem:[%s6136_s6 + $0xb0] sm:$0xf]  ;;  %v4342_v46 = vld [vmem:[%s6140_s10 + $0x58] sm:$0xff]  ;;  %v4340_v57 = vld [vmem:[%s6140_s10 + $0x48] sm:$0xff] }
 0x23b   : > { %v3550_v23 = vor.u32 %v4258_v16, %v3549_v0  ;;  %v3801_v1 = vld [vmem:[%s6137_s7 + $0x70] sm:$0xf]  ;;  %v4412_v0 = vld [vmem:[%s6137_s7 + $0x44] sm:$0xf0] }
 0x23c   : > { %1242 = vmatmul.bf16.vlgmr.msra.gmra.mxu2 %v1104_v33  ;;  %1256 = vmatmul.bf16.vlgmr.msra.gmra.mxu3 %v1105_v34  ;;  %v3525_v34 = vld [vmem:[%s6136_s6 + $0x80] sm:$0xf]  ;;  %v3778_v16 = vor.u32 %v4412_v0, %v3777_v15  ;;  %v4332_v28 = vld [vmem:[%s6140_s10 + $0x8] sm:$0xff]  ;;  %v4415_v15 = vld [vmem:[%s6137_s7 + $0x64] sm:$0xf] }
 0x23d   : > { %1520 = vmatpush.bf16.msra.mxu0 %v3518_v25  ;;  %1534 = vmatpush.bf16.msra.mxu1 %v3614_v26  ;;  %v3537_v25 = vld [vmem:[%s6136_s6 + $0x98] sm:$0xf]  ;;  %v4255_v26 = vld [vmem:[%s6136_s6 + $0xa0] sm:$0xf0]  ;;  %v3795_v0 = vld [vmem:[%s6137_s7 + $0x68] sm:$0xf0] }
 0x23e   : > { %1550 = vmatpush.bf16.msrb.mxu2 %v3498_v27  ;;  %1564 = vmatpush.bf16.msrb.mxu3 %v3594_v17  ;;  %v3633_v27 = vld [vmem:[%s6136_s6 + $0x158] sm:$0xf]  ;;  %v3538_v32 = vor.u32 %v4255_v26, %v3537_v25  ;;  %v4252_v17 = vld [vmem:[%s6136_s6 + $0x88] sm:$0xf0]  ;;  %v3745_v26 = vld [vmem:[%s6137_s7] sm:$0xf] }
 0x23f   : > { %v3634_v33 = vor.u32 %v4279_v29, %v3633_v27  ;;  %v3526_v36 = vor.u32 %v4252_v17, %v3525_v34  ;;  %v4404_v27 = vld [vmem:[%s6137_s7 + $0x4] sm:$0xf0]  ;;  %v4439_v17 = vld [vmem:[%s6138_s8 + $0x20] sm:$0xff] }
 0x240   : > { %v3746_v29 = vor.u32 %v4404_v27, %v3745_v26  ;;  %v4440_v34 = vld [vmem:[%s6138_s8 + $0x28] sm:$0xff] }
 0x241   : > { %1521 = vmatpush.bf16.msra.mxu0 %v3506_v40  ;;  %1535 = vmatpush.bf16.msra.mxu1 %v3602_v41  ;;  %v3609_v40 = vld [vmem:[%s6136_s6 + $0x128] sm:$0xf]  ;;  %v4273_v41 = vld [vmem:[%s6136_s6 + $0x130] sm:$0xf0] }
 0x242   : > { %1551 = vmatpush.bf16.msrb.mxu2 %v3486_v44  ;;  %1565 = vmatpush.bf16.msrb.mxu3 %v3582_v45  ;;  %v3610_v43 = vor.u32 %v4273_v41, %v3609_v40  ;;  %v3501_v44 = vld [vmem:[%s6136_s6 + $0x50] sm:$0xf]  ;;  %v4246_v45 = vld [vmem:[%s6136_s6 + $0x58] sm:$0xf0]  ;;  %v4344_v40 = vld [vmem:[%s6140_s10 + $0x68] sm:$0xff] }
 0x243   : > { %v3502_v48 = vor.u32 %v4246_v45, %v3501_v44  ;;  %v4336_v41 = vld [vmem:[%s6140_s10 + $0x28] sm:$0xff]  ;;  %v4335_v44 = vld [vmem:[%s6140_s10 + $0x20] sm:$0xff] }
 0x244   : > { %1080 = vmatmul.bf16.vlgmr.msrb.gmra.mxu0 %v4996_v30  ;;  %1094 = vmatmul.bf16.vlgmr.msrb.gmra.mxu1 %v4999_v31  ;;  %v3565_v30 = vld [vmem:[%s6136_s6 + $0xd8] sm:$0xf]  ;;  %v4263_v31 = vld [vmem:[%s6136_s6 + $0xe0] sm:$0xf0] }
 0x245   : > { %1522 = vmatpush.bf16.msra.mxu0 %v3494_v52  ;;  %1536 = vmatpush.bf16.msra.mxu1 %v3590_v53  ;;  %v3566_v7 = vor.u32 %v4263_v31, %v3565_v30  ;;  %v3585_v52 = vld [vmem:[%s6136_s6 + $0xf8] sm:$0xf]  ;;  %v4267_v53 = vld [vmem:[%s6136_s6 + $0x100] sm:$0xf0]  ;;  %v3793_v31 = vld [vmem:[%s6137_s7 + $0x60] sm:$0xf] }
 0x246   : > { %1552 = vmatpush.bf16.msrb.mxu2 %v3474_v14  ;;  %1566 = vmatpush.bf16.msrb.mxu3 %v3570_v56  ;;  %v3586_v55 = vor.u32 %v4267_v53, %v3585_v52  ;;  %v3477_v14 = vld [vmem:[%s6136_s6 + $0x20] sm:$0xf]  ;;  %v4240_v56 = vld [vmem:[%s6136_s6 + $0x28] sm:$0xf0]  ;;  %v4341_v52 = vld [vmem:[%s6140_s10 + $0x50] sm:$0xff] }
 0x247   : > { %v3478_v58 = vor.u32 %v4240_v56, %v3477_v14  ;;  %v4435_v45 = vld [vmem:[%s6138_s8] sm:$0xff]  ;;  %v5413_v56 = vld [vmem:[%s4641_s30 + $0x8] sm:$0xff] }
 0x249   : > { %1523 = vmatpush.bf16.msra.mxu0 %v3482_v62  ;;  %1537 = vmatpush.bf16.msra.mxu1 %v3578_v63  ;;  %v3561_v62 = vld [vmem:[%s6136_s6 + $0xc8] sm:$0xf]  ;;  %v4261_v63 = vld [vmem:[%s6136_s6 + $0xd0] sm:$0xf0] }
 0x24a   : > { %1553 = vmatpush.bf16.msrb.mxu2 %v3462_v2  ;;  %1567 = vmatpush.bf16.msrb.mxu3 %v3558_v3  ;;  %v4418_v2 = vld [vmem:[%s6137_s7 + $0x74] sm:$0xf0]  ;;  %v3466_v3 = vor.u32 %v4237_v61, %v3465_v60  ;;  %v3562_v5 = vor.u32 %v4261_v63, %v3561_v62  ;;  %v4339_v61 = vld [vmem:[%s6140_s10 + $0x40] sm:$0xff]  ;;  %v4417_v62 = vld [vmem:[%s6137_s7 + $0x74] sm:$0xf] }
 0x24b   : > { %v3802_v30 = vor.u32 %v4418_v2, %v3801_v1  ;;  %v3803_v63 = vld [vmem:[%s6137_s7 + $0x78] sm:$0xf0] }
 0x24c   : > { %v3806_v1 = vor.u32 %v4417_v62, %v3803_v63 }
 0x24d   : > { %1524 = vmatpush.bf16.msra.mxu0 %v3470_v6  ;;  %1538 = vmatpush.bf16.msra.mxu1 %v3566_v7  ;;  %v4416_v6 = vld [vmem:[%s6137_s7 + $0x64] sm:$0xf0] }
 0x24e   : > { %1554 = vmatmul.bf16.vlgmr.msrb.gmra.mxu2 %v4661_v9  ;;  %1568 = vmatmul.bf16.vlgmr.msrb.gmra.mxu3 %v4666_v13  ;;  %v3794_v7 = vor.u32 %v4416_v6, %v3793_v31  ;;  %v3865_v31 = vld [vmem:[%s6137_s7 + $0xf0] sm:$0xf] }
 0x24f   : > { %1883 = vmatpush.bf16.msra.mxu3 %v4346_v18  ;;  %1869 = vmatpush.bf16.msra.mxu2 %v4338_v35  ;;  %v4411_v35 = vld [vmem:[%s6137_s7 + $0x44] sm:$0xf] }
 0x251   : > { %1525 = vmatpush.bf16.msra.mxu0 %v3458_v21  ;;  %1539 = vmatpush.bf16.msra.mxu1 %v3554_v22  ;;  %v4408_v21 = vld [vmem:[%s6137_s7 + $0x24] sm:$0xf0] }
 0x252   : > { %v3762_v22 = vor.u32 %v4408_v21, %v3761_v20  ;;  %v4432_v20 = vld [vmem:[%s6137_s7 + $0xe4] sm:$0xf0] }
 0x253   : > { %1870 = vmatpush.bf16.msra.mxu2 %v4337_v38 }
 0x254   : > { %1526 = vmatmul.bf16.vlgmr.msra.gmra.mxu0 %v4661_v9  ;;  %1540 = vmatmul.bf16.vlgmr.msra.gmra.mxu1 %v4666_v13 }
 0x255   : > { %1574 = vmatpush.bf16.msrb.mxu0 %v3550_v23  ;;  %1588 = vmatpush.bf16.msrb.mxu1 %v3646_v24  ;;  %v3753_v23 = vld [vmem:[%s6137_s7 + $0x10] sm:$0xf]  ;;  %v4406_v24 = vld [vmem:[%s6137_s7 + $0x14] sm:$0xf0] }
 0x256   : > { %v3754_v25 = vor.u32 %v4406_v24, %v3753_v23  ;;  %v4413_v23 = vld [vmem:[%s6137_s7 + $0x54] sm:$0xf]  ;;  %v3787_v24 = vld [vmem:[%s6137_s7 + $0x58] sm:$0xf0] }
 0x257   : > { %1871 = vmatpush.bf16.msra.mxu2 %v4336_v41  ;;  %v3790_v26 = vor.u32 %v4413_v23, %v3787_v24  ;;  %v4428_v41 = vld [vmem:[%s6137_s7 + $0xc4] sm:$0xf0] }
 0x259   : > { %1575 = vmatpush.bf16.msrb.mxu0 %v3538_v32  ;;  %1589 = vmatpush.bf16.msrb.mxu1 %v3634_v33  ;;  %v4442_v32 = vld [vmem:[%s6138_s8 + $0x38] sm:$0xff]  ;;  %v4441_v33 = vld [vmem:[%s6138_s8 + $0x30] sm:$0xff] }
 0x25b   : > { %1872 = vmatpush.bf16.msra.mxu2 %v4335_v44  ;;  %v3771_v44 = vld [vmem:[%s6137_s7 + $0x38] sm:$0xf0] }
 0x25d   : > { %1576 = vmatpush.bf16.msrb.mxu0 %v3526_v36  ;;  %1590 = vmatpush.bf16.msrb.mxu1 %v3622_v37  ;;  %v4438_v36 = vld [vmem:[%s6138_s8 + $0x18] sm:$0xff]  ;;  %v4345_v37 = vld [vmem:[%s6140_s10 + $0x70] sm:$0xff] }
 0x25e   : > { %1884 = vmatpush.bf16.msra.mxu3 %v4345_v37  ;;  %v1933_v37 = vunpack.c.l.bf16 %v5392_v47 }
 0x261   : > { %1577 = vmatpush.bf16.msrb.mxu0 %v3514_v42  ;;  %1591 = vmatpush.bf16.msrb.mxu1 %v3610_v43  ;;  %v4436_v42 = vld [vmem:[%s6138_s8 + $0x8] sm:$0xff]  ;;  %v4343_v43 = vld [vmem:[%s6140_s10 + $0x60] sm:$0xff] }
 0x262   : > { %1885 = vmatpush.bf16.msra.mxu3 %v4344_v40  ;;  %v3841_v40 = vld [vmem:[%s6137_s7 + $0xc0] sm:$0xf] }
 0x265   : > { %1578 = vmatpush.bf16.msrb.mxu0 %v3502_v48  ;;  %1592 = vmatpush.bf16.msrb.mxu1 %v3598_v49  ;;  %v4334_v48 = vld [vmem:[%s6140_s10 + $0x18] sm:$0xff]  ;;  %v1934_v49 = vunpack.c.h.bf16 %v5392_v47  ;;  %v3833_v47 = vld [vmem:[%s6137_s7 + $0xb0] sm:$0xf] }
 0x266   : > { %1886 = vmatpush.bf16.msra.mxu3 %v4343_v43  ;;  %1873 = vmatpush.bf16.msra.mxu2 %v4334_v48  ;;  %v4409_v43 = vld [vmem:[%s6137_s7 + $0x34] sm:$0xf]  ;;  %v4426_v48 = vld [vmem:[%s6137_s7 + $0xb4] sm:$0xf0] }
 0x269   : > { %1579 = vmatpush.bf16.msrb.mxu0 %v3490_v54  ;;  %1593 = vmatpush.bf16.msrb.mxu1 %v3586_v55  ;;  %v4333_v55 = vld [vmem:[%s6140_s10 + $0x10] sm:$0xff] }
 0x26a   : > { %1887 = vmatpush.bf16.msra.mxu3 %v4342_v46  ;;  %1874 = vmatpush.bf16.msra.mxu2 %v4333_v55  ;;  %v3774_v46 = vor.u32 %v4409_v43, %v3771_v44  ;;  %v3763_v55 = vld [vmem:[%s6137_s7 + $0x28] sm:$0xf0] }
 0x26d   : > { %1580 = vmatpush.bf16.msrb.mxu0 %v3478_v58  ;;  %1594 = vmatpush.bf16.msrb.mxu1 %v3574_v59  ;;  %v1936_v58 = vunpack.c.h.bf16 %v5413_v56 }
 0x26e   : > { %1888 = vmatpush.bf16.msra.mxu3 %v4341_v52  ;;  %1875 = vmatpush.bf16.msra.mxu2 %v4332_v28  ;;  %v4350_v52 = vld [vmem:[%s6140_s10 + $0x98] sm:$0xff]  ;;  %v3834_v28 = vor.u32 %v4426_v48, %v3833_v47 }
 0x271   : > { %1581 = vmatpush.bf16.msrb.mxu0 %v3466_v3  ;;  %1595 = vmatpush.bf16.msrb.mxu1 %v3562_v5  ;;  %v4331_v5 = vld [vmem:[%s6140_s10] sm:$0xff] }
 0x272   : > { %1889 = vmatpush.bf16.msra.mxu3 %v4340_v57  ;;  %1876 = vmatpush.bf16.msra.mxu2 %v4331_v5 }
 0x274   : > { %1582 = vmatmul.bf16.vlgmr.msrb.gmra.mxu0 %v4661_v9  ;;  %1596 = vmatmul.bf16.vlgmr.msrb.gmra.mxu1 %v4666_v13  ;;  %v4410_v9 = vld [vmem:[%s6137_s7 + $0x34] sm:$0xf0] }
 0x275   : > { %2195 = vmatpush.bf16.msra.mxu1 %v3802_v30  ;;  %v3770_v13 = vor.u32 %v4410_v9, %v3769_v19  ;;  %v4354_v30 = vld [vmem:[%s6140_s10 + $0xb8] sm:$0xff]  ;;  %v3798_v19 = vor.u32 %v4415_v15, %v3795_v0  ;;  %v4353_v9 = vld [vmem:[%s6140_s10 + $0xb0] sm:$0xff] }
 0x276   : > { %1890 = vmatpush.bf16.msra.mxu3 %v4339_v61  ;;  %1897 = vmatpush.bf16.msra.mxu0 %v4354_v30  ;;  %v4405_v30 = vld [vmem:[%s6137_s7 + $0x14] sm:$0xf] }
 0x279   : > { %2196 = vmatpush.bf16.msra.mxu1 %v3794_v7 }
 0x27a   : > { %2223 = vmatpush.bf16.msrb.mxu3 %v3806_v1  ;;  %1898 = vmatpush.bf16.msra.mxu0 %v4353_v9  ;;  %v4349_v1 = vld [vmem:[%s6140_s10 + $0x90] sm:$0xff] }
 0x27d   : > { %2197 = vmatpush.bf16.msra.mxu1 %v3786_v12  ;;  %v3866_v12 = vor.u32 %v4434_v11, %v3865_v31  ;;  %v3755_v31 = vld [vmem:[%s6137_s7 + $0x18] sm:$0xf0] }
 0x27e   : > { %2224 = vmatpush.bf16.msrb.mxu3 %v3798_v19  ;;  %v3758_v15 = vor.u32 %v4405_v30, %v3755_v31  ;;  %v4429_v31 = vld [vmem:[%s6137_s7 + $0xd4] sm:$0xf] }
 0x27f   : > { %2209 = vmatpush.bf16.msrb.mxu2 %v3866_v12 }
 0x281   : > { %2198 = vmatpush.bf16.msra.mxu1 %v3778_v16 }
 0x282   : > { %2225 = vmatpush.bf16.msrb.mxu3 %v3790_v26 }
 0x285   : > { %2199 = vmatpush.bf16.msra.mxu1 %v3770_v13  ;;  %v3857_v13 = vld [vmem:[%s6137_s7 + $0xe0] sm:$0xf] }
 0x286   : > { %v3858_v21 = vor.u32 %v4432_v20, %v3857_v13  ;;  %v4348_v13 = vld [vmem:[%s6140_s10 + $0x88] sm:$0xff]  ;;  %v3817_v20 = vld [vmem:[%s6137_s7 + $0x90] sm:$0xf] }
 0x288   : > { %2210 = vmatpush.bf16.msrb.mxu2 %v3858_v21  ;;  %v4422_v21 = vld [vmem:[%s6137_s7 + $0x94] sm:$0xf0] }
 0x289   : > { %2200 = vmatpush.bf16.msra.mxu1 %v3762_v22 }
 0x28d   : > { %2201 = vmatpush.bf16.msra.mxu1 %v3754_v25 }
 0x291   : > { %2202 = vmatpush.bf16.msra.mxu1 %v3746_v29 }
 0x295   : > { %2385 = vmatpush.bf16.msrb.mxu1 %v4442_v32  ;;  %v4352_v32 = vld [vmem:[%s6140_s10 + $0xa8] sm:$0xff] }
 0x296   : > { %1899 = vmatpush.bf16.msra.mxu0 %v4352_v32  ;;  %v3747_v32 = vld [vmem:[%s6137_s7 + $0x8] sm:$0xf0] }
 0x299   : > { %2386 = vmatpush.bf16.msrb.mxu1 %v4441_v33  ;;  %v3849_v33 = vld [vmem:[%s6137_s7 + $0xd0] sm:$0xf] }
 0x29d   : > { %2387 = vmatpush.bf16.msrb.mxu1 %v4440_v34  ;;  %v4430_v34 = vld [vmem:[%s6137_s7 + $0xd4] sm:$0xf0] }
 0x29e   : > { %v3850_v18 = vor.u32 %v4430_v34, %v3849_v33 }
 0x2a0   : > { %2211 = vmatpush.bf16.msrb.mxu2 %v3850_v18 }
 0x2a1   : > { %2388 = vmatpush.bf16.msrb.mxu1 %v4439_v17  ;;  %v1935_v17 = vunpack.c.l.bf16 %v5413_v56 }
 0x2a5   : > { %2389 = vmatpush.bf16.msrb.mxu1 %v4438_v36  ;;  %v3779_v36 = vld [vmem:[%s6137_s7 + $0x48] sm:$0xf0] }
 0x2a6   : > { %v3782_v38 = vor.u32 %v4411_v35, %v3779_v36  ;;  %v4347_v36 = vld [vmem:[%s6140_s10 + $0x80] sm:$0xff] }
 0x2a8   : > { %2226 = vmatpush.bf16.msrb.mxu3 %v3782_v38  ;;  %v4420_v38 = vld [vmem:[%s6137_s7 + $0x84] sm:$0xf0] }
 0x2a9   : > { %2390 = vmatpush.bf16.msrb.mxu1 %v4437_v39  ;;  %v4351_v39 = vld [vmem:[%s6140_s10 + $0xa0] sm:$0xff] }
 0x2aa   : > { %1900 = vmatpush.bf16.msra.mxu0 %v4351_v39 }
 0x2ac   : > { %2227 = vmatpush.bf16.msrb.mxu3 %v3774_v46 }
 0x2ad   : > { %2391 = vmatpush.bf16.msrb.mxu1 %v4436_v42  ;;  %v3842_v42 = vor.u32 %v4428_v41, %v3841_v40  ;;  %v4433_v41 = vld [vmem:[%s6137_s7 + $0xf4] sm:$0xf] }
 0x2ae   : > { %1901 = vmatpush.bf16.msra.mxu0 %v4350_v52 }
 0x2af   : > { %v5398_v50 = vpop.f32.mrf.mxu2  ;;  %v5400_v51 = vpop.f32.mrf.mxu3  ;;  %2212 = vmatpush.bf16.msrb.mxu2 %v3842_v42  ;;  %v3867_v42 = vld [vmem:[%s6137_s7 + $0xf8] sm:$0xf0] }
 0x2b0   : > { %v1068_v11 = vadd.f32 %v5400_v51, %v5398_v50  ;;  %v3870_v46 = vor.u32 %v4433_v41, %v3867_v42  ;;  %v3827_v41 = vld [vmem:[%s6137_s7 + $0xa8] sm:$0xf0] }
 0x2b1   : > { %2392 = vmatpush.bf16.msrb.mxu1 %v4435_v45  ;;  %v5405_v53 = vpop.f32.mrf.mxu0  ;;  %v777_v54 = vpop.f32.mrf.mxu1 }
 0x2b2   : > { %v5410_v14 = vmul.f32 %v1934_v49, %v777_v54  ;;  %v2251_v56 = vmul.f32 %v1933_v37, %v5405_v53  ;;  %1902 = vmatpush.bf16.msra.mxu0 %v4349_v1  ;;  %v3809_v37 = vld [vmem:[%s6137_s7 + $0x80] sm:$0xf] }
 0x2b3   : > { %2213 = vmatpush.bf16.msrb.mxu2 %v3834_v28  ;;  %v3810_v40 = vor.u32 %v4420_v38, %v3809_v37  ;;  %v3859_v28 = vld [vmem:[%s6137_s7 + $0xe8] sm:$0xf0] }
 0x2b6   : > { %1903 = vmatpush.bf16.msra.mxu0 %v4348_v13 }
 0x2b7   : > { %v5422_v59 = vpop.f32.mrf.mxu2  ;;  %v5424_v60 = vpop.f32.mrf.mxu3 }
 0x2b8   : > { %v1070_v39 = vadd.f32 %v5424_v60, %v5422_v59 }
 0x2b9   : > { %v765_v2 = vpop.f32.mrf.mxu0  ;;  %v779_v3 = vpop.f32.mrf.mxu1 }
 0x2ba   : > { %v5445_v6 = vpack.c.bf16 %v765_v2, %v5405_v53  ;;  %v5447_v7 = vpack.c.bf16 %v779_v3, %v777_v54  ;;  %v5449_v10 = vmul.f32 %v1936_v58, %v779_v3  ;;  %v2253_v45 = vmul.f32 %v1935_v17, %v765_v2  ;;  %v4407_v54 = vld [vmem:[%s6137_s7 + $0x24] sm:$0xf]  ;;  %v3825_v53 = vld [vmem:[%s6137_s7 + $0xa0] sm:$0xf]  ;;  %v4424_v2 = vld [vmem:[%s6137_s7 + $0xa4] sm:$0xf0]  ;;  %1904 = vmatpush.bf16.msra.mxu0 %v4347_v36 }
 0x2bb   : > { %v3766_v63 = vor.u32 %v4407_v54, %v3763_v55  ;;  %v5546_v3 = vld [vmem:[%s6139_s9] sm:$0x7]  ;;  %v3826_v5 = vor.u32 %v4424_v2, %v3825_v53  ;;  %v4023_v36 = vld [vmem:[%s6136_s6 + $0xb4] sm:$0xf0] }
 0x2bc   : > { %v2256_v16 = vpack.c.bf16 %v5449_v10, %v5410_v14  ;;  %2203 = vmatmul.bf16.vlgmr.msra.gmra.mxu1 %v5445_v6  ;;  %v2255_v58 = vpack.c.bf16 %v2253_v45, %v2251_v56  ;;  %v1605_v9 = vperm.slane %v5546_v3, 1  ;;  %v1604_v26 = vperm.slane %v5546_v3, 0  ;;  %v4392_v14 = vld [vmem:[%s6136_s6 + $0x128] sm:$0xf0]  ;;  %v4391_v10 = vld [vmem:[%s6136_s6 + $0x124] sm:$0xf] }
 0x2bd   : > { %2228 = vmatpush.bf16.msrb.mxu3 %v3766_v63  ;;  %2214 = vmatpush.bf16.msrb.mxu2 %v3826_v5 }
 0x2be   : > { %2237 = vmatpush.bf16.msrb.mxu0 %v3870_v46 }
 0x2bf   : > { %v5472_v22 = vpop.f32.mrf.mxu2  ;;  %v5480_v25 = vpop.f32.mrf.mxu3 }
 0x2c1   : > { %v1081_v27 = vpop.f32.mrf.mxu0  ;;  %v1095_v29 = vpop.f32.mrf.mxu1  ;;  %2229 = vmatpush.bf16.msrb.mxu3 %v3758_v15 }
 0x2c2   : > { %v1096_v12 = vadd.f32 %v1095_v29, %v1081_v27  ;;  %v3818_v27 = vor.u32 %v4422_v21, %v3817_v20  ;;  %v4403_v29 = vld [vmem:[%s6137_s7 + $0x4] sm:$0xf] }
 0x2c3   : > { %v3750_v17 = vor.u32 %v4403_v29, %v3747_v32  ;;  %v4427_v21 = vld [vmem:[%s6137_s7 + $0xc4] sm:$0xf]  ;;  %v4425_v32 = vld [vmem:[%s6137_s7 + $0xb4] sm:$0xf] }
 0x2c4   : > { %2215 = vmatpush.bf16.msrb.mxu2 %v3818_v27 }
 0x2c5   : > { %2230 = vmatpush.bf16.msrb.mxu3 %v3750_v17 }
 0x2c7   : > { %v5520_v49 = vpop.f32.mrf.mxu2  ;;  %v5532_v61 = vpop.f32.mrf.mxu3 }
 0x2c8   : > { %2216 = vmatpush.bf16.msrb.mxu2 %v3810_v40  ;;  %v4423_v40 = vld [vmem:[%s6137_s7 + $0xa4] sm:$0xf] }
 0x2c9   : > { %v1083_v57 = vpop.f32.mrf.mxu0  ;;  %v1097_v62 = vpop.f32.mrf.mxu1  ;;  %v3830_v42 = vor.u32 %v4423_v40, %v3827_v41 }
 0x2ca   : > { %v1098_v43 = vadd.f32 %v1097_v62, %v1083_v57  ;;  %v4431_v57 = vld [vmem:[%s6137_s7 + $0xe4] sm:$0xf] }
 0x2cc   : > { %2393 = vmatmul.bf16.vlgmr.msrb.gmra.mxu1 %v2255_v58  ;;  %v3862_v58 = vor.u32 %v4431_v57, %v3859_v28  ;;  %v1606_v57 = vperm.slane %v5546_v3, 2  ;;  %v3999_v28 = vld [vmem:[%s6136_s6 + $0x84] sm:$0xf0] }
 0x2ce   : > { %2238 = vmatpush.bf16.msrb.mxu0 %v3862_v58 }
 0x2d1   : > { %v1555_v0 = vpop.f32.mrf.mxu2  ;;  %v1527_v19 = vpop.f32.mrf.mxu0 }
 0x2d2   : > { %v1556_v50 = vadd.f32 %v1555_v0, %v1096_v12  ;;  %v1528_v51 = vadd.f32 %v1527_v19, %v1068_v11  ;;  %v1569_v23 = vpop.f32.mrf.mxu3  ;;  %v1541_v24 = vpop.f32.mrf.mxu1  ;;  %v3851_v11 = vld [vmem:[%s6137_s7 + $0xd8] sm:$0xf0] }
 0x2d3   : > { %v3854_v15 = vor.u32 %v4429_v31, %v3851_v11 }
 0x2d4   : > { %v1570_v33 = vadd.f32 %v1569_v23, %v1556_v50  ;;  %v1542_v34 = vadd.f32 %v1541_v24, %v1528_v51  ;;  %v3843_v51 = vld [vmem:[%s6137_s7 + $0xc8] sm:$0xf0] }
 0x2d5   : > { %2239 = vmatpush.bf16.msrb.mxu0 %v3854_v15 }
 0x2d6   : > { %v5573_v18 = vadd.f32 %v1605_v9, %v1570_v33  ;;  %v5575_v35 = vadd.f32 %v1604_v26, %v1542_v34  ;;  %v3835_v33 = vld [vmem:[%s6137_s7 + $0xb8] sm:$0xf0]  ;;  %v4376_v34 = vld [vmem:[%s6136_s6 + $0xac] sm:$0xf] }
 0x2d7   : > { %v3838_v17 = vor.u32 %v4425_v32, %v3835_v33  ;;  %v4009_v33 = vld [vmem:[%s6136_s6 + $0x90] sm:$0xf] }
 0x2d8   : > { %v1623_v44 = vmul.f32 0.044715, %v5573_v18  ;;  %v1622_v45 = vmul.f32 0.044715, %v5575_v35  ;;  %v1616_v15 = vmul.f32 0.5, %v5575_v35 }
 0x2d9   : > { %v1557_v47 = vpop.f32.mrf.mxu2  ;;  %v1529_v48 = vpop.f32.mrf.mxu0 }
 0x2da   : > { %v1629_v59 = vmul.f32 %v1623_v44, %v5573_v18  ;;  %v1628_v60 = vmul.f32 %v1622_v45, %v5575_v35  ;;  %v1558_v52 = vadd.f32 %v1557_v47, %v1098_v43  ;;  %v1530_v54 = vadd.f32 %v1529_v48, %v1070_v39  ;;  %v1571_v55 = vpop.f32.mrf.mxu3  ;;  %v1543_v56 = vpop.f32.mrf.mxu1  ;;  %v4373_v43 = vld [vmem:[%s6136_s6 + $0x94] sm:$0xf]  ;;  %v4011_v44 = vld [vmem:[%s6136_s6 + $0x9c] sm:$0xf0] }
 0x2db   : > { %v4026_v39 = vor.u32 %v4376_v34, %v4023_v36  ;;  %v4014_v46 = vor.u32 %v4373_v43, %v4011_v44  ;;  %v1258_v48 = vadd.f32 %v5480_v25, %v5472_v22  ;;  %v4374_v34 = vld [vmem:[%s6136_s6 + $0x98] sm:$0xf0]  ;;  %v4449_v44 = vld [vmem:[%s6138_s8 + $0x70] sm:$0xff] }
 0x2dc   : > { %v1635_v62 = vmul.f32 %v1629_v59, %v5573_v18  ;;  %v1634_v63 = vmul.f32 %v1628_v60, %v5575_v35  ;;  %v1572_v1 = vadd.f32 %v1571_v55, %v1558_v52  ;;  %v1544_v53 = vadd.f32 %v1543_v56, %v1530_v54  ;;  %v4421_v52 = vld [vmem:[%s6137_s7 + $0x94] sm:$0xf]  ;;  %v3819_v54 = vld [vmem:[%s6137_s7 + $0x98] sm:$0xf0] }
 0x2dd   : > { %2697 = vmatpush.bf16.msra.mxu1 %v4026_v39  ;;  %v4370_v55 = vld [vmem:[%s6136_s6 + $0x7c] sm:$0xf]  ;;  %v3822_v25 = vor.u32 %v4421_v52, %v3819_v54  ;;  %v4010_v40 = vor.u32 %v4374_v34, %v4009_v33 }
 0x2de   : > { %v5606_v2 = vadd.f32 %v1605_v9, %v1572_v1  ;;  %v5608_v5 = vadd.f32 %v1604_v26, %v1544_v53  ;;  %v1641_v30 = vadd.f32 %v1635_v62, %v5573_v18  ;;  %v1640_v12 = vadd.f32 %v1634_v63, %v5575_v35  ;;  %v4021_v63 = vld [vmem:[%s6136_s6 + $0xa8] sm:$0xf]  ;;  %v4367_v35 = vld [vmem:[%s6136_s6 + $0x64] sm:$0xf]  ;;  %v4378_v33 = vld [vmem:[%s6136_s6 + $0xb8] sm:$0xf0] }
 0x2df   : > { %v3846_v26 = vor.u32 %v4427_v21, %v3843_v51  ;;  %v1617_v62 = vmul.f32 0.5, %v5573_v18  ;;  %v4002_v53 = vor.u32 %v4370_v55, %v3999_v28  ;;  %v4448_v55 = vld [vmem:[%s6138_s8 + $0x68] sm:$0xff] }
 0x2e0   : > { %v1626_v0 = vmul.f32 0.044715, %v5606_v2  ;;  %v1625_v19 = vmul.f32 0.044715, %v5608_v5  ;;  %v1647_v20 = vmul.f32 0.7978846, %v1641_v30 }
 0x2e1   : > { %v1646_v50 = vmul.f32 0.7978846, %v1640_v12  ;;  %2240 = vmatpush.bf16.msrb.mxu0 %v3846_v26  ;;  %2698 = vmatpush.bf16.msra.mxu1 %v4014_v46  ;;  %v1620_v11 = vmul.f32 0.5, %v5606_v2  ;;  %v4377_v12 = vld [vmem:[%s6136_s6 + $0xb0] sm:$0xf0] }
 0x2e2   : > { %v1632_v9 = vmul.f32 %v1626_v0, %v5606_v2  ;;  %v1631_v13 = vmul.f32 %v1625_v19, %v5608_v5  ;;  %4514 = vtanh.f32 %v1647_v20  ;;  %v1619_v0 = vmul.f32 0.5, %v5608_v5  ;;  %v4419_v19 = vld [vmem:[%s6137_s7 + $0x84] sm:$0xf]  ;;  %v3951_v28 = vld [vmem:[%s6136_s6 + $0x24] sm:$0xf0] }
 0x2e3   : > { %4516 = vtanh.f32 %v1646_v50  ;;  %v4022_v50 = vor.u32 %v4377_v12, %v4021_v63  ;;  %v4371_v46 = vld [vmem:[%s6136_s6 + $0x80] sm:$0xf0]  ;;  %v3939_v12 = vld [vmem:[%s6136_s6 + $0xc] sm:$0xf0] }
 0x2e4   : > { %v1638_v23 = vmul.f32 %v1632_v9, %v5606_v2  ;;  %v1637_v24 = vmul.f32 %v1631_v13, %v5608_v5 }
 0x2e5   : > { %2241 = vmatpush.bf16.msrb.mxu0 %v3838_v17  ;;  %2699 = vmatpush.bf16.msra.mxu1 %v4002_v53 }
 0x2e6   : > { %v1644_v27 = vadd.f32 %v1638_v23, %v5606_v2  ;;  %v1643_v29 = vadd.f32 %v1637_v24, %v5608_v5  ;;  %v3811_v2 = vld [vmem:[%s6137_s7 + $0x88] sm:$0xf0]  ;;  %v3987_v5 = vld [vmem:[%s6136_s6 + $0x6c] sm:$0xf0]  ;;  %v4450_v24 = vld [vmem:[%s6138_s8 + $0x78] sm:$0xff] }
 0x2e7   : > { %v3814_v21 = vor.u32 %v4419_v19, %v3811_v2  ;;  %v3990_v26 = vor.u32 %v4367_v35, %v3987_v5  ;;  %v4446_v19 = vld [vmem:[%s6138_s8 + $0x58] sm:$0xff]  ;;  %v3961_v2 = vld [vmem:[%s6136_s6 + $0x30] sm:$0xf] }
 0x2e8   : > { %v1650_v37 = vmul.f32 0.7978846, %v1644_v27  ;;  %v1649_v38 = vmul.f32 0.7978846, %v1643_v29  ;;  %v4515_v45 = vpop.eup %4514  ;;  %v1260_v27 = vadd.f32 %v5532_v61, %v5520_v49  ;;  %v4445_v5 = vld [vmem:[%s6138_s8 + $0x50] sm:$0xff] }
 0x2e9   : > { %v4517_v47 = vpop.eup %4516  ;;  %2242 = vmatpush.bf16.msrb.mxu0 %v3830_v42  ;;  %v1659_v22 = vadd.f32 1.0, %v4515_v45  ;;  %2700 = vmatpush.bf16.msra.mxu1 %v3990_v26  ;;  %v3997_v45 = vld [vmem:[%s6136_s6 + $0x78] sm:$0xf] }
 0x2ea   : > { %4518 = vtanh.f32 %v1650_v37  ;;  %v1658_v1 = vadd.f32 1.0, %v4517_v47  ;;  %v4364_v37 = vld [vmem:[%s6136_s6 + $0x4c] sm:$0xf]  ;;  %v4361_v47 = vld [vmem:[%s6136_s6 + $0x34] sm:$0xf]  ;;  %v3998_v54 = vor.u32 %v4371_v46, %v3997_v45 }
 0x2eb   : > { %4520 = vtanh.f32 %v1649_v38  ;;  %v1665_v13 = vmul.f32 %v1659_v22, %v1617_v62  ;;  %v3975_v38 = vld [vmem:[%s6136_s6 + $0x54] sm:$0xf0]  ;;  %v3985_v22 = vld [vmem:[%s6136_s6 + $0x60] sm:$0xf] }
 0x2ec   : > { %v1664_v51 = vmul.f32 %v1658_v1, %v1616_v15  ;;  %v3978_v41 = vor.u32 %v4364_v37, %v3975_v38  ;;  %v4117_v37 = vld [vmem:[%s6136_s6 + $0x168] sm:$0xf]  ;;  %v4119_v38 = vld [vmem:[%s6136_s6 + $0x174] sm:$0xf0] }
 0x2ed   : > { %2243 = vmatpush.bf16.msrb.mxu0 %v3822_v25  ;;  %v4368_v25 = vld [vmem:[%s6136_s6 + $0x68] sm:$0xf0]  ;;  %v4017_v46 = vld [vmem:[%s6136_s6 + $0x98] sm:$0xf] }
 0x2ee   : > { %2701 = vmatpush.bf16.msra.mxu1 %v3978_v41  ;;  %v3986_v1 = vor.u32 %v4368_v25, %v3985_v22  ;;  %v4005_v22 = vld [vmem:[%s6136_s6 + $0x80] sm:$0xf]  ;;  %v4372_v25 = vld [vmem:[%s6136_s6 + $0x88] sm:$0xf0] }
 0x2f0   : > { %v4519_v58 = vpop.eup %4518 }
 0x2f1   : > { %v1583_v59 = vpop.f32.mrf.mxu0  ;;  %v1597_v60 = vpop.f32.mrf.mxu1  ;;  %v1662_v3 = vadd.f32 1.0, %v4519_v58  ;;  %2244 = vmatpush.bf16.msrb.mxu0 %v3814_v21 }
 0x2f2   : > { %v1584_v56 = vadd.f32 %v1583_v59, %v1258_v48  ;;  %v4521_v30 = vpop.eup %4520  ;;  %v3963_v48 = vld [vmem:[%s6136_s6 + $0x3c] sm:$0xf0] }
 0x2f3   : > { %v1661_v18 = vadd.f32 1.0, %v4521_v30  ;;  %v1668_v20 = vmul.f32 %v1662_v3, %v1620_v11  ;;  %v3966_v52 = vor.u32 %v4361_v47, %v3963_v48  ;;  %v4447_v30 = vld [vmem:[%s6138_s8 + $0x60] sm:$0xff]  ;;  %v4365_v11 = vld [vmem:[%s6136_s6 + $0x50] sm:$0xf0]  ;;  %v4105_v48 = vld [vmem:[%s6136_s6 + $0x150] sm:$0xf] }
 0x2f4   : > { %v1598_v31 = vadd.f32 %v1597_v60, %v1584_v56  ;;  %v4355_v3 = vld [vmem:[%s6136_s6 + $0x4] sm:$0xf] }
 0x2f5   : > { %v1667_v23 = vmul.f32 %v1661_v18, %v1619_v0  ;;  %v1671_v32 = vpack.c.bf16 %v1668_v20, %v1665_v13  ;;  %2702 = vmatpush.bf16.msra.mxu1 %v3966_v52  ;;  %v3942_v0 = vor.u32 %v4355_v3, %v3939_v12  ;;  %v4362_v13 = vld [vmem:[%s6136_s6 + $0x38] sm:$0xf0]  ;;  %v4375_v47 = vld [vmem:[%s6136_s6 + $0xa0] sm:$0xf0]  ;;  %v4107_v52 = vld [vmem:[%s6136_s6 + $0x15c] sm:$0xf0] }
 0x2f6   : > { %v5687_v9 = vadd.f32 %v1606_v57, %v1598_v31  ;;  %v3973_v31 = vld [vmem:[%s6136_s6 + $0x48] sm:$0xf]  ;;  %v3962_v21 = vor.u32 %v4362_v13, %v3961_v2  ;;  %v4389_v2 = vld [vmem:[%s6136_s6 + $0x110] sm:$0xf0]  ;;  %v4388_v13 = vld [vmem:[%s6136_s6 + $0x10c] sm:$0xf] }
 0x2f7   : > { %v1670_v36 = vpack.c.bf16 %v1667_v23, %v1664_v51  ;;  %1891 = vmatmul.bf16.vlgmr.msra.gmra.mxu3 %v1671_v32  ;;  %v3974_v18 = vor.u32 %v4365_v11, %v3973_v31  ;;  %v4359_v51 = vld [vmem:[%s6136_s6 + $0x20] sm:$0xf0]  ;;  %v4444_v23 = vld [vmem:[%s6138_s8 + $0x48] sm:$0xff]  ;;  %v4029_v32 = vld [vmem:[%s6136_s6 + $0xb0] sm:$0xf] }
 0x2f8   : > { %v1624_v29 = vmul.f32 0.044715, %v5687_v9  ;;  %2669 = vmatpush.bf16.msra.mxu3 %v4022_v50  ;;  %v3949_v50 = vld [vmem:[%s6136_s6 + $0x18] sm:$0xf]  ;;  %v1618_v34 = vmul.f32 0.5, %v5687_v9  ;;  %v4030_v41 = vor.u32 %v4378_v33, %v4029_v32 }
 0x2f9   : > { %v1585_v17 = vpop.f32.mrf.mxu0  ;;  %v1599_v39 = vpop.f32.mrf.mxu1  ;;  %1877 = vmatmul.bf16.vlgmr.msra.gmra.mxu2 %v1670_v36  ;;  %v4369_v31 = vld [vmem:[%s6136_s6 + $0x70] sm:$0xf0]  ;;  %v4081_v11 = vld [vmem:[%s6136_s6 + $0x120] sm:$0xf] }
 0x2fa   : > { %v1630_v49 = vmul.f32 %v1624_v29, %v5687_v9  ;;  %v1586_v61 = vadd.f32 %v1585_v17, %v1260_v27  ;;  %2399 = vmatpush.bf16.msra.mxu2 %v4450_v24  ;;  %v3937_v24 = vld [vmem:[%s6136_s6] sm:$0xf]  ;;  %v4356_v29 = vld [vmem:[%s6136_s6 + $0x8] sm:$0xf0]  ;;  %v4082_v12 = vor.u32 %v4392_v14, %v4081_v11  ;;  %v4041_v14 = vld [vmem:[%s6136_s6 + $0xc8] sm:$0xf] }
 0x2fb   : > { %v3957_v33 = vld [vmem:[%s6136_s6 + $0x20] sm:$0xf] }
 0x2fc   : > { %v1636_v42 = vmul.f32 %v1630_v49, %v5687_v9  ;;  %v1600_v43 = vadd.f32 %v1599_v39, %v1586_v61  ;;  %2670 = vmatpush.bf16.msra.mxu3 %v4010_v40  ;;  %v4401_v49 = vld [vmem:[%s6136_s6 + $0x170] sm:$0xf0]  ;;  %v4400_v61 = vld [vmem:[%s6136_s6 + $0x16c] sm:$0xf] }
 0x2fd   : > { %v4122_v45 = vor.u32 %v4400_v61, %v4119_v38 }
 0x2fe   : > { %v1615_v59 = vadd.f32 %v1606_v57, %v1600_v43  ;;  %v1642_v60 = vadd.f32 %v1636_v42, %v5687_v9  ;;  %2400 = vmatpush.bf16.msra.mxu2 %v4449_v44  ;;  %v4358_v57 = vld [vmem:[%s6136_s6 + $0x1c] sm:$0xf]  ;;  %v3938_v9 = vor.u32 %v4356_v29, %v3937_v24  ;;  %v4443_v42 = vld [vmem:[%s6138_s8 + $0x40] sm:$0xff]  ;;  %v4118_v44 = vor.u32 %v4401_v49, %v4117_v37  ;;  %v4385_v24 = vld [vmem:[%s6136_s6 + $0xf4] sm:$0xf] }
 0x2ff   : > { %v3954_v63 = vor.u32 %v4358_v57, %v3951_v28  ;;  %v4093_v57 = vld [vmem:[%s6136_s6 + $0x138] sm:$0xf]  ;;  %v4395_v28 = vld [vmem:[%s6136_s6 + $0x140] sm:$0xf0]  ;;  %v4047_v37 = vld [vmem:[%s6136_s6 + $0xe4] sm:$0xf0] }
 0x300   : > { %v1627_v56 = vmul.f32 0.044715, %v1615_v59  ;;  %v1648_v62 = vmul.f32 0.7978846, %v1642_v60  ;;  %2671 = vmatpush.bf16.msra.mxu3 %v3998_v54  ;;  %v1621_v17 = vmul.f32 0.5, %v1615_v59  ;;  %v4018_v54 = vor.u32 %v4375_v47, %v4017_v46 }
 0x301   : > { %2703 = vmatpush.bf16.msra.mxu1 %v3954_v63  ;;  %v4397_v60 = vld [vmem:[%s6136_s6 + $0x154] sm:$0xf]  ;;  %v4006_v63 = vor.u32 %v4372_v25, %v4005_v22  ;;  %v4089_v25 = vld [vmem:[%s6136_s6 + $0x128] sm:$0xf] }
 0x302   : > { %v1633_v58 = vmul.f32 %v1627_v56, %v1615_v59  ;;  %2401 = vmatpush.bf16.msra.mxu2 %v4448_v55  ;;  %4522 = vtanh.f32 %v1648_v62  ;;  %v4110_v56 = vor.u32 %v4397_v60, %v4107_v52  ;;  %v4095_v62 = vld [vmem:[%s6136_s6 + $0x144] sm:$0xf0]  ;;  %v4113_v60 = vld [vmem:[%s6136_s6 + $0x158] sm:$0xf]  ;;  %v4399_v52 = vld [vmem:[%s6136_s6 + $0x160] sm:$0xf0] }
 0x304   : > { %v1639_v53 = vmul.f32 %v1633_v58, %v1615_v59  ;;  %2672 = vmatpush.bf16.msra.mxu3 %v3986_v1  ;;  %v4394_v58 = vld [vmem:[%s6136_s6 + $0x13c] sm:$0xf]  ;;  %v4094_v1 = vor.u32 %v4395_v28, %v4093_v57  ;;  %v4077_v28 = vld [vmem:[%s6136_s6 + $0x110] sm:$0xf] }
 0x305   : > { %2704 = vmatpush.bf16.msra.mxu1 %v3942_v0  ;;  %v3981_v0 = vld [vmem:[%s6136_s6 + $0x50] sm:$0xf] }
 0x306   : > { %v1645_v15 = vadd.f32 %v1639_v53, %v1615_v59  ;;  %2402 = vmatpush.bf16.msra.mxu2 %v4447_v30  ;;  %v4398_v59 = vld [vmem:[%s6136_s6 + $0x158] sm:$0xf0]  ;;  %v4098_v53 = vor.u32 %v4394_v58, %v4095_v62  ;;  %v3993_v30 = vld [vmem:[%s6136_s6 + $0x68] sm:$0xf] }
 0x307   : > { %2231 = vmatmul.bf16.vlgmr.msrb.gmra.mxu3 %v5445_v6  ;;  %v3950_v6 = vor.u32 %v4359_v51, %v3949_v50  ;;  %v4106_v55 = vor.u32 %v4398_v59, %v4105_v48  ;;  %v3994_v3 = vor.u32 %v4369_v31, %v3993_v30  ;;  %v3969_v50 = vld [vmem:[%s6136_s6 + $0x38] sm:$0xf]  ;;  %v4363_v51 = vld [vmem:[%s6136_s6 + $0x40] sm:$0xf0]  ;;  %v4390_v58 = vld [vmem:[%s6136_s6 + $0x118] sm:$0xf0] }
 0x308   : > { %v1651_v20 = vmul.f32 0.7978846, %v1645_v15  ;;  %2673 = vmatpush.bf16.msra.mxu3 %v3974_v18  ;;  %v4523_v35 = vpop.eup %4522  ;;  %2705 = vmatmul.bf16.vlgmr.msra.gmra.mxu1 %v4654_v4  ;;  %v4366_v18 = vld [vmem:[%s6136_s6 + $0x58] sm:$0xf0]  ;;  %v4078_v62 = vor.u32 %v4390_v58, %v4077_v28  ;;  %v4053_v30 = vld [vmem:[%s6136_s6 + $0xe0] sm:$0xf] }
 0x309   : > { %2217 = vmatmul.bf16.vlgmr.msrb.gmra.mxu2 %v5447_v7  ;;  %v1660_v26 = vadd.f32 1.0, %v4523_v35  ;;  %v4384_v31 = vld [vmem:[%s6136_s6 + $0xe8] sm:$0xf0]  ;;  %v6052_v28 = vld [vmem:[%s6139_s9] sm:$0x7] }
 0x30a   : > { %4524 = vtanh.f32 %v1651_v20  ;;  %2403 = vmatpush.bf16.msra.mxu2 %v4446_v19  ;;  %v4069_v19 = vld [vmem:[%s6136_s6 + $0x108] sm:$0xf]  ;;  %v4071_v20 = vld [vmem:[%s6136_s6 + $0x114] sm:$0xf0]  ;;  %v4054_v11 = vor.u32 %v4384_v31, %v4053_v30  ;;  %v4461_v30 = vld [vmem:[%s6140_s10 + $0x50] sm:$0xff] }
 0x30b   : > { %v1666_v39 = vmul.f32 %v1660_v26, %v1618_v34  ;;  %v4070_v35 = vor.u32 %v4389_v2, %v4069_v19  ;;  %v4059_v26 = vld [vmem:[%s6136_s6 + $0xfc] sm:$0xf0]  ;;  %v4360_v34 = vld [vmem:[%s6136_s6 + $0x28] sm:$0xf0] }
 0x30c   : > { %2674 = vmatpush.bf16.msra.mxu3 %v3962_v21  ;;  %v3982_v21 = vor.u32 %v4366_v18, %v3981_v0  ;;  %v4062_v32 = vor.u32 %v4385_v24, %v4059_v26  ;;  %v3958_v49 = vor.u32 %v4360_v34, %v3957_v33  ;;  %v4457_v33 = vld [vmem:[%s6140_s10 + $0x30] sm:$0xff]  ;;  %v4452_v58 = vld [vmem:[%s6140_s10 + $0x8] sm:$0xff] }
 0x30e   : > { %2404 = vmatpush.bf16.msra.mxu2 %v4445_v5  ;;  %v4074_v5 = vor.u32 %v4388_v13, %v4071_v20 }
 0x310   : > { %v4525_v27 = vpop.eup %4524  ;;  %2675 = vmatpush.bf16.msra.mxu3 %v3950_v6  ;;  %v4057_v6 = vld [vmem:[%s6136_s6 + $0xf0] sm:$0xf] }
 0x311   : > { %v1663_v36 = vadd.f32 1.0, %v4525_v27  ;;  %v3970_v27 = vor.u32 %v4363_v51, %v3969_v50 }
 0x312   : > { %2405 = vmatpush.bf16.msra.mxu2 %v4444_v23  ;;  %v4386_v23 = vld [vmem:[%s6136_s6 + $0xf8] sm:$0xf0] }
 0x313   : > { %v1669_v40 = vmul.f32 %v1663_v36, %v1621_v17  ;;  %v4058_v29 = vor.u32 %v4386_v23, %v4057_v6  ;;  %v4045_v17 = vld [vmem:[%s6136_s6 + $0xd8] sm:$0xf]  ;;  %v4382_v36 = vld [vmem:[%s6136_s6 + $0xdc] sm:$0xf] }
 0x314   : > { %2676 = vmatpush.bf16.msra.mxu3 %v3938_v9  ;;  %v4050_v38 = vor.u32 %v4382_v36, %v4047_v37  ;;  %v3945_v9 = vld [vmem:[%s6136_s6 + $0x8] sm:$0xf]  ;;  %v4458_v6 = vld [vmem:[%s6140_s10 + $0x38] sm:$0xff] }
 0x315   : > { %v1672_v43 = vpack.c.bf16 %v1669_v40, %v1666_v39  ;;  %v4357_v39 = vld [vmem:[%s6136_s6 + $0x10] sm:$0xf0]  ;;  %v4033_v40 = vld [vmem:[%s6136_s6 + $0xc0] sm:$0xf]  ;;  %3020 = vmatpush.bf16.msrb.mxu1 %v4458_v6 }
 0x316   : > { %2406 = vmatpush.bf16.msra.mxu2 %v4443_v42  ;;  %v4379_v42 = vld [vmem:[%s6136_s6 + $0xc4] sm:$0xf]  ;;  %v3946_v46 = vor.u32 %v4357_v39, %v3945_v9  ;;  %v4465_v9 = vld [vmem:[%s6140_s10 + $0x70] sm:$0xff] }
 0x317   : > { %1905 = vmatmul.bf16.vlgmr.msra.gmra.mxu0 %v1672_v43  ;;  %2677 = vmatmul.bf16.vlgmr.msra.gmra.mxu3 %v4654_v4  ;;  %v4035_v43 = vld [vmem:[%s6136_s6 + $0xcc] sm:$0xf0] }
 0x318   : > { %2725 = vmatpush.bf16.msrb.mxu3 %v4030_v41  ;;  %2683 = vmatpush.bf16.msra.mxu0 %v4118_v44  ;;  %v4380_v41 = vld [vmem:[%s6136_s6 + $0xc8] sm:$0xf0]  ;;  %v4125_v44 = vld [vmem:[%s6136_s6 + $0x170] sm:$0xf]  ;;  %v4038_v48 = vor.u32 %v4379_v42, %v4035_v43  ;;  %v4455_v42 = vld [vmem:[%s6140_s10 + $0x20] sm:$0xff] }
 0x319   : > { %2407 = vmatmul.bf16.vlgmr.msra.gmra.mxu2 %v2256_v16  ;;  %v4083_v16 = vld [vmem:[%s6136_s6 + $0x12c] sm:$0xf0]  ;;  %v4034_v47 = vor.u32 %v4380_v41, %v4033_v40  ;;  %3021 = vmatpush.bf16.msrb.mxu1 %v4457_v33 }
 0x31a   : > { %2711 = vmatpush.bf16.msrb.mxu2 %v4122_v45  ;;  %v4086_v15 = vor.u32 %v4391_v10, %v4083_v16  ;;  %v4402_v45 = vld [vmem:[%s6136_s6 + $0x178] sm:$0xf0]  ;;  %v4381_v10 = vld [vmem:[%s6136_s6 + $0xd0] sm:$0xf0] }
 0x31b   : > { %v4126_v59 = vor.u32 %v4402_v45, %v4125_v44  ;;  %v4042_v16 = vor.u32 %v4381_v10, %v4041_v14  ;;  %v4464_v44 = vld [vmem:[%s6140_s10 + $0x68] sm:$0xff]  ;;  %v2755_v14 = vperm.slane %v6052_v28, 0 }
 0x31c   : > { %2726 = vmatpush.bf16.msrb.mxu3 %v4018_v54  ;;  %2684 = vmatpush.bf16.msra.mxu0 %v4106_v55  ;;  %v4114_v54 = vor.u32 %v4399_v52, %v4113_v60  ;;  %v4101_v55 = vld [vmem:[%s6136_s6 + $0x140] sm:$0xf]  ;;  %v4453_v60 = vld [vmem:[%s6140_s10 + $0x10] sm:$0xff] }
 0x31e   : > { %2712 = vmatpush.bf16.msrb.mxu2 %v4110_v56  ;;  %v4396_v56 = vld [vmem:[%s6136_s6 + $0x148] sm:$0xf0] }
 0x31f   : > { %v4102_v22 = vor.u32 %v4396_v56, %v4101_v55 }
 0x320   : > { %2727 = vmatpush.bf16.msrb.mxu3 %v4006_v63  ;;  %2685 = vmatpush.bf16.msra.mxu0 %v4094_v1  ;;  %v4065_v63 = vld [vmem:[%s6136_s6 + $0xf8] sm:$0xf]  ;;  %v4387_v1 = vld [vmem:[%s6136_s6 + $0x100] sm:$0xf0] }
 0x322   : > { %2713 = vmatpush.bf16.msrb.mxu2 %v4098_v53  ;;  %v4066_v53 = vor.u32 %v4387_v1, %v4065_v63 }
 0x324   : > { %2728 = vmatpush.bf16.msrb.mxu3 %v3994_v3  ;;  %2686 = vmatpush.bf16.msra.mxu0 %v4082_v12 }
 0x326   : > { %2714 = vmatpush.bf16.msrb.mxu2 %v4086_v15  ;;  %v4496_v15 = vld [vmem:[%s6141_s11] ss:$0 sm:$0xff] }
 0x327   : > { %2245 = vmatmul.bf16.vlgmr.msrb.gmra.mxu0 %v5447_v7  ;;  %v4383_v7 = vld [vmem:[%s6136_s6 + $0xe0] sm:$0xf0] }
 0x328   : > { %2729 = vmatpush.bf16.msrb.mxu3 %v3982_v21  ;;  %2687 = vmatpush.bf16.msra.mxu0 %v4070_v35  ;;  %v4046_v61 = vor.u32 %v4383_v7, %v4045_v17  ;;  %v4466_v7 = vld [vmem:[%s6140_s10 + $0x78] sm:$0xff] }
 0x32a   : > { %2715 = vmatpush.bf16.msrb.mxu2 %v4074_v5 }
 0x32c   : > { %2730 = vmatpush.bf16.msrb.mxu3 %v3970_v27  ;;  %2688 = vmatpush.bf16.msra.mxu0 %v4058_v29 }
 0x32e   : > { %2716 = vmatpush.bf16.msrb.mxu2 %v4062_v32 }
 0x330   : > { %2731 = vmatpush.bf16.msrb.mxu3 %v3958_v49  ;;  %2689 = vmatpush.bf16.msra.mxu0 %v4046_v61  ;;  %v4456_v49 = vld [vmem:[%s6140_s10 + $0x28] sm:$0xff] }
 0x331   : > { %3022 = vmatpush.bf16.msrb.mxu1 %v4456_v49 }
 0x332   : > { %2717 = vmatpush.bf16.msrb.mxu2 %v4050_v38 }
 0x334   : > { %2732 = vmatpush.bf16.msrb.mxu3 %v3946_v46  ;;  %2690 = vmatpush.bf16.msra.mxu0 %v4034_v47  ;;  %v4454_v46 = vld [vmem:[%s6140_s10 + $0x18] sm:$0xff] }
 0x335   : > { %3023 = vmatpush.bf16.msrb.mxu1 %v4455_v42 }
 0x336   : > { %2718 = vmatpush.bf16.msrb.mxu2 %v4038_v48  ;;  %v4463_v48 = vld [vmem:[%s6140_s10 + $0x60] sm:$0xff] }
 0x337   : > { %2733 = vmatmul.bf16.vlgmr.msrb.gmra.mxu3 %v4654_v4  ;;  %2691 = vmatmul.bf16.vlgmr.msra.gmra.mxu0 %v4659_v8  ;;  %v4393_v4 = vld [vmem:[%s6136_s6 + $0x130] sm:$0xf0] }
 0x338   : > { %2739 = vmatpush.bf16.msrb.mxu0 %v4126_v59  ;;  %v4090_v57 = vor.u32 %v4393_v4, %v4089_v25 }
 0x339   : > { %2719 = vmatmul.bf16.vlgmr.msrb.gmra.mxu2 %v4659_v8  ;;  %v5999_v18 = vpop.f32.mrf.mxu1  ;;  %3024 = vmatpush.bf16.msrb.mxu1 %v4454_v46 }
 0x33a   : > { %3034 = vmatpush.bf16.msra.mxu2 %v4466_v7 }
 0x33c   : > { %2740 = vmatpush.bf16.msrb.mxu0 %v4114_v54  ;;  %v4462_v54 = vld [vmem:[%s6140_s10 + $0x58] sm:$0xff] }
 0x33d   : > { %3025 = vmatpush.bf16.msrb.mxu1 %v4453_v60 }
 0x33e   : > { %3035 = vmatpush.bf16.msra.mxu2 %v4465_v9 }
 0x340   : > { %2741 = vmatpush.bf16.msrb.mxu0 %v4102_v22 }
 0x341   : > { %v6001_v51 = vpop.f32.mrf.mxu1  ;;  %3026 = vmatpush.bf16.msrb.mxu1 %v4452_v58 }
 0x342   : > { %3036 = vmatpush.bf16.msra.mxu2 %v4464_v44 }
 0x344   : > { %2742 = vmatpush.bf16.msrb.mxu0 %v4090_v57 }
 0x346   : > { %3037 = vmatpush.bf16.msra.mxu2 %v4463_v48 }
 0x348   : > { %2743 = vmatpush.bf16.msrb.mxu0 %v4078_v62 }
 0x349   : > { %v6019_v61 = vpop.f32.mrf.mxu1 }
 0x34a   : > { %3038 = vmatpush.bf16.msra.mxu2 %v4462_v54 }
 0x34c   : > { %2744 = vmatpush.bf16.msrb.mxu0 %v4066_v53 }
 0x34e   : > { %3039 = vmatpush.bf16.msra.mxu2 %v4461_v30 }
 0x350   : > { %2745 = vmatpush.bf16.msrb.mxu0 %v4054_v11 }
 0x351   : > { %v6043_v52 = vpop.f32.mrf.mxu1 }
 0x354   : > { %2746 = vmatpush.bf16.msrb.mxu0 %v4042_v16 }
 0x357   : > { %2747 = vmatmul.bf16.vlgmr.msrb.gmra.mxu0 %v4659_v8 }
 0x37a   : > { %v1892_v12 = vpop.f32.mrf.mxu3 }
 0x37c   : > { %v1878_v3 = vpop.f32.mrf.mxu2 }
 0x37d   : > { %v1879_v19 = vadd.f32 %v4496_v15, %v1878_v3  ;;  %v4451_v3 = vld [vmem:[%s6140_s10] sm:$0xff] }
 0x37e   : > { %3027 = vmatpush.bf16.msrb.mxu1 %v4451_v3 }
 0x37f   : > { %v1893_v13 = vadd.f32 %v1892_v12, %v1879_v19  ;;  %v4474_v12 = vld [vmem:[%s6140_s10 + $0xb8] sm:$0xff] }
 0x380   : > { %3048 = vmatpush.bf16.msra.mxu3 %v4474_v12 }
 0x382   : > { %v1894_v2 = vpop.f32.mrf.mxu3 }
 0x384   : > { %v1880_v0 = vpop.f32.mrf.mxu2 }
 0x385   : > { %v1881_v5 = vadd.f32 %v4496_v15, %v1880_v0  ;;  %v2706_v10 = vpop.f32.mrf.mxu1 }
 0x387   : > { %v1895_v26 = vadd.f32 %v1894_v2, %v1881_v5  ;;  %v2756_v5 = vperm.slane %v6052_v28, 1 }
 0x38a   : > { %v6006_v23 = vpop.f32.mrf.mxu3 }
 0x38c   : > { %v2218_v21 = vpop.f32.mrf.mxu2 }
 0x38d   : > { %v2219_v62 = vadd.f32 %v2218_v21, %v5999_v18  ;;  %v4460_v18 = vld [vmem:[%s6140_s10 + $0x48] sm:$0xff] }
 0x38e   : > { %3040 = vmatpush.bf16.msra.mxu2 %v4460_v18 }
 0x392   : > { %v6024_v40 = vpop.f32.mrf.mxu3 }
 0x394   : > { %v1906_v20 = vpop.f32.mrf.mxu0  ;;  %v6011_v34 = vpop.f32.mrf.mxu2 }
 0x395   : > { %v1907_v35 = vadd.f32 %v1906_v20, %v1893_v13  ;;  %v4473_v13 = vld [vmem:[%s6140_s10 + $0xb0] sm:$0xff]  ;;  %v2221_v20 = vadd.f32 %v6011_v34, %v6001_v51  ;;  %v4472_v51 = vld [vmem:[%s6140_s10 + $0xa8] sm:$0xff]  ;;  %v2708_v34 = vpop.f32.mrf.mxu1 }
 0x396   : > { %3049 = vmatpush.bf16.msra.mxu3 %v4473_v13 }
 0x397   : > { %v1913_v50 = vmul.f32 0.044715, %v1907_v35  ;;  %v1911_v25 = vmul.f32 0.5, %v1907_v35 }
 0x399   : > { %v1915_v8 = vmul.f32 %v1913_v50, %v1907_v35 }
 0x39a   : > { %v2678_v22 = vpop.f32.mrf.mxu3  ;;  %3050 = vmatpush.bf16.msra.mxu3 %v4472_v51 }
 0x39b   : > { %v1917_v24 = vmul.f32 %v1915_v8, %v1907_v35  ;;  %v2679_v11 = vadd.f32 %v2678_v22, %v2219_v62  ;;  %v4459_v8 = vld [vmem:[%s6140_s10 + $0x40] sm:$0xff] }
 0x39c   : > { %v1908_v27 = vpop.f32.mrf.mxu0  ;;  %v6032_v45 = vpop.f32.mrf.mxu2  ;;  %3041 = vmatpush.bf16.msra.mxu2 %v4459_v8 }
 0x39d   : > { %v1919_v29 = vadd.f32 %v1917_v24, %v1907_v35  ;;  %v1909_v32 = vadd.f32 %v1908_v27, %v1895_v26 }
 0x39f   : > { %v1914_v17 = vmul.f32 0.044715, %v1909_v32  ;;  %v1921_v36 = vmul.f32 0.7978846, %v1919_v29  ;;  %v1912_v4 = vmul.f32 0.5, %v1909_v32 }
 0x3a1   : > { %v1916_v37 = vmul.f32 %v1914_v17, %v1909_v32  ;;  %4526 = vtanh.f32 %v1921_v36 }
 0x3a2   : > { %v2680_v2 = vpop.f32.mrf.mxu3 }
 0x3a3   : > { %v1918_v38 = vmul.f32 %v1916_v37, %v1909_v32  ;;  %v2681_v6 = vadd.f32 %v2680_v2, %v2221_v20  ;;  %v4471_v37 = vld [vmem:[%s6140_s10 + $0xa0] sm:$0xff] }
 0x3a4   : > { %v2246_v39 = vpop.f32.mrf.mxu0  ;;  %v6063_v53 = vpop.f32.mrf.mxu2  ;;  %3051 = vmatpush.bf16.msra.mxu3 %v4471_v37 }
 0x3a5   : > { %v1920_v41 = vadd.f32 %v1918_v38, %v1909_v32  ;;  %v2247_v15 = vadd.f32 %v2246_v39, %v6006_v23  ;;  %v2411_v20 = vadd.f32 %v6063_v53, %v6043_v52 }
 0x3a7   : > { %v1922_v43 = vmul.f32 0.7978846, %v1920_v41  ;;  %v4527_v47 = vpop.eup %4526  ;;  %v2707_v21 = vadd.f32 %v2706_v10, %v2247_v15 }
 0x3a8   : > { %v1925_v55 = vadd.f32 1.0, %v4527_v47 }
 0x3a9   : > { %4528 = vtanh.f32 %v1922_v43 }
 0x3aa   : > { %v1927_v63 = vmul.f32 %v1925_v55, %v1911_v25  ;;  %v4468_v25 = vld [vmem:[%s6140_s10 + $0x88] sm:$0xff] }
 0x3ac   : > { %v2248_v59 = vpop.f32.mrf.mxu0 }
 0x3ad   : > { %v2249_v27 = vadd.f32 %v2248_v59, %v6024_v40  ;;  %v4470_v40 = vld [vmem:[%s6140_s10 + $0x98] sm:$0xff]  ;;  %v4469_v59 = vld [vmem:[%s6140_s10 + $0x90] sm:$0xff] }
 0x3ae   : > { %3052 = vmatpush.bf16.msra.mxu3 %v4470_v40 }
 0x3af   : > { %v4529_v56 = vpop.eup %4528  ;;  %v2709_v49 = vadd.f32 %v2708_v34, %v2249_v27 }
 0x3b0   : > { %v1926_v57 = vadd.f32 1.0, %v4529_v56 }
 0x3b2   : > { %v1928_v1 = vmul.f32 %v1926_v57, %v1912_v4  ;;  %3053 = vmatpush.bf16.msra.mxu3 %v4469_v59 }
 0x3b4   : > { %v4478_v31 = vpack.c.bf16 %v1928_v1, %v1927_v63  ;;  %v2692_v16 = vpop.f32.mrf.mxu0  ;;  %v2409_v63 = vadd.f32 %v6032_v45, %v6019_v61  ;;  %v4467_v1 = vld [vmem:[%s6140_s10 + $0x80] sm:$0xff] }
 0x3b5   : > { %v2693_v0 = vadd.f32 %v2692_v16, %v2679_v11  ;;  %v2757_v11 = vperm.slane %v6052_v28, 2 }
 0x3b6   : > { %4479 = vst [vmem:[%s536_s21] sm:$0xff] %v4478_v31   ;;  %3054 = vmatpush.bf16.msra.mxu3 %v4468_v25 }
 0x3b7   : > { %v6079_v19 = vadd.f32 %v2755_v14, %v2693_v0 }
 0x3b9   : > { %v2773_v35 = vmul.f32 0.044715, %v6079_v19  ;;  %v2767_v12 = vmul.f32 0.5, %v6079_v19 }
 0x3ba   : > { %v2734_v4 = vpop.f32.mrf.mxu3  ;;  %3055 = vmatpush.bf16.msra.mxu3 %v4467_v1 }
 0x3bb   : > { %v2779_v23 = vmul.f32 %v2773_v35, %v6079_v19  ;;  %v2735_v31 = vadd.f32 %v2734_v4, %v2409_v63 }
 0x3bc   : > { %v2720_v50 = vpop.f32.mrf.mxu2  ;;  %v2694_v26 = vpop.f32.mrf.mxu0 }
 0x3bd   : > { %v2721_v24 = vadd.f32 %v2720_v50, %v2707_v21  ;;  %v2785_v29 = vmul.f32 %v2779_v23, %v6079_v19  ;;  %v2695_v33 = vadd.f32 %v2694_v26, %v2681_v6 }
 0x3bf   : > { %v2762_v32 = vadd.f32 %v2756_v5, %v2721_v24  ;;  %v2764_v7 = vadd.f32 %v2755_v14, %v2695_v33  ;;  %v2791_v36 = vadd.f32 %v2785_v29, %v6079_v19 }
 0x3c1   : > { %v2774_v17 = vmul.f32 0.044715, %v2762_v32  ;;  %v2776_v9 = vmul.f32 0.044715, %v2764_v7  ;;  %v2797_v44 = vmul.f32 0.7978846, %v2791_v36 }
 0x3c2   : > { %v2770_v15 = vmul.f32 0.5, %v2764_v7  ;;  %v2736_v13 = vpop.f32.mrf.mxu3  ;;  %v2768_v50 = vmul.f32 0.5, %v2762_v32 }
 0x3c3   : > { %v2780_v38 = vmul.f32 %v2774_v17, %v2762_v32  ;;  %v2782_v42 = vmul.f32 %v2776_v9, %v2764_v7  ;;  %4530 = vtanh.f32 %v2797_v44  ;;  %v2737_v8 = vadd.f32 %v2736_v13, %v2411_v20 }
 0x3c4   : > { %v2722_v39 = vpop.f32.mrf.mxu2 }
 0x3c5   : > { %v2786_v41 = vmul.f32 %v2780_v38, %v2762_v32  ;;  %v2723_v43 = vadd.f32 %v2722_v39, %v2709_v49  ;;  %v2788_v46 = vmul.f32 %v2782_v42, %v2764_v7 }
 0x3c7   : > { %v2765_v47 = vadd.f32 %v2756_v5, %v2723_v43  ;;  %v2792_v48 = vadd.f32 %v2786_v41, %v2762_v32  ;;  %v2794_v54 = vadd.f32 %v2788_v46, %v2764_v7 }
 0x3c9   : > { %v2777_v60 = vmul.f32 0.044715, %v2765_v47  ;;  %v2800_v56 = vmul.f32 0.7978846, %v2794_v54  ;;  %v2798_v22 = vmul.f32 0.7978846, %v2792_v48  ;;  %v4531_v58 = vpop.eup %4530 }
 0x3ca   : > { %v2809_v14 = vadd.f32 1.0, %v4531_v58  ;;  %v2771_v19 = vmul.f32 0.5, %v2765_v47 }
 0x3cb   : > { %v2783_v55 = vmul.f32 %v2777_v60, %v2765_v47  ;;  %4532 = vtanh.f32 %v2800_v56 }
 0x3cc   : > { %4534 = vtanh.f32 %v2798_v22  ;;  %v2815_v18 = vmul.f32 %v2809_v14, %v2767_v12 }
 0x3cd   : > { %v2789_v57 = vmul.f32 %v2783_v55, %v2765_v47 }
 0x3cf   : > { %v2795_v62 = vadd.f32 %v2789_v57, %v2765_v47  ;;  %v4497_v47 = vld [vmem:[%s6141_s11] ss:$0 sm:$0xff] }
 0x3d1   : > { %v2801_v30 = vmul.f32 0.7978846, %v2795_v62  ;;  %v4533_v10 = vpop.eup %4532 }
 0x3d2   : > { %v2812_v0 = vadd.f32 1.0, %v4533_v10  ;;  %v4535_v61 = vpop.eup %4534 }
 0x3d3   : > { %4536 = vtanh.f32 %v2801_v30  ;;  %v2810_v35 = vadd.f32 1.0, %v4535_v61 }
 0x3d4   : > { %v2748_v16 = vpop.f32.mrf.mxu0  ;;  %v2818_v2 = vmul.f32 %v2812_v0, %v2770_v15 }
 0x3d5   : > { %v2749_v3 = vadd.f32 %v2748_v16, %v2735_v31  ;;  %v2816_v27 = vmul.f32 %v2810_v35, %v2768_v50 }
 0x3d6   : > { %v2821_v28 = vpack.c.bf16 %v2818_v2, %v2815_v18 }
 0x3d7   : > { %v2763_v45 = vadd.f32 %v2757_v11, %v2749_v3 }
 0x3d8   : > { %3028 = vmatmul.bf16.vlgmr.msrb.gmra.mxu1 %v2821_v28 }
 0x3d9   : > { %v2775_v21 = vmul.f32 0.044715, %v2763_v45  ;;  %v4537_v5 = vpop.eup %4536  ;;  %v2769_v39 = vmul.f32 0.5, %v2763_v45 }
 0x3da   : > { %v2813_v23 = vadd.f32 1.0, %v4537_v5 }
 0x3db   : > { %v2781_v6 = vmul.f32 %v2775_v21, %v2763_v45 }
 0x3dc   : > { %v2750_v24 = vpop.f32.mrf.mxu0  ;;  %v2819_v29 = vmul.f32 %v2813_v23, %v2771_v19 }
 0x3dd   : > { %v2787_v26 = vmul.f32 %v2781_v6, %v2763_v45  ;;  %v2751_v51 = vadd.f32 %v2750_v24, %v2737_v8 }
 0x3de   : > { %v2822_v34 = vpack.c.bf16 %v2819_v29, %v2816_v27 }
 0x3df   : > { %v2766_v33 = vadd.f32 %v2757_v11, %v2751_v51  ;;  %v2793_v17 = vadd.f32 %v2787_v26, %v2763_v45 }
 0x3e0   : > { %3042 = vmatmul.bf16.vlgmr.msra.gmra.mxu2 %v2822_v34 }
 0x3e1   : > { %v2778_v7 = vmul.f32 0.044715, %v2766_v33  ;;  %v2799_v53 = vmul.f32 0.7978846, %v2793_v17  ;;  %v2772_v40 = vmul.f32 0.5, %v2766_v33 }
 0x3e3   : > { %v2784_v52 = vmul.f32 %v2778_v7, %v2766_v33  ;;  %4538 = vtanh.f32 %v2799_v53 }
 0x3e5   : > { %v2790_v36 = vmul.f32 %v2784_v52, %v2766_v33 }
 0x3e7   : > { %v2796_v37 = vadd.f32 %v2790_v36, %v2766_v33 }
 0x3e9   : > { %v2802_v32 = vmul.f32 0.7978846, %v2796_v37  ;;  %v4539_v49 = vpop.eup %4538 }
 0x3ea   : > { %v2811_v38 = vadd.f32 1.0, %v4539_v49 }
 0x3eb   : > { %4540 = vtanh.f32 %v2802_v32 }
 0x3ec   : > { %v2817_v42 = vmul.f32 %v2811_v38, %v2769_v39 }
 0x3f1   : > { %v4541_v9 = vpop.eup %4540 }
 0x3f2   : > { %v2814_v41 = vadd.f32 1.0, %v4541_v9 }
 0x3f4   : > { %v2820_v43 = vmul.f32 %v2814_v41, %v2772_v40 }
 0x3f6   : > { %v2823_v44 = vpack.c.bf16 %v2820_v43, %v2817_v42 }
 0x3f8   : > { %3056 = vmatmul.bf16.vlgmr.msra.gmra.mxu3 %v2823_v44 }
 0x455   : > { %v3029_v46 = vpop.f32.mrf.mxu1 }
 0x456   : > { %v3030_v59 = vadd.f32 %v4497_v47, %v3029_v46 }
 0x45d   : > { %v3031_v56 = vpop.f32.mrf.mxu1 }
 0x45e   : > { %v3032_v4 = vadd.f32 %v4497_v47, %v3031_v56 }
 0x463   : > { %v3043_v48 = vpop.f32.mrf.mxu2 }
 0x464   : > { %v3044_v60 = vadd.f32 %v3043_v48, %v3030_v59 }
 0x46b   : > { %v3045_v25 = vpop.f32.mrf.mxu2 }
 0x46c   : > { %v3046_v58 = vadd.f32 %v3045_v25, %v3032_v4 }
 0x47b   : > { %v3057_v54 = vpop.f32.mrf.mxu3 }
 0x47c   : > { %v3058_v55 = vadd.f32 %v3057_v54, %v3044_v60 }
 0x47e   : > { %v3064_v22 = vmul.f32 0.044715, %v3058_v55  ;;  %v3062_v61 = vmul.f32 0.5, %v3058_v55 }
 0x480   : > { %v3066_v57 = vmul.f32 %v3064_v22, %v3058_v55 }
 0x482   : > { %v3068_v62 = vmul.f32 %v3066_v57, %v3058_v55 }
 0x483   : > { %v3059_v63 = vpop.f32.mrf.mxu3 }
 0x484   : > { %v3070_v1 = vadd.f32 %v3068_v62, %v3058_v55  ;;  %v3060_v30 = vadd.f32 %v3059_v63, %v3046_v58 }
 0x486   : > { %v3065_v31 = vmul.f32 0.044715, %v3060_v30  ;;  %v3072_v11 = vmul.f32 0.7978846, %v3070_v1  ;;  %v3063_v45 = vmul.f32 0.5, %v3060_v30 }
 0x488   : > { %v3067_v14 = vmul.f32 %v3065_v31, %v3060_v30  ;;  %4542 = vtanh.f32 %v3072_v11 }
 0x48a   : > { %v3069_v10 = vmul.f32 %v3067_v14, %v3060_v30 }
 0x48c   : > { %v3071_v16 = vadd.f32 %v3069_v10, %v3060_v30 }
 0x48e   : > { %v3073_v3 = vmul.f32 0.7978846, %v3071_v16  ;;  %v4543_v12 = vpop.eup %4542 }
 0x48f   : > { %v3076_v15 = vadd.f32 1.0, %v4543_v12 }
 0x490   : > { %4544 = vtanh.f32 %v3073_v3 }
 0x491   : > { %v3078_v2 = vmul.f32 %v3076_v15, %v3062_v61 }
 0x496   : > { %v4545_v0 = vpop.eup %4544 }
 0x497   : > { %v3077_v18 = vadd.f32 1.0, %v4545_v0 }
 0x499   : > { %v3079_v13 = vmul.f32 %v3077_v18, %v3063_v45 }
 0x49b   : > { %v4483_v20 = vpack.c.bf16 %v3079_v13, %v3078_v2 }
 0x49d   : > { %4484 = vst [vmem:[%s541_s22] sm:$0xff] %v4483_v20  }
 0x49e PF: > { %s24_s25 = sadd.s32 1, %s4552_s25  }
 0x49f   : > { %p21_p4 = scmp.ge.s32.totalorder %s24_s25, 4  }
 0x4a1   :  { %23 = sbr.rel (!%p21_p4) target bundleno = 1 (0x1), region = 125 }

// kernel: re2_forward.8
= control target key start
LH: loop header
LB: loop body
LE: loop exit
PB: predicated region body
PF: predicated region fallthrough
CT: control target
= control target key end

     0   :  { %s6006_s25 = smov 0   ;;  %s8149_s0 = inlined_call_operand.vmem [shape: bf16[2,16,384], index: 0, kind: input, shape index: {}]   ;;  %s8150_s1 = inlined_call_operand.vmem [shape: bf16[2,16,384], index: 1, kind: input, shape index: {}]   ;;  %s8151_s2 = inlined_call_operand.vmem [shape: f32[2,16,1], index: 2, kind: input, shape index: {}]   ;;  %s8152_s3 = inlined_call_operand.vmem [shape: f32[2,1,16], index: 3, kind: input, shape index: {}]   ;;  %s8153_s4 = inlined_call_operand.vmem [shape: f32[2,16,1], index: 4, kind: input, shape index: {}]   ;;  %s8154_s5 = inlined_call_operand.vmem [shape: f32[2,1,16], index: 5, kind: input, shape index: {}]   ;;  %s8155_s6 = inlined_call_operand.vmem [shape: bf16[384,384], index: 6, kind: input, shape index: {}]   ;;  %s8156_s7 = inlined_call_operand.vmem [shape: bf16[384,256], index: 7, kind: input, shape index: {}]   ;;  %s8157_s8 = inlined_call_operand.vmem [shape: bf16[384,128], index: 8, kind: input, shape index: {}]   ;;  %s8158_s9 = inlined_call_operand.vmem [shape: f32[1,384], index: 9, kind: input, shape index: {}]   ;;  %s8159_s10 = inlined_call_operand.vmem [shape: bf16[384,128], index: 10, kind: input, shape index: {}]   ;;  %s8160_s11 = inlined_call_operand.vmem [shape: f32[1,128], index: 11, kind: input, shape index: {}]   ;;  %s8161_s12 = inlined_call_operand.vmem [shape: bf16[2,16,128], index: 12, kind: output, shape index: {0}]   ;;  %s8162_s13 = inlined_call_operand.vmem [shape: bf16[2,16,128], index: 13, kind: output, shape index: {1}]  }
   0x1 LB: > { %s4118_s26 = sadd.s32 4294967295, %s5933_s25   ;;  %p4122_p0 = scmp.ge.s32.totalorder %s5933_s25, 1  ;;  %s5933_s25 = sphi %s6006_s25, %s24_s25  }
   0x2   : > { %p436_p1 = scmp.lt.s32.totalorder %s5933_s25, 3 }
   0x4   : > { %p437_p2 = pnand %p4122_p0, %p436_p1 }
   0x5   : > { %p506_p3 = scmp.lt.s32.totalorder (!%p437_p2), %s4118_s26, 1 }
   0x6   : > { %440 = sbr.rel (%p437_p2) target bundleno = 1573 (0x625), region = 68 }
   0xb   : > { %v5935_v0 = vmov 0   ;;  %s8168_s26 = smov (!%p506_p3, %s4118_s26), 1  ;;  %vm653_vm7 = vcmask 130048   ;;  %v4221_v62 = vld [vmem:[%s8156_s7 + $0x70] sm:$0xf] }
   0xc   : > { %5875 = vset.pattern.permute.xlu0 %v5935_v0  ;;  %5876 = vset.pattern.permute.xlu1 %v5935_v0  ;;  %s5865_s27 = smul.u32 24, %s8168_s26  ;;  %s5509_s28 = sshll.u32 %s8168_s26, 4  ;;  %v5606_v63 = vld [vmem:[%s8156_s7 + $0x74] sm:$0xf0]  ;;  %v4287_v33 = vld [vmem:[%s8156_s7 + $0xf8] sm:$0xf0] }
   0xd   : > { %s520_s14 = scalar_lea.vmem %s8151_s2, %s5509_s28  ;;  %s6071_s23 = scalar_lea.vmem %s8153_s4, %s5509_s28 }
   0xe   : > { %s6028_s17 = scalar_lea.vmem %s8150_s1, %s5865_s27  ;;  %s6033_s20 = scalar_lea.vmem %s8149_s0, %s5865_s27  ;;  %v551_v1 = vld [vmem:[%s520_s14] sm:$0xff]  ;;  %v552_v16 = vld [vmem:[%s520_s14 + $0x8] sm:$0xff] }
   0xf   : > { %v4147_v2 = vld [vmem:[%s6028_s17] sm:$0xf]  ;;  %v5517_v3 = vld [vmem:[%s6028_s17 + $0x8] sm:$0xf0]  ;;  %v4155_v4 = vld [vmem:[%s6028_s17 + $0x8] sm:$0xf]  ;;  %s531_s28 = scalar_lea.vmem %s8154_s5, %s8168_s26  ;;  %s523_s30 = scalar_lea.vmem %s8152_s3, %s8168_s26 }
  0x10   : > { %v6038_v5 = vor.u32 %v5517_v3, %v4147_v2  ;;  %v5518_v6 = vld [vmem:[%s6028_s17 + $0x10] sm:$0xf0]  ;;  %v4135_v7 = vld [vmem:[%s6033_s20] sm:$0xf]  ;;  %v5514_v8 = vld [vmem:[%s6033_s20 + $0x8] sm:$0xf0] }
  0x11   : > { %v6043_v9 = vor.u32 %v5518_v6, %v4155_v4  ;;  %v4143_v10 = vld [vmem:[%s6033_s20 + $0x8] sm:$0xf]  ;;  %v5515_v11 = vld [vmem:[%s6033_s20 + $0x10] sm:$0xf0]  ;;  %v5516_v12 = vld [vmem:[%s6028_s17 + $0x4] sm:$0xf]  ;;  %v6055_v17 = vor.u32 %v5514_v8, %v4135_v7  ;;  %v4222_v4 = vor.u32 %v5606_v63, %v4221_v62 }
  0x12   : > { %596 = vmatpush.bf16.xpose.msra.mxu1 %v6038_v5  ;;  %v4149_v13 = vld [vmem:[%s6028_s17 + $0xc] sm:$0xf0]  ;;  %vm633_vm0 = vcmp.gt.f32.partialorder %v551_v1, 0.0  ;;  %v6057_v18 = vor.u32 %v5515_v11, %v4143_v10  ;;  %v5513_v19 = vld [vmem:[%s6033_s20 + $0x4] sm:$0xf]  ;;  %vm634_vm1 = vcmp.gt.f32.partialorder %v552_v16, 0.0 }
  0x13   : > { %624 = vmatpush.bf16.xpose.msra.mxu2 %v6043_v9  ;;  %v6051_v14 = vor.u32 %v5516_v12, %v4149_v13  ;;  %v636_v15 = vsel %vm633_vm0, 1, %v5935_v0  ;;  %715 = vmatpush.bf16.msra.mxu0 %v6043_v9  ;;  %v4137_v20 = vld [vmem:[%s6033_s20 + $0xc] sm:$0xf0]  ;;  %v637_v22 = vsel %vm634_vm1, 1, %v5935_v0  ;;  %v554_v23 = vld [vmem:[%s6071_s23] sm:$0xff]  ;;  %v555_v58 = vld [vmem:[%s6071_s23 + $0x8] sm:$0xff] }
  0x14   : > { %639 = vperm.xlu0 %5875, %v636_v15   ;;  %v6074_v21 = vor.u32 %v5513_v19, %v4137_v20  ;;  %vm766_vm2 = vcmp.gt.f32.partialorder %v554_v23, 0.0  ;;  %v556_v26 = vld [vmem:[%s531_s28] sm:$0x1]  ;;  %vm767_vm10 = vcmp.gt.f32.partialorder %v555_v58, 0.0  ;;  %v5604_v8 = vld [vmem:[%s8156_s7 + $0x64] sm:$0xf0] }
  0x15   : > { %701 = vmatpush.bf16.msra.mxu3 %v6051_v14  ;;  %v769_v24 = vsel %vm766_vm2, 1, %v5935_v0  ;;  %vm635_vm3 = vcmp.gt.f32.partialorder %v556_v26, 0.0  ;;  %v770_v59 = vsel %vm767_vm10, 1, %v5935_v0  ;;  %v4213_v7 = vld [vmem:[%s8156_s7 + $0x60] sm:$0xf]  ;;  %v5662_v62 = vld [vmem:[%s8157_s8 + $0xb8] sm:$0xff] }
  0x16   : > { %v646_v28 = vsel %vm635_vm3, 1, %v5935_v0  ;;  %v4214_v10 = vor.u32 %v5604_v8, %v4213_v7  ;;  %v4205_v11 = vld [vmem:[%s8156_s7 + $0x50] sm:$0xf]  ;;  %v5602_v12 = vld [vmem:[%s8156_s7 + $0x54] sm:$0xf0]  ;;  %s5511_s24 = sshll.u32 %s8168_s26, 3 }
  0x17   : > { %819 = vmatpush.bf16.msrb.mxu0 %v6055_v17  ;;  %v647_v29 = vperm.slane %v646_v28, 0  ;;  %v4206_v13 = vor.u32 %v5602_v12, %v4205_v11  ;;  %v4197_v15 = vld [vmem:[%s8156_s7 + $0x40] sm:$0xf]  ;;  %v5600_v16 = vld [vmem:[%s8156_s7 + $0x44] sm:$0xf0]  ;;  %s536_s28 = scalar_lea.vmem %s8161_s12, %s5511_s24  ;;  %s541_s27 = scalar_lea.vmem %s8162_s13, %s5511_s24 }
  0x18   : > { %v4198_v19 = vor.u32 %v5600_v16, %v4197_v15  ;;  %v4189_v20 = vld [vmem:[%s8156_s7 + $0x30] sm:$0xf]  ;;  %v5594_v28 = vld [vmem:[%s8156_s7 + $0x14] sm:$0xf0]  ;;  %v5636_v12 = vld [vmem:[%s8156_s7 + $0x164] sm:$0xf0] }
  0x19   : > { %757 = vmatpush.bf16.xpose.msrb.mxu3 %v6057_v18  ;;  %597 = vmatmul.bf16.vlgmr.msra.gmra.mxu1 %v6055_v17  ;;  %vm6090_vm4 = vcmp.eq.s32.totalorder %v647_v29, 1 }
  0x1a   : > { %610 = vmatpush.bf16.xpose.msrb.mxu1 %v6051_v14  ;;  %625 = vmatmul.bf16.vlgmr.msra.gmra.mxu2 %v6057_v18 }
  0x1b   : > { %687 = vmatpush.bf16.msrb.mxu2 %v6038_v5 }
  0x1c   : > { %642 = vperm.xlu0 %5875, %v637_v22   ;;  %v5598_v22 = vld [vmem:[%s8156_s7 + $0x34] sm:$0xf0] }
  0x1d   : > { %v4190_v23 = vor.u32 %v5598_v22, %v4189_v20 }
  0x1f   : > { %743 = vmatpush.bf16.xpose.msra.mxu2 %v6074_v21 }
  0x22   : > { %729 = vmatpush.bf16.xpose.msra.mxu1 %v6055_v17 }
  0x24   : > { %772 = vperm.xlu0 %5875, %v769_v24   ;;  %v4181_v24 = vld [vmem:[%s8156_s7 + $0x20] sm:$0xf] }
  0x29   : > { %611 = vmatmul.bf16.vlgmr.msrb.gmra.mxu1 %v6074_v21 }
  0x2a   : > { %833 = vmatpush.bf16.msrb.mxu1 %v6074_v21 }
  0x39   : > { %730 = vmatmul.bf16.vlgmr.msra.gmra.mxu1 %v6038_v5 }
  0x86   : > { %v640_v30 = vpop.permute.xlu0 %639 }
  0x87   : > { %vm644_vm5 = vcmp.eq.s32.totalorder %v640_v30, 1  ;;  %v4165_v30 = vld [vmem:[%s8156_s7] sm:$0xf] }
  0x88   : > { %vm649_vm6 = vmand %vm644_vm5, %vm6090_vm4 }
  0x8e   : > { %v643_v41 = vpop.permute.xlu0 %642 }
  0x8f   : > { %vm645_vm8 = vcmp.eq.s32.totalorder %v643_v41, 1 }
  0x90   : > { %vm650_vm9 = vmand %vm645_vm8, %vm6090_vm4 }
  0x96   : > { %v598_v25 = vpop.f32.mrf.mxu1 }
  0x9d   : > { %v626_v31 = vpop.f32.mrf.mxu2 }
  0x9e   : > { %v600_v27 = vpop.f32.mrf.mxu1 }
  0xa5   : > { %v628_v42 = vpop.f32.mrf.mxu2 }
  0xa6   : > { %v612_v32 = vpop.f32.mrf.mxu1 }
  0xa7   : > { %v613_v34 = vadd.f32 %v612_v32, %v598_v25  ;;  %v5596_v25 = vld [vmem:[%s8156_s7 + $0x24] sm:$0xf0]  ;;  %v5621_v32 = vld [vmem:[%s8156_s7 + $0xf4] sm:$0xf] }
  0xa8   : > { %v4182_v26 = vor.u32 %v5596_v25, %v4181_v24  ;;  %v5658_v25 = vld [vmem:[%s8157_s8 + $0x98] sm:$0xff] }
  0xa9   : > { %v627_v35 = vadd.f32 %v626_v31, %v613_v34  ;;  %v5592_v31 = vld [vmem:[%s8156_s7 + $0x4] sm:$0xf0] }
  0xaa   : > { %v4166_v34 = vor.u32 %v5592_v31, %v4165_v30  ;;  %v5657_v30 = vld [vmem:[%s8157_s8 + $0x90] sm:$0xff] }
  0xab   : > { %v631_v36 = vmul.f32 0.088388346, %v627_v35  ;;  %v4290_v35 = vor.u32 %v5621_v32, %v4287_v33  ;;  %v546_v32 = vld [vmem:[%s6033_s20 + $0x14] sm:$0xf] }
  0xad   : > { %v651_v37 = vsel %vm649_vm6, %v631_v36, -10000000.0  ;;  %v5619_v36 = vld [vmem:[%s8156_s7 + $0xe4] sm:$0xf] }
  0xae   : > { %v614_v38 = vpop.f32.mrf.mxu1  ;;  %v654_v39 = vsel %vm653_vm7, %v651_v37, -inf }
  0xaf   : > { %v615_v40 = vadd.f32 %v614_v38, %v600_v27  ;;  %655 = vmax.xlane.f32.xlu1 %v654_v39  ;;  %v4173_v27 = vld [vmem:[%s8156_s7 + $0x10] sm:$0xf]  ;;  %v5617_v39 = vld [vmem:[%s8156_s7 + $0xd4] sm:$0xf] }
  0xb0   : > { %v4174_v29 = vor.u32 %v5594_v28, %v4173_v27 }
  0xb1   : > { %v629_v43 = vadd.f32 %v628_v42, %v615_v40  ;;  %v4271_v40 = vld [vmem:[%s8156_s7 + $0xd8] sm:$0xf0]  ;;  %v5615_v42 = vld [vmem:[%s8156_s7 + $0xc4] sm:$0xf] }
  0xb2   : > { %v4274_v41 = vor.u32 %v5617_v39, %v4271_v40  ;;  %v5655_v40 = vld [vmem:[%s8157_s8 + $0x80] sm:$0xff] }
  0xb3   : > { %v632_v44 = vmul.f32 0.088388346, %v629_v43  ;;  %v4263_v43 = vld [vmem:[%s8156_s7 + $0xc8] sm:$0xf0] }
  0xb5   : > { %v652_v45 = vsel %vm650_vm9, %v632_v44, -10000000.0  ;;  %v4266_v44 = vor.u32 %v5615_v42, %v4263_v43 }
  0xb6   : > { %v657_v46 = vsel %vm653_vm7, %v652_v45, -inf }
  0xb7   : > { %658 = vmax.xlane.f32.xlu1 %v657_v46  ;;  %v4255_v46 = vld [vmem:[%s8156_s7 + $0xb8] sm:$0xf0] }
  0xd0   : > { %775 = vperm.xlu1 %5876, %v770_v59   ;;  %v553_v59 = vld [vmem:[%s523_s30] sm:$0x1] }
  0xd1   : > { %vm768_vm11 = vcmp.gt.f32.partialorder %v553_v59, 0.0 }
 0x122   : > { %v656_v47 = vpop.xlane.xlu1 %655 }
 0x123   : > { %v660_v48 = vsub.f32 %v651_v37, %v656_v47  ;;  %v4279_v37 = vld [vmem:[%s8156_s7 + $0xe8] sm:$0xf0] }
 0x124   : > { %v4282_v38 = vor.u32 %v5619_v36, %v4279_v37  ;;  %v5656_v36 = vld [vmem:[%s8157_s8 + $0x88] sm:$0xff]  ;;  %v859_v37 = vunpack.c.l.bf16 %v546_v32  ;;  %v5599_v32 = vld [vmem:[%s8156_s7 + $0x44] sm:$0xf] }
 0x125   : > { %v662_v49 = vmul.f32 1.442695, %v660_v48  ;;  %v5611_v48 = vld [vmem:[%s8156_s7 + $0xa4] sm:$0xf] }
 0x127   : > { %5879 = vpow2.f32 %v662_v49  ;;  %v4247_v49 = vld [vmem:[%s8156_s7 + $0xa8] sm:$0xf0] }
 0x12a   : > { %v659_v50 = vpop.xlane.xlu1 %658 }
 0x12b   : > { %v661_v51 = vsub.f32 %v652_v45, %v659_v50  ;;  %v5613_v45 = vld [vmem:[%s8156_s7 + $0xb4] sm:$0xf]  ;;  %v4250_v50 = vor.u32 %v5611_v48, %v4247_v49  ;;  %v4285_v49 = vld [vmem:[%s8156_s7 + $0xf0] sm:$0xf] }
 0x12c   : > { %v4258_v47 = vor.u32 %v5613_v45, %v4255_v46 }
 0x12d   : > { %v5880_v52 = vpop.eup %5879  ;;  %v664_v53 = vmul.f32 1.442695, %v661_v51  ;;  %v5609_v51 = vld [vmem:[%s8156_s7 + $0x94] sm:$0xf] }
 0x12e   : > { %v666_v54 = vsel %vm653_vm7, %v5880_v52, 0.0 }
 0x12f   : > { %5881 = vpow2.f32 %v664_v53  ;;  %667 = vadd.xlane.f32.xlu2 %v666_v54  ;;  %v5607_v54 = vld [vmem:[%s8156_s7 + $0x84] sm:$0xf] }
 0x135   : > { %v5882_v55 = vpop.eup %5881 }
 0x136   : > { %v669_v56 = vsel %vm653_vm7, %v5882_v55, 0.0 }
 0x137   : > { %670 = vadd.xlane.f32.xlu2 %v669_v56 }
 0x142   : > { %v776_v16 = vpop.permute.xlu1 %775 }
 0x143   : > { %vm778_vm15 = vcmp.eq.s32.totalorder %v776_v16, 1  ;;  %v5601_v16 = vld [vmem:[%s8156_s7 + $0x54] sm:$0xf] }
 0x1a2   : > { %v668_v57 = vpop.xlane.xlu2 %667 }
 0x1a3   : > { %5883 = vrcp.f32 %v668_v57 }
 0x1a9   : > { %v5884_v61 = vpop.eup %5883 }
 0x1aa   : > { %v671_v60 = vpop.xlane.xlu2 %670  ;;  %v674_v2 = vmul.f32 %v5884_v61, %v5880_v52  ;;  %v4239_v52 = vld [vmem:[%s8156_s7 + $0x98] sm:$0xf0] }
 0x1ab   : > { %5885 = vrcp.f32 %v671_v60  ;;  %v4242_v53 = vor.u32 %v5609_v51, %v4239_v52  ;;  %v5605_v51 = vld [vmem:[%s8156_s7 + $0x74] sm:$0xf] }
 0x1b1   : > { %v5886_v1 = vpop.eup %5885 }
 0x1b2   : > { %v675_v3 = vmul.f32 %v5886_v1, %v5882_v55  ;;  %v4231_v55 = vld [vmem:[%s8156_s7 + $0x88] sm:$0xf0]  ;;  %v779_v1 = vsel %vm768_vm11, 1, %v5935_v0 }
 0x1b3   : > { %v4234_v56 = vor.u32 %v5607_v54, %v4231_v55  ;;  %v4223_v55 = vld [vmem:[%s8156_s7 + $0x78] sm:$0xf0] }
 0x1b4   : > { %v676_v6 = vpack.c.bf16 %v675_v3, %v674_v2  ;;  %v5661_v2 = vld [vmem:[%s8157_s8 + $0xb0] sm:$0xff]  ;;  %v731_v3 = vpop.f32.mrf.mxu1 }
 0x1b6   : > { %4157 = vmatmul.msk.bf16.vlgmr.msrb.gmra.mxu2 %vm653_vm7, %v676_v6  ;;  %4158 = vmatmul.msk.bf16.vlgmr.msra.gmra.mxu3 %vm653_vm7, %v676_v6 }
 0x1b7   : > { %4159 = vmatmul.msk.bf16.vlgmr.msra.gmra.mxu0 %vm653_vm7, %v676_v6  ;;  %1247 = vmatpush.bf16.msra.mxu3 %v4222_v4  ;;  %v780_v4 = vperm.slane %v779_v1, 0  ;;  %v773_v6 = vpop.permute.xlu0 %772  ;;  %v5638_v1 = vld [vmem:[%s8156_s7 + $0x174] sm:$0xf0] }
 0x1b8   : > { %847 = vmatpush.bf16.msrb.mxu2 %v6057_v18  ;;  %vm777_vm13 = vcmp.eq.s32.totalorder %v773_v6, 1  ;;  %v5603_v6 = vld [vmem:[%s8156_s7 + $0x64] sm:$0xf] }
 0x1b9   : > { %vm6233_vm12 = vcmp.eq.s32.totalorder %v780_v4, 1  ;;  %v5620_v4 = vld [vmem:[%s8156_s7 + $0xe4] sm:$0xf0] }
 0x1ba   : > { %vm782_vm14 = vmand %vm777_vm13, %vm6233_vm12 }
 0x1bb   : > { %1248 = vmatpush.bf16.msra.mxu3 %v4214_v10  ;;  %v5660_v10 = vld [vmem:[%s8157_s8 + $0xa8] sm:$0xff]  ;;  %vm783_vm0 = vmand %vm778_vm15, %vm6233_vm12 }
 0x1bf   : > { %1249 = vmatpush.bf16.msra.mxu3 %v4206_v13  ;;  %v5659_v13 = vld [vmem:[%s8157_s8 + $0xa0] sm:$0xff] }
 0x1c3   : > { %1250 = vmatpush.bf16.msra.mxu3 %v4198_v19  ;;  %v733_v19 = vpop.f32.mrf.mxu1 }
 0x1c6   : > { %744 = vmatmul.bf16.vlgmr.msra.gmra.mxu2 %v6051_v14  ;;  %758 = vmatmul.bf16.vlgmr.msrb.gmra.mxu3 %v6043_v9 }
 0x1c7   : > { %1251 = vmatpush.bf16.msra.mxu3 %v4190_v23 }
 0x1cb   : > { %1252 = vmatpush.bf16.msra.mxu3 %v4182_v26 }
 0x1cf   : > { %1253 = vmatpush.bf16.msra.mxu3 %v4174_v29 }
 0x1d3   : > { %1254 = vmatpush.bf16.msra.mxu3 %v4166_v34  ;;  %v544_v34 = vld [vmem:[%s6033_s20 + $0x8] sm:$0xf] }
 0x1d4   : > { %v856_v39 = vunpack.c.l.bf16 %v544_v34  ;;  %v4199_v34 = vld [vmem:[%s8156_s7 + $0x48] sm:$0xf0] }
 0x1d7   : > { %1303 = vmatpush.bf16.msrb.mxu3 %v4290_v35 }
 0x1db   : > { %1304 = vmatpush.bf16.msrb.mxu3 %v4282_v38 }
 0x1df   : > { %1305 = vmatpush.bf16.msrb.mxu3 %v4274_v41 }
 0x1e3   : > { %1306 = vmatpush.bf16.msrb.mxu3 %v4266_v44 }
 0x1e7   : > { %1307 = vmatpush.bf16.msrb.mxu3 %v4258_v47 }
 0x1eb   : > { %1308 = vmatpush.bf16.msrb.mxu3 %v4250_v50  ;;  %v5622_v50 = vld [vmem:[%s8156_s7 + $0xf4] sm:$0xf0] }
 0x1ec   : > { %v4286_v54 = vor.u32 %v5622_v50, %v4285_v49  ;;  %v4245_v49 = vld [vmem:[%s8156_s7 + $0xa0] sm:$0xf]  ;;  %v5612_v50 = vld [vmem:[%s8156_s7 + $0xa4] sm:$0xf0] }
 0x1ee   : > { %1261 = vmatpush.bf16.msra.mxu0 %v4286_v54  ;;  %v4183_v54 = vld [vmem:[%s8156_s7 + $0x28] sm:$0xf0] }
 0x1ef   : > { %1309 = vmatpush.bf16.msrb.mxu3 %v4242_v53 }
 0x1f3   : > { %1310 = vmatpush.bf16.msrb.mxu3 %v4234_v56  ;;  %v4349_v56 = vld [vmem:[%s8156_s7 + $0x170] sm:$0xf] }
 0x234   : > { %v6242_v22 = vpop.f32.mrf.mxu0 }
 0x235   : > { %v1333_v42 = vmul.f32 %v856_v39, %v6242_v22 }
 0x239   : > { %v6206_v57 = vpop.f32.mrf.mxu2  ;;  %v6208_v58 = vpop.f32.mrf.mxu3 }
 0x23c   : > { %v6264_v38 = vpop.f32.mrf.mxu0 }
 0x23d   : > { %v1336_v41 = vmul.f32 %v859_v37, %v6264_v38  ;;  %v4202_v37 = vor.u32 %v5599_v32, %v4199_v34  ;;  %v4515_v34 = vld [vmem:[%s8155_s6 + $0x84] sm:$0xf0] }
 0x23f   : > { %v1339_v43 = vpack.c.bf16 %v1336_v41, %v1333_v42  ;;  %v5614_v41 = vld [vmem:[%s8156_s7 + $0xb4] sm:$0xf0]  ;;  %v5597_v42 = vld [vmem:[%s8156_s7 + $0x34] sm:$0xf] }
 0x241   : > { %v6214_v60 = vpop.f32.mrf.mxu2  ;;  %v6216_v61 = vpop.f32.mrf.mxu3 }
 0x242   : > { %v6223_v63 = vpack.c.bf16 %v6214_v60, %v6206_v57  ;;  %v6250_v26 = vpack.c.bf16 %v6216_v61, %v6208_v58 }
 0x244   : > { %1255 = vmatmul.bf16.vlgmr.msra.gmra.mxu3 %v6223_v63 }
 0x245   : > { %1560 = vmatpush.bf16.msra.mxu3 %v5662_v62  ;;  %v4226_v62 = vor.u32 %v5605_v51, %v4223_v55  ;;  %v5595_v51 = vld [vmem:[%s8156_s7 + $0x24] sm:$0xf]  ;;  %v4309_v55 = vld [vmem:[%s8156_s7 + $0x120] sm:$0xf] }
 0x247   : > { %1289 = vmatpush.bf16.msra.mxu2 %v4226_v62 }
 0x249   : > { %v745_v7 = vpop.f32.mrf.mxu2  ;;  %v759_v8 = vpop.f32.mrf.mxu3  ;;  %1561 = vmatpush.bf16.msra.mxu3 %v5661_v2  ;;  %v4277_v2 = vld [vmem:[%s8156_s7 + $0xe0] sm:$0xf] }
 0x24a   : > { %v746_v11 = vadd.f32 %v745_v7, %v731_v3  ;;  %v4350_v3 = vor.u32 %v5638_v1, %v4349_v56  ;;  %v4215_v7 = vld [vmem:[%s8156_s7 + $0x68] sm:$0xf0]  ;;  %v5628_v56 = vld [vmem:[%s8156_s7 + $0x124] sm:$0xf0]  ;;  %v4237_v1 = vld [vmem:[%s8156_s7 + $0x90] sm:$0xf] }
 0x24b   : > { %v4310_v62 = vor.u32 %v5628_v56, %v4309_v55  ;;  %v5637_v56 = vld [vmem:[%s8156_s7 + $0x174] sm:$0xf] }
 0x24c   : > { %v760_v0 = vadd.f32 %v759_v8, %v746_v11  ;;  %v4278_v8 = vor.u32 %v5620_v4, %v4277_v2  ;;  %v4341_v11 = vld [vmem:[%s8156_s7 + $0x160] sm:$0xf]  ;;  %1275 = vmatpush.bf16.msra.mxu1 %v4350_v3  ;;  %v5610_v2 = vld [vmem:[%s8156_s7 + $0x94] sm:$0xf0]  ;;  %v5593_v3 = vld [vmem:[%s8156_s7 + $0x14] sm:$0xf] }
 0x24d   : > { %1562 = vmatpush.bf16.msra.mxu3 %v5660_v10  ;;  %v4218_v10 = vor.u32 %v5603_v6, %v4215_v7  ;;  %v4238_v4 = vor.u32 %v5610_v2, %v4237_v1  ;;  %v4175_v6 = vld [vmem:[%s8156_s7 + $0x18] sm:$0xf0]  ;;  %v4301_v7 = vld [vmem:[%s8156_s7 + $0x110] sm:$0xf] }
 0x24e   : > { %v764_v15 = vmul.f32 0.088388346, %v760_v0  ;;  %v4269_v0 = vld [vmem:[%s8156_s7 + $0xd0] sm:$0xf]  ;;  %1262 = vmatpush.bf16.msra.mxu0 %v4278_v8  ;;  %v5626_v8 = vld [vmem:[%s8156_s7 + $0x114] sm:$0xf0] }
 0x24f   : > { %1290 = vmatpush.bf16.msra.mxu2 %v4218_v10  ;;  %v4178_v10 = vor.u32 %v5593_v3, %v4175_v6 }
 0x250   : > { %v784_v20 = vsel %vm782_vm14, %v764_v15, -10000000.0  ;;  %v5618_v15 = vld [vmem:[%s8156_s7 + $0xd4] sm:$0xf0] }
 0x251   : > { %v747_v23 = vpop.f32.mrf.mxu2  ;;  %1563 = vmatpush.bf16.msra.mxu3 %v5659_v13  ;;  %v786_v24 = vsel %vm653_vm7, %v784_v20, -inf  ;;  %v761_v28 = vpop.f32.mrf.mxu3  ;;  %v4342_v13 = vor.u32 %v5636_v12, %v4341_v11  ;;  %v4302_v11 = vor.u32 %v5626_v8, %v4301_v7  ;;  %v5540_v12 = vld [vmem:[%s8155_s6 + $0xac] sm:$0xf]  ;;  %v5646_v7 = vld [vmem:[%s8157_s8 + $0x38] sm:$0xff]  ;;  %v5635_v8 = vld [vmem:[%s8156_s7 + $0x164] sm:$0xf] }
 0x252   : > { %v748_v27 = vadd.f32 %v747_v23, %v733_v19  ;;  %787 = vmax.xlane.f32.xlu2 %v786_v24  ;;  %v4207_v19 = vld [vmem:[%s8156_s7 + $0x58] sm:$0xf0]  ;;  %v5634_v23 = vld [vmem:[%s8156_s7 + $0x154] sm:$0xf0]  ;;  %v4270_v24 = vor.u32 %v5618_v15, %v4269_v0  ;;  %v4229_v15 = vld [vmem:[%s8156_s7 + $0x80] sm:$0xf] }
 0x253   : > { %1276 = vmatpush.bf16.msra.mxu1 %v4342_v13  ;;  %v4539_v0 = vld [vmem:[%s8155_s6 + $0xb4] sm:$0xf0] }
 0x254   : > { %v762_v29 = vadd.f32 %v761_v28, %v748_v27  ;;  %1311 = vmatmul.bf16.vlgmr.msrb.gmra.mxu3 %v6250_v26  ;;  %1263 = vmatpush.bf16.msra.mxu0 %v4270_v24  ;;  %v4542_v13 = vor.u32 %v5540_v12, %v4539_v0  ;;  %v5633_v12 = vld [vmem:[%s8156_s7 + $0x154] sm:$0xf]  ;;  %v4335_v0 = vld [vmem:[%s8156_s7 + $0x158] sm:$0xf0] }
 0x255   : > { %1564 = vmatpush.bf16.msra.mxu3 %v5658_v25  ;;  %v4210_v25 = vor.u32 %v5601_v16, %v4207_v19  ;;  %v5608_v16 = vld [vmem:[%s8156_s7 + $0x84] sm:$0xf0]  ;;  %v5591_v19 = vld [vmem:[%s8156_s7 + $0x4] sm:$0xf] }
 0x256   : > { %v765_v31 = vmul.f32 0.088388346, %v762_v29 }
 0x257   : > { %1291 = vmatpush.bf16.msra.mxu2 %v4210_v25  ;;  %v4293_v25 = vld [vmem:[%s8156_s7 + $0x100] sm:$0xf] }
 0x258   : > { %v785_v33 = vsel %vm783_vm0, %v765_v31, -10000000.0  ;;  %v5616_v31 = vld [vmem:[%s8156_s7 + $0xc4] sm:$0xf0] }
 0x259   : > { %1565 = vmatpush.bf16.msra.mxu3 %v5657_v30  ;;  %v789_v35 = vsel %vm653_vm7, %v785_v33, -inf  ;;  %v4261_v30 = vld [vmem:[%s8156_s7 + $0xc0] sm:$0xf] }
 0x25a   : > { %790 = vmax.xlane.f32.xlu0 %v789_v35  ;;  %v4325_v35 = vld [vmem:[%s8156_s7 + $0x140] sm:$0xf] }
 0x25b   : > { %1292 = vmatpush.bf16.msra.mxu2 %v4202_v37  ;;  %v4503_v37 = vld [vmem:[%s8155_s6 + $0x6c] sm:$0xf0] }
 0x25d   : > { %1566 = vmatpush.bf16.msra.mxu3 %v5656_v36  ;;  %v5632_v36 = vld [vmem:[%s8156_s7 + $0x144] sm:$0xf0] }
 0x25e   : > { %v4326_v39 = vor.u32 %v5632_v36, %v4325_v35  ;;  %v5531_v36 = vld [vmem:[%s8155_s6 + $0x64] sm:$0xf] }
 0x261   : > { %1567 = vmatpush.bf16.msra.mxu3 %v5655_v40  ;;  %v4253_v40 = vld [vmem:[%s8156_s7 + $0xb0] sm:$0xf] }
 0x264   : > { %1568 = vmatmul.bf16.vlgmr.msra.gmra.mxu3 %v1339_v43  ;;  %v4254_v43 = vor.u32 %v5614_v41, %v4253_v40  ;;  %v5528_v41 = vld [vmem:[%s8155_s6 + $0x4c] sm:$0xf] }
 0x265   : > { %2000 = vmatpush.bf16.msrb.mxu3 %v4542_v13  ;;  %v4338_v13 = vor.u32 %v5633_v12, %v4335_v0  ;;  %v5562_v12 = vld [vmem:[%s8155_s6 + $0x158] sm:$0xf0] }
 0x2c5   : > { %v788_v44 = vpop.xlane.xlu2 %787 }
 0x2c6   : > { %v792_v45 = vsub.f32 %v784_v20, %v788_v44  ;;  %v4333_v20 = vld [vmem:[%s8156_s7 + $0x150] sm:$0xf]  ;;  %v4191_v44 = vld [vmem:[%s8156_s7 + $0x38] sm:$0xf0] }
 0x2c7   : > { %v4334_v28 = vor.u32 %v5634_v23, %v4333_v20  ;;  %v4230_v20 = vor.u32 %v5608_v16, %v4229_v15  ;;  %v4167_v23 = vld [vmem:[%s8156_s7 + $0x8] sm:$0xf0] }
 0x2c8   : > { %v794_v46 = vmul.f32 1.442695, %v792_v45  ;;  %v4317_v45 = vld [vmem:[%s8156_s7 + $0x130] sm:$0xf]  ;;  %v4170_v24 = vor.u32 %v5591_v19, %v4167_v23  ;;  %v5652_v15 = vld [vmem:[%s8157_s8 + $0x68] sm:$0xff] }
 0x2c9   : > { %1277 = vmatpush.bf16.msra.mxu1 %v4334_v28  ;;  %v5624_v28 = vld [vmem:[%s8156_s7 + $0x104] sm:$0xf0]  ;;  %v5631_v19 = vld [vmem:[%s8156_s7 + $0x144] sm:$0xf] }
 0x2ca   : > { %5887 = vpow2.f32 %v794_v46  ;;  %v5630_v46 = vld [vmem:[%s8156_s7 + $0x134] sm:$0xf0]  ;;  %v5644_v16 = vld [vmem:[%s8157_s8 + $0x28] sm:$0xff] }
 0x2cd   : > { %v791_v47 = vpop.xlane.xlu0 %790  ;;  %1278 = vmatpush.bf16.msra.mxu1 %v4326_v39  ;;  %v4506_v39 = vor.u32 %v5531_v36, %v4503_v37  ;;  %v5641_v36 = vld [vmem:[%s8157_s8 + $0x10] sm:$0xff] }
 0x2ce   : > { %v793_v48 = vsub.f32 %v785_v33, %v791_v47  ;;  %v4262_v33 = vor.u32 %v5616_v31, %v4261_v30  ;;  %v4194_v47 = vor.u32 %v5597_v42, %v4191_v44  ;;  %v5537_v30 = vld [vmem:[%s8155_s6 + $0x94] sm:$0xf]  ;;  %v4527_v31 = vld [vmem:[%s8155_s6 + $0x9c] sm:$0xf0]  ;;  %v4491_v42 = vld [vmem:[%s8155_s6 + $0x54] sm:$0xf0] }
 0x2cf   : > { %v4530_v32 = vor.u32 %v5537_v30, %v4527_v31  ;;  %v5525_v44 = vld [vmem:[%s8155_s6 + $0x34] sm:$0xf]  ;;  %v5650_v31 = vld [vmem:[%s8157_s8 + $0x58] sm:$0xff]  ;;  %v545_v37 = vld [vmem:[%s6033_s20 + $0xc] sm:$0xff] }
 0x2d0   : > { %v6280_v52 = vpop.eup %5887  ;;  %v796_v53 = vmul.f32 1.442695, %v793_v48  ;;  %1264 = vmatpush.bf16.msra.mxu0 %v4262_v33  ;;  %v4318_v48 = vor.u32 %v5630_v46, %v4317_v45  ;;  %1293 = vmatpush.bf16.msra.mxu2 %v4194_v47  ;;  %v5534_v33 = vld [vmem:[%s8155_s6 + $0x7c] sm:$0xf]  ;;  %v4479_v45 = vld [vmem:[%s8155_s6 + $0x3c] sm:$0xf0] }
 0x2d1   : > { %v798_v59 = vsel %vm653_vm7, %v6280_v52, 0.0  ;;  %2001 = vmatpush.bf16.msrb.mxu3 %v4530_v32  ;;  %v4518_v35 = vor.u32 %v5534_v33, %v4515_v34  ;;  %v4482_v46 = vor.u32 %v5525_v44, %v4479_v45  ;;  %v6536_v32 = vpack.c.bf16 %v6264_v38, %v6242_v22  ;;  %v5642_v33 = vld [vmem:[%s8157_s8 + $0x18] sm:$0xff]  ;;  %v5627_v34 = vld [vmem:[%s8156_s7 + $0x124] sm:$0xf]  ;;  %v5649_v38 = vld [vmem:[%s8157_s8 + $0x50] sm:$0xff] }
 0x2d2   : > { %5889 = vpow2.f32 %v796_v53  ;;  %799 = vadd.xlane.f32.xlu2 %v798_v59  ;;  %1279 = vmatpush.bf16.msra.mxu1 %v4318_v48  ;;  %v4246_v53 = vor.u32 %v5612_v50, %v4245_v49  ;;  %v4186_v59 = vor.u32 %v5595_v51, %v4183_v54  ;;  %v5522_v48 = vld [vmem:[%s8155_s6 + $0x1c] sm:$0xf]  ;;  %v4467_v49 = vld [vmem:[%s8155_s6 + $0x24] sm:$0xf0]  ;;  %v5519_v51 = vld [vmem:[%s8155_s6 + $0x4] sm:$0xf] }
 0x2d3   : > { %v4470_v50 = vor.u32 %v5522_v48, %v4467_v49  ;;  %v5623_v44 = vld [vmem:[%s8156_s7 + $0x104] sm:$0xf]  ;;  %v4295_v45 = vld [vmem:[%s8156_s7 + $0x108] sm:$0xf0]  ;;  %v5541_v49 = vld [vmem:[%s8155_s6 + $0xb0] sm:$0xf0] }
 0x2d4   : > { %1265 = vmatpush.bf16.msra.mxu0 %v4254_v43  ;;  %1294 = vmatpush.bf16.msra.mxu2 %v4186_v59  ;;  %v4494_v43 = vor.u32 %v5528_v41, %v4491_v42  ;;  %v4351_v59 = vld [vmem:[%s8156_s7 + $0x178] sm:$0xf0]  ;;  %v5648_v41 = vld [vmem:[%s8157_s8 + $0x48] sm:$0xff]  ;;  %v857_v42 = vunpack.c.l.bf16 %v545_v37 }
 0x2d5   : > { %2002 = vmatpush.bf16.msrb.mxu3 %v4518_v35  ;;  %v4354_v3 = vor.u32 %v5637_v56, %v4351_v59  ;;  %v4311_v35 = vld [vmem:[%s8156_s7 + $0x128] sm:$0xf0]  ;;  %v5565_v56 = vld [vmem:[%s8155_s6 + $0x170] sm:$0xf0] }
 0x2d6   : > { %1280 = vmatpush.bf16.msra.mxu1 %v4310_v62  ;;  %v4314_v22 = vor.u32 %v5627_v34, %v4311_v35  ;;  %v1334_v59 = vmul.f32 %v857_v42, %v6214_v60  ;;  %v5538_v60 = vld [vmem:[%s8155_s6 + $0x98] sm:$0xf0]  ;;  %v4501_v35 = vld [vmem:[%s8155_s6 + $0x60] sm:$0xf] }
 0x2d8   : > { %v6329_v27 = vpop.eup %5889  ;;  %1266 = vmatpush.bf16.msra.mxu0 %v4246_v53  ;;  %1295 = vmatpush.bf16.msra.mxu2 %v4178_v10  ;;  %v4455_v53 = vld [vmem:[%s8155_s6 + $0xc] sm:$0xf0] }
 0x2d9   : > { %v801_v29 = vsel %vm653_vm7, %v6329_v27, 0.0  ;;  %2003 = vmatpush.bf16.msrb.mxu3 %v4506_v39  ;;  %v4458_v55 = vor.u32 %v5519_v51, %v4455_v53  ;;  %v5653_v10 = vld [vmem:[%s8157_s8 + $0x70] sm:$0xff]  ;;  %v543_v39 = vld [vmem:[%s6033_s20] sm:$0xff] }
 0x2da   : > { %802 = vadd.xlane.f32.xlu2 %v801_v29  ;;  %1281 = vmatpush.bf16.msra.mxu1 %v4302_v11  ;;  %v4294_v29 = vor.u32 %v5624_v28, %v4293_v25  ;;  %v5645_v11 = vld [vmem:[%s8157_s8 + $0x30] sm:$0xff]  ;;  %v5643_v25 = vld [vmem:[%s8157_s8 + $0x20] sm:$0xff]  ;;  %v854_v48 = vunpack.c.l.bf16 %v543_v39  ;;  %v855_v53 = vunpack.c.h.bf16 %v543_v39  ;;  %v5556_v39 = vld [vmem:[%s8155_s6 + $0x128] sm:$0xf0] }
 0x2db   : > { %v5629_v28 = vld [vmem:[%s8156_s7 + $0x134] sm:$0xf] }
 0x2dc   : > { %1267 = vmatpush.bf16.msra.mxu0 %v4238_v4  ;;  %1296 = vmatpush.bf16.msra.mxu2 %v4170_v24  ;;  %v5654_v4 = vld [vmem:[%s8157_s8 + $0x78] sm:$0xff]  ;;  %v5651_v24 = vld [vmem:[%s8157_s8 + $0x60] sm:$0xff]  ;;  %v5589_v51 = vld [vmem:[%s8155_s6 + $0x230] sm:$0xf0] }
 0x2dd   : > { %2004 = vmatpush.bf16.msrb.mxu3 %v4494_v43  ;;  %v5640_v43 = vld [vmem:[%s8157_s8 + $0x8] sm:$0xff] }
 0x2de   : > { %1282 = vmatpush.bf16.msra.mxu1 %v4294_v29  ;;  %v4319_v29 = vld [vmem:[%s8156_s7 + $0x138] sm:$0xf0] }
 0x2df   : > { %v4322_v30 = vor.u32 %v5629_v28, %v4319_v29  ;;  %v4629_v28 = vld [vmem:[%s8155_s6 + $0x158] sm:$0xf] }
 0x2e0   : > { %1268 = vmatpush.bf16.msra.mxu0 %v4230_v20  ;;  %v4327_v20 = vld [vmem:[%s8156_s7 + $0x148] sm:$0xf0]  ;;  %v4609_v29 = vld [vmem:[%s8155_s6 + $0x138] sm:$0xf] }
 0x2e1   : > { %2005 = vmatpush.bf16.msrb.mxu3 %v4482_v46  ;;  %v4330_v23 = vor.u32 %v5631_v19, %v4327_v20  ;;  %v858_v46 = vunpack.c.h.bf16 %v545_v37  ;;  %v5535_v20 = vld [vmem:[%s8155_s6 + $0x80] sm:$0xf0]  ;;  %v4597_v37 = vld [vmem:[%s8155_s6 + $0x120] sm:$0xf] }
 0x2e5   : > { %2006 = vmatpush.bf16.msrb.mxu3 %v4470_v50  ;;  %v4729_v50 = vld [vmem:[%s8155_s6 + $0x228] sm:$0xf] }
 0x2e9   : > { %2007 = vmatpush.bf16.msrb.mxu3 %v4458_v55  ;;  %v4633_v55 = vld [vmem:[%s8155_s6 + $0x168] sm:$0xf] }
 0x2ec   : > { %2008 = vmatmul.bf16.vlgmr.msrb.gmra.mxu3 %v6055_v17 }
 0x345   : > { %v800_v40 = vpop.xlane.xlu2 %799 }
 0x346   : > { %5891 = vrcp.f32 %v800_v40 }
 0x34c   : > { %v5892_v54 = vpop.eup %5891 }
 0x34d   : > { %v803_v47 = vpop.xlane.xlu2 %802  ;;  %v806_v1 = vmul.f32 %v5892_v54, %v6280_v52  ;;  %v4343_v52 = vld [vmem:[%s8156_s7 + $0x168] sm:$0xf0]  ;;  %v4298_v54 = vor.u32 %v5623_v44, %v4295_v45  ;;  %v4489_v44 = vld [vmem:[%s8155_s6 + $0x48] sm:$0xf]  ;;  %v5529_v45 = vld [vmem:[%s8155_s6 + $0x50] sm:$0xf0] }
 0x34e   : > { %5893 = vrcp.f32 %v803_v47  ;;  %v4537_v47 = vld [vmem:[%s8155_s6 + $0xa8] sm:$0xf] }
 0x354   : > { %v5894_v62 = vpop.eup %5893 }
 0x355   : > { %v807_v2 = vmul.f32 %v5894_v62, %v6329_v27  ;;  %v4346_v27 = vor.u32 %v5635_v8, %v4343_v52  ;;  %v5647_v62 = vld [vmem:[%s8157_s8 + $0x40] sm:$0xff]  ;;  %v1331_v8 = vmul.f32 %v854_v48, %v6206_v57  ;;  %v4634_v52 = vor.u32 %v5565_v56, %v4633_v55  ;;  %v4621_v57 = vld [vmem:[%s8155_s6 + $0x150] sm:$0xf]  ;;  %v5577_v48 = vld [vmem:[%s8155_s6 + $0x1d0] sm:$0xf0] }
 0x356   : > { %v4490_v55 = vor.u32 %v5529_v45, %v4489_v44  ;;  %v5561_v44 = vld [vmem:[%s8155_s6 + $0x154] sm:$0xf]  ;;  %v4623_v45 = vld [vmem:[%s8155_s6 + $0x15c] sm:$0xf0] }
 0x357   : > { %v808_v6 = vpack.c.bf16 %v807_v2, %v806_v1  ;;  %v5639_v1 = vld [vmem:[%s8157_s8] sm:$0xff]  ;;  %v1335_v2 = vmul.f32 %v858_v46, %v6216_v61  ;;  %v5586_v61 = vld [vmem:[%s8155_s6 + $0x218] sm:$0xf0]  ;;  %v1337_v0 = vpack.c.bf16 %v1334_v59, %v1331_v8  ;;  %v4598_v46 = vor.u32 %v5556_v39, %v4597_v37  ;;  %v4477_v59 = vld [vmem:[%s8155_s6 + $0x30] sm:$0xf] }
 0x359   : > { %4160 = vmatmul.msk.bf16.vlgmr.msrb.gmra.mxu0 %vm653_vm7, %v808_v6  ;;  %4161 = vmatmul.msk.bf16.vlgmr.msrb.gmra.mxu1 %vm653_vm7, %v808_v6 }
 0x35a   : > { %4162 = vmatmul.msk.bf16.vlgmr.msrb.gmra.mxu2 %vm653_vm7, %v808_v6  ;;  %1317 = vmatpush.bf16.msrb.mxu0 %v4354_v3  ;;  %v4538_v3 = vor.u32 %v5541_v49, %v4537_v47  ;;  %v4525_v6 = vld [vmem:[%s8155_s6 + $0x90] sm:$0xf]  ;;  %v4681_v47 = vld [vmem:[%s8155_s6 + $0x1c8] sm:$0xf] }
 0x35b   : > { %1546 = vmatpush.bf16.msrb.mxu2 %v5654_v4  ;;  %1532 = vmatpush.bf16.msrb.mxu1 %v5646_v7  ;;  %v4730_v4 = vor.u32 %v5589_v51, %v4729_v50  ;;  %v4717_v7 = vld [vmem:[%s8155_s6 + $0x210] sm:$0xf]  ;;  %v4605_v49 = vld [vmem:[%s8155_s6 + $0x128] sm:$0xf]  ;;  %v5553_v51 = vld [vmem:[%s8155_s6 + $0x110] sm:$0xf0]  ;;  %v4682_v56 = vor.u32 %v5577_v48, %v4681_v47 }
 0x35c   : > { %v4718_v19 = vor.u32 %v5586_v61, %v4717_v7  ;;  %v4585_v50 = vld [vmem:[%s8155_s6 + $0x108] sm:$0xf]  ;;  %v5554_v7 = vld [vmem:[%s8155_s6 + $0x118] sm:$0xf0]  ;;  %v4533_v47 = vld [vmem:[%s8155_s6 + $0x98] sm:$0xf] }
 0x35d   : > { %v5539_v48 = vld [vmem:[%s8155_s6 + $0xa0] sm:$0xf0] }
 0x35e   : > { %1318 = vmatpush.bf16.msrb.mxu0 %v4346_v27  ;;  %v4641_v27 = vld [vmem:[%s8155_s6 + $0x170] sm:$0xf] }
 0x35f   : > { %1547 = vmatpush.bf16.msrb.mxu2 %v5653_v10  ;;  %1533 = vmatpush.bf16.msrb.mxu1 %v5645_v11  ;;  %v5566_v10 = vld [vmem:[%s8155_s6 + $0x178] sm:$0xf0]  ;;  %v1332_v11 = vmul.f32 %v855_v53, %v6208_v58  ;;  %v4513_v58 = vld [vmem:[%s8155_s6 + $0x78] sm:$0xf]  ;;  %v5557_v53 = vld [vmem:[%s8155_s6 + $0x130] sm:$0xf0] }
 0x362   : > { %1319 = vmatpush.bf16.msrb.mxu0 %v4338_v13  ;;  %v4642_v13 = vor.u32 %v5566_v10, %v4641_v27  ;;  %v4465_v27 = vld [vmem:[%s8155_s6 + $0x18] sm:$0xf]  ;;  %v5523_v10 = vld [vmem:[%s8155_s6 + $0x20] sm:$0xf0] }
 0x363   : > { %1548 = vmatpush.bf16.msrb.mxu2 %v5652_v15  ;;  %1534 = vmatpush.bf16.msrb.mxu1 %v5644_v16  ;;  %v1338_v15 = vpack.c.bf16 %v1335_v2, %v1332_v11  ;;  %v4526_v16 = vor.u32 %v5538_v60, %v4525_v6  ;;  %v4669_v2 = vld [vmem:[%s8155_s6 + $0x1b0] sm:$0xf]  ;;  %v5550_v60 = vld [vmem:[%s8155_s6 + $0xf8] sm:$0xf0] }
 0x364   : > { %2056 = vmatpush.bf16.msra.mxu3 %v4642_v13  ;;  %v4573_v6 = vld [vmem:[%s8155_s6 + $0xf0] sm:$0xf]  ;;  %v4561_v13 = vld [vmem:[%s8155_s6 + $0xd8] sm:$0xf] }
 0x365   : > { %v4574_v11 = vor.u32 %v5550_v60, %v4573_v6  ;;  %v4707_v6 = vld [vmem:[%s8155_s6 + $0x204] sm:$0xf0] }
 0x366   : > { %1320 = vmatpush.bf16.msrb.mxu0 %v4330_v23  ;;  %v4622_v23 = vor.u32 %v5562_v12, %v4621_v57  ;;  %v4657_v57 = vld [vmem:[%s8155_s6 + $0x198] sm:$0xf]  ;;  %v5571_v12 = vld [vmem:[%s8155_s6 + $0x1a0] sm:$0xf0] }
 0x367   : > { %1549 = vmatpush.bf16.msrb.mxu2 %v5651_v24  ;;  %1535 = vmatpush.bf16.msrb.mxu1 %v5643_v25  ;;  %v4705_v24 = vld [vmem:[%s8155_s6 + $0x1f8] sm:$0xf]  ;;  %v5583_v25 = vld [vmem:[%s8155_s6 + $0x200] sm:$0xf0] }
 0x368   : > { %v4706_v34 = vor.u32 %v5583_v25, %v4705_v24  ;;  %v5520_v24 = vld [vmem:[%s8155_s6 + $0x8] sm:$0xf0]  ;;  %v4645_v25 = vld [vmem:[%s8155_s6 + $0x180] sm:$0xf] }
 0x369   : > { %1269 = vmatmul.bf16.vlgmr.msra.gmra.mxu0 %v6250_v26  ;;  %1283 = vmatmul.bf16.vlgmr.msra.gmra.mxu1 %v6536_v32  ;;  %v5625_v26 = vld [vmem:[%s8156_s7 + $0x114] sm:$0xf] }
 0x36a   : > { %1297 = vmatmul.bf16.vlgmr.msra.gmra.mxu2 %v6223_v63  ;;  %1321 = vmatpush.bf16.msrb.mxu0 %v4322_v30  ;;  %v4303_v63 = vld [vmem:[%s8156_s7 + $0x118] sm:$0xf0]  ;;  %v5559_v30 = vld [vmem:[%s8155_s6 + $0x140] sm:$0xf0] }
 0x36b   : > { %1550 = vmatpush.bf16.msrb.mxu2 %v5650_v31  ;;  %1536 = vmatpush.bf16.msrb.mxu1 %v5642_v33  ;;  %v4306_v40 = vor.u32 %v5625_v26, %v4303_v63  ;;  %v5563_v31 = vld [vmem:[%s8155_s6 + $0x160] sm:$0xf0]  ;;  %v4514_v33 = vor.u32 %v5535_v20, %v4513_v58  ;;  %v5580_v26 = vld [vmem:[%s8155_s6 + $0x1e8] sm:$0xf0]  ;;  %v4617_v63 = vld [vmem:[%s8155_s6 + $0x140] sm:$0xf]  ;;  %v4466_v20 = vor.u32 %v5523_v10, %v4465_v27 }
 0x36e   : > { %1322 = vmatpush.bf16.msrb.mxu0 %v4314_v22  ;;  %v5532_v22 = vld [vmem:[%s8155_s6 + $0x68] sm:$0xf0] }
 0x36f   : > { %1551 = vmatpush.bf16.msrb.mxu2 %v5649_v38  ;;  %1537 = vmatpush.bf16.msrb.mxu1 %v5641_v36  ;;  %v4610_v38 = vor.u32 %v5559_v30, %v4609_v29  ;;  %v4693_v36 = vld [vmem:[%s8155_s6 + $0x1e0] sm:$0xf]  ;;  %v4502_v42 = vor.u32 %v5532_v22, %v4501_v35  ;;  %v5564_v30 = vld [vmem:[%s8155_s6 + $0x16c] sm:$0xf] }
 0x370   : > { %v5548_v35 = vld [vmem:[%s8155_s6 + $0xe8] sm:$0xf0]  ;;  %v4549_v22 = vld [vmem:[%s8155_s6 + $0xc0] sm:$0xf] }
 0x372   : > { %1323 = vmatpush.bf16.msrb.mxu0 %v4306_v40  ;;  %v5560_v40 = vld [vmem:[%s8155_s6 + $0x148] sm:$0xf0] }
 0x373   : > { %1552 = vmatpush.bf16.msrb.mxu2 %v5648_v41  ;;  %1538 = vmatpush.bf16.msrb.mxu1 %v5640_v43  ;;  %v4618_v41 = vor.u32 %v5560_v40, %v4617_v63  ;;  %v4694_v43 = vor.u32 %v5580_v26, %v4693_v36  ;;  %v5588_v40 = vld [vmem:[%s8155_s6 + $0x22c] sm:$0xf] }
 0x376   : > { %1324 = vmatpush.bf16.msrb.mxu0 %v4298_v54  ;;  %v4606_v54 = vor.u32 %v5557_v53, %v4605_v49  ;;  %v5585_v53 = vld [vmem:[%s8155_s6 + $0x214] sm:$0xf] }
 0x377   : > { %1553 = vmatpush.bf16.msrb.mxu2 %v5647_v62  ;;  %1539 = vmatpush.bf16.msrb.mxu1 %v5639_v1  ;;  %v5526_v62 = vld [vmem:[%s8155_s6 + $0x38] sm:$0xf0]  ;;  %v4586_v1 = vor.u32 %v5553_v51, %v4585_v50  ;;  %v4626_v51 = vor.u32 %v5561_v44, %v4623_v45  ;;  %v4461_v44 = vld [vmem:[%s8155_s6 + $0x8] sm:$0xf]  ;;  %v5521_v45 = vld [vmem:[%s8155_s6 + $0x10] sm:$0xf0] }
 0x379   : > { %1325 = vmatmul.bf16.vlgmr.msrb.gmra.mxu0 %v6536_v32  ;;  %v4630_v32 = vor.u32 %v5563_v31, %v4629_v28  ;;  %v5568_v28 = vld [vmem:[%s8155_s6 + $0x188] sm:$0xf0]  ;;  %v4635_v31 = vld [vmem:[%s8155_s6 + $0x174] sm:$0xf0] }
 0x37a   : > { %1958 = vmatpush.bf16.msra.mxu0 %v4538_v3  ;;  %1540 = vmatmul.bf16.vlgmr.msrb.gmra.mxu1 %v1337_v0  ;;  %v5574_v3 = vld [vmem:[%s8155_s6 + $0x1b8] sm:$0xf0]  ;;  %v4581_v0 = vld [vmem:[%s8155_s6 + $0xf8] sm:$0xf]  ;;  %v4646_v63 = vor.u32 %v5568_v28, %v4645_v25  ;;  %v4638_v37 = vor.u32 %v5564_v30, %v4635_v31  ;;  %v5549_v25 = vld [vmem:[%s8155_s6 + $0xf4] sm:$0xf] }
 0x37b   : > { %1986 = vmatpush.bf16.msra.mxu2 %v4730_v4  ;;  %1972 = vmatpush.bf16.msra.mxu1 %v4634_v52  ;;  %v4593_v4 = vld [vmem:[%s8155_s6 + $0x110] sm:$0xf]  ;;  %v4478_v52 = vor.u32 %v5526_v62, %v4477_v59  ;;  %v4670_v61 = vor.u32 %v5574_v3, %v4669_v2  ;;  %v4611_v59 = vld [vmem:[%s8155_s6 + $0x144] sm:$0xf0]  ;;  %v4521_v62 = vld [vmem:[%s8155_s6 + $0x80] sm:$0xf] }
 0x37c   : > { %1554 = vmatmul.bf16.vlgmr.msrb.gmra.mxu2 %v1338_v15  ;;  %2057 = vmatpush.bf16.msra.mxu3 %v4630_v32  ;;  %v4594_v8 = vor.u32 %v5554_v7, %v4593_v4  ;;  %v5547_v15 = vld [vmem:[%s8155_s6 + $0xe0] sm:$0xf0]  ;;  %v4569_v32 = vld [vmem:[%s8155_s6 + $0xe0] sm:$0xf]  ;;  %v5582_v4 = vld [vmem:[%s8155_s6 + $0x1fc] sm:$0xf] }
 0x37d   : > { %v4562_v29 = vor.u32 %v5547_v15, %v4561_v13  ;;  %v4570_v36 = vor.u32 %v5548_v35, %v4569_v32  ;;  %v5555_v7 = vld [vmem:[%s8155_s6 + $0x124] sm:$0xf]  ;;  %v4710_v27 = vor.u32 %v5582_v4, %v4707_v6  ;;  %v4587_v13 = vld [vmem:[%s8155_s6 + $0x114] sm:$0xf0]  ;;  %v4497_v15 = vld [vmem:[%s8155_s6 + $0x50] sm:$0xf] }
 0x37e   : > { %1959 = vmatpush.bf16.msra.mxu0 %v4526_v16  ;;  %v5551_v16 = vld [vmem:[%s8155_s6 + $0x100] sm:$0xf0]  ;;  %v4575_v28 = vld [vmem:[%s8155_s6 + $0xfc] sm:$0xf0]  ;;  %v4701_v4 = vld [vmem:[%s8155_s6 + $0x1e8] sm:$0xf] }
 0x37f   : > { %1987 = vmatpush.bf16.msra.mxu2 %v4718_v19  ;;  %1973 = vmatpush.bf16.msra.mxu1 %v4622_v23  ;;  %v4453_v19 = vld [vmem:[%s8155_s6] sm:$0xf]  ;;  %v4582_v58 = vor.u32 %v5551_v16, %v4581_v0  ;;  %v4658_v23 = vor.u32 %v5571_v12, %v4657_v57  ;;  %v4695_v57 = vld [vmem:[%s8155_s6 + $0x1ec] sm:$0xf0]  ;;  %v5552_v0 = vld [vmem:[%s8155_s6 + $0x10c] sm:$0xf]  ;;  %v4578_v32 = vor.u32 %v5549_v25, %v4575_v28 }
 0x380   : > { %2058 = vmatpush.bf16.msra.mxu3 %v4618_v41  ;;  %v4454_v26 = vor.u32 %v5520_v24, %v4453_v19  ;;  %v4731_v41 = vld [vmem:[%s8155_s6 + $0x234] sm:$0xf0]  ;;  %v5530_v16 = vld [vmem:[%s8155_s6 + $0x58] sm:$0xf0]  ;;  %v5527_v30 = vld [vmem:[%s8155_s6 + $0x40] sm:$0xf0] }
 0x381   : > { %v4734_v49 = vor.u32 %v5588_v40, %v4731_v41  ;;  %v4498_v24 = vor.u32 %v5530_v16, %v4497_v15  ;;  %v4659_v40 = vld [vmem:[%s8155_s6 + $0x1a4] sm:$0xf0]  ;;  %v5581_v6 = vld [vmem:[%s8155_s6 + $0x1f0] sm:$0xf0]  ;;  %v4869_v28 = vld [vmem:[%s8156_s7 + $0x40] sm:$0xf] }
 0x382   : > { %1960 = vmatpush.bf16.msra.mxu0 %v4514_v33  ;;  %v4545_v33 = vld [vmem:[%s8155_s6 + $0xb0] sm:$0xf] }
 0x383   : > { %1988 = vmatpush.bf16.msra.mxu2 %v4706_v34  ;;  %1974 = vmatpush.bf16.msra.mxu1 %v4610_v38  ;;  %v5542_v34 = vld [vmem:[%s8155_s6 + $0xb8] sm:$0xf0]  ;;  %v5544_v38 = vld [vmem:[%s8155_s6 + $0xc8] sm:$0xf0] }
 0x384   : > { %2059 = vmatpush.bf16.msra.mxu3 %v4606_v54  ;;  %v4546_v39 = vor.u32 %v5542_v34, %v4545_v33  ;;  %v4719_v54 = vld [vmem:[%s8155_s6 + $0x21c] sm:$0xf0]  ;;  %v5573_v33 = vld [vmem:[%s8155_s6 + $0x1b4] sm:$0xf] }
 0x385   : > { %v4722_v2 = vor.u32 %v5585_v53, %v4719_v54  ;;  %v4671_v34 = vld [vmem:[%s8155_s6 + $0x1bc] sm:$0xf0]  ;;  %v4462_v53 = vor.u32 %v5521_v45, %v4461_v44 }
 0x386   : > { %1961 = vmatpush.bf16.msra.mxu0 %v4502_v42  ;;  %v4557_v42 = vld [vmem:[%s8155_s6 + $0xc8] sm:$0xf] }
 0x387   : > { %1989 = vmatpush.bf16.msra.mxu2 %v4694_v43  ;;  %1975 = vmatpush.bf16.msra.mxu1 %v4598_v46  ;;  %v4550_v43 = vor.u32 %v5544_v38, %v4549_v22  ;;  %v5545_v46 = vld [vmem:[%s8155_s6 + $0xd0] sm:$0xf0]  ;;  %v5546_v22 = vld [vmem:[%s8155_s6 + $0xdc] sm:$0xf]  ;;  %v4563_v38 = vld [vmem:[%s8155_s6 + $0xe4] sm:$0xf0] }
 0x388   : > { %2060 = vmatpush.bf16.msra.mxu3 %v4594_v8  ;;  %v4558_v50 = vor.u32 %v5545_v46, %v4557_v42  ;;  %v4599_v8 = vld [vmem:[%s8155_s6 + $0x12c] sm:$0xf0]  ;;  %v5543_v42 = vld [vmem:[%s8155_s6 + $0xc4] sm:$0xf] }
 0x389   : > { %v4602_v10 = vor.u32 %v5555_v7, %v4599_v8  ;;  %v4737_v46 = vld [vmem:[%s8155_s6 + $0x230] sm:$0xf]  ;;  %v4677_v8 = vld [vmem:[%s8155_s6 + $0x1b8] sm:$0xf] }
 0x38a   : > { %1962 = vmatpush.bf16.msra.mxu0 %v4490_v55  ;;  %v4534_v55 = vor.u32 %v5539_v48, %v4533_v47  ;;  %v5590_v47 = vld [vmem:[%s8155_s6 + $0x238] sm:$0xf0] }
 0x38b   : > { %1990 = vmatpush.bf16.msra.mxu2 %v4682_v56  ;;  %1976 = vmatpush.bf16.msra.mxu1 %v4586_v1  ;;  %v5558_v56 = vld [vmem:[%s8155_s6 + $0x13c] sm:$0xf]  ;;  %v5536_v1 = vld [vmem:[%s8155_s6 + $0x88] sm:$0xf0]  ;;  %v4738_v54 = vor.u32 %v5590_v47, %v4737_v46 }
 0x38c   : > { %2061 = vmatpush.bf16.msra.mxu3 %v4582_v58  ;;  %v4614_v3 = vor.u32 %v5558_v56, %v4611_v59  ;;  %v4522_v60 = vor.u32 %v5536_v1, %v4521_v62  ;;  %v4590_v58 = vor.u32 %v5552_v0, %v4587_v13  ;;  %v5587_v56 = vld [vmem:[%s8155_s6 + $0x220] sm:$0xf0]  ;;  %v4713_v1 = vld [vmem:[%s8155_s6 + $0x200] sm:$0xf]  ;;  %v4893_v0 = vld [vmem:[%s8156_s7 + $0x70] sm:$0xf] }
 0x38d   : > { %v5774_v13 = vld [vmem:[%s8156_s7 + $0x74] sm:$0xf0] }
 0x38e   : > { %1963 = vmatpush.bf16.msra.mxu0 %v4478_v52  ;;  %v4509_v52 = vld [vmem:[%s8155_s6 + $0x68] sm:$0xf]  ;;  %v4894_v16 = vor.u32 %v5774_v13, %v4893_v0  ;;  %v7094_v0 = vpop.f32.mrf.mxu3  ;;  %v5783_v13 = vld [vmem:[%s8156_s7 + $0xc4] sm:$0xf] }
 0x38f   : > { %1991 = vmatpush.bf16.msra.mxu2 %v4670_v61  ;;  %1977 = vmatpush.bf16.msra.mxu1 %v4574_v11  ;;  %v5533_v61 = vld [vmem:[%s8155_s6 + $0x70] sm:$0xf0]  ;;  %v5579_v11 = vld [vmem:[%s8155_s6 + $0x1e4] sm:$0xf] }
 0x390   : > { %2062 = vmatpush.bf16.msra.mxu3 %v4570_v36  ;;  %v4510_v12 = vor.u32 %v5533_v61, %v4509_v52  ;;  %v4698_v19 = vor.u32 %v5579_v11, %v4695_v57  ;;  %v4473_v36 = vld [vmem:[%s8155_s6 + $0x20] sm:$0xf]  ;;  %v5575_v52 = vld [vmem:[%s8155_s6 + $0x1c0] sm:$0xf0]  ;;  %v4653_v57 = vld [vmem:[%s8155_s6 + $0x188] sm:$0xf] }
 0x391   : > { %v4678_v61 = vor.u32 %v5575_v52, %v4677_v8 }
 0x392   : > { %1964 = vmatpush.bf16.msra.mxu0 %v4466_v20  ;;  %v5576_v20 = vld [vmem:[%s8155_s6 + $0x1cc] sm:$0xf] }
 0x393   : > { %1992 = vmatpush.bf16.msra.mxu2 %v4658_v23  ;;  %1978 = vmatpush.bf16.msra.mxu1 %v4562_v29  ;;  %v4683_v23 = vld [vmem:[%s8155_s6 + $0x1d4] sm:$0xf0] }
 0x394   : > { %2063 = vmatpush.bf16.msra.mxu3 %v4558_v50  ;;  %v4485_v29 = vld [vmem:[%s8155_s6 + $0x38] sm:$0xf]  ;;  %v4686_v31 = vor.u32 %v5576_v20, %v4683_v23  ;;  %v5567_v50 = vld [vmem:[%s8155_s6 + $0x184] sm:$0xf]  ;;  %v4877_v23 = vld [vmem:[%s8156_s7 + $0x50] sm:$0xf] }
 0x395   : > { %v4486_v35 = vor.u32 %v5527_v30, %v4485_v29  ;;  %v5768_v29 = vld [vmem:[%s8156_s7 + $0x44] sm:$0xf0] }
 0x396   : > { %1965 = vmatpush.bf16.msra.mxu0 %v4454_v26  ;;  %v5524_v26 = vld [vmem:[%s8155_s6 + $0x28] sm:$0xf0] }
 0x397   : > { %1993 = vmatpush.bf16.msra.mxu2 %v4646_v63  ;;  %1979 = vmatpush.bf16.msra.mxu1 %v4550_v43  ;;  %v4674_v63 = vor.u32 %v5573_v33, %v4671_v34  ;;  %v4474_v41 = vor.u32 %v5524_v26, %v4473_v36  ;;  %v4551_v43 = vld [vmem:[%s8155_s6 + $0xcc] sm:$0xf0]  ;;  %v4870_v33 = vor.u32 %v5768_v29, %v4869_v28  ;;  %v5766_v34 = vld [vmem:[%s8156_s7 + $0x34] sm:$0xf0] }
 0x398   : > { %2064 = vmatmul.bf16.vlgmr.msra.gmra.mxu3 %v6074_v21 }
 0x399   : > { %1966 = vmatmul.bf16.vlgmr.msra.gmra.mxu0 %v6055_v17 }
 0x39a   : > { %2014 = vmatpush.bf16.msrb.mxu0 %v4638_v37  ;;  %1994 = vmatmul.bf16.vlgmr.msra.gmra.mxu2 %v6057_v18  ;;  %v4566_v37 = vor.u32 %v5546_v22, %v4563_v38 }
 0x39b   : > { %2042 = vmatpush.bf16.msrb.mxu2 %v4546_v39  ;;  %2028 = vmatpush.bf16.msrb.mxu1 %v4734_v49  ;;  %v5570_v39 = vld [vmem:[%s8155_s6 + $0x19c] sm:$0xf]  ;;  %v4554_v49 = vor.u32 %v5543_v42, %v4551_v43 }
 0x39c   : > { %1980 = vmatmul.bf16.vlgmr.msra.gmra.mxu1 %v6074_v21  ;;  %v4662_v48 = vor.u32 %v5570_v39, %v4659_v40  ;;  %v5764_v39 = vld [vmem:[%s8156_s7 + $0x24] sm:$0xf0] }
 0x39e   : > { %2015 = vmatpush.bf16.msrb.mxu0 %v4626_v51  ;;  %v4647_v51 = vld [vmem:[%s8155_s6 + $0x18c] sm:$0xf0] }
 0x39f   : > { %2043 = vmatpush.bf16.msrb.mxu2 %v4534_v55  ;;  %2029 = vmatpush.bf16.msrb.mxu1 %v4722_v2  ;;  %v4725_v55 = vld [vmem:[%s8155_s6 + $0x218] sm:$0xf]  ;;  %v4650_v59 = vor.u32 %v5567_v50, %v4647_v51  ;;  %v5584_v2 = vld [vmem:[%s8155_s6 + $0x208] sm:$0xf0] }
 0x3a0   : > { %v4726_v62 = vor.u32 %v5587_v56, %v4725_v55  ;;  %v4837_v55 = vld [vmem:[%s8156_s7] sm:$0xf]  ;;  %v5760_v56 = vld [vmem:[%s8156_s7 + $0x4] sm:$0xf0] }
 0x3a2   : > { %2016 = vmatpush.bf16.msrb.mxu0 %v4614_v3  ;;  %v4714_v3 = vor.u32 %v5584_v2, %v4713_v1  ;;  %v4959_v1 = vld [vmem:[%s8156_s7 + $0xf8] sm:$0xf0] }
 0x3a3   : > { %2044 = vmatpush.bf16.msrb.mxu2 %v4522_v60  ;;  %2030 = vmatpush.bf16.msrb.mxu1 %v4710_v27  ;;  %v4702_v60 = vor.u32 %v5581_v6, %v4701_v4  ;;  %v4665_v27 = vld [vmem:[%s8155_s6 + $0x1a0] sm:$0xf]  ;;  %v4838_v4 = vor.u32 %v5760_v56, %v4837_v55 }
 0x3a4   : > { %v4949_v56 = vld [vmem:[%s8156_s7 + $0xe0] sm:$0xf] }
 0x3a6   : > { %2017 = vmatpush.bf16.msrb.mxu0 %v4602_v10  ;;  %v5572_v10 = vld [vmem:[%s8155_s6 + $0x1a8] sm:$0xf0] }
 0x3a7   : > { %2045 = vmatpush.bf16.msrb.mxu2 %v4510_v12  ;;  %2031 = vmatpush.bf16.msrb.mxu1 %v4698_v19  ;;  %v4666_v11 = vor.u32 %v5572_v10, %v4665_v27  ;;  %v5569_v12 = vld [vmem:[%s8155_s6 + $0x190] sm:$0xf0]  ;;  %v4885_v19 = vld [vmem:[%s8156_s7 + $0x60] sm:$0xf]  ;;  %v4943_v10 = vld [vmem:[%s8156_s7 + $0xd8] sm:$0xf0] }
 0x3a8   : > { %v4654_v15 = vor.u32 %v5569_v12, %v4653_v57  ;;  %v5785_v27 = vld [vmem:[%s8156_s7 + $0xd4] sm:$0xf] }
 0x3a9   : > { %v4946_v12 = vor.u32 %v5785_v27, %v4943_v10 }
 0x3aa   : > { %2018 = vmatpush.bf16.msrb.mxu0 %v4590_v58  ;;  %v5772_v58 = vld [vmem:[%s8156_s7 + $0x64] sm:$0xf0] }
 0x3ab   : > { %2046 = vmatpush.bf16.msrb.mxu2 %v4498_v24  ;;  %2032 = vmatpush.bf16.msrb.mxu1 %v4686_v31  ;;  %v4886_v20 = vor.u32 %v5772_v58, %v4885_v19  ;;  %v5770_v24 = vld [vmem:[%s8156_s7 + $0x54] sm:$0xf0] }
 0x3ac   : > { %v4878_v25 = vor.u32 %v5770_v24, %v4877_v23  ;;  %v5666_v19 = vld [vmem:[%s8159_s10 + $0x18] sm:$0xff]  ;;  %v5781_v23 = vld [vmem:[%s8156_s7 + $0xb4] sm:$0xf] }
 0x3ad   : > { %v4927_v24 = vld [vmem:[%s8156_s7 + $0xb8] sm:$0xf0] }
 0x3ae   : > { %2019 = vmatpush.bf16.msrb.mxu0 %v4578_v32  ;;  %v547_v32 = vld [vmem:[%s6028_s17] sm:$0xff]  ;;  %v4930_v29 = vor.u32 %v5781_v23, %v4927_v24 }
 0x3af   : > { %2047 = vmatpush.bf16.msrb.mxu2 %v4486_v35  ;;  %2033 = vmatpush.bf16.msrb.mxu1 %v4674_v63  ;;  %v549_v35 = vld [vmem:[%s6028_s17 + $0xc] sm:$0xff]  ;;  %v2415_v22 = vunpack.c.l.bf16 %v547_v32  ;;  %v2416_v38 = vunpack.c.h.bf16 %v547_v32 }
 0x3b0   : > { %v2418_v26 = vunpack.c.l.bf16 %v549_v35  ;;  %v2419_v63 = vunpack.c.h.bf16 %v549_v35  ;;  %v4919_v32 = vld [vmem:[%s8156_s7 + $0xa8] sm:$0xf0]  ;;  %v5678_v35 = vld [vmem:[%s8159_s10 + $0x78] sm:$0xff] }
 0x3b2   : > { %2020 = vmatpush.bf16.msrb.mxu0 %v4566_v37  ;;  %v4853_v37 = vld [vmem:[%s8156_s7 + $0x20] sm:$0xf] }
 0x3b3   : > { %2048 = vmatpush.bf16.msrb.mxu2 %v4474_v41  ;;  %2034 = vmatpush.bf16.msrb.mxu1 %v4662_v48  ;;  %v4854_v43 = vor.u32 %v5764_v39, %v4853_v37  ;;  %v4845_v48 = vld [vmem:[%s8156_s7 + $0x10] sm:$0xf]  ;;  %v5663_v37 = vld [vmem:[%s8159_s10] sm:$0xff] }
 0x3b4   : > { %v4957_v39 = vld [vmem:[%s8156_s7 + $0xf0] sm:$0xf] }
 0x3b6   : > { %2021 = vmatpush.bf16.msrb.mxu0 %v4554_v49  ;;  %v5762_v49 = vld [vmem:[%s8156_s7 + $0x14] sm:$0xf0] }
 0x3b7   : > { %2049 = vmatpush.bf16.msrb.mxu2 %v4462_v53  ;;  %2035 = vmatpush.bf16.msrb.mxu1 %v4650_v59  ;;  %v5670_v53 = vld [vmem:[%s8159_s10 + $0x38] sm:$0xff] }
 0x3b9   : > { %2022 = vmatmul.bf16.vlgmr.msrb.gmra.mxu0 %v6074_v21  ;;  %v4689_v21 = vld [vmem:[%s8155_s6 + $0x1d0] sm:$0xf] }
 0x3ba   : > { %2070 = vmatpush.bf16.msra.mxu0 %v4738_v54  ;;  %2050 = vmatmul.bf16.vlgmr.msrb.gmra.mxu2 %v6055_v17  ;;  %v5578_v17 = vld [vmem:[%s8155_s6 + $0x1d8] sm:$0xf0]  ;;  %v4846_v54 = vor.u32 %v5762_v49, %v4845_v48  ;;  %v5677_v48 = vld [vmem:[%s8159_s10 + $0x70] sm:$0xff] }
 0x3bb   : > { %2036 = vmatmul.bf16.vlgmr.msrb.gmra.mxu1 %v6057_v18  ;;  %v4690_v7 = vor.u32 %v5578_v17, %v4689_v21  ;;  %v5787_v21 = vld [vmem:[%s8156_s7 + $0xe4] sm:$0xf]  ;;  %v4951_v17 = vld [vmem:[%s8156_s7 + $0xe8] sm:$0xf0]  ;;  %2365 = vmatpush.bf16.msra.mxu2 %v5678_v35  ;;  %v5780_v35 = vld [vmem:[%s8156_s7 + $0xa4] sm:$0xf0] }
 0x3bc   : > { %2351 = vmatpush.bf16.msra.mxu1 %v5670_v53  ;;  %v4954_v52 = vor.u32 %v5787_v21, %v4951_v17  ;;  %v5775_v53 = vld [vmem:[%s8156_s7 + $0x84] sm:$0xf]  ;;  %v5830_v21 = vld [vmem:[%s8157_s8 + $0xb8] sm:$0xff]  ;;  %v4941_v17 = vld [vmem:[%s8156_s7 + $0xd0] sm:$0xf] }
 0x3be   : > { %2071 = vmatpush.bf16.msra.mxu0 %v4726_v62  ;;  %v5789_v62 = vld [vmem:[%s8156_s7 + $0xf4] sm:$0xf] }
 0x3bf   : > { %v4962_v6 = vor.u32 %v5789_v62, %v4959_v1  ;;  %2366 = vmatpush.bf16.msra.mxu2 %v5677_v48  ;;  %v5788_v62 = vld [vmem:[%s8156_s7 + $0xe4] sm:$0xf0]  ;;  %v4909_v48 = vld [vmem:[%s8156_s7 + $0x90] sm:$0xf] }
 0x3c2   : > { %2072 = vmatpush.bf16.msra.mxu0 %v4714_v3  ;;  %v5669_v3 = vld [vmem:[%s8159_s10 + $0x30] sm:$0xff] }
 0x3c3   : > { %2352 = vmatpush.bf16.msra.mxu1 %v5669_v3  ;;  %v5676_v3 = vld [vmem:[%s8159_s10 + $0x68] sm:$0xff] }
 0x3c4   : > { %2367 = vmatpush.bf16.msra.mxu2 %v5676_v3  ;;  %v5825_v3 = vld [vmem:[%s8157_s8 + $0x90] sm:$0xff] }
 0x3c6   : > { %2073 = vmatpush.bf16.msra.mxu0 %v4702_v60 }
 0x3ca   : > { %2074 = vmatpush.bf16.msra.mxu0 %v4690_v7  ;;  %v5668_v7 = vld [vmem:[%s8159_s10 + $0x28] sm:$0xff] }
 0x3cb   : > { %2353 = vmatpush.bf16.msra.mxu1 %v5668_v7  ;;  %v5786_v7 = vld [vmem:[%s8156_s7 + $0xd4] sm:$0xf0] }
 0x3cc   : > { %v4942_v27 = vor.u32 %v5786_v7, %v4941_v17 }
 0x3ce   : > { %2075 = vmatpush.bf16.msra.mxu0 %v4678_v61 }
 0x3d2   : > { %2076 = vmatpush.bf16.msra.mxu0 %v4666_v11  ;;  %v5667_v11 = vld [vmem:[%s8159_s10 + $0x20] sm:$0xff] }
 0x3d3   : > { %2354 = vmatpush.bf16.msra.mxu1 %v5667_v11  ;;  %v5829_v11 = vld [vmem:[%s8157_s8 + $0xb0] sm:$0xff] }
 0x3d6   : > { %2077 = vmatpush.bf16.msra.mxu0 %v4654_v15  ;;  %v821_v30 = vpop.f32.mrf.mxu0  ;;  %v7003_v31 = vpop.f32.mrf.mxu1  ;;  %v4935_v15 = vld [vmem:[%s8156_s7 + $0xc8] sm:$0xf0] }
 0x3d7   : > { %v7023_v44 = vmul.f32 %v2415_v22, %v821_v30  ;;  %v7026_v45 = vmul.f32 %v2416_v38, %v7003_v31  ;;  %v4938_v58 = vor.u32 %v5783_v13, %v4935_v15  ;;  %2355 = vmatpush.bf16.msra.mxu1 %v5666_v19  ;;  %v4933_v13 = vld [vmem:[%s8156_s7 + $0xc0] sm:$0xf]  ;;  %v5828_v19 = vld [vmem:[%s8157_s8 + $0xa8] sm:$0xff] }
 0x3d9   : > { %2078 = vmatmul.bf16.vlgmr.msra.gmra.mxu0 %v6057_v18  ;;  %v4861_v18 = vld [vmem:[%s8156_s7 + $0x30] sm:$0xf] }
 0x3da   : > { %2808 = vmatpush.bf16.msrb.mxu0 %v4894_v16  ;;  %v4862_v36 = vor.u32 %v5766_v34, %v4861_v18  ;;  %v5664_v18 = vld [vmem:[%s8159_s10 + $0x8] sm:$0xff] }
 0x3dd   : > { %v7019_v40 = vpop.f32.mrf.mxu2 }
 0x3de   : > { %2809 = vmatpush.bf16.msrb.mxu0 %v4886_v20  ;;  %v823_v41 = vpop.f32.mrf.mxu0  ;;  %v7021_v42 = vpop.f32.mrf.mxu1 }
 0x3df   : > { %v7028_v46 = vmul.f32 %v2418_v26, %v823_v41  ;;  %v7031_v47 = vmul.f32 %v2419_v63, %v7021_v42  ;;  %v7078_v8 = vpack.c.bf16 %v823_v41, %v821_v30  ;;  %v5779_v30 = vld [vmem:[%s8156_s7 + $0xa4] sm:$0xf]  ;;  %v4911_v26 = vld [vmem:[%s8156_s7 + $0x98] sm:$0xf0]  ;;  %v5790_v41 = vld [vmem:[%s8156_s7 + $0xf4] sm:$0xf0]  ;;  %v7187_v10 = vpack.c.bf16 %v7021_v42, %v7003_v31 }
 0x3e0   : > { %v4922_v34 = vor.u32 %v5779_v30, %v4919_v32  ;;  %v4958_v49 = vor.u32 %v5790_v41, %v4957_v39  ;;  %v5784_v31 = vld [vmem:[%s8156_s7 + $0xc4] sm:$0xf0]  ;;  %v5673_v30 = vld [vmem:[%s8159_s10 + $0x50] sm:$0xff]  ;;  %v7243_v39 = vld [vmem:[%s8158_s9] sm:$0x7] }
 0x3e1   : > { %v2898_v50 = vpack.c.bf16 %v7028_v46, %v7023_v44  ;;  %v2899_v51 = vpack.c.bf16 %v7031_v47, %v7026_v45  ;;  %v4934_v15 = vor.u32 %v5784_v31, %v4933_v13  ;;  %v5819_v44 = vld [vmem:[%s8157_s8 + $0x60] sm:$0xff]  ;;  %v5728_v45 = vld [vmem:[%s8155_s6 + $0x148] sm:$0xf0] }
 0x3e2   : > { %2810 = vmatpush.bf16.msrb.mxu0 %v4878_v25  ;;  %v5665_v25 = vld [vmem:[%s8159_s10 + $0x10] sm:$0xff]  ;;  %v5269_v46 = vld [vmem:[%s8155_s6 + $0x120] sm:$0xf] }
 0x3e3   : > { %2356 = vmatpush.bf16.msra.mxu1 %v5665_v25  ;;  %v4925_v25 = vld [vmem:[%s8156_s7 + $0xb0] sm:$0xf] }
 0x3e5   : > { %v7052_v59 = vpop.f32.mrf.mxu2 }
 0x3e6   : > { %2811 = vmatpush.bf16.msrb.mxu0 %v4870_v33  ;;  %v7062_v2 = vpack.c.bf16 %v7052_v59, %v7019_v40  ;;  %v7067_v60 = vpop.f32.mrf.mxu1  ;;  %v7091_v57 = vpop.f32.mrf.mxu0 }
 0x3e7   : > { %v7126_v33 = vpop.f32.mrf.mxu3  ;;  %2357 = vmatpush.bf16.msra.mxu1 %v5664_v18  ;;  %v1271_v24 = vadd.f32 %v7091_v57, %v7094_v0  ;;  %v5827_v18 = vld [vmem:[%s8157_s8 + $0xa0] sm:$0xff] }
 0x3e8   : > { %v4917_v0 = vld [vmem:[%s8156_s7 + $0xa0] sm:$0xf] }
 0x3e9   : > { %v1285_v57 = vadd.f32 %v7067_v60, %v1271_v24  ;;  %v5826_v60 = vld [vmem:[%s8157_s8 + $0x98] sm:$0xff] }
 0x3ea   : > { %2812 = vmatpush.bf16.msrb.mxu0 %v4862_v36  ;;  %v5777_v36 = vld [vmem:[%s8156_s7 + $0x94] sm:$0xf] }
 0x3eb   : > { %2358 = vmatpush.bf16.msra.mxu1 %v5663_v37 }
 0x3ed   : > { %v7080_v61 = vpop.f32.mrf.mxu2 }
 0x3ee   : > { %2813 = vmatpush.bf16.msrb.mxu0 %v4854_v43  ;;  %v7102_v16 = vpop.f32.mrf.mxu1  ;;  %v7118_v28 = vpop.f32.mrf.mxu0  ;;  %v4914_v43 = vor.u32 %v5777_v36, %v4911_v26  ;;  %v4918_v36 = vor.u32 %v5780_v35, %v4917_v0  ;;  %v5684_v0 = vld [vmem:[%s8159_s10 + $0xa8] sm:$0xff] }
 0x3ef   : > { %2822 = vmatpush.bf16.msrb.mxu1 %v4958_v49  ;;  %v1273_v41 = vadd.f32 %v7118_v28, %v7126_v33  ;;  %v5778_v49 = vld [vmem:[%s8156_s7 + $0x94] sm:$0xf0]  ;;  %v5021_v28 = vld [vmem:[%s8156_s7 + $0x170] sm:$0xf] }
 0x3f0   : > { %v5806_v33 = vld [vmem:[%s8156_s7 + $0x174] sm:$0xf0] }
 0x3f1   : > { %v1287_v7 = vadd.f32 %v7102_v16, %v1273_v41  ;;  %v5013_v16 = vld [vmem:[%s8156_s7 + $0x160] sm:$0xf] }
 0x3f2   : > { %2814 = vmatpush.bf16.msrb.mxu0 %v4846_v54  ;;  %v4903_v54 = vld [vmem:[%s8156_s7 + $0x88] sm:$0xf0] }
 0x3f3   : > { %v4906_v1 = vor.u32 %v5775_v53, %v4903_v54  ;;  %v5671_v53 = vld [vmem:[%s8159_s10 + $0x40] sm:$0xff]  ;;  %v4910_v54 = vor.u32 %v5778_v49, %v4909_v48 }
 0x3f5   : > { %v7107_v20 = vpop.f32.mrf.mxu2 }
 0x3f6   : > { %2815 = vmatpush.bf16.msrb.mxu0 %v4838_v4  ;;  %v7160_v55 = vpop.f32.mrf.mxu0  ;;  %v4950_v4 = vor.u32 %v5788_v62, %v4949_v56 }
 0x3f7   : > { %v1541_v22 = vpop.f32.mrf.mxu1 }
 0x3f8   : > { %2823 = vmatpush.bf16.msrb.mxu1 %v4950_v4  ;;  %v5022_v4 = vor.u32 %v5806_v33, %v5021_v28  ;;  %v4997_v33 = vld [vmem:[%s8156_s7 + $0x140] sm:$0xf] }
 0x3f9   : > { %2816 = vmatmul.bf16.vlgmr.msrb.gmra.mxu0 %v7078_v8 }
 0x3fa   : > { %2864 = vmatpush.bf16.msra.mxu0 %v4962_v6  ;;  %v7171_v6 = vpop.f32.mrf.mxu3 }
 0x3fc   : > { %2824 = vmatpush.bf16.msrb.mxu1 %v4942_v27  ;;  %v5685_v27 = vld [vmem:[%s8159_s10 + $0xb0] sm:$0xff] }
 0x3fe   : > { %2865 = vmatpush.bf16.msra.mxu0 %v4954_v52  ;;  %v5675_v52 = vld [vmem:[%s8159_s10 + $0x60] sm:$0xff]  ;;  %v7202_v42 = vpop.f32.mrf.mxu0 }
 0x3ff   : > { %v1555_v38 = vpop.f32.mrf.mxu2  ;;  %2368 = vmatpush.bf16.msra.mxu2 %v5675_v52 }
 0x400   : > { %v7140_v63 = vadd.f32 %v1555_v38, %v1541_v22  ;;  %2825 = vmatpush.bf16.msrb.mxu1 %v4934_v15  ;;  %v5672_v38 = vld [vmem:[%s8159_s10 + $0x48] sm:$0xff] }
 0x401   : > { %v5804_v15 = vld [vmem:[%s8156_s7 + $0x164] sm:$0xf0] }
 0x402   : > { %2866 = vmatpush.bf16.msra.mxu0 %v4946_v12  ;;  %v5674_v12 = vld [vmem:[%s8159_s10 + $0x58] sm:$0xff]  ;;  %v7209_v23 = vpop.f32.mrf.mxu3 }
 0x403   : > { %2369 = vmatpush.bf16.msra.mxu2 %v5674_v12  ;;  %v5776_v12 = vld [vmem:[%s8156_s7 + $0x84] sm:$0xf0] }
 0x406   : > { %2867 = vmatpush.bf16.msra.mxu0 %v4938_v58  ;;  %v7207_v58 = vpop.f32.mrf.mxu1 }
 0x407   : > { %2370 = vmatpush.bf16.msra.mxu2 %v5673_v30  ;;  %v5014_v30 = vor.u32 %v5804_v15, %v5013_v16  ;;  %v5681_v16 = vld [vmem:[%s8159_s10 + $0x90] sm:$0xff] }
 0x40a   : > { %2868 = vmatpush.bf16.msra.mxu0 %v4930_v29  ;;  %v5782_v29 = vld [vmem:[%s8156_s7 + $0xb4] sm:$0xf0]  ;;  %v7265_v56 = vpop.f32.mrf.mxu3 }
 0x40b   : > { %v4926_v32 = vor.u32 %v5782_v29, %v4925_v25  ;;  %2371 = vmatpush.bf16.msra.mxu2 %v5672_v38  ;;  %v5824_v29 = vld [vmem:[%s8157_s8 + $0x88] sm:$0xff]  ;;  %v5802_v38 = vld [vmem:[%s8156_s7 + $0x154] sm:$0xf0] }
 0x40d   : > { %2826 = vmatpush.bf16.msrb.mxu1 %v4926_v32 }
 0x40e   : > { %2869 = vmatpush.bf16.msra.mxu0 %v4922_v34  ;;  %v7225_v34 = vpop.f32.mrf.mxu2 }
 0x40f   : > { %2372 = vmatpush.bf16.msra.mxu2 %v5671_v53 }
 0x411   : > { %2827 = vmatpush.bf16.msrb.mxu1 %v4918_v36 }
 0x412   : > { %2870 = vmatpush.bf16.msra.mxu0 %v4914_v43  ;;  %v5686_v43 = vld [vmem:[%s8159_s10 + $0xb8] sm:$0xff]  ;;  %v7309_v48 = vpop.f32.mrf.mxu3 }
 0x413   : > { %2379 = vmatpush.bf16.msrb.mxu3 %v5686_v43  ;;  %2836 = vmatpush.bf16.msrb.mxu2 %v5022_v4 }
 0x415   : > { %2828 = vmatpush.bf16.msrb.mxu1 %v4910_v54  ;;  %v5683_v54 = vld [vmem:[%s8159_s10 + $0xa0] sm:$0xff] }
 0x416   : > { %2871 = vmatpush.bf16.msra.mxu0 %v4906_v1  ;;  %v1967_v22 = vpop.f32.mrf.mxu0  ;;  %v2086_v1 = vperm.slane %v7243_v39, 0 }
 0x417   : > { %v1968_v26 = vadd.f32 %v1967_v22, %v1285_v57  ;;  %2380 = vmatpush.bf16.msrb.mxu3 %v5685_v27  ;;  %2837 = vmatpush.bf16.msrb.mxu2 %v5014_v30  ;;  %v5005_v22 = vld [vmem:[%s8156_s7 + $0x150] sm:$0xf]  ;;  %v5680_v30 = vld [vmem:[%s8159_s10 + $0x88] sm:$0xff] }
 0x419   : > { %2872 = vmatmul.bf16.vlgmr.msra.gmra.mxu0 %v7187_v10  ;;  %v1981_v37 = vpop.f32.mrf.mxu1 }
 0x41a   : > { %3121 = vmatpush.bf16.msrb.mxu0 %v5830_v21  ;;  %v1982_v62 = vadd.f32 %v1981_v37, %v1968_v26  ;;  %v550_v21 = vld [vmem:[%s6028_s17 + $0x14] sm:$0xf]  ;;  %v5006_v37 = vor.u32 %v5802_v38, %v5005_v22 }
 0x41b   : > { %v2420_v32 = vunpack.c.l.bf16 %v550_v21  ;;  %2381 = vmatpush.bf16.msrb.mxu3 %v5684_v0 }
 0x41c   : > { %2838 = vmatpush.bf16.msrb.mxu2 %v5006_v37  ;;  %v4895_v37 = vld [vmem:[%s8156_s7 + $0x78] sm:$0xf0] }
 0x41d   : > { %v1995_v17 = vpop.f32.mrf.mxu2  ;;  %v2897_v41 = vmul.f32 %v2420_v32, %v7052_v59  ;;  %v5800_v59 = vld [vmem:[%s8156_s7 + $0x144] sm:$0xf0]  ;;  %v4973_v32 = vld [vmem:[%s8156_s7 + $0x110] sm:$0xf] }
 0x41e   : > { %3122 = vmatpush.bf16.msrb.mxu0 %v5829_v11  ;;  %v1996_v52 = vadd.f32 %v1995_v17, %v1982_v62  ;;  %v4901_v11 = vld [vmem:[%s8156_s7 + $0x80] sm:$0xf]  ;;  %v1969_v13 = vpop.f32.mrf.mxu0  ;;  %v4998_v4 = vor.u32 %v5800_v59, %v4997_v33 }
 0x41f   : > { %v4902_v31 = vor.u32 %v5776_v12, %v4901_v11  ;;  %v1970_v25 = vadd.f32 %v1969_v13, %v1287_v7  ;;  %2382 = vmatpush.bf16.msrb.mxu3 %v5683_v54  ;;  %v4989_v7 = vld [vmem:[%s8156_s7 + $0x130] sm:$0xf]  ;;  %v1313_v12 = vadd.f32 %v7171_v6, %v7080_v61  ;;  %v2009_v13 = vpop.f32.mrf.mxu3 }
 0x420   : > { %v7289_v24 = vadd.f32 %v2086_v1, %v1996_v52  ;;  %2839 = vmatpush.bf16.msrb.mxu2 %v4998_v4  ;;  %v5805_v4 = vld [vmem:[%s8156_s7 + $0x174] sm:$0xf] }
 0x421   : > { %2829 = vmatpush.bf16.msrb.mxu1 %v4902_v31  ;;  %v1327_v15 = vadd.f32 %v7160_v55, %v1313_v12 }
 0x422   : > { %3123 = vmatpush.bf16.msrb.mxu0 %v5828_v19  ;;  %v548_v19 = vld [vmem:[%s6028_s17 + $0x8] sm:$0xf]  ;;  %v2104_v57 = vmul.f32 0.044715, %v7289_v24 }
 0x423   : > { %v2417_v35 = vunpack.c.l.bf16 %v548_v19  ;;  %v4981_v19 = vld [vmem:[%s8156_s7 + $0x120] sm:$0xf]  ;;  %v2010_v55 = vadd.f32 %v2009_v13, %v1327_v15 }
 0x424   : > { %v2110_v36 = vmul.f32 %v2104_v57, %v7289_v24 }
 0x425   : > { %v1997_v43 = vpop.f32.mrf.mxu2  ;;  %v2894_v28 = vmul.f32 %v2417_v35, %v7019_v40  ;;  %v5682_v40 = vld [vmem:[%s8159_s10 + $0x98] sm:$0xff]  ;;  %v1315_v35 = vadd.f32 %v7209_v23, %v7107_v20 }
 0x426   : > { %3124 = vmatpush.bf16.msrb.mxu0 %v5827_v18  ;;  %v1983_v18 = vpop.f32.mrf.mxu1  ;;  %v2116_v49 = vmul.f32 %v2110_v36, %v7289_v24  ;;  %2383 = vmatpush.bf16.msrb.mxu3 %v5682_v40  ;;  %v2087_v36 = vperm.slane %v7243_v39, 1 }
 0x427   : > { %v1984_v26 = vadd.f32 %v1983_v18, %v1970_v25  ;;  %v2900_v21 = vpack.c.bf16 %v2897_v41, %v2894_v28  ;;  %v5796_v25 = vld [vmem:[%s8156_s7 + $0x124] sm:$0xf0]  ;;  %v5794_v18 = vld [vmem:[%s8156_s7 + $0x114] sm:$0xf0]  ;;  %v1329_v41 = vadd.f32 %v7202_v42, %v1315_v35  ;;  %v2098_v42 = vmul.f32 0.5, %v7289_v24 }
 0x428   : > { %v4982_v6 = vor.u32 %v5796_v25, %v4981_v19  ;;  %v4974_v0 = vor.u32 %v5794_v18, %v4973_v32 }
 0x429   : > { %v1998_v53 = vadd.f32 %v1997_v43, %v1984_v26  ;;  %v5679_v26 = vld [vmem:[%s8159_s10 + $0x80] sm:$0xff] }
 0x42a   : > { %3125 = vmatpush.bf16.msrb.mxu0 %v5826_v60  ;;  %v5823_v60 = vld [vmem:[%s8157_s8 + $0x80] sm:$0xff]  ;;  %2384 = vmatpush.bf16.msrb.mxu3 %v5681_v16 }
 0x42b   : > { %v7322_v62 = vadd.f32 %v2086_v1, %v1998_v53  ;;  %v5798_v1 = vld [vmem:[%s8156_s7 + $0x134] sm:$0xf0]  ;;  %v4965_v43 = vld [vmem:[%s8156_s7 + $0x100] sm:$0xf]  ;;  %v2011_v53 = vpop.f32.mrf.mxu3 }
 0x42c   : > { %v4990_v11 = vor.u32 %v5798_v1, %v4989_v7  ;;  %v5771_v1 = vld [vmem:[%s8156_s7 + $0x64] sm:$0xf] }
 0x42d   : > { %v2107_v17 = vmul.f32 0.044715, %v7322_v62  ;;  %v2101_v40 = vmul.f32 0.5, %v7322_v62 }
 0x42e   : > { %3126 = vmatpush.bf16.msrb.mxu0 %v5825_v3  ;;  %v2122_v3 = vadd.f32 %v2116_v49, %v7289_v24  ;;  %2840 = vmatpush.bf16.msrb.mxu2 %v4990_v11  ;;  %v5792_v49 = vld [vmem:[%s8156_s7 + $0x104] sm:$0xf0]  ;;  %v4887_v24 = vld [vmem:[%s8156_s7 + $0x68] sm:$0xf0] }
 0x42f   : > { %v2113_v52 = vmul.f32 %v2107_v17, %v7322_v62  ;;  %2385 = vmatpush.bf16.msrb.mxu3 %v5680_v30  ;;  %v4966_v28 = vor.u32 %v5792_v49, %v4965_v43  ;;  %v2012_v17 = vadd.f32 %v2011_v53, %v1329_v41  ;;  %v4890_v11 = vor.u32 %v5771_v1, %v4887_v24  ;;  %v4999_v49 = vld [vmem:[%s8156_s7 + $0x148] sm:$0xf0]  ;;  %v5765_v53 = vld [vmem:[%s8156_s7 + $0x34] sm:$0xf] }
 0x430   : > { %v2128_v27 = vmul.f32 0.7978846, %v2122_v3 }
 0x431   : > { %v2119_v31 = vmul.f32 %v2113_v52, %v7322_v62 }
 0x432   : > { %3127 = vmatpush.bf16.msrb.mxu0 %v5824_v29  ;;  %5895 = vtanh.f32 %v2128_v27  ;;  %2841 = vmatpush.bf16.msrb.mxu2 %v4982_v6  ;;  %v5769_v6 = vld [vmem:[%s8156_s7 + $0x54] sm:$0xf] }
 0x433   : > { %v2125_v61 = vadd.f32 %v2119_v31, %v7322_v62  ;;  %2386 = vmatpush.bf16.msrb.mxu3 %v5679_v26  ;;  %v5803_v62 = vld [vmem:[%s8156_s7 + $0x164] sm:$0xf] }
 0x435   : > { %v2131_v29 = vmul.f32 0.7978846, %v2125_v61  ;;  %v5015_v61 = vld [vmem:[%s8156_s7 + $0x168] sm:$0xf0] }
 0x436   : > { %3128 = vmatpush.bf16.msrb.mxu0 %v5823_v60  ;;  %v2023_v57 = vpop.f32.mrf.mxu0  ;;  %2842 = vmatpush.bf16.msrb.mxu2 %v4974_v0  ;;  %v5773_v60 = vld [vmem:[%s8156_s7 + $0x74] sm:$0xf] }
 0x437   : > { %5897 = vtanh.f32 %v2131_v29  ;;  %v2024_v22 = vadd.f32 %v2023_v57, %v2010_v55  ;;  %v4898_v23 = vor.u32 %v5773_v60, %v4895_v37  ;;  %v4879_v29 = vld [vmem:[%s8156_s7 + $0x58] sm:$0xf0]  ;;  %v5018_v57 = vor.u32 %v5803_v62, %v5015_v61  ;;  %v5801_v0 = vld [vmem:[%s8156_s7 + $0x154] sm:$0xf] }
 0x438   : > { %v5896_v38 = vpop.eup %5895  ;;  %v2037_v20 = vpop.f32.mrf.mxu1  ;;  %v4882_v32 = vor.u32 %v5769_v6, %v4879_v29 }
 0x439   : > { %3129 = vmatmul.bf16.vlgmr.msrb.gmra.mxu0 %v2900_v21  ;;  %v2038_v54 = vadd.f32 %v2037_v20, %v2024_v22  ;;  %v2140_v33 = vadd.f32 1.0, %v5896_v38  ;;  %2850 = vmatpush.bf16.msra.mxu3 %v4898_v23  ;;  %v5023_v21 = vld [vmem:[%s8156_s7 + $0x178] sm:$0xf0]  ;;  %v5767_v38 = vld [vmem:[%s8156_s7 + $0x44] sm:$0xf] }
 0x43a   : > { %2843 = vmatpush.bf16.msrb.mxu2 %v4966_v28  ;;  %v5026_v15 = vor.u32 %v5805_v4, %v5023_v21  ;;  %v5007_v22 = vld [vmem:[%s8156_s7 + $0x158] sm:$0xf0]  ;;  %v5799_v23 = vld [vmem:[%s8156_s7 + $0x144] sm:$0xf]  ;;  %v5797_v4 = vld [vmem:[%s8156_s7 + $0x134] sm:$0xf] }
 0x43b   : > { %v7378_v3 = vadd.f32 %v2087_v36, %v2038_v54  ;;  %v2146_v13 = vmul.f32 %v2140_v33, %v2098_v42  ;;  %v5010_v20 = vor.u32 %v5801_v0, %v5007_v22  ;;  %v4863_v54 = vld [vmem:[%s8156_s7 + $0x38] sm:$0xf0]  ;;  %v5002_v42 = vor.u32 %v5799_v23, %v4999_v49  ;;  %v5705_v0 = vld [vmem:[%s8155_s6 + $0x94] sm:$0xf] }
 0x43c   : > { %v4866_v33 = vor.u32 %v5765_v53, %v4863_v54  ;;  %v5791_v53 = vld [vmem:[%s8156_s7 + $0x104] sm:$0xf] }
 0x43d   : > { %v5898_v59 = vpop.eup %5897  ;;  %v2105_v52 = vmul.f32 0.044715, %v7378_v3  ;;  %2851 = vmatpush.bf16.msra.mxu3 %v4890_v11  ;;  %v2051_v43 = vpop.f32.mrf.mxu2  ;;  %v5795_v11 = vld [vmem:[%s8156_s7 + $0x124] sm:$0xf] }
 0x43e   : > { %v2143_v7 = vadd.f32 1.0, %v5898_v59  ;;  %v2025_v27 = vpop.f32.mrf.mxu0  ;;  %v1570_v59 = vadd.f32 %v7265_v56, %v7140_v63  ;;  %v4855_v63 = vld [vmem:[%s8156_s7 + $0x28] sm:$0xf0] }
 0x43f   : > { %v2026_v12 = vadd.f32 %v2025_v27, %v2012_v17  ;;  %v2111_v16 = vmul.f32 %v2105_v52, %v7378_v3  ;;  %v2065_v17 = vpop.f32.mrf.mxu3  ;;  %v1558_v52 = vadd.f32 %v7225_v34, %v7207_v58  ;;  %v4847_v58 = vld [vmem:[%s8156_s7 + $0x18] sm:$0xf0]  ;;  %v5708_v34 = vld [vmem:[%s8155_s6 + $0xac] sm:$0xf] }
 0x440   : > { %v2149_v31 = vmul.f32 %v2143_v7, %v2101_v40  ;;  %v2039_v19 = vpop.f32.mrf.mxu1  ;;  %v4991_v40 = vld [vmem:[%s8156_s7 + $0x138] sm:$0xf0]  ;;  %v5763_v7 = vld [vmem:[%s8156_s7 + $0x24] sm:$0xf]  ;;  %v2052_v56 = vadd.f32 %v2051_v43, %v1570_v59 }
 0x441   : > { %v2117_v30 = vmul.f32 %v2111_v16, %v7378_v3  ;;  %v2040_v55 = vadd.f32 %v2039_v19, %v2026_v12  ;;  %2852 = vmatpush.bf16.msra.mxu3 %v4882_v32  ;;  %v4858_v24 = vor.u32 %v5763_v7, %v4855_v63  ;;  %v4994_v27 = vor.u32 %v5797_v4, %v4991_v40  ;;  %v4983_v12 = vld [vmem:[%s8156_s7 + $0x128] sm:$0xf0]  ;;  %v5211_v19 = vld [vmem:[%s8155_s6 + $0xb4] sm:$0xf0]  ;;  %v5793_v32 = vld [vmem:[%s8156_s7 + $0x114] sm:$0xf] }
 0x442   : > { %v2152_v25 = vpack.c.bf16 %v2149_v31, %v2146_v13  ;;  %v5761_v31 = vld [vmem:[%s8156_s7 + $0x14] sm:$0xf]  ;;  %v2066_v16 = vadd.f32 %v2065_v17, %v2052_v56  ;;  %v5214_v6 = vor.u32 %v5708_v34, %v5211_v19  ;;  %v1572_v29 = vadd.f32 %v7309_v48, %v1558_v52  ;;  %v4839_v48 = vld [vmem:[%s8156_s7 + $0x8] sm:$0xf0]  ;;  %v5814_v4 = vld [vmem:[%s8157_s8 + $0x38] sm:$0xff] }
 0x443   : > { %v7409_v18 = vadd.f32 %v2087_v36, %v2040_v55  ;;  %v2123_v35 = vadd.f32 %v2117_v30, %v7378_v3  ;;  %v4871_v36 = vld [vmem:[%s8156_s7 + $0x48] sm:$0xf0]  ;;  %v4850_v62 = vor.u32 %v5761_v31, %v4847_v58  ;;  %v4986_v55 = vor.u32 %v5795_v11, %v4983_v12  ;;  %v5709_v17 = vld [vmem:[%s8155_s6 + $0xb0] sm:$0xf0]  ;;  %v5175_v11 = vld [vmem:[%s8155_s6 + $0x6c] sm:$0xf0] }
 0x444   : > { %2359 = vmatmul.bf16.vlgmr.msra.gmra.mxu1 %v2152_v25  ;;  %v4874_v37 = vor.u32 %v5767_v38, %v4871_v36  ;;  %3561 = vmatpush.bf16.msra.mxu0 %v5214_v6  ;;  %v5197_v31 = vld [vmem:[%s8155_s6 + $0x90] sm:$0xf]  ;;  %v5706_v58 = vld [vmem:[%s8155_s6 + $0x98] sm:$0xf0] }
 0x445   : > { %2878 = vmatpush.bf16.msra.mxu1 %v5026_v15  ;;  %v2108_v26 = vmul.f32 0.044715, %v7409_v18  ;;  %v2129_v60 = vmul.f32 0.7978846, %v2123_v35  ;;  %v2088_v15 = vperm.slane %v7243_v39, 2  ;;  %v2053_v25 = vpop.f32.mrf.mxu2  ;;  %v5198_v19 = vor.u32 %v5706_v58, %v5197_v31  ;;  %v5807_v58 = vld [vmem:[%s8157_s8] sm:$0xff] }
 0x446   : > { %2853 = vmatpush.bf16.msra.mxu3 %v4874_v37  ;;  %v4975_v39 = vld [vmem:[%s8156_s7 + $0x118] sm:$0xf0]  ;;  %v2054_v22 = vadd.f32 %v2053_v25, %v1572_v29  ;;  %v2099_v37 = vmul.f32 0.5, %v7378_v3  ;;  %v5185_v25 = vld [vmem:[%s8155_s6 + $0x78] sm:$0xf] }
 0x447   : > { %v2114_v41 = vmul.f32 %v2108_v26, %v7409_v18  ;;  %5899 = vtanh.f32 %v2129_v60  ;;  %v5199_v26 = vld [vmem:[%s8155_s6 + $0x9c] sm:$0xf0]  ;;  %v2067_v60 = vpop.f32.mrf.mxu3  ;;  %v4978_v49 = vor.u32 %v5793_v32, %v4975_v39  ;;  %v5702_v3 = vld [vmem:[%s8155_s6 + $0x7c] sm:$0xf] }
 0x448   : > { %v5202_v23 = vor.u32 %v5705_v0, %v5199_v26  ;;  %v2068_v59 = vadd.f32 %v2067_v60, %v2054_v22  ;;  %v5811_v0 = vld [vmem:[%s8157_s8 + $0x20] sm:$0xff]  ;;  %v5700_v22 = vld [vmem:[%s8155_s6 + $0x68] sm:$0xf0] }
 0x449   : > { %2879 = vmatpush.bf16.msra.mxu1 %v5018_v57  ;;  %v2120_v28 = vmul.f32 %v2114_v41, %v7409_v18  ;;  %v2102_v41 = vmul.f32 0.5, %v7409_v18 }
 0x44a   : > { %2854 = vmatpush.bf16.msra.mxu3 %v4866_v33  ;;  %v4967_v33 = vld [vmem:[%s8156_s7 + $0x108] sm:$0xf0]  ;;  %3562 = vmatpush.bf16.msra.mxu0 %v5202_v23  ;;  %v5697_v23 = vld [vmem:[%s8155_s6 + $0x50] sm:$0xf0] }
 0x44b   : > { %v2126_v21 = vadd.f32 %v2120_v28, %v7409_v18  ;;  %v5187_v18 = vld [vmem:[%s8155_s6 + $0x84] sm:$0xf0] }
 0x44c   : > { %v5190_v40 = vor.u32 %v5702_v3, %v5187_v18  ;;  %v5127_v3 = vld [vmem:[%s8155_s6 + $0xc] sm:$0xf0] }
 0x44d   : > { %2880 = vmatpush.bf16.msra.mxu1 %v5010_v20  ;;  %v2132_v1 = vmul.f32 0.7978846, %v2126_v21  ;;  %v5900_v13 = vpop.eup %5899  ;;  %v5209_v21 = vld [vmem:[%s8155_s6 + $0xa8] sm:$0xf]  ;;  %v5809_v18 = vld [vmem:[%s8157_s8 + $0x10] sm:$0xff] }
 0x44e   : > { %2855 = vmatpush.bf16.msra.mxu3 %v4858_v24  ;;  %v2141_v57 = vadd.f32 1.0, %v5900_v13  ;;  %v4970_v24 = vor.u32 %v5791_v53, %v4967_v33  ;;  %v5210_v52 = vor.u32 %v5709_v17, %v5209_v21  ;;  %3563 = vmatpush.bf16.msra.mxu0 %v5190_v40  ;;  %v5813_v13 = vld [vmem:[%s8157_s8 + $0x30] sm:$0xff]  ;;  %v5687_v33 = vld [vmem:[%s8155_s6 + $0x4] sm:$0xf] }
 0x44f   : > { %5901 = vtanh.f32 %v2132_v1 }
 0x450   : > { %v2147_v54 = vmul.f32 %v2141_v57, %v2099_v37  ;;  %v5810_v37 = vld [vmem:[%s8157_s8 + $0x18] sm:$0xff] }
 0x451   : > { %2881 = vmatpush.bf16.msra.mxu1 %v5002_v42 }
 0x452   : > { %2856 = vmatpush.bf16.msra.mxu3 %v4850_v62 }
 0x454   : > { %2830 = vmatmul.bf16.vlgmr.msrb.gmra.mxu1 %v7187_v10  ;;  %v5759_v10 = vld [vmem:[%s8156_s7 + $0x4] sm:$0xf] }
 0x455   : > { %2882 = vmatpush.bf16.msra.mxu1 %v4994_v27  ;;  %v5902_v35 = vpop.eup %5901  ;;  %v4842_v36 = vor.u32 %v5759_v10, %v4839_v48  ;;  %v5699_v27 = vld [vmem:[%s8155_s6 + $0x64] sm:$0xf]  ;;  %v5693_v10 = vld [vmem:[%s8155_s6 + $0x34] sm:$0xf]  ;;  %v5151_v48 = vld [vmem:[%s8155_s6 + $0x3c] sm:$0xf0] }
 0x456   : > { %v2079_v61 = vpop.f32.mrf.mxu0  ;;  %v2144_v20 = vadd.f32 1.0, %v5902_v35  ;;  %v5173_v35 = vld [vmem:[%s8155_s6 + $0x60] sm:$0xf]  ;;  %v5154_v26 = vor.u32 %v5693_v10, %v5151_v48  ;;  %v5281_v10 = vld [vmem:[%s8155_s6 + $0x138] sm:$0xf] }
 0x457   : > { %v2080_v30 = vadd.f32 %v2079_v61, %v2066_v16  ;;  %2857 = vmatpush.bf16.msra.mxu3 %v4842_v36  ;;  %v5178_v16 = vor.u32 %v5699_v27, %v5175_v11  ;;  %v5703_v61 = vld [vmem:[%s8155_s6 + $0x80] sm:$0xf0]  ;;  %v5305_v11 = vld [vmem:[%s8155_s6 + $0x168] sm:$0xf] }
 0x458   : > { %v2150_v28 = vmul.f32 %v2144_v20, %v2102_v41  ;;  %v5186_v57 = vor.u32 %v5703_v61, %v5185_v25  ;;  %v5174_v41 = vor.u32 %v5700_v22, %v5173_v35  ;;  %v5161_v20 = vld [vmem:[%s8155_s6 + $0x48] sm:$0xf]  ;;  %v5821_v25 = vld [vmem:[%s8157_s8 + $0x70] sm:$0xff]  ;;  %v5727_v48 = vld [vmem:[%s8155_s6 + $0x140] sm:$0xf0] }
 0x459   : > { %v7492_v38 = vadd.f32 %v2088_v15, %v2080_v30  ;;  %2883 = vmatpush.bf16.msra.mxu1 %v4986_v55  ;;  %3564 = vmatpush.bf16.msra.mxu0 %v5178_v16  ;;  %v5696_v30 = vld [vmem:[%s8155_s6 + $0x4c] sm:$0xf]  ;;  %v5163_v55 = vld [vmem:[%s8155_s6 + $0x54] sm:$0xf0]  ;;  %v5293_v61 = vld [vmem:[%s8155_s6 + $0x150] sm:$0xf]  ;;  %v5282_v35 = vor.u32 %v5727_v48, %v5281_v10 }
 0x45a   : > { %v2153_v63 = vpack.c.bf16 %v2150_v28, %v2147_v54  ;;  %v5166_v32 = vor.u32 %v5696_v30, %v5163_v55  ;;  %v5162_v28 = vor.u32 %v5697_v23, %v5161_v20  ;;  %v5688_v16 = vld [vmem:[%s8155_s6 + $0x8] sm:$0xf0]  ;;  %v5726_v22 = vld [vmem:[%s8155_s6 + $0x13c] sm:$0xf]  ;;  %v5257_v23 = vld [vmem:[%s8155_s6 + $0x108] sm:$0xf] }
 0x45b   : > { %v2106_v43 = vmul.f32 0.044715, %v7492_v38  ;;  %v2100_v40 = vmul.f32 0.5, %v7492_v38  ;;  %v5818_v20 = vld [vmem:[%s8157_s8 + $0x58] sm:$0xff]  ;;  %v5731_v10 = vld [vmem:[%s8155_s6 + $0x160] sm:$0xf0] }
 0x45c   : > { %2373 = vmatmul.bf16.vlgmr.msra.gmra.mxu2 %v2153_v63 }
 0x45d   : > { %v2112_v42 = vmul.f32 %v2106_v43, %v7492_v38  ;;  %2884 = vmatpush.bf16.msra.mxu1 %v4978_v49  ;;  %3093 = vmatpush.bf16.msra.mxu2 %v5814_v4  ;;  %v5690_v43 = vld [vmem:[%s8155_s6 + $0x1c] sm:$0xf]  ;;  %v5139_v49 = vld [vmem:[%s8155_s6 + $0x24] sm:$0xf0] }
 0x45e   : > { %v2081_v7 = vpop.f32.mrf.mxu0  ;;  %3565 = vmatpush.bf16.msra.mxu0 %v5166_v32  ;;  %v5142_v53 = vor.u32 %v5690_v43, %v5139_v49  ;;  %v5729_v32 = vld [vmem:[%s8155_s6 + $0x154] sm:$0xf] }
 0x45f   : > { %v2118_v56 = vmul.f32 %v2112_v42, %v7492_v38  ;;  %v2082_v1 = vadd.f32 %v2081_v7, %v2068_v59  ;;  %v5149_v59 = vld [vmem:[%s8155_s6 + $0x30] sm:$0xf]  ;;  %v5130_v42 = vor.u32 %v5687_v33, %v5127_v3  ;;  %v5721_v43 = vld [vmem:[%s8155_s6 + $0x110] sm:$0xf0] }
 0x460   : > { %v5817_v33 = vld [vmem:[%s8157_s8 + $0x50] sm:$0xff] }
 0x461   : > { %v7529_v12 = vadd.f32 %v2088_v15, %v2082_v1  ;;  %v2124_v34 = vadd.f32 %v2118_v56, %v7492_v38  ;;  %2885 = vmatpush.bf16.msra.mxu1 %v4970_v24  ;;  %v5812_v15 = vld [vmem:[%s8157_s8 + $0x28] sm:$0xff]  ;;  %3094 = vmatpush.bf16.msra.mxu2 %v5813_v13  ;;  %v5137_v1 = vld [vmem:[%s8155_s6 + $0x18] sm:$0xf]  ;;  %v5691_v24 = vld [vmem:[%s8155_s6 + $0x20] sm:$0xf0] }
 0x462   : > { %3566 = vmatpush.bf16.msra.mxu0 %v5154_v26  ;;  %v5808_v56 = vld [vmem:[%s8157_s8 + $0x8] sm:$0xff]  ;;  %v5822_v38 = vld [vmem:[%s8157_s8 + $0x78] sm:$0xff]  ;;  %v5138_v31 = vor.u32 %v5691_v24, %v5137_v1  ;;  %v5245_v3 = vld [vmem:[%s8155_s6 + $0xf0] sm:$0xf] }
 0x463   : > { %v2109_v62 = vmul.f32 0.044715, %v7529_v12  ;;  %v2130_v29 = vmul.f32 0.7978846, %v2124_v34  ;;  %v2103_v7 = vmul.f32 0.5, %v7529_v12  ;;  %v5815_v1 = vld [vmem:[%s8157_s8 + $0x40] sm:$0xff] }
 0x464   : > { %2886 = vmatmul.bf16.vlgmr.msra.gmra.mxu1 %v7062_v2  ;;  %v5125_v34 = vld [vmem:[%s8155_s6] sm:$0xf]  ;;  %v5714_v24 = vld [vmem:[%s8155_s6 + $0xdc] sm:$0xf] }
 0x465   : > { %3519 = vmatpush.bf16.msrb.mxu1 %v5210_v52  ;;  %v2115_v6 = vmul.f32 %v2109_v62, %v7529_v12  ;;  %3095 = vmatpush.bf16.msra.mxu2 %v5812_v15  ;;  %5903 = vtanh.f32 %v2130_v29  ;;  %v5732_v15 = vld [vmem:[%s8155_s6 + $0x16c] sm:$0xf]  ;;  %v5126_v29 = vor.u32 %v5688_v16, %v5125_v34  ;;  %v5389_v16 = vld [vmem:[%s8155_s6 + $0x210] sm:$0xf] }
 0x466   : > { %3567 = vmatpush.bf16.msra.mxu0 %v5142_v53  ;;  %v5258_v53 = vor.u32 %v5721_v43, %v5257_v23  ;;  %v5385_v43 = vld [vmem:[%s8155_s6 + $0x200] sm:$0xf] }
 0x467   : > { %v2121_v39 = vmul.f32 %v2115_v6, %v7529_v12  ;;  %v5730_v6 = vld [vmem:[%s8155_s6 + $0x158] sm:$0xf0] }
 0x468   : > { %v5294_v55 = vor.u32 %v5730_v6, %v5293_v61  ;;  %v5223_v61 = vld [vmem:[%s8155_s6 + $0xcc] sm:$0xf0] }
 0x469   : > { %3520 = vmatpush.bf16.msrb.mxu1 %v5198_v19  ;;  %v2127_v36 = vadd.f32 %v2121_v39, %v7529_v12  ;;  %3096 = vmatpush.bf16.msra.mxu2 %v5811_v0  ;;  %v5733_v12 = vld [vmem:[%s8155_s6 + $0x170] sm:$0xf0]  ;;  %v5307_v19 = vld [vmem:[%s8155_s6 + $0x174] sm:$0xf0]  ;;  %v5295_v39 = vld [vmem:[%s8155_s6 + $0x15c] sm:$0xf0] }
 0x46a   : > { %3568 = vmatpush.bf16.msra.mxu0 %v5130_v42  ;;  %v5306_v62 = vor.u32 %v5733_v12, %v5305_v11  ;;  %v5310_v30 = vor.u32 %v5732_v15, %v5307_v19  ;;  %v5298_v0 = vor.u32 %v5729_v32, %v5295_v39  ;;  %v5247_v42 = vld [vmem:[%s8155_s6 + $0xfc] sm:$0xf0]  ;;  %v5313_v11 = vld [vmem:[%s8155_s6 + $0x170] sm:$0xf]  ;;  %v5753_v39 = vld [vmem:[%s8155_s6 + $0x214] sm:$0xf] }
 0x46b   : > { %v2133_v60 = vmul.f32 0.7978846, %v2127_v36  ;;  %v5904_v54 = vpop.eup %5903  ;;  %v5283_v36 = vld [vmem:[%s8155_s6 + $0x144] sm:$0xf0] }
 0x46c   : > { %2844 = vmatmul.bf16.vlgmr.msrb.gmra.mxu2 %v7062_v2  ;;  %v5694_v2 = vld [vmem:[%s8155_s6 + $0x38] sm:$0xf0]  ;;  %v2142_v4 = vadd.f32 1.0, %v5904_v54  ;;  %v5286_v26 = vor.u32 %v5726_v22, %v5283_v36  ;;  %v5720_v54 = vld [vmem:[%s8155_s6 + $0x10c] sm:$0xf] }
 0x46d   : > { %3521 = vmatpush.bf16.msrb.mxu1 %v5186_v57  ;;  %5905 = vtanh.f32 %v2133_v60  ;;  %3097 = vmatpush.bf16.msra.mxu2 %v5810_v37  ;;  %v5150_v17 = vor.u32 %v5694_v2, %v5149_v59  ;;  %v5820_v57 = vld [vmem:[%s8157_s8 + $0x68] sm:$0xff]  ;;  %v5723_v37 = vld [vmem:[%s8155_s6 + $0x124] sm:$0xf]  ;;  %v5717_v2 = vld [vmem:[%s8155_s6 + $0xf4] sm:$0xf] }
 0x46e   : > { %v2148_v52 = vmul.f32 %v2142_v4, %v2100_v40  ;;  %3569 = vmatmul.bf16.vlgmr.msra.gmra.mxu0 %v6038_v5  ;;  %v5816_v4 = vld [vmem:[%s8157_s8 + $0x48] sm:$0xff]  ;;  %v5250_v40 = vor.u32 %v5717_v2, %v5247_v42  ;;  %v5745_v2 = vld [vmem:[%s8155_s6 + $0x1d0] sm:$0xf0] }
 0x471   : > { %3522 = vmatpush.bf16.msrb.mxu1 %v5174_v41  ;;  %3098 = vmatpush.bf16.msra.mxu2 %v5809_v18  ;;  %v5271_v41 = vld [vmem:[%s8155_s6 + $0x12c] sm:$0xf0] }
 0x472   : > { %v5274_v49 = vor.u32 %v5723_v37, %v5271_v41  ;;  %v5365_v41 = vld [vmem:[%s8155_s6 + $0x1e0] sm:$0xf] }
 0x473   : > { %v5906_v21 = vpop.eup %5905 }
 0x474   : > { %v2145_v63 = vadd.f32 1.0, %v5906_v21  ;;  %v5233_v21 = vld [vmem:[%s8155_s6 + $0xd8] sm:$0xf] }
 0x475   : > { %3523 = vmatpush.bf16.msrb.mxu1 %v5162_v28  ;;  %3099 = vmatpush.bf16.msra.mxu2 %v5808_v56  ;;  %v5259_v28 = vld [vmem:[%s8155_s6 + $0x114] sm:$0xf0] }
 0x476   : > { %v2151_v27 = vmul.f32 %v2145_v63, %v2103_v7  ;;  %v5262_v18 = vor.u32 %v5720_v54, %v5259_v28  ;;  %v5401_v7 = vld [vmem:[%s8155_s6 + $0x228] sm:$0xf]  ;;  %v5757_v63 = vld [vmem:[%s8155_s6 + $0x230] sm:$0xf0] }
 0x477   : > { %v5402_v12 = vor.u32 %v5757_v63, %v5401_v7  ;;  %v5277_v54 = vld [vmem:[%s8155_s6 + $0x128] sm:$0xf]  ;;  %v5725_v28 = vld [vmem:[%s8155_s6 + $0x130] sm:$0xf0]  ;;  %v5744_v63 = vld [vmem:[%s8155_s6 + $0x1cc] sm:$0xf] }
 0x478   : > { %v2154_v13 = vpack.c.bf16 %v2151_v27, %v2148_v52  ;;  %v5235_v52 = vld [vmem:[%s8155_s6 + $0xe4] sm:$0xf0]  ;;  %v5221_v27 = vld [vmem:[%s8155_s6 + $0xc0] sm:$0xf] }
 0x479   : > { %3524 = vmatpush.bf16.msrb.mxu1 %v5150_v17  ;;  %3100 = vmatpush.bf16.msra.mxu2 %v5807_v58  ;;  %v5715_v17 = vld [vmem:[%s8155_s6 + $0xe0] sm:$0xf0]  ;;  %v5734_v58 = vld [vmem:[%s8155_s6 + $0x178] sm:$0xf0]  ;;  %v5238_v34 = vor.u32 %v5714_v24, %v5235_v52  ;;  %v5341_v24 = vld [vmem:[%s8155_s6 + $0x1b0] sm:$0xf] }
 0x47a   : > { %2387 = vmatmul.bf16.vlgmr.msrb.gmra.mxu3 %v2154_v13  ;;  %v5234_v56 = vor.u32 %v5715_v17, %v5233_v21  ;;  %v5756_v13 = vld [vmem:[%s8155_s6 + $0x22c] sm:$0xf]  ;;  %v5314_v15 = vor.u32 %v5734_v58, %v5313_v11  ;;  %v5373_v21 = vld [vmem:[%s8155_s6 + $0x1e8] sm:$0xf]  ;;  %v5749_v17 = vld [vmem:[%s8155_s6 + $0x1f0] sm:$0xf0] }
 0x47b   : > { %3107 = vmatpush.bf16.msrb.mxu3 %v5822_v38  ;;  %v5712_v38 = vld [vmem:[%s8155_s6 + $0xc8] sm:$0xf0]  ;;  %v5742_v52 = vld [vmem:[%s8155_s6 + $0x1b8] sm:$0xf0]  ;;  %v5361_v11 = vld [vmem:[%s8155_s6 + $0x1d0] sm:$0xf] }
 0x47c   : > { %3101 = vmatmul.bf16.vlgmr.msra.gmra.mxu2 %v2898_v50  ;;  %v5724_v50 = vld [vmem:[%s8155_s6 + $0x128] sm:$0xf0]  ;;  %v5222_v19 = vor.u32 %v5712_v38, %v5221_v27  ;;  %3617 = vmatpush.bf16.msrb.mxu0 %v5314_v15  ;;  %v5374_v38 = vor.u32 %v5749_v17, %v5373_v21  ;;  %v5719_v58 = vld [vmem:[%s8155_s6 + $0x100] sm:$0xf0]  ;;  %v5698_v21 = vld [vmem:[%s8155_s6 + $0x58] sm:$0xf0] }
 0x47d   : > { %3525 = vmatpush.bf16.msrb.mxu1 %v5138_v31  ;;  %3533 = vmatpush.bf16.msrb.mxu2 %v5306_v62  ;;  %v5270_v60 = vor.u32 %v5724_v50, %v5269_v46  ;;  %v5403_v31 = vld [vmem:[%s8155_s6 + $0x234] sm:$0xf0]  ;;  %v5754_v62 = vld [vmem:[%s8155_s6 + $0x218] sm:$0xf0]  ;;  %v5755_v50 = vld [vmem:[%s8155_s6 + $0x220] sm:$0xf0] }
 0x47e   : > { %v5406_v6 = vor.u32 %v5756_v13, %v5403_v31  ;;  %v5390_v32 = vor.u32 %v5754_v62, %v5389_v16  ;;  %v5746_v13 = vld [vmem:[%s8155_s6 + $0x1d8] sm:$0xf0]  ;;  %v5253_v31 = vld [vmem:[%s8155_s6 + $0xf8] sm:$0xf]  ;;  %v5741_v16 = vld [vmem:[%s8155_s6 + $0x1b4] sm:$0xf] }
 0x47f   : > { %3108 = vmatpush.bf16.msrb.mxu3 %v5821_v25  ;;  %v5711_v25 = vld [vmem:[%s8155_s6 + $0xc4] sm:$0xf]  ;;  %v5343_v62 = vld [vmem:[%s8155_s6 + $0x1bc] sm:$0xf0]  ;;  %v5254_v15 = vor.u32 %v5719_v58, %v5253_v31 }
 0x480   : > { %v5226_v48 = vor.u32 %v5711_v25, %v5223_v61  ;;  %v5739_v25 = vld [vmem:[%s8155_s6 + $0x1a0] sm:$0xf0]  ;;  %v5362_v61 = vor.u32 %v5746_v13, %v5361_v11  ;;  %v5877_v13 = vld [vmem:[%s8160_s11] ss:$0 sm:$0xff] }
 0x481   : > { %3526 = vmatpush.bf16.msrb.mxu1 %v5126_v29  ;;  %3534 = vmatpush.bf16.msrb.mxu2 %v5294_v55  ;;  %v5409_v29 = vld [vmem:[%s8155_s6 + $0x230] sm:$0xf]  ;;  %v5301_v55 = vld [vmem:[%s8155_s6 + $0x158] sm:$0xf] }
 0x482   : > { %v5302_v22 = vor.u32 %v5731_v10, %v5301_v55  ;;  %v5241_v55 = vld [vmem:[%s8155_s6 + $0xe0] sm:$0xf]  ;;  %v5716_v10 = vld [vmem:[%s8155_s6 + $0xe8] sm:$0xf0] }
 0x483   : > { %3109 = vmatpush.bf16.msrb.mxu3 %v5820_v57  ;;  %v5391_v57 = vld [vmem:[%s8155_s6 + $0x21c] sm:$0xf0] }
 0x484   : > { %3527 = vmatmul.bf16.vlgmr.msrb.gmra.mxu1 %v6038_v5  ;;  %v5394_v46 = vor.u32 %v5753_v39, %v5391_v57  ;;  %3618 = vmatpush.bf16.msrb.mxu0 %v5302_v22  ;;  %v5738_v39 = vld [vmem:[%s8155_s6 + $0x19c] sm:$0xf]  ;;  %v5331_v57 = vld [vmem:[%s8155_s6 + $0x1a4] sm:$0xf0]  ;;  %v5217_v22 = vld [vmem:[%s8155_s6 + $0xb0] sm:$0xf] }
 0x485   : > { %3575 = vmatpush.bf16.msra.mxu1 %v5310_v30  ;;  %3535 = vmatpush.bf16.msrb.mxu2 %v5282_v35  ;;  %v5758_v30 = vld [vmem:[%s8155_s6 + $0x238] sm:$0xf0]  ;;  %v5751_v35 = vld [vmem:[%s8155_s6 + $0x200] sm:$0xf0] }
 0x486   : > { %v5410_v36 = vor.u32 %v5758_v30, %v5409_v29  ;;  %v5349_v29 = vld [vmem:[%s8155_s6 + $0x1b8] sm:$0xf]  ;;  %v5743_v30 = vld [vmem:[%s8155_s6 + $0x1c0] sm:$0xf0] }
 0x487   : > { %3110 = vmatpush.bf16.msrb.mxu3 %v5819_v44  ;;  %v5397_v44 = vld [vmem:[%s8155_s6 + $0x218] sm:$0xf] }
 0x488   : > { %v5398_v23 = vor.u32 %v5755_v50, %v5397_v44  ;;  %v5350_v44 = vor.u32 %v5743_v30, %v5349_v29  ;;  %v5334_v50 = vor.u32 %v5738_v39, %v5331_v57 }
 0x489   : > { %3576 = vmatpush.bf16.msra.mxu1 %v5298_v0  ;;  %3536 = vmatpush.bf16.msrb.mxu2 %v5270_v60  ;;  %v5377_v0 = vld [vmem:[%s8155_s6 + $0x1f8] sm:$0xf]  ;;  %v5379_v60 = vld [vmem:[%s8155_s6 + $0x204] sm:$0xf0] }
 0x48a   : > { %2858 = vmatmul.bf16.vlgmr.msra.gmra.mxu3 %v7078_v8  ;;  %v5718_v8 = vld [vmem:[%s8155_s6 + $0xf8] sm:$0xf0]  ;;  %v5378_v47 = vor.u32 %v5751_v35, %v5377_v0  ;;  %v5736_v0 = vld [vmem:[%s8155_s6 + $0x188] sm:$0xf0]  ;;  %v5242_v35 = vor.u32 %v5716_v10, %v5241_v55 }
 0x48b   : > { %3111 = vmatpush.bf16.msrb.mxu3 %v5818_v20  ;;  %v5246_v59 = vor.u32 %v5718_v8, %v5245_v3  ;;  %v5748_v20 = vld [vmem:[%s8155_s6 + $0x1e8] sm:$0xf0]  ;;  %v5747_v3 = vld [vmem:[%s8155_s6 + $0x1e4] sm:$0xf]  ;;  %v5367_v8 = vld [vmem:[%s8155_s6 + $0x1ec] sm:$0xf0] }
 0x48d   : > { %3577 = vmatpush.bf16.msra.mxu1 %v5286_v26  ;;  %3537 = vmatpush.bf16.msrb.mxu2 %v5258_v53  ;;  %v5289_v26 = vld [vmem:[%s8155_s6 + $0x140] sm:$0xf]  ;;  %v5752_v53 = vld [vmem:[%s8155_s6 + $0x208] sm:$0xf0] }
 0x48e   : > { %v5290_v37 = vor.u32 %v5728_v45, %v5289_v26  ;;  %v5386_v42 = vor.u32 %v5752_v53, %v5385_v43  ;;  %v5740_v26 = vld [vmem:[%s8155_s6 + $0x1a8] sm:$0xf0]  ;;  %v5229_v45 = vld [vmem:[%s8155_s6 + $0xc8] sm:$0xf]  ;;  %v5707_v43 = vld [vmem:[%s8155_s6 + $0xa0] sm:$0xf0] }
 0x48f   : > { %3112 = vmatpush.bf16.msrb.mxu3 %v5817_v33  ;;  %v5366_v33 = vor.u32 %v5748_v20, %v5365_v41 }
 0x490   : > { %3619 = vmatpush.bf16.msrb.mxu0 %v5290_v37  ;;  %v5319_v37 = vld [vmem:[%s8155_s6 + $0x18c] sm:$0xf0] }
 0x491   : > { %3578 = vmatpush.bf16.msra.mxu1 %v5274_v49  ;;  %3538 = vmatpush.bf16.msrb.mxu2 %v5246_v59  ;;  %v5353_v59 = vld [vmem:[%s8155_s6 + $0x1c8] sm:$0xf] }
 0x492   : > { %v5354_v7 = vor.u32 %v5745_v2, %v5353_v59  ;;  %v5181_v2 = vld [vmem:[%s8155_s6 + $0x68] sm:$0xf] }
 0x493   : > { %3113 = vmatpush.bf16.msrb.mxu3 %v5816_v4  ;;  %v5370_v4 = vor.u32 %v5747_v3, %v5367_v8  ;;  %v5193_v3 = vld [vmem:[%s8155_s6 + $0x80] sm:$0xf]  ;;  %v5704_v8 = vld [vmem:[%s8155_s6 + $0x88] sm:$0xf0] }
 0x494   : > { %v5194_v59 = vor.u32 %v5704_v8, %v5193_v3  ;;  %v5838_v3 = vld [vmem:[%s8159_s10 + $0x38] sm:$0xff] }
 0x495   : > { %3579 = vmatpush.bf16.msra.mxu1 %v5262_v18  ;;  %3539 = vmatpush.bf16.msrb.mxu2 %v5234_v56  ;;  %v5278_v18 = vor.u32 %v5725_v28, %v5277_v54  ;;  %v5355_v56 = vld [vmem:[%s8155_s6 + $0x1d4] sm:$0xf0]  ;;  %v5325_v54 = vld [vmem:[%s8155_s6 + $0x188] sm:$0xf]  ;;  %v5737_v28 = vld [vmem:[%s8155_s6 + $0x190] sm:$0xf0] }
 0x496   : > { %v5846_v8 = vld [vmem:[%s8159_s10 + $0x78] sm:$0xff] }
 0x497   : > { %3114 = vmatpush.bf16.msrb.mxu3 %v5815_v1  ;;  %3620 = vmatpush.bf16.msrb.mxu0 %v5278_v18  ;;  %v5722_v1 = vld [vmem:[%s8155_s6 + $0x118] sm:$0xf0]  ;;  %v5326_v18 = vor.u32 %v5737_v28, %v5325_v54 }
 0x499   : > { %3580 = vmatpush.bf16.msra.mxu1 %v5250_v40  ;;  %3540 = vmatpush.bf16.msrb.mxu2 %v5222_v19  ;;  %v5265_v40 = vld [vmem:[%s8155_s6 + $0x110] sm:$0xf]  ;;  %v5329_v19 = vld [vmem:[%s8155_s6 + $0x198] sm:$0xf] }
 0x49a   : > { %3115 = vmatmul.bf16.vlgmr.msrb.gmra.mxu3 %v2899_v51  ;;  %v5750_v51 = vld [vmem:[%s8155_s6 + $0x1fc] sm:$0xf]  ;;  %v5266_v27 = vor.u32 %v5722_v1, %v5265_v40  ;;  %v5157_v40 = vld [vmem:[%s8155_s6 + $0x38] sm:$0xf] }
 0x49b   : > { %3547 = vmatpush.bf16.msra.mxu3 %v5402_v12  ;;  %v5382_v49 = vor.u32 %v5750_v51, %v5379_v60  ;;  %v5358_v12 = vor.u32 %v5744_v63, %v5355_v56  ;;  %v5735_v60 = vld [vmem:[%s8155_s6 + $0x184] sm:$0xf]  ;;  %v5145_v63 = vld [vmem:[%s8155_s6 + $0x20] sm:$0xf]  ;;  %v5692_v56 = vld [vmem:[%s8155_s6 + $0x28] sm:$0xf0] }
 0x49c   : > { %3541 = vmatmul.bf16.vlgmr.msrb.gmra.mxu2 %v6051_v14  ;;  %3621 = vmatpush.bf16.msrb.mxu0 %v5266_v27  ;;  %v5322_v53 = vor.u32 %v5735_v60, %v5319_v37  ;;  %v5146_v1 = vor.u32 %v5692_v56, %v5145_v63  ;;  %v5834_v56 = vld [vmem:[%s8159_s10 + $0x18] sm:$0xff] }
 0x49d   : > { %3581 = vmatpush.bf16.msra.mxu1 %v5238_v34  ;;  %3589 = vmatpush.bf16.msra.mxu2 %v5406_v6  ;;  %v5342_v34 = vor.u32 %v5742_v52, %v5341_v24  ;;  %v5346_v6 = vor.u32 %v5741_v16, %v5343_v62  ;;  %v5133_v24 = vld [vmem:[%s8155_s6 + $0x8] sm:$0xf]  ;;  %v5689_v52 = vld [vmem:[%s8155_s6 + $0x10] sm:$0xf0] }
 0x49e   : > { %v5134_v27 = vor.u32 %v5689_v52, %v5133_v24  ;;  %v5842_v24 = vld [vmem:[%s8159_s10 + $0x58] sm:$0xff] }
 0x49f   : > { %3548 = vmatpush.bf16.msra.mxu3 %v5390_v32  ;;  %v5330_v32 = vor.u32 %v5739_v25, %v5329_v19 }
 0x4a0   : > { %3622 = vmatpush.bf16.msrb.mxu0 %v5254_v15  ;;  %v8006_v15 = vpop.f32.mrf.mxu0 }
 0x4a1   : > { %3582 = vmatpush.bf16.msra.mxu1 %v5226_v48  ;;  %3590 = vmatpush.bf16.msra.mxu2 %v5394_v46  ;;  %v5317_v48 = vld [vmem:[%s8155_s6 + $0x180] sm:$0xf] }
 0x4a2   : > { %v5337_v46 = vld [vmem:[%s8155_s6 + $0x1a0] sm:$0xf]  ;;  %v5318_v51 = vor.u32 %v5736_v0, %v5317_v48 }
 0x4a3   : > { %3549 = vmatpush.bf16.msra.mxu3 %v5378_v47  ;;  %v5713_v47 = vld [vmem:[%s8155_s6 + $0xd0] sm:$0xf0] }
 0x4a4   : > { %3583 = vmatmul.bf16.vlgmr.msra.gmra.mxu1 %v6051_v14  ;;  %3623 = vmatpush.bf16.msrb.mxu0 %v5242_v35  ;;  %v5230_v41 = vor.u32 %v5713_v47, %v5229_v45 }
 0x4a5   : > { %3631 = vmatpush.bf16.msrb.mxu1 %v5410_v36  ;;  %3591 = vmatpush.bf16.msra.mxu2 %v5382_v49  ;;  %v5710_v36 = vld [vmem:[%s8155_s6 + $0xb8] sm:$0xf0]  ;;  %v5338_v49 = vor.u32 %v5740_v26, %v5337_v46 }
 0x4a6   : > { %v5218_v20 = vor.u32 %v5710_v36, %v5217_v22 }
 0x4a7   : > { %3550 = vmatpush.bf16.msra.mxu3 %v5366_v33 }
 0x4a8   : > { %3624 = vmatpush.bf16.msrb.mxu0 %v5230_v41  ;;  %v8012_v10 = vpop.f32.mrf.mxu0 }
 0x4a9   : > { %3632 = vmatpush.bf16.msrb.mxu1 %v5398_v23  ;;  %3592 = vmatpush.bf16.msra.mxu2 %v5370_v4  ;;  %v5205_v23 = vld [vmem:[%s8155_s6 + $0x98] sm:$0xf] }
 0x4aa   : > { %v5206_v33 = vor.u32 %v5707_v43, %v5205_v23 }
 0x4ab   : > { %3551 = vmatpush.bf16.msra.mxu3 %v5354_v7  ;;  %3625 = vmatmul.bf16.vlgmr.msrb.gmra.mxu0 %v6051_v14  ;;  %v5169_v14 = vld [vmem:[%s8155_s6 + $0x50] sm:$0xf]  ;;  %v5695_v7 = vld [vmem:[%s8155_s6 + $0x40] sm:$0xf0] }
 0x4ac   : > { %v5170_v17 = vor.u32 %v5698_v21, %v5169_v14  ;;  %v5836_v14 = vld [vmem:[%s8159_s10 + $0x28] sm:$0xff] }
 0x4ad   : > { %3633 = vmatpush.bf16.msrb.mxu1 %v5386_v42  ;;  %3593 = vmatpush.bf16.msra.mxu2 %v5358_v12  ;;  %v5701_v42 = vld [vmem:[%s8155_s6 + $0x70] sm:$0xf0] }
 0x4ae   : > { %v5182_v4 = vor.u32 %v5701_v42, %v5181_v2  ;;  %v5845_v42 = vld [vmem:[%s8159_s10 + $0x70] sm:$0xff] }
 0x4af   : > { %3552 = vmatpush.bf16.msra.mxu3 %v5342_v34 }
 0x4b1   : > { %3634 = vmatpush.bf16.msrb.mxu1 %v5374_v38  ;;  %3594 = vmatpush.bf16.msra.mxu2 %v5346_v6 }
 0x4b3   : > { %3553 = vmatpush.bf16.msra.mxu3 %v5330_v32 }
 0x4b5   : > { %3635 = vmatpush.bf16.msrb.mxu1 %v5362_v61  ;;  %3595 = vmatpush.bf16.msra.mxu2 %v5334_v50  ;;  %v2873_v50 = vpop.f32.mrf.mxu0 }
 0x4b7   : > { %3554 = vmatpush.bf16.msra.mxu3 %v5318_v51 }
 0x4b9   : > { %3636 = vmatpush.bf16.msrb.mxu1 %v5350_v44  ;;  %3596 = vmatpush.bf16.msra.mxu2 %v5322_v53 }
 0x4ba   : > { %3555 = vmatmul.bf16.vlgmr.msra.gmra.mxu3 %v6043_v9 }
 0x4bb   : > { %3603 = vmatpush.bf16.msrb.mxu3 %v5218_v20 }
 0x4bc   : > { %3597 = vmatmul.bf16.vlgmr.msra.gmra.mxu2 %v6043_v9 }
 0x4bd   : > { %3637 = vmatpush.bf16.msrb.mxu1 %v5338_v49  ;;  %v2875_v43 = vpop.f32.mrf.mxu0  ;;  %3912 = vmatpush.bf16.msrb.mxu2 %v5838_v3 }
 0x4bf   : > { %3604 = vmatpush.bf16.msrb.mxu3 %v5206_v33 }
 0x4c1   : > { %3638 = vmatpush.bf16.msrb.mxu1 %v5326_v18  ;;  %v2360_v38 = vpop.f32.mrf.mxu1  ;;  %v5837_v18 = vld [vmem:[%s8159_s10 + $0x30] sm:$0xff] }
 0x4c2   : > { %v2361_v31 = vadd.f32 %v5877_v13, %v2360_v38  ;;  %3913 = vmatpush.bf16.msrb.mxu2 %v5837_v18  ;;  %v5833_v38 = vld [vmem:[%s8159_s10 + $0x10] sm:$0xff] }
 0x4c3   : > { %3605 = vmatpush.bf16.msrb.mxu3 %v5194_v59 }
 0x4c4   : > { %3639 = vmatmul.bf16.vlgmr.msrb.gmra.mxu1 %v6043_v9  ;;  %v5158_v9 = vor.u32 %v5695_v7, %v5157_v40  ;;  %v5835_v40 = vld [vmem:[%s8159_s10 + $0x20] sm:$0xff] }
 0x4c5   : > { %v8037_v59 = vpop.f32.mrf.mxu0 }
 0x4c6   : > { %3914 = vmatpush.bf16.msrb.mxu2 %v5836_v14 }
 0x4c7   : > { %3606 = vmatpush.bf16.msrb.mxu3 %v5182_v4 }
 0x4c9   : > { %v2362_v12 = vpop.f32.mrf.mxu1 }
 0x4ca   : > { %v2363_v61 = vadd.f32 %v5877_v13, %v2362_v12  ;;  %3915 = vmatpush.bf16.msrb.mxu2 %v5835_v40  ;;  %v5841_v12 = vld [vmem:[%s8159_s10 + $0x50] sm:$0xff] }
 0x4cb   : > { %3607 = vmatpush.bf16.msrb.mxu3 %v5170_v17  ;;  %v5844_v17 = vld [vmem:[%s8159_s10 + $0x68] sm:$0xff] }
 0x4cd   : > { %v8058_v63 = vpop.f32.mrf.mxu0 }
 0x4ce   : > { %3916 = vmatpush.bf16.msrb.mxu2 %v5834_v56 }
 0x4cf   : > { %3608 = vmatpush.bf16.msrb.mxu3 %v5158_v9  ;;  %v5843_v9 = vld [vmem:[%s8159_s10 + $0x60] sm:$0xff] }
 0x4d1   : > { %v8008_v19 = vpop.f32.mrf.mxu1 }
 0x4d2   : > { %3917 = vmatpush.bf16.msrb.mxu2 %v5833_v38 }
 0x4d3   : > { %3609 = vmatpush.bf16.msrb.mxu3 %v5146_v1 }
 0x4d7   : > { %3610 = vmatpush.bf16.msrb.mxu3 %v5134_v27 }
 0x4d9   : > { %v8014_v48 = vpop.f32.mrf.mxu1 }
 0x4da   : > { %3611 = vmatmul.bf16.vlgmr.msrb.gmra.mxu3 %v6038_v5 }
 0x4db   : > { %3926 = vmatpush.bf16.msra.mxu3 %v5846_v8 }
 0x4df   : > { %v2374_v11 = vpop.f32.mrf.mxu2  ;;  %3927 = vmatpush.bf16.msra.mxu3 %v5845_v42 }
 0x4e0   : > { %v2375_v34 = vadd.f32 %v2374_v11, %v2361_v31  ;;  %v2832_v11 = vadd.f32 %v8008_v19, %v8006_v15 }
 0x4e1   : > { %v2887_v26 = vpop.f32.mrf.mxu1 }
 0x4e3   : > { %3928 = vmatpush.bf16.msra.mxu3 %v5844_v17  ;;  %v5852_v17 = vld [vmem:[%s8159_s10 + $0xa8] sm:$0xff] }
 0x4e7   : > { %v2376_v58 = vpop.f32.mrf.mxu2  ;;  %3929 = vmatpush.bf16.msra.mxu3 %v5843_v9 }
 0x4e8   : > { %v2377_v5 = vadd.f32 %v2376_v58, %v2363_v61 }
 0x4e9   : > { %v8026_v54 = vpop.f32.mrf.mxu1 }
 0x4eb   : > { %3930 = vmatpush.bf16.msra.mxu3 %v5842_v24  ;;  %v3570_v31 = vpop.f32.mrf.mxu0 }
 0x4ef   : > { %v8010_v30 = vpop.f32.mrf.mxu2  ;;  %3931 = vmatpush.bf16.msra.mxu3 %v5841_v12 }
 0x4f0   : > { %v2846_v13 = vadd.f32 %v8010_v30, %v2832_v11 }
 0x4f7   : > { %v8016_v44 = vpop.f32.mrf.mxu2 }
 0x4fd   : > { %v2388_v16 = vpop.f32.mrf.mxu3 }
 0x4fe   : > { %v2389_v62 = vadd.f32 %v2388_v16, %v2375_v34  ;;  %v8080_v16 = vld [vmem:[%s8158_s9] sm:$0x7] }
 0x4ff   : > { %v8018_v41 = vpop.f32.mrf.mxu2 }
 0x500   : > { %v2395_v25 = vmul.f32 0.044715, %v2389_v62  ;;  %v2393_v37 = vmul.f32 0.5, %v2389_v62 }
 0x501   : > { %v3528_v4 = vpop.f32.mrf.mxu1 }
 0x502   : > { %v2397_v6 = vmul.f32 %v2395_v25, %v2389_v62  ;;  %v3529_v15 = vadd.f32 %v3528_v4, %v2846_v13  ;;  %v5840_v25 = vld [vmem:[%s8159_s10 + $0x48] sm:$0xff]  ;;  %v5850_v13 = vld [vmem:[%s8159_s10 + $0x98] sm:$0xff] }
 0x503   : > { %3932 = vmatpush.bf16.msra.mxu3 %v5840_v25 }
 0x504   : > { %v2399_v29 = vmul.f32 %v2397_v6, %v2389_v62  ;;  %v3647_v6 = vperm.slane %v8080_v16, 0 }
 0x505   : > { %v2390_v55 = vpop.f32.mrf.mxu3 }
 0x506   : > { %v2401_v32 = vadd.f32 %v2399_v29, %v2389_v62  ;;  %v2391_v39 = vadd.f32 %v2390_v55, %v2377_v5  ;;  %v5832_v62 = vld [vmem:[%s8159_s10 + $0x8] sm:$0xff]  ;;  %v5831_v55 = vld [vmem:[%s8159_s10] sm:$0xff] }
 0x507   : > { %v8039_v2 = vpop.f32.mrf.mxu2  ;;  %3918 = vmatpush.bf16.msrb.mxu2 %v5832_v62  ;;  %v5849_v62 = vld [vmem:[%s8159_s10 + $0x90] sm:$0xff] }
 0x508   : > { %v2396_v57 = vmul.f32 0.044715, %v2391_v39  ;;  %v2403_v0 = vmul.f32 0.7978846, %v2401_v32  ;;  %v2394_v20 = vmul.f32 0.5, %v2391_v39  ;;  %v2834_v32 = vadd.f32 %v8014_v48, %v8012_v10  ;;  %v5854_v48 = vld [vmem:[%s8159_s10 + $0xb8] sm:$0xff] }
 0x509   : > { %v3530_v1 = vpop.f32.mrf.mxu1  ;;  %3940 = vmatpush.bf16.msra.mxu0 %v5854_v48 }
 0x50a   : > { %v2398_v35 = vmul.f32 %v2396_v57, %v2391_v39  ;;  %5907 = vtanh.f32 %v2403_v0  ;;  %v3648_v0 = vperm.slane %v8080_v16, 1 }
 0x50b   : > { %3919 = vmatpush.bf16.msrb.mxu2 %v5831_v55 }
 0x50c   : > { %v2400_v22 = vmul.f32 %v2398_v35, %v2391_v39  ;;  %v5839_v35 = vld [vmem:[%s8159_s10 + $0x40] sm:$0xff] }
 0x50d   : > { %v2859_v47 = vpop.f32.mrf.mxu3  ;;  %3933 = vmatpush.bf16.msra.mxu3 %v5839_v35 }
 0x50e   : > { %v2402_v36 = vadd.f32 %v2400_v22, %v2391_v39  ;;  %v2874_v52 = vadd.f32 %v2873_v50, %v2859_v47  ;;  %v2848_v22 = vadd.f32 %v8016_v44, %v2834_v32  ;;  %v3572_v47 = vpop.f32.mrf.mxu0 }
 0x510   : > { %v2404_v46 = vmul.f32 0.7978846, %v2402_v36  ;;  %v5908_v45 = vpop.eup %5907  ;;  %v2888_v34 = vadd.f32 %v2887_v26, %v2874_v52  ;;  %v5851_v52 = vld [vmem:[%s8159_s10 + $0xa0] sm:$0xff] }
 0x511   : > { %v2407_v51 = vadd.f32 1.0, %v5908_v45  ;;  %v3531_v45 = vadd.f32 %v3530_v1, %v2848_v22 }
 0x512   : > { %5909 = vtanh.f32 %v2404_v46  ;;  %v3571_v5 = vadd.f32 %v3570_v31, %v2888_v34 }
 0x513   : > { %v2409_v49 = vmul.f32 %v2407_v51, %v2393_v37 }
 0x515   : > { %v2861_v33 = vpop.f32.mrf.mxu3 }
 0x516   : > { %v2876_v29 = vadd.f32 %v2875_v43, %v2861_v33 }
 0x518   : > { %v5910_v60 = vpop.eup %5909  ;;  %v2890_v50 = vadd.f32 %v8026_v54, %v2876_v29  ;;  %v5853_v54 = vld [vmem:[%s8159_s10 + $0xb0] sm:$0xff] }
 0x519   : > { %v2408_v23 = vadd.f32 1.0, %v5910_v60  ;;  %3941 = vmatpush.bf16.msra.mxu0 %v5853_v54 }
 0x51a   : > { %v3573_v44 = vadd.f32 %v3572_v47, %v2890_v50 }
 0x51b   : > { %v2410_v53 = vmul.f32 %v2408_v23, %v2394_v20 }
 0x51d   : > { %v5858_v28 = vpack.c.bf16 %v2410_v53, %v2409_v49  ;;  %v8047_v21 = vpop.f32.mrf.mxu3  ;;  %3942 = vmatpush.bf16.msra.mxu0 %v5852_v17 }
 0x51f   : > { %5859 = vst [vmem:[%s536_s28] sm:$0xff] %v5858_v28   ;;  %v3542_v7 = vpop.f32.mrf.mxu2 }
 0x520   : > { %v3543_v61 = vadd.f32 %v3542_v7, %v3529_v15  ;;  %v3117_v15 = vadd.f32 %v8047_v21, %v8018_v41 }
 0x521   : > { %v3584_v19 = vpop.f32.mrf.mxu1  ;;  %3943 = vmatpush.bf16.msra.mxu0 %v5851_v52 }
 0x522   : > { %v3585_v57 = vadd.f32 %v3584_v19, %v3571_v5  ;;  %v3131_v5 = vadd.f32 %v8037_v59, %v3117_v15 }
 0x525   : > { %v8066_v27 = vpop.f32.mrf.mxu3  ;;  %3944 = vmatpush.bf16.msra.mxu0 %v5850_v13 }
 0x526   : > { %v3119_v41 = vadd.f32 %v8066_v27, %v8039_v2 }
 0x527   : > { %v3544_v58 = vpop.f32.mrf.mxu2 }
 0x528   : > { %v3545_v37 = vadd.f32 %v3544_v58, %v3531_v45  ;;  %v3626_v55 = vpop.f32.mrf.mxu0 }
 0x529   : > { %v3586_v60 = vpop.f32.mrf.mxu1  ;;  %3945 = vmatpush.bf16.msra.mxu0 %v5849_v62 }
 0x52a   : > { %v3587_v28 = vadd.f32 %v3586_v60, %v3573_v44  ;;  %v3133_v44 = vadd.f32 %v8058_v63, %v3119_v41 }
 0x53d   : > { %v3556_v30 = vpop.f32.mrf.mxu3 }
 0x53e   : > { %v3557_v39 = vadd.f32 %v3556_v30, %v3543_v61  ;;  %v5848_v61 = vld [vmem:[%s8159_s10 + $0x88] sm:$0xff] }
 0x53f   : > { %v3598_v46 = vpop.f32.mrf.mxu2  ;;  %3946 = vmatpush.bf16.msra.mxu0 %v5848_v61 }
 0x540   : > { %v3653_v36 = vadd.f32 %v3647_v6, %v3557_v39  ;;  %v3599_v26 = vadd.f32 %v3598_v46, %v3585_v57  ;;  %v5847_v46 = vld [vmem:[%s8159_s10 + $0x80] sm:$0xff] }
 0x541   : > { %v3640_v21 = vpop.f32.mrf.mxu1 }
 0x542   : > { %v3665_v10 = vmul.f32 0.044715, %v3653_v36  ;;  %v8103_v51 = vadd.f32 %v3648_v0, %v3599_v26  ;;  %v3659_v39 = vmul.f32 0.5, %v3653_v36  ;;  %v3649_v26 = vperm.slane %v8080_v16, 2  ;;  %v3628_v16 = vpop.f32.mrf.mxu0 }
 0x543   : > { %3947 = vmatpush.bf16.msra.mxu0 %v5847_v46 }
 0x544   : > { %v3671_v20 = vmul.f32 %v3665_v10, %v3653_v36  ;;  %v3666_v23 = vmul.f32 0.044715, %v8103_v51 }
 0x545   : > { %v3558_v43 = vpop.f32.mrf.mxu3 }
 0x546   : > { %v3677_v49 = vmul.f32 %v3671_v20, %v3653_v36  ;;  %v3559_v53 = vadd.f32 %v3558_v43, %v3545_v37  ;;  %v3672_v33 = vmul.f32 %v3666_v23, %v8103_v51 }
 0x547   : > { %v3600_v18 = vpop.f32.mrf.mxu2 }
 0x548   : > { %v3683_v3 = vadd.f32 %v3677_v49, %v3653_v36  ;;  %v3656_v8 = vadd.f32 %v3647_v6, %v3559_v53  ;;  %v3678_v42 = vmul.f32 %v3672_v33, %v8103_v51  ;;  %v3601_v4 = vadd.f32 %v3600_v18, %v3587_v28 }
 0x549   : > { %v3660_v36 = vmul.f32 0.5, %v8103_v51 }
 0x54a   : > { %v3668_v14 = vmul.f32 0.044715, %v3656_v8  ;;  %v3684_v40 = vadd.f32 %v3678_v42, %v8103_v51  ;;  %v3657_v7 = vadd.f32 %v3648_v0, %v3601_v4  ;;  %v3689_v9 = vmul.f32 0.7978846, %v3683_v3  ;;  %v3642_v51 = vpop.f32.mrf.mxu1 }
 0x54b   : > { %v3662_v57 = vmul.f32 0.5, %v3656_v8 }
 0x54c   : > { %v3674_v56 = vmul.f32 %v3668_v14, %v3656_v8  ;;  %v3669_v1 = vmul.f32 0.044715, %v3657_v7  ;;  %v3690_v38 = vmul.f32 0.7978846, %v3684_v40  ;;  %5911 = vtanh.f32 %v3689_v9 }
 0x54d   : > { %v3663_v10 = vmul.f32 0.5, %v3657_v7 }
 0x54e   : > { %v3680_v24 = vmul.f32 %v3674_v56, %v3656_v8  ;;  %v3675_v11 = vmul.f32 %v3669_v1, %v3657_v7  ;;  %5913 = vtanh.f32 %v3690_v38 }
 0x550   : > { %v3686_v12 = vadd.f32 %v3680_v24, %v3656_v8  ;;  %v3681_v31 = vmul.f32 %v3675_v11, %v3657_v7 }
 0x552   : > { %v3692_v58 = vmul.f32 0.7978846, %v3686_v12  ;;  %v3687_v34 = vadd.f32 %v3681_v31, %v3657_v7  ;;  %v5912_v25 = vpop.eup %5911  ;;  %v5878_v31 = vld [vmem:[%s8160_s11] ss:$0 sm:$0xff] }
 0x553   : > { %v3701_v29 = vadd.f32 1.0, %v5912_v25 }
 0x554   : > { %5915 = vtanh.f32 %v3692_v58  ;;  %v3693_v19 = vmul.f32 0.7978846, %v3687_v34  ;;  %v5914_v6 = vpop.eup %5913 }
 0x555   : > { %v3702_v22 = vadd.f32 1.0, %v5914_v6  ;;  %v3707_v45 = vmul.f32 %v3701_v29, %v3659_v39 }
 0x556   : > { %5917 = vtanh.f32 %v3693_v19 }
 0x557   : > { %v3708_v2 = vmul.f32 %v3702_v22, %v3660_v36 }
 0x55a   : > { %v5916_v30 = vpop.eup %5915 }
 0x55b   : > { %v3704_v35 = vadd.f32 1.0, %v5916_v30 }
 0x55c   : > { %v5918_v50 = vpop.eup %5917 }
 0x55d   : > { %v3612_v32 = vpop.f32.mrf.mxu3  ;;  %v3710_v47 = vmul.f32 %v3704_v35, %v3662_v57  ;;  %v3705_v48 = vadd.f32 1.0, %v5918_v50 }
 0x55e   : > { %v3613_v0 = vadd.f32 %v3612_v32, %v3131_v5 }
 0x55f   : > { %v3713_v37 = vpack.c.bf16 %v3710_v47, %v3707_v45  ;;  %v3711_v27 = vmul.f32 %v3705_v48, %v3663_v10 }
 0x560   : > { %v3627_v59 = vadd.f32 %v3626_v55, %v3613_v0 }
 0x561   : > { %3920 = vmatmul.bf16.vlgmr.msrb.gmra.mxu2 %v3713_v37  ;;  %v3714_v43 = vpack.c.bf16 %v3711_v27, %v3708_v2 }
 0x562   : > { %v3641_v60 = vadd.f32 %v3640_v21, %v3627_v59 }
 0x563   : > { %3934 = vmatmul.bf16.vlgmr.msra.gmra.mxu3 %v3714_v43 }
 0x564   : > { %v3655_v20 = vadd.f32 %v3649_v26, %v3641_v60 }
 0x565   : > { %v3614_v23 = vpop.f32.mrf.mxu3 }
 0x566   : > { %v3667_v49 = vmul.f32 0.044715, %v3655_v20  ;;  %v3615_v53 = vadd.f32 %v3614_v23, %v3133_v44  ;;  %v3661_v1 = vmul.f32 0.5, %v3655_v20 }
 0x568   : > { %v3673_v54 = vmul.f32 %v3667_v49, %v3655_v20  ;;  %v3629_v28 = vadd.f32 %v3628_v16, %v3615_v53 }
 0x56a   : > { %v3679_v33 = vmul.f32 %v3673_v54, %v3655_v20  ;;  %v3643_v3 = vadd.f32 %v3642_v51, %v3629_v28 }
 0x56c   : > { %v3658_v8 = vadd.f32 %v3649_v26, %v3643_v3  ;;  %v3685_v18 = vadd.f32 %v3679_v33, %v3655_v20 }
 0x56e   : > { %v3670_v42 = vmul.f32 0.044715, %v3658_v8  ;;  %v3691_v14 = vmul.f32 0.7978846, %v3685_v18  ;;  %v3664_v24 = vmul.f32 0.5, %v3658_v8 }
 0x570   : > { %v3676_v4 = vmul.f32 %v3670_v42, %v3658_v8  ;;  %5919 = vtanh.f32 %v3691_v14 }
 0x572   : > { %v3682_v17 = vmul.f32 %v3676_v4, %v3658_v8 }
 0x574   : > { %v3688_v40 = vadd.f32 %v3682_v17, %v3658_v8 }
 0x576   : > { %v3694_v63 = vmul.f32 0.7978846, %v3688_v40  ;;  %v5920_v7 = vpop.eup %5919 }
 0x577   : > { %v3703_v9 = vadd.f32 1.0, %v5920_v7 }
 0x578   : > { %5921 = vtanh.f32 %v3694_v63 }
 0x579   : > { %v3709_v38 = vmul.f32 %v3703_v9, %v3661_v1 }
 0x57e   : > { %v5922_v56 = vpop.eup %5921 }
 0x57f   : > { %v3706_v52 = vadd.f32 1.0, %v5922_v56 }
 0x581   : > { %v3712_v11 = vmul.f32 %v3706_v52, %v3664_v24 }
 0x583   : > { %v3715_v12 = vpack.c.bf16 %v3712_v11, %v3709_v38 }
 0x585   : > { %3948 = vmatmul.bf16.vlgmr.msra.gmra.mxu0 %v3715_v12 }
 0x5e4   : > { %v3921_v13 = vpop.f32.mrf.mxu2 }
 0x5e5   : > { %v3922_v34 = vadd.f32 %v5878_v31, %v3921_v13 }
 0x5e6   : > { %v3935_v58 = vpop.f32.mrf.mxu3 }
 0x5e7   : > { %v3936_v62 = vadd.f32 %v3935_v58, %v3922_v34 }
 0x5ec   : > { %v3923_v15 = vpop.f32.mrf.mxu2 }
 0x5ed   : > { %v3924_v61 = vadd.f32 %v5878_v31, %v3923_v15 }
 0x5ee   : > { %v3937_v5 = vpop.f32.mrf.mxu3 }
 0x5ef   : > { %v3938_v30 = vadd.f32 %v3937_v5, %v3924_v61 }
 0x602   : > { %v3949_v19 = vpop.f32.mrf.mxu0 }
 0x603   : > { %v3950_v25 = vadd.f32 %v3949_v19, %v3936_v62 }
 0x605   : > { %v3956_v6 = vmul.f32 0.044715, %v3950_v25  ;;  %v3954_v45 = vmul.f32 0.5, %v3950_v25 }
 0x607   : > { %v3958_v29 = vmul.f32 %v3956_v6, %v3950_v25 }
 0x609   : > { %v3960_v55 = vmul.f32 %v3958_v29, %v3950_v25 }
 0x60a   : > { %v3951_v32 = vpop.f32.mrf.mxu0 }
 0x60b   : > { %v3962_v39 = vadd.f32 %v3960_v55, %v3950_v25  ;;  %v3952_v57 = vadd.f32 %v3951_v32, %v3938_v30 }
 0x60d   : > { %v3957_v0 = vmul.f32 0.044715, %v3952_v57  ;;  %v3964_v35 = vmul.f32 0.7978846, %v3962_v39  ;;  %v3955_v47 = vmul.f32 0.5, %v3952_v57 }
 0x60f   : > { %v3959_v41 = vmul.f32 %v3957_v0, %v3952_v57  ;;  %5923 = vtanh.f32 %v3964_v35 }
 0x611   : > { %v3961_v21 = vmul.f32 %v3959_v41, %v3952_v57 }
 0x613   : > { %v3963_v22 = vadd.f32 %v3961_v21, %v3952_v57 }
 0x615   : > { %v3965_v46 = vmul.f32 0.7978846, %v3963_v22  ;;  %v5924_v50 = vpop.eup %5923 }
 0x616   : > { %v3968_v59 = vadd.f32 1.0, %v5924_v50 }
 0x617   : > { %5925 = vtanh.f32 %v3965_v46 }
 0x618   : > { %v3970_v10 = vmul.f32 %v3968_v59, %v3954_v45 }
 0x61d   : > { %v5926_v26 = vpop.eup %5925 }
 0x61e   : > { %v3969_v36 = vadd.f32 1.0, %v5926_v26 }
 0x620   : > { %v3971_v48 = vmul.f32 %v3969_v36, %v3955_v47 }
 0x622   : > { %v5863_v60 = vpack.c.bf16 %v3971_v48, %v3970_v10 }
 0x624   : > { %5864 = vst [vmem:[%s541_s27] sm:$0xff] %v5863_v60  }
 0x625 PF: > { %s24_s25 = sadd.s32 1, %s5933_s25  }
 0x626   : > { %p21_p4 = scmp.ge.s32.totalorder %s24_s25, 4  }
 0x628   :  { %23 = sbr.rel (!%p21_p4) target bundleno = 1 (0x1), region = 125 }

</bundles_post_ra>
